<compile_context>
chip_gen: v6e
topology: v6e:2x2x1
jax: 0.10.0
libtpu: 0.0.40
codegen_flags: <defaults>
</compile_context>

<pallas_src>
import math

import jax
import jax.numpy as jnp
from jax.experimental import pallas as pl
from jax.experimental.pallas import tpu as pltpu

LATENT_DIM = 512
LR_MUL = 0.01
NEG_SLOPE = 0.2
FLRELU_SCALE = math.sqrt(2.0)
EQL_SCALE = (1.0 / math.sqrt(LATENT_DIM)) * LR_MUL  # EqualLinear weight scale


def _ceil_div(a, b):
    return -(-a // b)


def _round_up(v, m):
    return _ceil_div(v, m) * m


def _make_levels_kernel(steps, zero_slices):
    """Build the fused kernel.

    steps: tuple (one entry per mapper-grid step) of tuples of
           (layer0, n_layers, weight_row_offset) -- all static Python ints.
    zero_slices: ((layer0, n_layers), ...) slices to zero-fill (disabled mappers).
    """
    n_steps = len(steps)

    def kernel(x_ref, w_ref, b_ref, o_ref):
        _, bblk, d = x_ref.shape  # x_ref block: (L, bblk, D), layer-major

        def run_group(layer0, n_l, w0):
            xs = x_ref[layer0:layer0 + n_l]                       # (n_l, bblk, d), free view
            # PixelNorm over the style-layer axis (torch dim=1 on (B, n_l, 512)).
            ms = jnp.mean(xs * xs, axis=0, keepdims=True)
            h = (xs * jax.lax.rsqrt(ms + 1e-8)).reshape(n_l * bblk, d)  # free: bblk % 8 == 0
            h = h.astype(jnp.bfloat16)
            # 4 x EqualLinear + fused leaky-relu (sqrt(2) folded into W and b).
            for i in range(4):
                y = jnp.dot(h, w_ref[w0 + i], preferred_element_type=jnp.float32)
                y = y + b_ref[w0 + i]                             # (1, d) bias, f32
                y = jnp.maximum(y, NEG_SLOPE * y)                 # leaky_relu(y, 0.2)
                h = y.astype(jnp.bfloat16) if i < 3 else y        # carry bf16 between layers
            o_ref[layer0:layer0 + n_l] = h.reshape(n_l, bblk, d).astype(o_ref.dtype)

        def zero_fill():
            for (l0, n_l) in zero_slices:
                o_ref[l0:l0 + n_l] = jnp.zeros((n_l, bblk, d), o_ref.dtype)

        def run_step(groups_in_step):
            for (l0, n_l, w0) in groups_in_step:
                run_group(l0, n_l, w0)

        if n_steps == 1:
            zero_fill()
            run_step(steps[0])
        else:
            m = pl.program_id(1)  # mapper axis (inner, "arbitrary")
            if zero_slices:
                @pl.when(m == 0)
                def _():
                    zero_fill()
            for mi in range(n_steps):
                @pl.when(m == mi)
                def _(groups_in_step=steps[mi]):
                    run_step(groups_in_step)

    return kernel


def levels_mapper(x, params, no_coarse_mapper=False, no_medium_mapper=False,
                  no_fine_mapper=False, block_b=64):
    """LevelsMapper.forward. x: (B, num_layers >= 8, 512) float32 -> same shape, float32."""
    B, L, D = x.shape
    assert L >= 8, "LevelsMapper expects at least 8 style layers"
    W_all, b_all = params["W"], params["b"]  # (12, D, D) bf16, (12, 1, D) f32

    bounds = ((0, 4), (4, 4), (8, L - 8))
    enabled_flags = (not no_coarse_mapper, not no_medium_mapper, not no_fine_mapper)
    groups, zero_slices = [], []
    for gi, ((l0, n_l), on) in enumerate(zip(bounds, enabled_flags)):
        if n_l <= 0:
            continue
        if on:
            groups.append((l0, n_l, gi))
        else:
            zero_slices.append((l0, n_l))

    if not groups:                      # everything disabled -> torch.zeros_like(x)
        return jnp.zeros_like(x)

    n_en = len(groups)
    # Ship ONLY the enabled mappers' weights/biases to the kernel (no DMA for disabled).
    if n_en == 3:
        W_en, b_en = W_all, b_all
    else:
        W_en = jnp.concatenate([W_all[4 * gi:4 * gi + 4] for (_, _, gi) in groups], axis=0)
        b_en = jnp.concatenate([b_all[4 * gi:4 * gi + 4] for (_, _, gi) in groups], axis=0)

    # Batch tile: multiple of 8 sublanes; aim for ~4 grid steps at medium/large B so
    # v7x's two TensorCores both get work and x/out DMA pipelines under compute.
    block_b = max(8, _round_up(block_b, 8))
    bblk = max(8, min(block_b, _round_up(_ceil_div(B, 4), 8)))
    Bp = _round_up(B, bblk)
    nb = Bp // bblk

    # Layer-major internal layout: mapper slices and the (n_l*bblk, D) flatten are
    # layout-free inside the kernel.  (Transpose/pad/slice are fused by XLA; negligible
    # at the small-B inference sizes this module is used at.)
    xt = jnp.swapaxes(x, 0, 1)                                   # (L, B, D)
    if Bp != B:
        xt = jnp.pad(xt, ((0, 0), (0, Bp - B), (0, 0)))

    if nb == 1:
        # Small batch: weight-DMA-latency bound.  Inner mapper grid axis with per-group
        # (4, D, D) weight blocks -> group m+1's weights prefetch under group m's compute.
        n_m = n_en
        steps = tuple(((l0, n_l, 0),) for (l0, n_l, _) in groups)
        w_spec = pl.BlockSpec((4, D, D), lambda b, m: (m, 0, 0))
        bias_spec = pl.BlockSpec((4, 1, D), lambda b, m: (m, 0, 0))
        w_block_bytes = 4 * D * D * 2
    else:
        # Larger batch: grid-invariant weight block -> fetched once, never re-fetched
        # per batch tile (avoids nb * 6 MiB of redundant weight HBM traffic).
        n_m = 1
        steps = (tuple((l0, n_l, 4 * s) for s, (l0, n_l, _) in enumerate(groups)),)
        w_spec = pl.BlockSpec((4 * n_en, D, D), lambda b, m: (0, 0, 0))
        bias_spec = pl.BlockSpec((4 * n_en, 1, D), lambda b, m: (0, 0, 0))
        w_block_bytes = 4 * n_en * D * D * 2

    x_spec = pl.BlockSpec((L, bblk, D), lambda b, m: (0, b, 0))
    out_spec = pl.BlockSpec((L, bblk, D), lambda b, m: (0, b, 0))

    # VMEM budget: x + out tiles double-buffered, weights (conservatively) double-buffered,
    # plus headroom for in-kernel intermediates.  Stays well inside v7x's 64 MiB.
    x_tile_bytes = L * bblk * D * 4
    vmem_limit = int(min(2 * 2 * x_tile_bytes + 2 * w_block_bytes + (8 << 20), 56 << 20))

    rows = sum(n_l for (_, n_l, _) in groups)
    cost = pl.CostEstimate(
        flops=int(2 * 4 * D * D * rows * B),
        transcendentals=int(rows * B),                           # PixelNorm rsqrt
        bytes_accessed=int(x.size * x.dtype.itemsize + B * L * D * 4
                           + W_en.size * 2 + b_en.size * 4),
    )

    kernel = _make_levels_kernel(steps, tuple(zero_slices))

    out_t = pl.pallas_call(
        kernel,
        out_shape=jax.ShapeDtypeStruct((L, Bp, D), jnp.float32),
        grid=(nb, n_m),
        in_specs=[x_spec, w_spec, bias_spec],
        out_specs=out_spec,
        compiler_params=pltpu.CompilerParams(
            dimension_semantics=("parallel", "arbitrary"),
            vmem_limit_bytes=vmem_limit,
        ),
        cost_estimate=cost,
    )(xt, W_en, b_en)

    out = jnp.swapaxes(out_t, 0, 1)                              # (Bp, L, D)
    return out[:B] if Bp != B else out


def init_levels_mapper_params(key, randomize_bias=False):
    """Params for coarse/medium/fine mappers (4 EqualLinear layers each = 12 total).

    Matches EqualLinear.__init__: weight = randn(out, in) / lr_mul, bias = 0
    (optionally randomized so the bias path is numerically exercised).
    Returns kernel params (pre-scaled, pre-transposed, sqrt(2)-folded, bf16 weights)
    packed as (12, 512, 512) / (12, 1, 512), plus raw torch-layout f32 params.
    """
    raw_w, raw_b, kw, kb = [], [], [], []
    for _ in range(12):
        key, sub = jax.random.split(key)
        w = jax.random.normal(sub, (LATENT_DIM, LATENT_DIM), jnp.float32) / LR_MUL  # (out, in)
        if randomize_bias:
            key, sub = jax.random.split(key)
            b = 10.0 * jax.random.normal(sub, (LATENT_DIM,), jnp.float32)
        else:
            b = jnp.zeros((LATENT_DIM,), jnp.float32)
        raw_w.append(w)
        raw_b.append(b)
        kw.append((FLRELU_SCALE * EQL_SCALE * w).T.astype(jnp.bfloat16))  # (in, out) bf16
        kb.append((FLRELU_SCALE * LR_MUL * b).astype(jnp.float32))
    params = {"W": jnp.stack(kw), "b": jnp.stack(kb)[:, None, :]}
    return key, params, (raw_w, raw_b)


def _ref_levels_mapper_matched(x, params):
    """Pure-JAX reference using the SAME packed bf16 params / numerics as the kernel."""
    W, bias = params["W"], params["b"]

    def mapper(xs, w0):
        Bsz, L, D = xs.shape
        ms = jnp.mean(xs * xs, axis=1, keepdims=True)
        h = (xs * jax.lax.rsqrt(ms + 1e-8)).reshape(-1, D)
        for i in range(4):
            y = jnp.dot(h.astype(jnp.bfloat16), W[w0 + i],
                        preferred_element_type=jnp.float32) + bias[w0 + i]
            h = jnp.maximum(y, NEG_SLOPE * y)
        return h.reshape(Bsz, L, D)

    return jnp.concatenate(
        [mapper(x[:, :4], 0), mapper(x[:, 4:8], 4), mapper(x[:, 8:], 8)], axis=1)


def _ref_levels_mapper_torch(x, raw):
    """Full-f32 reference following the original torch math (unfolded, untransposed params)."""
    raw_w, raw_b = raw

    def mapper(xs, w0):
        ms = jnp.mean(xs * xs, axis=1, keepdims=True)
        h = xs * jax.lax.rsqrt(ms + 1e-8)
        for i in range(4):
            y = jnp.einsum("bld,od->blo", h, raw_w[w0 + i] * EQL_SCALE) + raw_b[w0 + i] * LR_MUL
            h = FLRELU_SCALE * jnp.where(y >= 0.0, y, NEG_SLOPE * y)
        return h

    return jnp.concatenate(
        [mapper(x[:, :4], 0), mapper(x[:, 4:8], 4), mapper(x[:, 8:], 8)], axis=1)


if __name__ == "__main__":
    key = jax.random.PRNGKey(0)
    key, params, raw = init_levels_mapper_params(key, randomize_bias=True)

    # Small example input consistent with the module: B=2 W+ latents, 18 style layers, 512-dim.
    key, xkey = jax.random.split(key)
    B = 2
    x = jax.random.normal(xkey, (B, 18, LATENT_DIM), jnp.float32)

    out = jax.block_until_ready(levels_mapper(x, params))
    assert out.shape == x.shape, (out.shape, x.shape)

    # Tight check: kernel vs a pure-JAX reference with identical (bf16-weight) numerics.
    ref_m = jax.block_until_ready(_ref_levels_mapper_matched(x, params))
    max_err = float(jnp.max(jnp.abs(out - ref_m)))
    assert jnp.allclose(out, ref_m, atol=5e-3, rtol=5e-3), max_err

    # Loose semantic check: bf16-weight kernel vs full-f32 torch-faithful reference.
    ref_t = jax.block_until_ready(_ref_levels_mapper_torch(x, raw))
    rel = float(jnp.linalg.norm(out - ref_t) / jnp.linalg.norm(ref_t))
    assert rel < 5e-2, rel

    # Flag handling: a disabled mapper must yield zeros for its slice (torch.zeros_like),
    # and its weights are not even shipped to the kernel.
    out_nm = jax.block_until_ready(levels_mapper(x, params, no_medium_mapper=True))
    assert float(jnp.max(jnp.abs(out_nm[:, 4:8]))) == 0.0
    assert jnp.allclose(out_nm[:, :4], out[:, :4], atol=1e-5, rtol=1e-5)
    assert jnp.allclose(out_nm[:, 8:], out[:, 8:], atol=1e-5, rtol=1e-5)

    # Multi-batch-tile (grid-invariant-weight) path with a ragged batch (exercises padding).
    key, xkey2 = jax.random.split(key)
    x_big = jax.random.normal(xkey2, (19, 18, LATENT_DIM), jnp.float32)
    out_big = jax.block_until_ready(levels_mapper(x_big, params))
    ref_big = jax.block_until_ready(_ref_levels_mapper_matched(x_big, params))
    assert out_big.shape == x_big.shape
    assert jnp.allclose(out_big, ref_big, atol=5e-3, rtol=5e-3), \
        float(jnp.max(jnp.abs(out_big - ref_big)))

    print("KERNEL_OK")
</pallas_src>

<mosaic_0001>
module attributes {stable_mosaic.version = 11 : i64} {
  func.func @kernel(%arg0: i32, %arg1: i32, %arg2: memref<18x8x512xf32, #tpu.memory_space<vmem>>, %arg3: memref<4x512x512xbf16, #tpu.memory_space<vmem>>, %arg4: memref<4x1x512xf32, #tpu.memory_space<vmem>>, %arg5: memref<18x8x512xf32, #tpu.memory_space<vmem>>) attributes {dimension_semantics = [#tpu.dimension_semantics<parallel>, #tpu.dimension_semantics<arbitrary>], iteration_bounds = array<i64: 1, 3>, scalar_prefetch = 0 : i64, scratch_operands = 0 : i64, tpu.core_type = #tpu.core_type<tc>, window_params = [{transform_indices = @transform_0, window_bounds = array<i64: 18, 8, 512>}, {transform_indices = @transform_1, window_bounds = array<i64: 4, 512, 512>}, {transform_indices = @transform_2, window_bounds = array<i64: 4, 1, 512>}, {transform_indices = @transform_3, window_bounds = array<i64: 18, 8, 512>}]} {
    %c0_i32 = arith.constant 0 : i32
    %0 = arith.cmpi eq, %arg1, %c0_i32 : i32
    %1 = arith.extui %0 : i1 to i32
    %c0_i32_0 = arith.constant 0 : i32
    %2 = arith.cmpi ne, %1, %c0_i32_0 : i32
    scf.if %2 {
      %c0 = arith.constant 0 : index
      %c0_3 = arith.constant 0 : index
      %c0_4 = arith.constant 0 : index
      %9 = vector.load %arg2[%c0, %c0_3, %c0_4] : memref<18x8x512xf32, #tpu.memory_space<vmem>>, vector<4x8x512xf32>
      %10 = arith.mulf %9, %9 : vector<4x8x512xf32>
      %cst = arith.constant dense<0.000000e+00> : vector<8x512xf32>
      %11 = vector.multi_reduction <add>, %10, %cst [0] : vector<4x8x512xf32> to vector<8x512xf32>
      %12 = vector.shape_cast %11 : vector<8x512xf32> to vector<1x8x512xf32>
      %cst_5 = arith.constant 4.000000e+00 : f32
      %13 = vector.broadcast %cst_5 : f32 to vector<1x8x512xf32>
      %14 = arith.divf %12, %13 : vector<1x8x512xf32>
      %cst_6 = arith.constant 9.99999993E-9 : f32
      %15 = vector.broadcast %cst_6 : f32 to vector<1x8x512xf32>
      %16 = arith.addf %14, %15 : vector<1x8x512xf32>
      %17 = math.rsqrt %16 : vector<1x8x512xf32>
      %18 = vector.broadcast %17 : vector<1x8x512xf32> to vector<4x8x512xf32>
      %19 = arith.mulf %9, %18 : vector<4x8x512xf32>
      %20 = vector.shape_cast %19 : vector<4x8x512xf32> to vector<32x512xf32>
      %21 = arith.truncf %20 : vector<32x512xf32> to vector<32x512xbf16>
      %c0_7 = arith.constant 0 : index
      %c0_8 = arith.constant 0 : index
      %c0_9 = arith.constant 0 : index
      %22 = vector.load %arg3[%c0_7, %c0_8, %c0_9] : memref<4x512x512xbf16, #tpu.memory_space<vmem>>, vector<1x512x512xbf16>
      %23 = vector.shape_cast %22 : vector<1x512x512xbf16> to vector<512x512xbf16>
      %cst_10 = arith.constant dense<0.000000e+00> : vector<32x512xf32>
      %24 = tpu.matmul %21, %23, %cst_10 {dimension_numbers = #tpu.dot_dimension_numbers<[1], [0], [0], [1], [0, 0, 1, 1], [], []>} : vector<32x512xbf16>, vector<512x512xbf16>, vector<32x512xf32> -> vector<32x512xf32>
      %c0_11 = arith.constant 0 : index
      %c0_12 = arith.constant 0 : index
      %c0_13 = arith.constant 0 : index
      %25 = vector.load %arg4[%c0_11, %c0_12, %c0_13] : memref<4x1x512xf32, #tpu.memory_space<vmem>>, vector<1x1x512xf32>
      %26 = vector.shape_cast %25 : vector<1x1x512xf32> to vector<1x512xf32>
      %27 = vector.broadcast %26 : vector<1x512xf32> to vector<32x512xf32>
      %28 = arith.addf %24, %27 : vector<32x512xf32>
      %cst_14 = arith.constant 2.000000e-01 : f32
      %29 = vector.broadcast %cst_14 : f32 to vector<32x512xf32>
      %30 = arith.mulf %29, %28 : vector<32x512xf32>
      %31 = arith.maximumf %28, %30 : vector<32x512xf32>
      %32 = arith.truncf %31 : vector<32x512xf32> to vector<32x512xbf16>
      %c1 = arith.constant 1 : index
      %c0_15 = arith.constant 0 : index
      %c0_16 = arith.constant 0 : index
      %33 = vector.load %arg3[%c1, %c0_15, %c0_16] : memref<4x512x512xbf16, #tpu.memory_space<vmem>>, vector<1x512x512xbf16>
      %34 = vector.shape_cast %33 : vector<1x512x512xbf16> to vector<512x512xbf16>
      %cst_17 = arith.constant dense<0.000000e+00> : vector<32x512xf32>
      %35 = tpu.matmul %32, %34, %cst_17 {dimension_numbers = #tpu.dot_dimension_numbers<[1], [0], [0], [1], [0, 0, 1, 1], [], []>} : vector<32x512xbf16>, vector<512x512xbf16>, vector<32x512xf32> -> vector<32x512xf32>
      %c1_18 = arith.constant 1 : index
      %c0_19 = arith.constant 0 : index
      %c0_20 = arith.constant 0 : index
      %36 = vector.load %arg4[%c1_18, %c0_19, %c0_20] : memref<4x1x512xf32, #tpu.memory_space<vmem>>, vector<1x1x512xf32>
      %37 = vector.shape_cast %36 : vector<1x1x512xf32> to vector<1x512xf32>
      %38 = vector.broadcast %37 : vector<1x512xf32> to vector<32x512xf32>
      %39 = arith.addf %35, %38 : vector<32x512xf32>
      %cst_21 = arith.constant 2.000000e-01 : f32
      %40 = vector.broadcast %cst_21 : f32 to vector<32x512xf32>
      %41 = arith.mulf %40, %39 : vector<32x512xf32>
      %42 = arith.maximumf %39, %41 : vector<32x512xf32>
      %43 = arith.truncf %42 : vector<32x512xf32> to vector<32x512xbf16>
      %c2 = arith.constant 2 : index
      %c0_22 = arith.constant 0 : index
      %c0_23 = arith.constant 0 : index
      %44 = vector.load %arg3[%c2, %c0_22, %c0_23] : memref<4x512x512xbf16, #tpu.memory_space<vmem>>, vector<1x512x512xbf16>
      %45 = vector.shape_cast %44 : vector<1x512x512xbf16> to vector<512x512xbf16>
      %cst_24 = arith.constant dense<0.000000e+00> : vector<32x512xf32>
      %46 = tpu.matmul %43, %45, %cst_24 {dimension_numbers = #tpu.dot_dimension_numbers<[1], [0], [0], [1], [0, 0, 1, 1], [], []>} : vector<32x512xbf16>, vector<512x512xbf16>, vector<32x512xf32> -> vector<32x512xf32>
      %c2_25 = arith.constant 2 : index
      %c0_26 = arith.constant 0 : index
      %c0_27 = arith.constant 0 : index
      %47 = vector.load %arg4[%c2_25, %c0_26, %c0_27] : memref<4x1x512xf32, #tpu.memory_space<vmem>>, vector<1x1x512xf32>
      %48 = vector.shape_cast %47 : vector<1x1x512xf32> to vector<1x512xf32>
      %49 = vector.broadcast %48 : vector<1x512xf32> to vector<32x512xf32>
      %50 = arith.addf %46, %49 : vector<32x512xf32>
      %cst_28 = arith.constant 2.000000e-01 : f32
      %51 = vector.broadcast %cst_28 : f32 to vector<32x512xf32>
      %52 = arith.mulf %51, %50 : vector<32x512xf32>
      %53 = arith.maximumf %50, %52 : vector<32x512xf32>
      %54 = arith.truncf %53 : vector<32x512xf32> to vector<32x512xbf16>
      %c3 = arith.constant 3 : index
      %c0_29 = arith.constant 0 : index
      %c0_30 = arith.constant 0 : index
      %55 = vector.load %arg3[%c3, %c0_29, %c0_30] : memref<4x512x512xbf16, #tpu.memory_space<vmem>>, vector<1x512x512xbf16>
      %56 = vector.shape_cast %55 : vector<1x512x512xbf16> to vector<512x512xbf16>
      %cst_31 = arith.constant dense<0.000000e+00> : vector<32x512xf32>
      %57 = tpu.matmul %54, %56, %cst_31 {dimension_numbers = #tpu.dot_dimension_numbers<[1], [0], [0], [1], [0, 0, 1, 1], [], []>} : vector<32x512xbf16>, vector<512x512xbf16>, vector<32x512xf32> -> vector<32x512xf32>
      %c3_32 = arith.constant 3 : index
      %c0_33 = arith.constant 0 : index
      %c0_34 = arith.constant 0 : index
      %58 = vector.load %arg4[%c3_32, %c0_33, %c0_34] : memref<4x1x512xf32, #tpu.memory_space<vmem>>, vector<1x1x512xf32>
      %59 = vector.shape_cast %58 : vector<1x1x512xf32> to vector<1x512xf32>
      %60 = vector.broadcast %59 : vector<1x512xf32> to vector<32x512xf32>
      %61 = arith.addf %57, %60 : vector<32x512xf32>
      %cst_35 = arith.constant 2.000000e-01 : f32
      %62 = vector.broadcast %cst_35 : f32 to vector<32x512xf32>
      %63 = arith.mulf %62, %61 : vector<32x512xf32>
      %64 = arith.maximumf %61, %63 : vector<32x512xf32>
      %65 = vector.shape_cast %64 : vector<32x512xf32> to vector<4x8x512xf32>
      %c0_36 = arith.constant 0 : index
      %c0_37 = arith.constant 0 : index
      %c0_38 = arith.constant 0 : index
      %66 = vector.load %arg5[%c0_36, %c0_37, %c0_38] : memref<18x8x512xf32, #tpu.memory_space<vmem>>, vector<4x8x512xf32>
      tpu.vector_store %arg5[%c0_36, %c0_37, %c0_38], %65 {strides = array<i32>} : memref<18x8x512xf32, #tpu.memory_space<vmem>>, vector<4x8x512xf32>,
    } else {
    }
    %c1_i32 = arith.constant 1 : i32
    %3 = arith.cmpi eq, %arg1, %c1_i32 : i32
    %4 = arith.extui %3 : i1 to i32
    %c0_i32_1 = arith.constant 0 : i32
    %5 = arith.cmpi ne, %4, %c0_i32_1 : i32
    scf.if %5 {
      %c4 = arith.constant 4 : index
      %c0 = arith.constant 0 : index
      %c0_3 = arith.constant 0 : index
      %9 = vector.load %arg2[%c4, %c0, %c0_3] : memref<18x8x512xf32, #tpu.memory_space<vmem>>, vector<4x8x512xf32>
      %10 = arith.mulf %9, %9 : vector<4x8x512xf32>
      %cst = arith.constant dense<0.000000e+00> : vector<8x512xf32>
      %11 = vector.multi_reduction <add>, %10, %cst [0] : vector<4x8x512xf32> to vector<8x512xf32>
      %12 = vector.shape_cast %11 : vector<8x512xf32> to vector<1x8x512xf32>
      %cst_4 = arith.constant 4.000000e+00 : f32
      %13 = vector.broadcast %cst_4 : f32 to vector<1x8x512xf32>
      %14 = arith.divf %12, %13 : vector<1x8x512xf32>
      %cst_5 = arith.constant 9.99999993E-9 : f32
      %15 = vector.broadcast %cst_5 : f32 to vector<1x8x512xf32>
      %16 = arith.addf %14, %15 : vector<1x8x512xf32>
      %17 = math.rsqrt %16 : vector<1x8x512xf32>
      %18 = vector.broadcast %17 : vector<1x8x512xf32> to vector<4x8x512xf32>
      %19 = arith.mulf %9, %18 : vector<4x8x512xf32>
      %20 = vector.shape_cast %19 : vector<4x8x512xf32> to vector<32x512xf32>
      %21 = arith.truncf %20 : vector<32x512xf32> to vector<32x512xbf16>
      %c0_6 = arith.constant 0 : index
      %c0_7 = arith.constant 0 : index
      %c0_8 = arith.constant 0 : index
      %22 = vector.load %arg3[%c0_6, %c0_7, %c0_8] : memref<4x512x512xbf16, #tpu.memory_space<vmem>>, vector<1x512x512xbf16>
      %23 = vector.shape_cast %22 : vector<1x512x512xbf16> to vector<512x512xbf16>
      %cst_9 = arith.constant dense<0.000000e+00> : vector<32x512xf32>
      %24 = tpu.matmul %21, %23, %cst_9 {dimension_numbers = #tpu.dot_dimension_numbers<[1], [0], [0], [1], [0, 0, 1, 1], [], []>} : vector<32x512xbf16>, vector<512x512xbf16>, vector<32x512xf32> -> vector<32x512xf32>
      %c0_10 = arith.constant 0 : index
      %c0_11 = arith.constant 0 : index
      %c0_12 = arith.constant 0 : index
      %25 = vector.load %arg4[%c0_10, %c0_11, %c0_12] : memref<4x1x512xf32, #tpu.memory_space<vmem>>, vector<1x1x512xf32>
      %26 = vector.shape_cast %25 : vector<1x1x512xf32> to vector<1x512xf32>
      %27 = vector.broadcast %26 : vector<1x512xf32> to vector<32x512xf32>
      %28 = arith.addf %24, %27 : vector<32x512xf32>
      %cst_13 = arith.constant 2.000000e-01 : f32
      %29 = vector.broadcast %cst_13 : f32 to vector<32x512xf32>
      %30 = arith.mulf %29, %28 : vector<32x512xf32>
      %31 = arith.maximumf %28, %30 : vector<32x512xf32>
      %32 = arith.truncf %31 : vector<32x512xf32> to vector<32x512xbf16>
      %c1 = arith.constant 1 : index
      %c0_14 = arith.constant 0 : index
      %c0_15 = arith.constant 0 : index
      %33 = vector.load %arg3[%c1, %c0_14, %c0_15] : memref<4x512x512xbf16, #tpu.memory_space<vmem>>, vector<1x512x512xbf16>
      %34 = vector.shape_cast %33 : vector<1x512x512xbf16> to vector<512x512xbf16>
      %cst_16 = arith.constant dense<0.000000e+00> : vector<32x512xf32>
      %35 = tpu.matmul %32, %34, %cst_16 {dimension_numbers = #tpu.dot_dimension_numbers<[1], [0], [0], [1], [0, 0, 1, 1], [], []>} : vector<32x512xbf16>, vector<512x512xbf16>, vector<32x512xf32> -> vector<32x512xf32>
      %c1_17 = arith.constant 1 : index
      %c0_18 = arith.constant 0 : index
      %c0_19 = arith.constant 0 : index
      %36 = vector.load %arg4[%c1_17, %c0_18, %c0_19] : memref<4x1x512xf32, #tpu.memory_space<vmem>>, vector<1x1x512xf32>
      %37 = vector.shape_cast %36 : vector<1x1x512xf32> to vector<1x512xf32>
      %38 = vector.broadcast %37 : vector<1x512xf32> to vector<32x512xf32>
      %39 = arith.addf %35, %38 : vector<32x512xf32>
      %cst_20 = arith.constant 2.000000e-01 : f32
      %40 = vector.broadcast %cst_20 : f32 to vector<32x512xf32>
      %41 = arith.mulf %40, %39 : vector<32x512xf32>
      %42 = arith.maximumf %39, %41 : vector<32x512xf32>
      %43 = arith.truncf %42 : vector<32x512xf32> to vector<32x512xbf16>
      %c2 = arith.constant 2 : index
      %c0_21 = arith.constant 0 : index
      %c0_22 = arith.constant 0 : index
      %44 = vector.load %arg3[%c2, %c0_21, %c0_22] : memref<4x512x512xbf16, #tpu.memory_space<vmem>>, vector<1x512x512xbf16>
      %45 = vector.shape_cast %44 : vector<1x512x512xbf16> to vector<512x512xbf16>
      %cst_23 = arith.constant dense<0.000000e+00> : vector<32x512xf32>
      %46 = tpu.matmul %43, %45, %cst_23 {dimension_numbers = #tpu.dot_dimension_numbers<[1], [0], [0], [1], [0, 0, 1, 1], [], []>} : vector<32x512xbf16>, vector<512x512xbf16>, vector<32x512xf32> -> vector<32x512xf32>
      %c2_24 = arith.constant 2 : index
      %c0_25 = arith.constant 0 : index
      %c0_26 = arith.constant 0 : index
      %47 = vector.load %arg4[%c2_24, %c0_25, %c0_26] : memref<4x1x512xf32, #tpu.memory_space<vmem>>, vector<1x1x512xf32>
      %48 = vector.shape_cast %47 : vector<1x1x512xf32> to vector<1x512xf32>
      %49 = vector.broadcast %48 : vector<1x512xf32> to vector<32x512xf32>
      %50 = arith.addf %46, %49 : vector<32x512xf32>
      %cst_27 = arith.constant 2.000000e-01 : f32
      %51 = vector.broadcast %cst_27 : f32 to vector<32x512xf32>
      %52 = arith.mulf %51, %50 : vector<32x512xf32>
      %53 = arith.maximumf %50, %52 : vector<32x512xf32>
      %54 = arith.truncf %53 : vector<32x512xf32> to vector<32x512xbf16>
      %c3 = arith.constant 3 : index
      %c0_28 = arith.constant 0 : index
      %c0_29 = arith.constant 0 : index
      %55 = vector.load %arg3[%c3, %c0_28, %c0_29] : memref<4x512x512xbf16, #tpu.memory_space<vmem>>, vector<1x512x512xbf16>
      %56 = vector.shape_cast %55 : vector<1x512x512xbf16> to vector<512x512xbf16>
      %cst_30 = arith.constant dense<0.000000e+00> : vector<32x512xf32>
      %57 = tpu.matmul %54, %56, %cst_30 {dimension_numbers = #tpu.dot_dimension_numbers<[1], [0], [0], [1], [0, 0, 1, 1], [], []>} : vector<32x512xbf16>, vector<512x512xbf16>, vector<32x512xf32> -> vector<32x512xf32>
      %c3_31 = arith.constant 3 : index
      %c0_32 = arith.constant 0 : index
      %c0_33 = arith.constant 0 : index
      %58 = vector.load %arg4[%c3_31, %c0_32, %c0_33] : memref<4x1x512xf32, #tpu.memory_space<vmem>>, vector<1x1x512xf32>
      %59 = vector.shape_cast %58 : vector<1x1x512xf32> to vector<1x512xf32>
      %60 = vector.broadcast %59 : vector<1x512xf32> to vector<32x512xf32>
      %61 = arith.addf %57, %60 : vector<32x512xf32>
      %cst_34 = arith.constant 2.000000e-01 : f32
      %62 = vector.broadcast %cst_34 : f32 to vector<32x512xf32>
      %63 = arith.mulf %62, %61 : vector<32x512xf32>
      %64 = arith.maximumf %61, %63 : vector<32x512xf32>
      %65 = vector.shape_cast %64 : vector<32x512xf32> to vector<4x8x512xf32>
      %c4_35 = arith.constant 4 : index
      %c0_36 = arith.constant 0 : index
      %c0_37 = arith.constant 0 : index
      %66 = vector.load %arg5[%c4_35, %c0_36, %c0_37] : memref<18x8x512xf32, #tpu.memory_space<vmem>>, vector<4x8x512xf32>
      tpu.vector_store %arg5[%c4_35, %c0_36, %c0_37], %65 {strides = array<i32>} : memref<18x8x512xf32, #tpu.memory_space<vmem>>, vector<4x8x512xf32>,
    } else {
    }
    %c2_i32 = arith.constant 2 : i32
    %6 = arith.cmpi eq, %arg1, %c2_i32 : i32
    %7 = arith.extui %6 : i1 to i32
    %c0_i32_2 = arith.constant 0 : i32
    %8 = arith.cmpi ne, %7, %c0_i32_2 : i32
    scf.if %8 {
      %c8 = arith.constant 8 : index
      %c0 = arith.constant 0 : index
      %c0_3 = arith.constant 0 : index
      %9 = vector.load %arg2[%c8, %c0, %c0_3] : memref<18x8x512xf32, #tpu.memory_space<vmem>>, vector<10x8x512xf32>
      %10 = arith.mulf %9, %9 : vector<10x8x512xf32>
      %cst = arith.constant dense<0.000000e+00> : vector<8x512xf32>
      %11 = vector.multi_reduction <add>, %10, %cst [0] : vector<10x8x512xf32> to vector<8x512xf32>
      %12 = vector.shape_cast %11 : vector<8x512xf32> to vector<1x8x512xf32>
      %cst_4 = arith.constant 1.000000e+01 : f32
      %13 = vector.broadcast %cst_4 : f32 to vector<1x8x512xf32>
      %14 = arith.divf %12, %13 : vector<1x8x512xf32>
      %cst_5 = arith.constant 9.99999993E-9 : f32
      %15 = vector.broadcast %cst_5 : f32 to vector<1x8x512xf32>
      %16 = arith.addf %14, %15 : vector<1x8x512xf32>
      %17 = math.rsqrt %16 : vector<1x8x512xf32>
      %18 = vector.broadcast %17 : vector<1x8x512xf32> to vector<10x8x512xf32>
      %19 = arith.mulf %9, %18 : vector<10x8x512xf32>
      %20 = vector.shape_cast %19 : vector<10x8x512xf32> to vector<80x512xf32>
      %21 = arith.truncf %20 : vector<80x512xf32> to vector<80x512xbf16>
      %c0_6 = arith.constant 0 : index
      %c0_7 = arith.constant 0 : index
      %c0_8 = arith.constant 0 : index
      %22 = vector.load %arg3[%c0_6, %c0_7, %c0_8] : memref<4x512x512xbf16, #tpu.memory_space<vmem>>, vector<1x512x512xbf16>
      %23 = vector.shape_cast %22 : vector<1x512x512xbf16> to vector<512x512xbf16>
      %cst_9 = arith.constant dense<0.000000e+00> : vector<80x512xf32>
      %24 = tpu.matmul %21, %23, %cst_9 {dimension_numbers = #tpu.dot_dimension_numbers<[1], [0], [0], [1], [0, 0, 1, 1], [], []>} : vector<80x512xbf16>, vector<512x512xbf16>, vector<80x512xf32> -> vector<80x512xf32>
      %c0_10 = arith.constant 0 : index
      %c0_11 = arith.constant 0 : index
      %c0_12 = arith.constant 0 : index
      %25 = vector.load %arg4[%c0_10, %c0_11, %c0_12] : memref<4x1x512xf32, #tpu.memory_space<vmem>>, vector<1x1x512xf32>
      %26 = vector.shape_cast %25 : vector<1x1x512xf32> to vector<1x512xf32>
      %27 = vector.broadcast %26 : vector<1x512xf32> to vector<80x512xf32>
      %28 = arith.addf %24, %27 : vector<80x512xf32>
      %cst_13 = arith.constant 2.000000e-01 : f32
      %29 = vector.broadcast %cst_13 : f32 to vector<80x512xf32>
      %30 = arith.mulf %29, %28 : vector<80x512xf32>
      %31 = arith.maximumf %28, %30 : vector<80x512xf32>
      %32 = arith.truncf %31 : vector<80x512xf32> to vector<80x512xbf16>
      %c1 = arith.constant 1 : index
      %c0_14 = arith.constant 0 : index
      %c0_15 = arith.constant 0 : index
      %33 = vector.load %arg3[%c1, %c0_14, %c0_15] : memref<4x512x512xbf16, #tpu.memory_space<vmem>>, vector<1x512x512xbf16>
      %34 = vector.shape_cast %33 : vector<1x512x512xbf16> to vector<512x512xbf16>
      %cst_16 = arith.constant dense<0.000000e+00> : vector<80x512xf32>
      %35 = tpu.matmul %32, %34, %cst_16 {dimension_numbers = #tpu.dot_dimension_numbers<[1], [0], [0], [1], [0, 0, 1, 1], [], []>} : vector<80x512xbf16>, vector<512x512xbf16>, vector<80x512xf32> -> vector<80x512xf32>
      %c1_17 = arith.constant 1 : index
      %c0_18 = arith.constant 0 : index
      %c0_19 = arith.constant 0 : index
      %36 = vector.load %arg4[%c1_17, %c0_18, %c0_19] : memref<4x1x512xf32, #tpu.memory_space<vmem>>, vector<1x1x512xf32>
      %37 = vector.shape_cast %36 : vector<1x1x512xf32> to vector<1x512xf32>
      %38 = vector.broadcast %37 : vector<1x512xf32> to vector<80x512xf32>
      %39 = arith.addf %35, %38 : vector<80x512xf32>
      %cst_20 = arith.constant 2.000000e-01 : f32
      %40 = vector.broadcast %cst_20 : f32 to vector<80x512xf32>
      %41 = arith.mulf %40, %39 : vector<80x512xf32>
      %42 = arith.maximumf %39, %41 : vector<80x512xf32>
      %43 = arith.truncf %42 : vector<80x512xf32> to vector<80x512xbf16>
      %c2 = arith.constant 2 : index
      %c0_21 = arith.constant 0 : index
      %c0_22 = arith.constant 0 : index
      %44 = vector.load %arg3[%c2, %c0_21, %c0_22] : memref<4x512x512xbf16, #tpu.memory_space<vmem>>, vector<1x512x512xbf16>
      %45 = vector.shape_cast %44 : vector<1x512x512xbf16> to vector<512x512xbf16>
      %cst_23 = arith.constant dense<0.000000e+00> : vector<80x512xf32>
      %46 = tpu.matmul %43, %45, %cst_23 {dimension_numbers = #tpu.dot_dimension_numbers<[1], [0], [0], [1], [0, 0, 1, 1], [], []>} : vector<80x512xbf16>, vector<512x512xbf16>, vector<80x512xf32> -> vector<80x512xf32>
      %c2_24 = arith.constant 2 : index
      %c0_25 = arith.constant 0 : index
      %c0_26 = arith.constant 0 : index
      %47 = vector.load %arg4[%c2_24, %c0_25, %c0_26] : memref<4x1x512xf32, #tpu.memory_space<vmem>>, vector<1x1x512xf32>
      %48 = vector.shape_cast %47 : vector<1x1x512xf32> to vector<1x512xf32>
      %49 = vector.broadcast %48 : vector<1x512xf32> to vector<80x512xf32>
      %50 = arith.addf %46, %49 : vector<80x512xf32>
      %cst_27 = arith.constant 2.000000e-01 : f32
      %51 = vector.broadcast %cst_27 : f32 to vector<80x512xf32>
      %52 = arith.mulf %51, %50 : vector<80x512xf32>
      %53 = arith.maximumf %50, %52 : vector<80x512xf32>
      %54 = arith.truncf %53 : vector<80x512xf32> to vector<80x512xbf16>
      %c3 = arith.constant 3 : index
      %c0_28 = arith.constant 0 : index
      %c0_29 = arith.constant 0 : index
      %55 = vector.load %arg3[%c3, %c0_28, %c0_29] : memref<4x512x512xbf16, #tpu.memory_space<vmem>>, vector<1x512x512xbf16>
      %56 = vector.shape_cast %55 : vector<1x512x512xbf16> to vector<512x512xbf16>
      %cst_30 = arith.constant dense<0.000000e+00> : vector<80x512xf32>
      %57 = tpu.matmul %54, %56, %cst_30 {dimension_numbers = #tpu.dot_dimension_numbers<[1], [0], [0], [1], [0, 0, 1, 1], [], []>} : vector<80x512xbf16>, vector<512x512xbf16>, vector<80x512xf32> -> vector<80x512xf32>
      %c3_31 = arith.constant 3 : index
      %c0_32 = arith.constant 0 : index
      %c0_33 = arith.constant 0 : index
      %58 = vector.load %arg4[%c3_31, %c0_32, %c0_33] : memref<4x1x512xf32, #tpu.memory_space<vmem>>, vector<1x1x512xf32>
      %59 = vector.shape_cast %58 : vector<1x1x512xf32> to vector<1x512xf32>
      %60 = vector.broadcast %59 : vector<1x512xf32> to vector<80x512xf32>
      %61 = arith.addf %57, %60 : vector<80x512xf32>
      %cst_34 = arith.constant 2.000000e-01 : f32
      %62 = vector.broadcast %cst_34 : f32 to vector<80x512xf32>
      %63 = arith.mulf %62, %61 : vector<80x512xf32>
      %64 = arith.maximumf %61, %63 : vector<80x512xf32>
      %65 = vector.shape_cast %64 : vector<80x512xf32> to vector<10x8x512xf32>
      %c8_35 = arith.constant 8 : index
      %c0_36 = arith.constant 0 : index
      %c0_37 = arith.constant 0 : index
      %66 = vector.load %arg5[%c8_35, %c0_36, %c0_37] : memref<18x8x512xf32, #tpu.memory_space<vmem>>, vector<10x8x512xf32>
      tpu.vector_store %arg5[%c8_35, %c0_36, %c0_37], %65 {strides = array<i32>} : memref<18x8x512xf32, #tpu.memory_space<vmem>>, vector<10x8x512xf32>,
    } else {
    }
    return
  }
  func.func @transform_0(%arg0: i32, %arg1: i32) -> (i32, i32, i32) {
    %c0_i32 = arith.constant 0 : i32
    %c0_i32_0 = arith.constant 0 : i32
    %c0_i32_1 = arith.constant 0 : i32
    return %c0_i32, %arg0, %c0_i32_0 : i32, i32, i32
  }
  func.func @transform_1(%arg0: i32, %arg1: i32) -> (i32, i32, i32) {
    %c0_i32 = arith.constant 0 : i32
    %c0_i32_0 = arith.constant 0 : i32
    %c0_i32_1 = arith.constant 0 : i32
    return %arg1, %c0_i32, %c0_i32_0 : i32, i32, i32
  }
  func.func @transform_2(%arg0: i32, %arg1: i32) -> (i32, i32, i32) {
    %c0_i32 = arith.constant 0 : i32
    %c0_i32_0 = arith.constant 0 : i32
    %c0_i32_1 = arith.constant 0 : i32
    return %arg1, %c0_i32, %c0_i32_0 : i32, i32, i32
  }
  func.func @transform_3(%arg0: i32, %arg1: i32) -> (i32, i32, i32) {
    %c0_i32 = arith.constant 0 : i32
    %c0_i32_0 = arith.constant 0 : i32
    %c0_i32_1 = arith.constant 0 : i32
    return %c0_i32, %arg0, %c0_i32_0 : i32, i32, i32
  }
}

</mosaic_0001>

<bundles_post_ra>
// kernel: tpu_custom_call.1
= control target key start
LH: loop header
LB: loop body
LE: loop exit
PB: predicated region body
PF: predicated region fallthrough
CT: control target
= control target key end

     0   :  { %8 = vsyncpa [#allocation3], 0  ;;  %s22469_s0 = inlined_call_operand.hbm [shape: f32[18,8,512], index: 0, kind: input, shape index: {}]   ;;  %s22470_s1 = inlined_call_operand.hbm [shape: bf16[12,512,512], index: 1, kind: input, shape index: {}]   ;;  %s22471_s2 = inlined_call_operand.hbm [shape: f32[12,1,512], index: 2, kind: input, shape index: {}]   ;;  %s22472_s3 = inlined_call_operand.hbm [shape: f32[18,8,512], index: 3, kind: output, shape index: {}]  }
   0x1   :  { %9 = vsyncpa [#allocation6], 0 }
   0x2   :  { %11 = vsyncpa [#allocation6 + $0x1], 0 }
   0x3   :  { %12 = vsyncpa [#allocation4], 0  ;;  %s19346_s12 = smov 0   ;;  %s19348_s13 = smov 0  }
   0x4   :  { %s19350_s14 = smov 0   ;;  %s19352_s15 = smov 0  }
   0x5   :  { %s19354_s16 = smov 0   ;;  %s19356_s17 = smov 0  }
   0x6 LB: > { %s27_s18 = sadd.s32 1, %s19308_s16  ;;  %s63_s19 = sadd.s32 1, %s19300_s14  ;;  %s19312_s17 = sphi %s19356_s17, %s18_s17   ;;  %s19308_s16 = sphi %s19354_s16, %s22486_s16   ;;  %s19304_s15 = sphi %s19352_s15, %s22485_s15   ;;  %s19300_s14 = sphi %s19350_s14, %s22484_s14   ;;  %s19296_s13 = sphi %s19348_s13, %s22483_s13   ;;  %s19292_s12 = sphi %s19346_s12, %s22482_s12  }
   0x7   : > { %p28_p0 = scmp.ge.s32.totalorder %s27_s18, 3  ;;  %p70_p1 = scmp.ne.s32.totalorder %s19300_s14, %s19296_s13 }
   0x8   : > { %p71_p2 = scmp.eq.s32.totalorder %s19312_s17, 0  ;;  %p16758_p4 = scmp.lt.s32.totalorder %s19312_s17, 3 }
   0x9   : > { %s22488_s18 = smov (%p28_p0, %s27_s18), 0  ;;  %s168_s21 = sand.u32 1, %s19312_s17  }
   0xa   : > { %p72_p3 = por %p71_p2, %p70_p1  ;;  %s60_s20 = ssub.s32 %s19308_s16, %s22488_s18 }
   0xb   : > { %p61_p5 = scmp.eq.s32.totalorder %s60_s20, 0  ;;  %s170_s22 = sand.u32 1, %s19300_s14  }
   0xc   : > { %s16731_s23 = sshll.u32 %s19308_s16, 16  ;;  %s14014_s25 = sshll.u32 %s170_s22, 12 }
   0xd   : > { %s19390_s24 = scalar_select %p61_p5, %s19300_s14, %s63_s19  }
   0xe   : > { %s179_s28 = scalar_lea.hbm %s22470_s1, %s16731_s23  ;;  %p19395_p6 = pnand %p16758_p4, %p72_p3 }
   0xf   : > { %s172_s30 = scalar_lea.vmem [#allocation5], %s14014_s25  ;;  %s14018_s5 = sshll.u32 %s170_s22, 4 }
  0x10   : > { %s180_s4 = sshll.u32 %s172_s30, 4  ;;  %s19399_s6 = scalar_lea.sflag [#allocation6], %s168_s21  ;;  %s181_s4 = int_to_ptr.vmem [resolvable:$true] %s180_s4 }
  0x11   : > { %p22473_p7 = pneg %p19395_p6  ;;  %s19161_s7 = scalar_lea.vmem %s181_s4, 65536 }
  0x12   : > { %p19162_p8 = scmp.ne.s32.totalorder %s181_s4, %s19161_s7  ;;  %s19314_s8 = smov [#allocation5]  }
  0x13   : > { %s19166_s9 = sshll.u32 %s19314_s8, 4  ;;  %s19167_s9 = int_to_ptr.vmem [resolvable:$false] %s19166_s9 }
  0x14   : > { %p19164_p9 = pnand %p19162_p8, %p22473_p7  ;;  %s19168_s10 = scalar_lea.vmem %s19167_s9, 131072 }
  0x15   : > { %p19169_p11 = scmp.lt.s32.totalorder %s181_s4, %s19167_s9  ;;  %p19170_p12 = scmp.lt.s32.totalorder %s19168_s10, %s19161_s7 }
  0x16   : > { %p19165_p10 = pneg %p19164_p9 }
  0x17   : > { %p19171_p13 = por %p19170_p12, %p19169_p11 }
  0x19   : > { %p19172_p0 = pnand %p19171_p13, %p19165_p10 }
  0x1b   : > { %19175 = shalt.err (!%p19172_p0)
}
  0x1c   : > { %s19315_s11 = smov 256   ;;  %s19316_s19 = smov 16  }
  0x1d   : > { %16753 = dma.hbm_to_vmem [thread:$0]  (!%p19395_p6), %s179_s28, 65536, %s181_s4, %s19399_s6, %s19315_s11, %s19315_s11, %s19316_s19  }
  0x1e   : > { %s194_s20 = scalar_lea.vmem [#allocation7], %s14018_s5  ;;  %s19410_s22 = sadd.s32 4294967295, %s19312_s17  }
  0x1f   : > { %s202_s21 = sshll.u32 %s194_s20, 4  ;;  %p76_p1 = scmp.ne.s32.totalorder %s19296_s13, %s19292_s12  ;;  %s19430_s21 = int_to_ptr.vmem [resolvable:$true] %s202_s21 }
  0x20   : > { %p77_p2 = scmp.eq.s32.totalorder %s19410_s22, 0  ;;  %p14011_p3 = scmp.ge.s32.totalorder %s19312_s17, 1 }
  0x21   : > { %p139_p4 = scmp.lt.s32.totalorder %s19312_s17, 4  ;;  %s19317_s26 = smov [#allocation2]  }
  0x22   : > { %p19419_p5 = por %p77_p2, %p76_p1  ;;  %s154_s27 = sshll.u32 %s19317_s26, 4  ;;  %s155_s27 = int_to_ptr.vmem [resolvable:$true] %s154_s27 }
  0x23   : > { %p19423_p8 = pnand %p14011_p3, %p139_p4  ;;  %s16733_s28 = sshll.u32 %s19308_s16, 8 }
  0x24   : > { %s19441_s5 = scalar_lea.hbm %s22471_s2, %s16733_s28  ;;  %s19187_s7 = scalar_lea.vmem %s155_s27, 9216 }
  0x25   : > { %p16746_p9 = pneg %p19423_p8  ;;  %p19188_p12 = scmp.ne.s32.totalorder %s155_s27, %s19187_s7 }
  0x26   : > { %p19195_p1 = scmp.lt.s32.totalorder %s155_s27, %s155_s27  ;;  %p19196_p3 = scmp.lt.s32.totalorder %s19187_s7, %s19187_s7 }
  0x27   : > { %p19434_p10 = pnand %p16746_p9, %p77_p2 }
  0x28   : > { %p19197_p4 = por %p19196_p3, %p19195_p1 }
  0x29   : > { %p19178_p11 = pneg %p19434_p10 }
  0x2b   : > { %p19190_p13 = pnand %p19188_p12, %p19178_p11 }
  0x2d   : > { %p19191_p0 = pneg %p19190_p13 }
  0x2f   : > { %p19198_p7 = pnand %p19197_p4, %p19191_p0 }
  0x31   : > { %19201 = shalt.err (!%p19198_p7)
}
  0x32   : > { %s19318_s8 = smov 512   ;;  %s19319_s9 = smov 32  }
  0x33   : > { %16749 = dma.hbm_to_vmem [thread:$0]  (!%p19434_p10), %s22469_s0, 9216, %s155_s27, [#allocation3], %s19318_s8, %s19318_s8, %s19319_s9  }
  0x34   : > { %s19215_s19 = scalar_lea.vmem %s19430_s21, 256  ;;  %p22479_p11 = pneg %p19395_p6 }
  0x35   : > { %p19216_p9 = scmp.ne.s32.totalorder %s19430_s21, %s19215_s19  ;;  %s19320_s20 = smov [#allocation7]  }
  0x36   : > { %s19220_s26 = sshll.u32 %s19320_s20, 4  ;;  %s19221_s26 = int_to_ptr.vmem [resolvable:$false] %s19220_s26 }
  0x37   : > { %p19218_p12 = pnand %p19216_p9, %p22479_p11  ;;  %s19222_s28 = scalar_lea.vmem %s19221_s26, 512 }
  0x38   : > { %p19223_p7 = scmp.lt.s32.totalorder %s19430_s21, %s19221_s26  ;;  %p19224_p0 = scmp.lt.s32.totalorder %s19222_s28, %s19215_s19 }
  0x39   : > { %p19219_p13 = pneg %p19218_p12 }
  0x3a   : > { %p19225_p1 = por %p19224_p0, %p19223_p7 }
  0x3c   : > { %p19226_p3 = pnand %p19225_p1, %p19219_p13 }
  0x3e   : > { %19229 = shalt.err (!%p19226_p3)
}
  0x3f   : > { %s19321_s12 = smov 64   ;;  %s19322_s27 = smov 4  }
  0x40   : > { %16756 = dma.hbm_to_vmem [thread:$0]  (!%p19395_p6), %s19441_s5, 256, %s19430_s21, %s19399_s6, %s19321_s12, %s19321_s12, %s19322_s27  }
  0x41   : > { %214 = sbr.rel (%p19423_p8) target bundleno = 3648 (0xe40), region = 32 }
  0x46   : > { %19279 = dma.done.wait (%p77_p2), [#allocation3], 9216  }
  0x47   : > { %19281 = vsyncadd (%p77_p2), [#allocation3], 4294958080  ;;  %s220_s30 = sand.u32 1, %s19410_s22   ;;  %s222_s4 = sand.u32 1, %s19296_s13  }
  0x48   : > { %s14024_s7 = sshll.u32 %s222_s4, 12  ;;  %s221_s8 = scalar_lea.sflag [#allocation6], %s220_s30 }
  0x49   : > { %s19469_s9 = scalar_lea.vmem [#allocation5], %s14024_s7 }
  0x4a   : > { %19283 = dma.done.wait (%p19419_p5), %s221_s8, 65792  }
  0x4b   : > { %19285 = vsyncadd (%p19419_p5), %s221_s8, 4294901504  ;;  %s14025_s29 = sshll.u32 %s222_s4, 4  ;;  %p14026_p6 = scmp.ne.s32.totalorder %s19304_s15, 0 }
  0x4c   : > { %s19475_s6 = scalar_lea.vmem [#allocation7], %s14025_s29 }
  0x4d   : > { %261 = sbr.rel (%p14026_p6) target bundleno = 1244 (0x4dc), region = 48 }
  0x52   : > { %v16820_v0 = vld [vmem:[%s19469_s9 + $0xe4] ss:$16 sps:$4 sm:$0xff]   ;;  %v16824_v2 = vld [vmem:[%s19469_s9 + $0xe0] ss:$16 sps:$4 sm:$0xff]   ;;  %v19526_v48 = vld [vmem:[#allocation2 + $0x8] sm:$0xff] }
  0x53   : > { %v16822_v1 = vld [vmem:[%s19469_s9 + $0x2e4] ss:$16 sps:$4 sm:$0xff]   ;;  %1133 = vmatprep.subr.bf16.mxu0 %v16820_v0  ;;  %v16825_v3 = vld [vmem:[%s19469_s9 + $0x2e0] ss:$16 sps:$4 sm:$0xff]   ;;  %v19530_v51 = vld [vmem:[#allocation2 + $0x28] sm:$0xff]  ;;  %v279_v54 = vmul.f32 %v19526_v48, %v19526_v48 }
  0x54   : > { %1186 = vmatprep.subr.bf16.mxu1 %v16822_v1  ;;  %v16826_v4 = vld [vmem:[%s19469_s9 + $0xc4] ss:$16 sps:$4 sm:$0xff]   ;;  %1134 = vmatpush1.bf16.msra.mxu0 %v16824_v2  ;;  %v16830_v6 = vld [vmem:[%s19469_s9 + $0xc0] ss:$16 sps:$4 sm:$0xff]   ;;  %v19532_v52 = vld [vmem:[#allocation2 + $0x48] sm:$0xff]  ;;  %v283_v55 = vmul.f32 %v19530_v51, %v19530_v51 }
  0x55   : > { %1187 = vmatpush1.bf16.msra.mxu1 %v16825_v3  ;;  %v16828_v5 = vld [vmem:[%s19469_s9 + $0x2c4] ss:$16 sps:$4 sm:$0xff]   ;;  %1135 = vmatprep.subr.bf16.mxu0 %v16826_v4  ;;  %v16831_v7 = vld [vmem:[%s19469_s9 + $0x2c0] ss:$16 sps:$4 sm:$0xff]   ;;  %v19534_v53 = vld [vmem:[#allocation2 + $0x68] sm:$0xff]  ;;  %v287_v56 = vmul.f32 %v19532_v52, %v19532_v52 }
  0x56   : > { %1188 = vmatprep.subr.bf16.mxu1 %v16828_v5  ;;  %v16832_v8 = vld [vmem:[%s19469_s9 + $0xa4] ss:$16 sps:$4 sm:$0xff]   ;;  %v16836_v10 = vld [vmem:[%s19469_s9 + $0xa0] ss:$16 sps:$4 sm:$0xff]   ;;  %v291_v57 = vmul.f32 %v19534_v53, %v19534_v53  ;;  %v19544_v58 = vld [vmem:[#allocation2 + $0x18] sm:$0xff]  ;;  %v297_v5 = vadd.f32 %v283_v55, %v279_v54 }
  0x57   : > { %v16834_v9 = vld [vmem:[%s19469_s9 + $0x2a4] ss:$16 sps:$4 sm:$0xff]   ;;  %v16837_v11 = vld [vmem:[%s19469_s9 + $0x2a0] ss:$16 sps:$4 sm:$0xff]   ;;  %v19546_v59 = vld [vmem:[#allocation2 + $0x38] sm:$0xff]  ;;  %v281_v62 = vmul.f32 %v19544_v58, %v19544_v58 }
  0x58   : > { %1136 = vmatpush1.bf16.msra.mxu0 %v16830_v6  ;;  %v16838_v12 = vld [vmem:[%s19469_s9 + $0x84] ss:$16 sps:$4 sm:$0xff]   ;;  %v16842_v14 = vld [vmem:[%s19469_s9 + $0x80] ss:$16 sps:$4 sm:$0xff]   ;;  %v19548_v60 = vld [vmem:[#allocation2 + $0x58] sm:$0xff]  ;;  %v285_v63 = vmul.f32 %v19546_v59, %v19546_v59 }
  0x59   : > { %1189 = vmatpush1.bf16.msra.mxu1 %v16831_v7  ;;  %1137 = vmatprep.subr.bf16.mxu0 %v16832_v8  ;;  %v16840_v13 = vld [vmem:[%s19469_s9 + $0x284] ss:$16 sps:$4 sm:$0xff]   ;;  %v16843_v15 = vld [vmem:[%s19469_s9 + $0x280] ss:$16 sps:$4 sm:$0xff]   ;;  %v19550_v61 = vld [vmem:[#allocation2 + $0x78] sm:$0xff]  ;;  %v289_v0 = vmul.f32 %v19548_v60, %v19548_v60 }
  0x5a   : > { %1190 = vmatprep.subr.bf16.mxu1 %v16834_v9  ;;  %v16844_v16 = vld [vmem:[%s19469_s9 + $0x64] ss:$16 sps:$4 sm:$0xff]   ;;  %v16848_v18 = vld [vmem:[%s19469_s9 + $0x60] ss:$16 sps:$4 sm:$0xff]   ;;  %v293_v6 = vmul.f32 %v19550_v61, %v19550_v61 }
  0x5b   : > { %v16846_v17 = vld [vmem:[%s19469_s9 + $0x264] ss:$16 sps:$4 sm:$0xff]   ;;  %v16849_v19 = vld [vmem:[%s19469_s9 + $0x260] ss:$16 sps:$4 sm:$0xff]  }
  0x5c   : > { %1138 = vmatpush1.bf16.msra.mxu0 %v16836_v10  ;;  %v16850_v20 = vld [vmem:[%s19469_s9 + $0x44] ss:$16 sps:$4 sm:$0xff]   ;;  %v16854_v22 = vld [vmem:[%s19469_s9 + $0x40] ss:$16 sps:$4 sm:$0xff]  }
  0x5d   : > { %1191 = vmatpush1.bf16.msra.mxu1 %v16837_v11  ;;  %1139 = vmatprep.subr.bf16.mxu0 %v16838_v12  ;;  %v16852_v21 = vld [vmem:[%s19469_s9 + $0x244] ss:$16 sps:$4 sm:$0xff]   ;;  %v16855_v23 = vld [vmem:[%s19469_s9 + $0x240] ss:$16 sps:$4 sm:$0xff]   ;;  %v303_v12 = vadd.f32 %v285_v63, %v281_v62 }
  0x5e   : > { %1192 = vmatprep.subr.bf16.mxu1 %v16840_v13  ;;  %v16856_v24 = vld [vmem:[%s19469_s9 + $0x24] ss:$16 sps:$4 sm:$0xff]   ;;  %v16860_v26 = vld [vmem:[%s19469_s9 + $0x20] ss:$16 sps:$4 sm:$0xff]  }
  0x5f   : > { %v16858_v25 = vld [vmem:[%s19469_s9 + $0x224] ss:$16 sps:$4 sm:$0xff]   ;;  %v16861_v27 = vld [vmem:[%s19469_s9 + $0x220] ss:$16 sps:$4 sm:$0xff]  }
  0x60   : > { %1140 = vmatpush1.bf16.msra.mxu0 %v16842_v14  ;;  %v16862_v28 = vld [vmem:[%s19469_s9 + $0x4] ss:$16 sps:$4 sm:$0xff]   ;;  %v16866_v30 = vld [vmem:[%s19469_s9] ss:$16 sps:$4 sm:$0xff]  }
  0x61   : > { %1193 = vmatpush1.bf16.msra.mxu1 %v16843_v15  ;;  %1141 = vmatprep.subr.bf16.mxu0 %v16844_v16  ;;  %v16864_v29 = vld [vmem:[%s19469_s9 + $0x204] ss:$16 sps:$4 sm:$0xff]   ;;  %v16867_v31 = vld [vmem:[%s19469_s9 + $0x200] ss:$16 sps:$4 sm:$0xff]  }
  0x62   : > { %1194 = vmatprep.subr.bf16.mxu1 %v16846_v17  ;;  %v16868_v32 = vld [vmem:[%s19469_s9 + $0x1e4] ss:$16 sps:$4 sm:$0xff]   ;;  %v16872_v34 = vld [vmem:[%s19469_s9 + $0x1e0] ss:$16 sps:$4 sm:$0xff]  }
  0x63   : > { %v16870_v33 = vld [vmem:[%s19469_s9 + $0x3e4] ss:$16 sps:$4 sm:$0xff]   ;;  %v16873_v35 = vld [vmem:[%s19469_s9 + $0x3e0] ss:$16 sps:$4 sm:$0xff]  }
  0x64   : > { %1142 = vmatpush1.bf16.msra.mxu0 %v16848_v18  ;;  %v16874_v36 = vld [vmem:[%s19469_s9 + $0x1c4] ss:$16 sps:$4 sm:$0xff]   ;;  %v16878_v38 = vld [vmem:[%s19469_s9 + $0x1c0] ss:$16 sps:$4 sm:$0xff]  }
  0x65   : > { %1195 = vmatpush1.bf16.msra.mxu1 %v16849_v19  ;;  %1143 = vmatprep.subr.bf16.mxu0 %v16850_v20  ;;  %v16876_v37 = vld [vmem:[%s19469_s9 + $0x3c4] ss:$16 sps:$4 sm:$0xff]   ;;  %v16879_v39 = vld [vmem:[%s19469_s9 + $0x3c0] ss:$16 sps:$4 sm:$0xff]   ;;  %v298_v20 = vadd.f32 %v297_v5, %v287_v56  ;;  %v16918_v56 = vld [vmem:[%s19469_s9 + $0xec] ss:$16 sps:$4 sm:$0xff]  }
  0x66   : > { %1196 = vmatprep.subr.bf16.mxu1 %v16852_v21  ;;  %v16880_v40 = vld [vmem:[%s19469_s9 + $0x1a4] ss:$16 sps:$4 sm:$0xff]   ;;  %v16884_v42 = vld [vmem:[%s19469_s9 + $0x1a0] ss:$16 sps:$4 sm:$0xff]  }
  0x67   : > { %v16882_v41 = vld [vmem:[%s19469_s9 + $0x3a4] ss:$16 sps:$4 sm:$0xff]   ;;  %v16885_v43 = vld [vmem:[%s19469_s9 + $0x3a0] ss:$16 sps:$4 sm:$0xff]  }
  0x68   : > { %1144 = vmatpush1.bf16.msra.mxu0 %v16854_v22  ;;  %v16886_v44 = vld [vmem:[%s19469_s9 + $0x184] ss:$16 sps:$4 sm:$0xff]   ;;  %v16890_v46 = vld [vmem:[%s19469_s9 + $0x180] ss:$16 sps:$4 sm:$0xff]  }
  0x69   : > { %1197 = vmatpush1.bf16.msra.mxu1 %v16855_v23  ;;  %1145 = vmatprep.subr.bf16.mxu0 %v16856_v24  ;;  %v16888_v45 = vld [vmem:[%s19469_s9 + $0x384] ss:$16 sps:$4 sm:$0xff]   ;;  %v16891_v47 = vld [vmem:[%s19469_s9 + $0x380] ss:$16 sps:$4 sm:$0xff]   ;;  %v304_v24 = vadd.f32 %v303_v12, %v289_v0 }
  0x6a   : > { %1198 = vmatprep.subr.bf16.mxu1 %v16858_v25  ;;  %v16892_v49 = vld [vmem:[%s19469_s9 + $0x164] ss:$16 sps:$4 sm:$0xff]   ;;  %v16896_v3 = vld [vmem:[%s19469_s9 + $0x160] ss:$16 sps:$4 sm:$0xff]  }
  0x6b   : > { %v16894_v50 = vld [vmem:[%s19469_s9 + $0x364] ss:$16 sps:$4 sm:$0xff]   ;;  %v16897_v4 = vld [vmem:[%s19469_s9 + $0x360] ss:$16 sps:$4 sm:$0xff]  }
  0x6c   : > { %1146 = vmatpush1.bf16.msra.mxu0 %v16860_v26  ;;  %v19558_v1 = vld [vmem:[#allocation2] sm:$0xff]  ;;  %v19574_v11 = vld [vmem:[#allocation2 + $0x10] sm:$0xff]  ;;  %v299_v26 = vadd.f32 %v298_v20, %v291_v57  ;;  %v16921_v57 = vld [vmem:[%s19469_s9 + $0x2ec] ss:$16 sps:$4 sm:$0xff]  }
  0x6d   : > { %1199 = vmatpush1.bf16.msra.mxu1 %v16861_v27  ;;  %1147 = vmatprep.subr.bf16.mxu0 %v16862_v28  ;;  %v19560_v2 = vld [vmem:[#allocation2 + $0x20] sm:$0xff]  ;;  %v278_v9 = vmul.f32 %v19558_v1, %v19558_v1  ;;  %v19580_v15 = vld [vmem:[#allocation2 + $0x30] sm:$0xff]  ;;  %v280_v18 = vmul.f32 %v19574_v11, %v19574_v11 }
  0x6e   : > { %1200 = vmatprep.subr.bf16.mxu1 %v16864_v29  ;;  %v19566_v7 = vld [vmem:[#allocation2 + $0x40] sm:$0xff]  ;;  %v282_v10 = vmul.f32 %v19560_v2, %v19560_v2  ;;  %v19582_v16 = vld [vmem:[#allocation2 + $0x50] sm:$0xff]  ;;  %v284_v22 = vmul.f32 %v19580_v15, %v19580_v15 }
  0x6f   : > { %v19568_v8 = vld [vmem:[#allocation2 + $0x60] sm:$0xff]  ;;  %v286_v13 = vmul.f32 %v19566_v7, %v19566_v7  ;;  %v19584_v17 = vld [vmem:[#allocation2 + $0x70] sm:$0xff]  ;;  %v288_v25 = vmul.f32 %v19582_v16, %v19582_v16 }
  0x70   : > { %1148 = vmatpush1.bf16.msra.mxu0 %v16866_v30  ;;  %v290_v14 = vmul.f32 %v19568_v8, %v19568_v8  ;;  %v16898_v19 = vld [vmem:[%s19469_s9 + $0x144] ss:$16 sps:$4 sm:$0xff]   ;;  %v294_v21 = vadd.f32 %v282_v10, %v278_v9  ;;  %v292_v28 = vmul.f32 %v19584_v17, %v19584_v17  ;;  %v300_v29 = vadd.f32 %v284_v22, %v280_v18  ;;  %v16902_v30 = vld [vmem:[%s19469_s9 + $0x140] ss:$16 sps:$4 sm:$0xff]  }
  0x71   : > { %1201 = vmatpush1.bf16.msra.mxu1 %v16867_v31  ;;  %1149 = vmatprep.subr.bf16.mxu0 %v16868_v32  ;;  %v16900_v23 = vld [vmem:[%s19469_s9 + $0x344] ss:$16 sps:$4 sm:$0xff]   ;;  %v16903_v31 = vld [vmem:[%s19469_s9 + $0x340] ss:$16 sps:$4 sm:$0xff]   ;;  %v305_v32 = vadd.f32 %v304_v24, %v293_v6 }
  0x72   : > { %1202 = vmatprep.subr.bf16.mxu1 %v16870_v33  ;;  %v295_v27 = vadd.f32 %v294_v21, %v286_v13  ;;  %v16904_v33 = vld [vmem:[%s19469_s9 + $0x124] ss:$16 sps:$4 sm:$0xff]   ;;  %v16914_v54 = vld [vmem:[%s19469_s9 + $0x100] ss:$16 sps:$4 sm:$0xff]   ;;  %v16927_v21 = vld [vmem:[%s19469_s9 + $0x2cc] ss:$16 sps:$4 sm:$0xff]  }
  0x73   : > { %v16915_v55 = vld [vmem:[%s19469_s9 + $0x300] ss:$16 sps:$4 sm:$0xff]  }
  0x74   : > { %1150 = vmatpush2.bf16.msra.mxu0 %v16872_v34  ;;  %v308_v34 = vmul.f32 0.25, %v299_v26  ;;  %v16933_v26 = vld [vmem:[%s19469_s9 + $0x2ac] ss:$16 sps:$4 sm:$0xff]  }
  0x75   : > { %1203 = vmatpush2.bf16.msra.mxu1 %v16873_v35  ;;  %1151 = vmatprep.subr.bf16.mxu0 %v16874_v36  ;;  %v296_v35 = vadd.f32 %v295_v27, %v290_v14  ;;  %v301_v36 = vadd.f32 %v300_v29, %v288_v25  ;;  %v16928_v27 = vld [vmem:[%s19469_s9 + $0xa8] ss:$16 sps:$4 sm:$0xff]   ;;  %v16939_v29 = vld [vmem:[%s19469_s9 + $0x28c] ss:$16 sps:$4 sm:$0xff]  }
  0x76   : > { %1204 = vmatprep.subr.bf16.mxu1 %v16876_v37  ;;  %v16906_v37 = vld [vmem:[%s19469_s9 + $0x324] ss:$16 sps:$4 sm:$0xff]  }
  0x78   : > { %1152 = vmatpush2.bf16.msra.mxu0 %v16878_v38  ;;  %v310_v38 = vmul.f32 0.25, %v305_v32  ;;  %v16937_v32 = vld [vmem:[%s19469_s9 + $0x288] ss:$16 sps:$4 sm:$0xff]  }
  0x79   : > { %1205 = vmatpush2.bf16.msra.mxu1 %v16879_v39  ;;  %1153 = vmatprep.subr.bf16.mxu0 %v16880_v40  ;;  %v312_v39 = vadd.f32 1e-08, %v308_v34  ;;  %v307_v40 = vmul.f32 0.25, %v296_v35  ;;  %v16940_v34 = vld [vmem:[%s19469_s9 + $0x68] ss:$16 sps:$4 sm:$0xff]  }
  0x7a   : > { %1206 = vmatprep.subr.bf16.mxu1 %v16882_v41  ;;  %v302_v41 = vadd.f32 %v301_v36, %v292_v28  ;;  %v16948_v35 = vld [vmem:[%s19469_s9 + $0x4c] ss:$16 sps:$4 sm:$0xff]   ;;  %v16943_v36 = vld [vmem:[%s19469_s9 + $0x268] ss:$16 sps:$4 sm:$0xff]  }
  0x7b   : > { %17588 = vrsqrt.f32 %v312_v39  ;;  %v16954_v39 = vld [vmem:[%s19469_s9 + $0x2c] ss:$16 sps:$4 sm:$0xff]  }
  0x7c   : > { %1154 = vmatpush2.bf16.msra.mxu0 %v16884_v42  ;;  %v16908_v42 = vld [vmem:[%s19469_s9 + $0x120] ss:$16 sps:$4 sm:$0xff]  }
  0x7d   : > { %1207 = vmatpush2.bf16.msra.mxu1 %v16885_v43  ;;  %1155 = vmatprep.subr.bf16.mxu0 %v16886_v44  ;;  %v314_v43 = vadd.f32 1e-08, %v310_v38  ;;  %v16909_v44 = vld [vmem:[%s19469_s9 + $0x320] ss:$16 sps:$4 sm:$0xff]   ;;  %v16946_v38 = vld [vmem:[%s19469_s9 + $0x48] ss:$16 sps:$4 sm:$0xff]  }
  0x7e   : > { %1208 = vmatprep.subr.bf16.mxu1 %v16888_v45  ;;  %v311_v45 = vadd.f32 1e-08, %v307_v40  ;;  %v16949_v40 = vld [vmem:[%s19469_s9 + $0x248] ss:$16 sps:$4 sm:$0xff]  }
  0x7f   : > { %17590 = vrsqrt.f32 %v314_v43  ;;  %v16960_v43 = vld [vmem:[%s19469_s9 + $0xc] ss:$16 sps:$4 sm:$0xff]  }
  0x80   : > { %1156 = vmatpush2.bf16.msra.mxu0 %v16890_v46  ;;  %v309_v46 = vmul.f32 0.25, %v302_v41  ;;  %17592 = vrsqrt.f32 %v311_v45  ;;  %v16957_v41 = vld [vmem:[%s19469_s9 + $0x22c] ss:$16 sps:$4 sm:$0xff]  }
  0x81   : > { %1209 = vmatpush2.bf16.msra.mxu1 %v16891_v47  ;;  %1157 = vmatprep.subr.bf16.mxu0 %v16892_v49  ;;  %v16910_v47 = vld [vmem:[%s19469_s9 + $0x104] ss:$16 sps:$4 sm:$0xff]   ;;  %v16963_v45 = vld [vmem:[%s19469_s9 + $0x20c] ss:$16 sps:$4 sm:$0xff]  }
  0x82   : > { %1210 = vmatprep.subr.bf16.mxu1 %v16894_v50  ;;  %v16912_v49 = vld [vmem:[%s19469_s9 + $0x304] ss:$16 sps:$4 sm:$0xff]   ;;  %v313_v50 = vadd.f32 1e-08, %v309_v46  ;;  %v16958_v46 = vld [vmem:[%s19469_s9 + $0x8] ss:$16 sps:$4 sm:$0xff]  }
  0x84   : > { %1158 = vmatpush2.bf16.msra.mxu0 %v16896_v3  ;;  %17594 = vrsqrt.f32 %v313_v50  ;;  %v16969_v50 = vld [vmem:[%s19469_s9 + $0x3ec] ss:$16 sps:$4 sm:$0xff]  }
  0x85   : > { %1211 = vmatpush2.bf16.msra.mxu1 %v16897_v4  ;;  %1159 = vmatprep.subr.bf16.mxu0 %v16898_v19 }
  0x86   : > { %1212 = vmatprep.subr.bf16.mxu1 %v16900_v23 }
  0x88   : > { %1160 = vmatpush2.bf16.msra.mxu0 %v16902_v30  ;;  %v17589_v62 = vpop.eup %17588  ;;  %v16934_v30 = vld [vmem:[%s19469_s9 + $0x88] ss:$16 sps:$4 sm:$0xff]  }
  0x89   : > { %1213 = vmatpush2.bf16.msra.mxu1 %v16903_v31  ;;  %1161 = vmatprep.subr.bf16.mxu0 %v16904_v33  ;;  %v320_v0 = vmul.f32 %v17589_v62, %v19526_v48  ;;  %v324_v3 = vmul.f32 %v17589_v62, %v19530_v51  ;;  %v328_v4 = vmul.f32 %v17589_v62, %v19532_v52  ;;  %v16942_v31 = vld [vmem:[%s19469_s9 + $0x6c] ss:$16 sps:$4 sm:$0xff]  }
  0x8a   : > { %1214 = vmatprep.subr.bf16.mxu1 %v16906_v37  ;;  %v332_v5 = vmul.f32 %v17589_v62, %v19534_v53  ;;  %v16916_v53 = vld [vmem:[%s19469_s9 + $0xe8] ss:$16 sps:$4 sm:$0xff]   ;;  %v16945_v33 = vld [vmem:[%s19469_s9 + $0x26c] ss:$16 sps:$4 sm:$0xff]  }
  0x8b   : > { %v336_v14 = vpack.c.bf16 %v324_v3, %v320_v0  ;;  %v16951_v37 = vld [vmem:[%s19469_s9 + $0x24c] ss:$16 sps:$4 sm:$0xff]   ;;  %v16973_v0 = vld [vmem:[%s19469_s9 + $0x3c8] ss:$16 sps:$4 sm:$0xff]  }
  0x8c   : > { %1162 = vmatpush2.bf16.msra.mxu0 %v16908_v42  ;;  %v17591_v63 = vpop.eup %17590  ;;  %v19619_v19 = vpack.c.bf16 %v332_v5, %v328_v4  ;;  %v16952_v42 = vld [vmem:[%s19469_s9 + $0x28] ss:$16 sps:$4 sm:$0xff]   ;;  %v16975_v62 = vld [vmem:[%s19469_s9 + $0x3cc] ss:$16 sps:$4 sm:$0xff]  }
  0x8d   : > { %1215 = vmatpush2.bf16.msra.mxu1 %v16909_v44  ;;  %1163 = vmatprep.subr.bf16.mxu0 %v16910_v47  ;;  %v17593_v6 = vpop.eup %17592  ;;  %v322_v9 = vmul.f32 %v17591_v63, %v19544_v58  ;;  %v326_v10 = vmul.f32 %v17591_v63, %v19546_v59  ;;  %v330_v12 = vmul.f32 %v17591_v63, %v19548_v60  ;;  %v16955_v44 = vld [vmem:[%s19469_s9 + $0x228] ss:$16 sps:$4 sm:$0xff]   ;;  %v16966_v47 = vld [vmem:[%s19469_s9 + $0x1ec] ss:$16 sps:$4 sm:$0xff]  }
  0x8e   : > { %1216 = vmatprep.subr.bf16.mxu1 %v16912_v49  ;;  %v334_v13 = vmul.f32 %v17591_v63, %v19550_v61  ;;  %v319_v48 = vmul.f32 %v17593_v6, %v19558_v1  ;;  %v323_v51 = vmul.f32 %v17593_v6, %v19560_v2  ;;  %1165 = vmatprep.mubr.bf16.mxu0 %v336_v14  ;;  %v16924_v61 = vld [vmem:[%s19469_s9 + $0xcc] ss:$16 sps:$4 sm:$0xff]   ;;  %v16919_v1 = vld [vmem:[%s19469_s9 + $0x2e8] ss:$16 sps:$4 sm:$0xff]  }
  0x8f   : > { %v338_v18 = vpack.c.bf16 %v326_v10, %v322_v9  ;;  %v327_v22 = vmul.f32 %v17593_v6, %v19566_v7  ;;  %v331_v23 = vmul.f32 %v17593_v6, %v19568_v8  ;;  %v16925_v7 = vld [vmem:[%s19469_s9 + $0x2c8] ss:$16 sps:$4 sm:$0xff]   ;;  %v16978_v63 = vld [vmem:[%s19469_s9 + $0x1ac] ss:$16 sps:$4 sm:$0xff]  }
  0x90   : > { %1164 = vmatpush2.bf16.msra.mxu0 %v16914_v54  ;;  %v19621_v58 = vpack.c.bf16 %v323_v51, %v319_v48  ;;  %v19627_v20 = vpack.c.bf16 %v334_v13, %v330_v12  ;;  %v16961_v49 = vld [vmem:[%s19469_s9 + $0x208] ss:$16 sps:$4 sm:$0xff]   ;;  %v16981_v3 = vld [vmem:[%s19469_s9 + $0x3ac] ss:$16 sps:$4 sm:$0xff]  }
  0x91   : > { %1217 = vmatpush2.bf16.msra.mxu1 %v16915_v55  ;;  %1239 = vmatprep.subr.bf16.mxu0 %v16918_v56  ;;  %v17595_v52 = vpop.eup %17594  ;;  %v19643_v8 = vpack.c.bf16 %v331_v23, %v327_v22  ;;  %v16964_v54 = vld [vmem:[%s19469_s9 + $0x1e8] ss:$16 sps:$4 sm:$0xff]   ;;  %v16972_v56 = vld [vmem:[%s19469_s9 + $0x1cc] ss:$16 sps:$4 sm:$0xff]  }
  0x92   : > { %1292 = vmatprep.subr.bf16.mxu1 %v16921_v57  ;;  %v321_v59 = vmul.f32 %v17595_v52, %v19574_v11  ;;  %v325_v60 = vmul.f32 %v17595_v52, %v19580_v15  ;;  %1218 = vmatprep.mubr.bf16.mxu1 %v338_v18  ;;  %v16922_v11 = vld [vmem:[%s19469_s9 + $0xc8] ss:$16 sps:$4 sm:$0xff]   ;;  %v16930_v15 = vld [vmem:[%s19469_s9 + $0xac] ss:$16 sps:$4 sm:$0xff]   ;;  %v329_v24 = vmul.f32 %v17595_v52, %v19582_v16 }
  0x93   : > { %1166 = vmatmul.mubr.bf16.vlgmr.msra.gmra.mxu0 %v19621_v58  ;;  %v333_v25 = vmul.f32 %v17595_v52, %v19584_v17  ;;  %v16936_v16 = vld [vmem:[%s19469_s9 + $0x8c] ss:$16 sps:$4 sm:$0xff]   ;;  %v16931_v17 = vld [vmem:[%s19469_s9 + $0x2a8] ss:$16 sps:$4 sm:$0xff]  }
  0x94   : > { %v19630_v2 = vpack.c.bf16 %v325_v60, %v321_v59  ;;  %1240 = vmatpush1.bf16.msra.mxu0 %v16916_v53  ;;  %1175 = vmatprep.mubr.bf16.mxu0 %v19619_v19  ;;  %v16967_v55 = vld [vmem:[%s19469_s9 + $0x3e8] ss:$16 sps:$4 sm:$0xff]   ;;  %v16984_v5 = vld [vmem:[%s19469_s9 + $0x18c] ss:$16 sps:$4 sm:$0xff]  }
  0x95   : > { %1241 = vmatprep.subr.bf16.mxu0 %v16924_v61  ;;  %v19647_v28 = vpack.c.bf16 %v333_v25, %v329_v24  ;;  %v16970_v57 = vld [vmem:[%s19469_s9 + $0x1c8] ss:$16 sps:$4 sm:$0xff]   ;;  %v16987_v9 = vld [vmem:[%s19469_s9 + $0x38c] ss:$16 sps:$4 sm:$0xff]   ;;  %v17012_v25 = vld [vmem:[%s19469_s9 + $0x4e0] ss:$16 sps:$4 sm:$0xff]  }
  0x96   : > { %1219 = vmatmul.mubr.bf16.vlgmr.msra.gmra.mxu1 %v19630_v2  ;;  %v16976_v4 = vld [vmem:[%s19469_s9 + $0x1a8] ss:$16 sps:$4 sm:$0xff]   ;;  %v16990_v12 = vld [vmem:[%s19469_s9 + $0x16c] ss:$16 sps:$4 sm:$0xff]  }
  0x97   : > { %1293 = vmatpush1.bf16.msra.mxu1 %v16919_v1  ;;  %1228 = vmatprep.mubr.bf16.mxu1 %v19627_v20  ;;  %v16979_v6 = vld [vmem:[%s19469_s9 + $0x3a8] ss:$16 sps:$4 sm:$0xff]   ;;  %v16996_v51 = vld [vmem:[%s19469_s9 + $0x14c] ss:$16 sps:$4 sm:$0xff]  }
  0x98   : > { %1294 = vmatprep.subr.bf16.mxu1 %v16927_v21  ;;  %1242 = vmatpush1.bf16.msra.mxu0 %v16922_v11  ;;  %v16982_v10 = vld [vmem:[%s19469_s9 + $0x188] ss:$16 sps:$4 sm:$0xff]   ;;  %v17002_v59 = vld [vmem:[%s19469_s9 + $0x12c] ss:$16 sps:$4 sm:$0xff]  }
  0x99   : > { %1243 = vmatprep.subr.bf16.mxu0 %v16930_v15  ;;  %v16985_v13 = vld [vmem:[%s19469_s9 + $0x388] ss:$16 sps:$4 sm:$0xff]   ;;  %v17005_v61 = vld [vmem:[%s19469_s9 + $0x32c] ss:$16 sps:$4 sm:$0xff]   ;;  %v17014_v15 = vld [vmem:[%s19469_s9 + $0x4e4] ss:$16 sps:$4 sm:$0xff]  }
  0x9a   : > { %v16988_v48 = vld [vmem:[%s19469_s9 + $0x168] ss:$16 sps:$4 sm:$0xff]   ;;  %v17008_v21 = vld [vmem:[%s19469_s9 + $0x10c] ss:$16 sps:$4 sm:$0xff]  }
  0x9b   : > { %1295 = vmatpush1.bf16.msra.mxu1 %v16925_v7  ;;  %1176 = vmatmul.mubr.bf16.gmra.mxu0 %v19643_v8  ;;  %v16991_v52 = vld [vmem:[%s19469_s9 + $0x368] ss:$16 sps:$4 sm:$0xff]   ;;  %v17011_v23 = vld [vmem:[%s19469_s9 + $0x30c] ss:$16 sps:$4 sm:$0xff]   ;;  %v17017_v7 = vld [vmem:[%s19469_s9 + $0x4c4] ss:$16 sps:$4 sm:$0xff]  }
  0x9c   : > { %1296 = vmatprep.subr.bf16.mxu1 %v16933_v26  ;;  %1244 = vmatpush1.bf16.msra.mxu0 %v16928_v27  ;;  %v16994_v53 = vld [vmem:[%s19469_s9 + $0x148] ss:$16 sps:$4 sm:$0xff]   ;;  %v17015_v26 = vld [vmem:[%s19469_s9 + $0x4c0] ss:$16 sps:$4 sm:$0xff]   ;;  %v17020_v27 = vld [vmem:[%s19469_s9 + $0x4a4] ss:$16 sps:$4 sm:$0xff]  }
  0x9d   : > { %1271 = vmatprep.mubr.bf16.mxu0 %v336_v14  ;;  %1245 = vmatprep.subr.bf16.mxu0 %v16936_v16  ;;  %v16993_v14 = vld [vmem:[%s19469_s9 + $0x36c] ss:$16 sps:$4 sm:$0xff]   ;;  %v16997_v60 = vld [vmem:[%s19469_s9 + $0x348] ss:$16 sps:$4 sm:$0xff]   ;;  %v17018_v16 = vld [vmem:[%s19469_s9 + $0x4a0] ss:$16 sps:$4 sm:$0xff]  }
  0x9e   : > { %1229 = vmatmul.mubr.bf16.gmra.mxu1 %v19647_v28  ;;  %v17000_v1 = vld [vmem:[%s19469_s9 + $0x128] ss:$16 sps:$4 sm:$0xff]  }
  0x9f   : > { %1297 = vmatpush1.bf16.msra.mxu1 %v16931_v17  ;;  %1324 = vmatprep.mubr.bf16.mxu1 %v338_v18  ;;  %v16999_v18 = vld [vmem:[%s19469_s9 + $0x34c] ss:$16 sps:$4 sm:$0xff]   ;;  %v17003_v22 = vld [vmem:[%s19469_s9 + $0x328] ss:$16 sps:$4 sm:$0xff]   ;;  %v17029_v17 = vld [vmem:[%s19469_s9 + $0x444] ss:$16 sps:$4 sm:$0xff]  }
  0xa0   : > { %1298 = vmatprep.subr.bf16.mxu1 %v16939_v29  ;;  %1246 = vmatpush1.bf16.msra.mxu0 %v16934_v30  ;;  %v17006_v11 = vld [vmem:[%s19469_s9 + $0x108] ss:$16 sps:$4 sm:$0xff]   ;;  %v17027_v29 = vld [vmem:[%s19469_s9 + $0x440] ss:$16 sps:$4 sm:$0xff]   ;;  %v17062_v30 = vld [vmem:[%s19469_s9 + $0x6e4] ss:$16 sps:$4 sm:$0xff]  }
  0xa1   : > { %1247 = vmatprep.subr.bf16.mxu0 %v16942_v31  ;;  %v17009_v24 = vld [vmem:[%s19469_s9 + $0x308] ss:$16 sps:$4 sm:$0xff]   ;;  %v17060_v31 = vld [vmem:[%s19469_s9 + $0x6e0] ss:$16 sps:$4 sm:$0xff]  }
  0xa3   : > { %1299 = vmatpush1.bf16.msra.mxu1 %v16937_v32  ;;  %v17066_v32 = vld [vmem:[%s19469_s9 + $0x6c0] ss:$16 sps:$4 sm:$0xff]  }
  0xa4   : > { %1300 = vmatprep.subr.bf16.mxu1 %v16945_v33  ;;  %1248 = vmatpush1.bf16.msra.mxu0 %v16940_v34  ;;  %v17068_v33 = vld [vmem:[%s19469_s9 + $0x6c4] ss:$16 sps:$4 sm:$0xff]  }
  0xa5   : > { %1249 = vmatprep.subr.bf16.mxu0 %v16948_v35  ;;  %v17035_v34 = vld [vmem:[%s19469_s9 + $0x404] ss:$16 sps:$4 sm:$0xff]   ;;  %v17033_v35 = vld [vmem:[%s19469_s9 + $0x400] ss:$16 sps:$4 sm:$0xff]  }
  0xa7   : > { %1301 = vmatpush1.bf16.msra.mxu1 %v16943_v36  ;;  %v17072_v36 = vld [vmem:[%s19469_s9 + $0x6a0] ss:$16 sps:$4 sm:$0xff]  }
  0xa8   : > { %1302 = vmatprep.subr.bf16.mxu1 %v16951_v37  ;;  %1250 = vmatpush1.bf16.msra.mxu0 %v16946_v38  ;;  %v17074_v37 = vld [vmem:[%s19469_s9 + $0x6a4] ss:$16 sps:$4 sm:$0xff]  }
  0xa9   : > { %1251 = vmatprep.subr.bf16.mxu0 %v16954_v39  ;;  %v17038_v38 = vld [vmem:[%s19469_s9 + $0x5e4] ss:$16 sps:$4 sm:$0xff]   ;;  %v17036_v39 = vld [vmem:[%s19469_s9 + $0x5e0] ss:$16 sps:$4 sm:$0xff]  }
  0xab   : > { %1303 = vmatpush1.bf16.msra.mxu1 %v16949_v40  ;;  %v17080_v40 = vld [vmem:[%s19469_s9 + $0x684] ss:$16 sps:$4 sm:$0xff]  }
  0xac   : > { %1304 = vmatprep.subr.bf16.mxu1 %v16957_v41  ;;  %1252 = vmatpush1.bf16.msra.mxu0 %v16952_v42  ;;  %v17041_v41 = vld [vmem:[%s19469_s9 + $0x5c4] ss:$16 sps:$4 sm:$0xff]   ;;  %v17078_v42 = vld [vmem:[%s19469_s9 + $0x680] ss:$16 sps:$4 sm:$0xff]  }
  0xad   : > { %1253 = vmatprep.subr.bf16.mxu0 %v16960_v43  ;;  %v17039_v43 = vld [vmem:[%s19469_s9 + $0x5c0] ss:$16 sps:$4 sm:$0xff]  }
  0xaf   : > { %1305 = vmatpush1.bf16.msra.mxu1 %v16955_v44  ;;  %v17086_v44 = vld [vmem:[%s19469_s9 + $0x664] ss:$16 sps:$4 sm:$0xff]  }
  0xb0   : > { %1306 = vmatprep.subr.bf16.mxu1 %v16963_v45  ;;  %1254 = vmatpush1.bf16.msra.mxu0 %v16958_v46  ;;  %v17044_v45 = vld [vmem:[%s19469_s9 + $0x5a4] ss:$16 sps:$4 sm:$0xff]   ;;  %v17084_v46 = vld [vmem:[%s19469_s9 + $0x660] ss:$16 sps:$4 sm:$0xff]  }
  0xb1   : > { %1255 = vmatprep.subr.bf16.mxu0 %v16966_v47  ;;  %v17042_v47 = vld [vmem:[%s19469_s9 + $0x5a0] ss:$16 sps:$4 sm:$0xff]  }
  0xb3   : > { %1307 = vmatpush1.bf16.msra.mxu1 %v16961_v49  ;;  %v17092_v49 = vld [vmem:[%s19469_s9 + $0x644] ss:$16 sps:$4 sm:$0xff]  }
  0xb4   : > { %1308 = vmatprep.subr.bf16.mxu1 %v16969_v50  ;;  %1256 = vmatpush2.bf16.msra.mxu0 %v16964_v54  ;;  %v17047_v50 = vld [vmem:[%s19469_s9 + $0x584] ss:$16 sps:$4 sm:$0xff]   ;;  %v17090_v54 = vld [vmem:[%s19469_s9 + $0x640] ss:$16 sps:$4 sm:$0xff]  }
  0xb5   : > { %1257 = vmatprep.subr.bf16.mxu0 %v16972_v56  ;;  %v17098_v56 = vld [vmem:[%s19469_s9 + $0x624] ss:$16 sps:$4 sm:$0xff]  }
  0xb7   : > { %1309 = vmatpush2.bf16.msra.mxu1 %v16967_v55  ;;  %v17045_v55 = vld [vmem:[%s19469_s9 + $0x580] ss:$16 sps:$4 sm:$0xff]  }
  0xb8   : > { %1310 = vmatprep.subr.bf16.mxu1 %v16975_v62  ;;  %1258 = vmatpush2.bf16.msra.mxu0 %v16970_v57  ;;  %v17050_v57 = vld [vmem:[%s19469_s9 + $0x564] ss:$16 sps:$4 sm:$0xff]   ;;  %v17096_v62 = vld [vmem:[%s19469_s9 + $0x620] ss:$16 sps:$4 sm:$0xff]  }
  0xb9   : > { %1259 = vmatprep.subr.bf16.mxu0 %v16978_v63  ;;  %v17048_v63 = vld [vmem:[%s19469_s9 + $0x560] ss:$16 sps:$4 sm:$0xff]  }
  0xbb   : > { %1311 = vmatpush2.bf16.msra.mxu1 %v16973_v0  ;;  %v17104_v0 = vld [vmem:[%s19469_s9 + $0x604] ss:$16 sps:$4 sm:$0xff]  }
  0xbc   : > { %1312 = vmatprep.subr.bf16.mxu1 %v16981_v3  ;;  %1260 = vmatpush2.bf16.msra.mxu0 %v16976_v4  ;;  %v17053_v3 = vld [vmem:[%s19469_s9 + $0x544] ss:$16 sps:$4 sm:$0xff]   ;;  %v17102_v4 = vld [vmem:[%s19469_s9 + $0x600] ss:$16 sps:$4 sm:$0xff]  }
  0xbd   : > { %1261 = vmatprep.subr.bf16.mxu0 %v16984_v5  ;;  %v17051_v5 = vld [vmem:[%s19469_s9 + $0x540] ss:$16 sps:$4 sm:$0xff]  }
  0xbf   : > { %1313 = vmatpush2.bf16.msra.mxu1 %v16979_v6  ;;  %v17110_v6 = vld [vmem:[%s19469_s9 + $0x7e4] ss:$16 sps:$4 sm:$0xff]  }
  0xc0   : > { %1314 = vmatprep.subr.bf16.mxu1 %v16987_v9  ;;  %1262 = vmatpush2.bf16.msra.mxu0 %v16982_v10  ;;  %v17056_v9 = vld [vmem:[%s19469_s9 + $0x524] ss:$16 sps:$4 sm:$0xff]   ;;  %v17108_v10 = vld [vmem:[%s19469_s9 + $0x7e0] ss:$16 sps:$4 sm:$0xff]  }
  0xc1   : > { %1263 = vmatprep.subr.bf16.mxu0 %v16990_v12  ;;  %v17054_v12 = vld [vmem:[%s19469_s9 + $0x520] ss:$16 sps:$4 sm:$0xff]  }
  0xc3   : > { %1315 = vmatpush2.bf16.msra.mxu1 %v16985_v13  ;;  %v17116_v13 = vld [vmem:[%s19469_s9 + $0x7c4] ss:$16 sps:$4 sm:$0xff]  }
  0xc4   : > { %1316 = vmatprep.subr.bf16.mxu1 %v16993_v14  ;;  %1264 = vmatpush2.bf16.msra.mxu0 %v16988_v48  ;;  %v17059_v14 = vld [vmem:[%s19469_s9 + $0x504] ss:$16 sps:$4 sm:$0xff]   ;;  %v17114_v48 = vld [vmem:[%s19469_s9 + $0x7c0] ss:$16 sps:$4 sm:$0xff]  }
  0xc5   : > { %1265 = vmatprep.subr.bf16.mxu0 %v16996_v51  ;;  %v17057_v51 = vld [vmem:[%s19469_s9 + $0x500] ss:$16 sps:$4 sm:$0xff]  }
  0xc7   : > { %1317 = vmatpush2.bf16.msra.mxu1 %v16991_v52  ;;  %v17122_v52 = vld [vmem:[%s19469_s9 + $0x7a4] ss:$16 sps:$4 sm:$0xff]  }
  0xc8   : > { %1318 = vmatprep.subr.bf16.mxu1 %v16999_v18  ;;  %1266 = vmatpush2.bf16.msra.mxu0 %v16994_v53  ;;  %v17065_v18 = vld [vmem:[%s19469_s9 + $0x4ec] ss:$16 sps:$4 sm:$0xff]   ;;  %v17120_v53 = vld [vmem:[%s19469_s9 + $0x7a0] ss:$16 sps:$4 sm:$0xff]  }
  0xc9   : > { %1267 = vmatprep.subr.bf16.mxu0 %v17002_v59  ;;  %v17128_v59 = vld [vmem:[%s19469_s9 + $0x784] ss:$16 sps:$4 sm:$0xff]  }
  0xcb   : > { %1319 = vmatpush2.bf16.msra.mxu1 %v16997_v60  ;;  %v17126_v60 = vld [vmem:[%s19469_s9 + $0x780] ss:$16 sps:$4 sm:$0xff]  }
  0xcc   : > { %1320 = vmatprep.subr.bf16.mxu1 %v17005_v61  ;;  %1268 = vmatpush2.bf16.msra.mxu0 %v17000_v1  ;;  %v17134_v61 = vld [vmem:[%s19469_s9 + $0x764] ss:$16 sps:$4 sm:$0xff]   ;;  %v17132_v1 = vld [vmem:[%s19469_s9 + $0x760] ss:$16 sps:$4 sm:$0xff]  }
  0xcd   : > { %1269 = vmatprep.subr.bf16.mxu0 %v17008_v21  ;;  %v17140_v21 = vld [vmem:[%s19469_s9 + $0x744] ss:$16 sps:$4 sm:$0xff]  }
  0xcf   : > { %1321 = vmatpush2.bf16.msra.mxu1 %v17003_v22  ;;  %v17138_v22 = vld [vmem:[%s19469_s9 + $0x740] ss:$16 sps:$4 sm:$0xff]  }
  0xd0   : > { %1322 = vmatprep.subr.bf16.mxu1 %v17011_v23  ;;  %1270 = vmatpush2.bf16.msra.mxu0 %v17006_v11  ;;  %v17146_v23 = vld [vmem:[%s19469_s9 + $0x724] ss:$16 sps:$4 sm:$0xff]   ;;  %v17144_v11 = vld [vmem:[%s19469_s9 + $0x720] ss:$16 sps:$4 sm:$0xff]  }
  0xd1   : > { %2177 = vmatprep.subr.bf16.mxu0 %v17014_v15  ;;  %v17152_v15 = vld [vmem:[%s19469_s9 + $0x704] ss:$16 sps:$4 sm:$0xff]  }
  0xd3   : > { %1323 = vmatpush2.bf16.msra.mxu1 %v17009_v24  ;;  %1272 = vmatmul.mubr.bf16.vlgmr.msra.gmra.mxu0 %v19621_v58  ;;  %v17023_v58 = vld [vmem:[%s19469_s9 + $0x484] ss:$16 sps:$4 sm:$0xff]   ;;  %v17150_v24 = vld [vmem:[%s19469_s9 + $0x700] ss:$16 sps:$4 sm:$0xff]  }
  0xd4   : > { %1281 = vmatprep.mubr.bf16.mxu0 %v19619_v19  ;;  %2178 = vmatpush1.bf16.msra.mxu0 %v17012_v25  ;;  %v17021_v19 = vld [vmem:[%s19469_s9 + $0x480] ss:$16 sps:$4 sm:$0xff]   ;;  %v17158_v25 = vld [vmem:[%s19469_s9 + $0x6ec] ss:$16 sps:$4 sm:$0xff]  }
  0xd5   : > { %2179 = vmatprep.subr.bf16.mxu0 %v17017_v7  ;;  %2230 = vmatprep.subr.bf16.mxu1 %v17062_v30  ;;  %v473_v7 = vlaneseq }
  0xd6   : > { %1325 = vmatmul.mubr.bf16.vlgmr.msra.gmra.mxu1 %v19630_v2  ;;  %v17026_v2 = vld [vmem:[%s19469_s9 + $0x464] ss:$16 sps:$4 sm:$0xff]  }
  0xd7   : > { %1334 = vmatprep.mubr.bf16.mxu1 %v19627_v20  ;;  %v17024_v20 = vld [vmem:[%s19469_s9 + $0x460] ss:$16 sps:$4 sm:$0xff]   ;;  %2231 = vmatpush1.bf16.msra.mxu1 %v17060_v31 }
  0xd8   : > { %2180 = vmatpush1.bf16.msra.mxu0 %v17015_v26  ;;  %2232 = vmatprep.subr.bf16.mxu1 %v17068_v33  ;;  %v19776_v26 = vshrl.u32 %v473_v7, 7  ;;  %v17083_v7 = vld [vmem:[%s19469_s9 + $0x48c] ss:$16 sps:$4 sm:$0xff]  }
  0xd9   : > { %2181 = vmatprep.subr.bf16.mxu0 %v17020_v27 }
  0xda   : > { %v19779_v27 = vsub.s32 0, %v19776_v26 }
  0xdb   : > { %1282 = vmatmul.mubr.bf16.gmra.mxu0 %v19643_v8  ;;  %v17032_v8 = vld [vmem:[%s19469_s9 + $0x424] ss:$16 sps:$4 sm:$0xff]   ;;  %2233 = vmatpush1.bf16.msra.mxu1 %v17066_v32 }
  0xdc   : > { %2182 = vmatpush1.bf16.msra.mxu0 %v17018_v16  ;;  %2234 = vmatprep.subr.bf16.mxu1 %v17074_v37  ;;  %v19782_v16 = vld [vmem:[%s19475_s6] sm:$0xf] }
  0xdd   : > { %2183 = vmatprep.subr.bf16.mxu0 %v17023_v58  ;;  %v19785_v58 = vsub.s32 1, %v19776_v26 }
  0xde   : > { %1335 = vmatmul.mubr.bf16.gmra.mxu1 %v19647_v28  ;;  %v17030_v28 = vld [vmem:[%s19469_s9 + $0x420] ss:$16 sps:$4 sm:$0xff]  }
  0xdf   : > { %2235 = vmatpush1.bf16.msra.mxu1 %v17072_v36 }
  0xe0   : > { %2184 = vmatpush1.bf16.msra.mxu0 %v17021_v19  ;;  %2236 = vmatprep.subr.bf16.mxu1 %v17080_v40  ;;  %v476_v19 = vrot.slane %v19782_v16, %v19779_v27 }
  0xe1   : > { %2185 = vmatprep.subr.bf16.mxu0 %v17026_v2  ;;  %v480_v2 = vrot.slane %v19782_v16, %v19785_v58 }
  0xe3   : > { %2237 = vmatpush1.bf16.msra.mxu1 %v17078_v42 }
  0xe4   : > { %2186 = vmatpush1.bf16.msra.mxu0 %v17024_v20  ;;  %2238 = vmatprep.subr.bf16.mxu1 %v17086_v44 }
  0xe5   : > { %2187 = vmatprep.subr.bf16.mxu0 %v17029_v17 }
  0xe7   : > { %2239 = vmatpush1.bf16.msra.mxu1 %v17084_v46 }
  0xe8   : > { %2188 = vmatpush1.bf16.msra.mxu0 %v17027_v29  ;;  %2240 = vmatprep.subr.bf16.mxu1 %v17092_v49 }
  0xe9   : > { %2189 = vmatprep.subr.bf16.mxu0 %v17032_v8 }
  0xeb   : > { %2241 = vmatpush1.bf16.msra.mxu1 %v17090_v54 }
  0xec   : > { %2190 = vmatpush1.bf16.msra.mxu0 %v17030_v28  ;;  %2242 = vmatprep.subr.bf16.mxu1 %v17098_v56 }
  0xed   : > { %2191 = vmatprep.subr.bf16.mxu0 %v17035_v34 }
  0xef   : > { %2243 = vmatpush1.bf16.msra.mxu1 %v17096_v62 }
  0xf0   : > { %2192 = vmatpush1.bf16.msra.mxu0 %v17033_v35  ;;  %2244 = vmatprep.subr.bf16.mxu1 %v17104_v0 }
  0xf1   : > { %2193 = vmatprep.subr.bf16.mxu0 %v17038_v38 }
  0xf3   : > { %2245 = vmatpush1.bf16.msra.mxu1 %v17102_v4 }
  0xf4   : > { %2194 = vmatpush2.bf16.msra.mxu0 %v17036_v39  ;;  %2246 = vmatprep.subr.bf16.mxu1 %v17110_v6 }
  0xf5   : > { %2195 = vmatprep.subr.bf16.mxu0 %v17041_v41 }
  0xf7   : > { %2247 = vmatpush2.bf16.msra.mxu1 %v17108_v10 }
  0xf8   : > { %2196 = vmatpush2.bf16.msra.mxu0 %v17039_v43  ;;  %2248 = vmatprep.subr.bf16.mxu1 %v17116_v13 }
  0xf9   : > { %2197 = vmatprep.subr.bf16.mxu0 %v17044_v45 }
  0xfb   : > { %2249 = vmatpush2.bf16.msra.mxu1 %v17114_v48 }
  0xfc   : > { %2198 = vmatpush2.bf16.msra.mxu0 %v17042_v47  ;;  %2250 = vmatprep.subr.bf16.mxu1 %v17122_v52 }
  0xfd   : > { %2199 = vmatprep.subr.bf16.mxu0 %v17047_v50 }
  0xff   : > { %2251 = vmatpush2.bf16.msra.mxu1 %v17120_v53 }
 0x100   : > { %2200 = vmatpush2.bf16.msra.mxu0 %v17045_v55  ;;  %2252 = vmatprep.subr.bf16.mxu1 %v17128_v59 }
 0x101   : > { %2201 = vmatprep.subr.bf16.mxu0 %v17050_v57 }
 0x103   : > { %2253 = vmatpush2.bf16.msra.mxu1 %v17126_v60 }
 0x104   : > { %2202 = vmatpush2.bf16.msra.mxu0 %v17048_v63  ;;  %2254 = vmatprep.subr.bf16.mxu1 %v17134_v61 }
 0x105   : > { %2203 = vmatprep.subr.bf16.mxu0 %v17053_v3 }
 0x107   : > { %2255 = vmatpush2.bf16.msra.mxu1 %v17132_v1 }
 0x108   : > { %2204 = vmatpush2.bf16.msra.mxu0 %v17051_v5  ;;  %2256 = vmatprep.subr.bf16.mxu1 %v17140_v21 }
 0x109   : > { %2205 = vmatprep.subr.bf16.mxu0 %v17056_v9 }
 0x10b   : > { %2257 = vmatpush2.bf16.msra.mxu1 %v17138_v22  ;;  %v17069_v22 = vld [vmem:[%s19469_s9 + $0x4c8] ss:$16 sps:$4 sm:$0xff]  }
 0x10c   : > { %2206 = vmatpush2.bf16.msra.mxu0 %v17054_v12  ;;  %2258 = vmatprep.subr.bf16.mxu1 %v17146_v23  ;;  %v17077_v23 = vld [vmem:[%s19469_s9 + $0x4ac] ss:$16 sps:$4 sm:$0xff]  }
 0x10d   : > { %2207 = vmatprep.subr.bf16.mxu0 %v17059_v14  ;;  %v17063_v14 = vld [vmem:[%s19469_s9 + $0x4e8] ss:$16 sps:$4 sm:$0xff]  }
 0x10f   : > { %2259 = vmatpush2.bf16.msra.mxu1 %v17144_v11 }
 0x110   : > { %2208 = vmatpush2.bf16.msra.mxu0 %v17057_v51  ;;  %2260 = vmatprep.subr.bf16.mxu1 %v17152_v15 }
 0x111   : > { %2283 = vmatprep.subr.bf16.mxu0 %v17065_v18  ;;  %v17071_v18 = vld [vmem:[%s19469_s9 + $0x4cc] ss:$16 sps:$4 sm:$0xff]  }
 0x113   : > { %2261 = vmatpush2.bf16.msra.mxu1 %v17150_v24 }
 0x114   : > { %2336 = vmatprep.subr.bf16.mxu1 %v17158_v25  ;;  %v17075_v25 = vld [vmem:[%s19469_s9 + $0x4a8] ss:$16 sps:$4 sm:$0xff]  }
 0x153   : > { %v1167_v20 = vpop.f32.mrf.mxu0 }
 0x154   : > { %v1168_v17 = vadd.f32 %v1167_v20, %v476_v19  ;;  %v17087_v20 = vld [vmem:[%s19469_s9 + $0x468] ss:$16 sps:$4 sm:$0xff]  }
 0x155   : > { %v1169_v30 = vpop.f32.mrf.mxu0 }
 0x156   : > { %v1220_v29 = vpop.f32.mrf.mxu1  ;;  %v1170_v8 = vadd.f32 %v1169_v30, %v480_v2  ;;  %v17101_v30 = vld [vmem:[%s19469_s9 + $0x42c] ss:$16 sps:$4 sm:$0xff]  }
 0x157   : > { %v1171_v28 = vpop.f32.mrf.mxu0  ;;  %v1221_v34 = vadd.f32 %v1220_v29, %v1168_v17  ;;  %v17095_v17 = vld [vmem:[%s19469_s9 + $0x44c] ss:$16 sps:$4 sm:$0xff]   ;;  %v17093_v29 = vld [vmem:[%s19469_s9 + $0x448] ss:$16 sps:$4 sm:$0xff]  }
 0x158   : > { %v1222_v31 = vpop.f32.mrf.mxu1  ;;  %v1172_v33 = vadd.f32 %v1171_v28, %v476_v19  ;;  %v17105_v28 = vld [vmem:[%s19469_s9 + $0x408] ss:$16 sps:$4 sm:$0xff]  }
 0x159   : > { %v1223_v32 = vadd.f32 %v1222_v31, %v1170_v8  ;;  %v1173_v36 = vpop.f32.mrf.mxu0  ;;  %v1345_v45 = vmul.f32 0.2, %v1221_v34  ;;  %v17099_v8 = vld [vmem:[%s19469_s9 + $0x428] ss:$16 sps:$4 sm:$0xff]   ;;  %v17107_v31 = vld [vmem:[%s19469_s9 + $0x40c] ss:$16 sps:$4 sm:$0xff]  }
 0x15a   : > { %v1224_v35 = vpop.f32.mrf.mxu1  ;;  %v1174_v38 = vadd.f32 %v1173_v36, %v480_v2  ;;  %v17125_v36 = vld [vmem:[%s19469_s9 + $0x5ac] ss:$16 sps:$4 sm:$0xff]  }
 0x15b   : > { %v1225_v37 = vadd.f32 %v1224_v35, %v1172_v33  ;;  %v1177_v40 = vpop.f32.mrf.mxu0  ;;  %v1346_v41 = vmul.f32 0.2, %v1223_v32  ;;  %v1361_v3 = vmax.f32 %v1221_v34, %v1345_v45  ;;  %v17111_v33 = vld [vmem:[%s19469_s9 + $0x5e8] ss:$16 sps:$4 sm:$0xff]   ;;  %v17119_v34 = vld [vmem:[%s19469_s9 + $0x5cc] ss:$16 sps:$4 sm:$0xff]  }
 0x15c   : > { %v1226_v39 = vpop.f32.mrf.mxu1  ;;  %v1178_v44 = vadd.f32 %v1177_v40, %v476_v19  ;;  %v17117_v35 = vld [vmem:[%s19469_s9 + $0x5c8] ss:$16 sps:$4 sm:$0xff]  }
 0x15d   : > { %v1349_v42 = vmul.f32 0.2, %v1225_v37  ;;  %v1227_v43 = vadd.f32 %v1226_v39, %v1174_v38  ;;  %v1179_v46 = vpop.f32.mrf.mxu0  ;;  %v1362_v62 = vmax.f32 %v1223_v32, %v1346_v41  ;;  %v17113_v32 = vld [vmem:[%s19469_s9 + $0x5ec] ss:$16 sps:$4 sm:$0xff]   ;;  %v19823_v39 = vsub.s32 2, %v19776_v26 }
 0x15e   : > { %v1230_v47 = vpop.f32.mrf.mxu1  ;;  %v1180_v50 = vadd.f32 %v1179_v46, %v480_v2  ;;  %v17131_v38 = vld [vmem:[%s19469_s9 + $0x58c] ss:$16 sps:$4 sm:$0xff]   ;;  %v17129_v40 = vld [vmem:[%s19469_s9 + $0x588] ss:$16 sps:$4 sm:$0xff]   ;;  %v19827_v41 = vsub.s32 3, %v19776_v26 }
 0x15f   : > { %v1350_v49 = vmul.f32 0.2, %v1227_v43  ;;  %v1231_v54 = vadd.f32 %v1230_v47, %v1178_v44  ;;  %v1365_v55 = vmax.f32 %v1225_v37, %v1349_v42  ;;  %v1181_v56 = vpop.f32.mrf.mxu0  ;;  %v17123_v37 = vld [vmem:[%s19469_s9 + $0x5a8] ss:$16 sps:$4 sm:$0xff]   ;;  %v17137_v42 = vld [vmem:[%s19469_s9 + $0x56c] ss:$16 sps:$4 sm:$0xff]  }
 0x160   : > { %v1232_v57 = vpop.f32.mrf.mxu1  ;;  %v1182_v0 = vadd.f32 %v1181_v56, %v476_v19  ;;  %v17081_v19 = vld [vmem:[%s19469_s9 + $0x488] ss:$16 sps:$4 sm:$0xff]   ;;  %v488_v45 = vrot.slane %v19782_v16, %v19827_v41  ;;  %v17143_v47 = vld [vmem:[%s19469_s9 + $0x54c] ss:$16 sps:$4 sm:$0xff]  }
 0x161   : > { %v1366_v63 = vmax.f32 %v1227_v43, %v1350_v49  ;;  %v1353_v4 = vmul.f32 0.2, %v1231_v54  ;;  %v1233_v5 = vadd.f32 %v1232_v57, %v1180_v50  ;;  %v1183_v6 = vpop.f32.mrf.mxu0  ;;  %v19792_v48 = vpack.c.bf16 %v1365_v55, %v1361_v3  ;;  %v17135_v44 = vld [vmem:[%s19469_s9 + $0x568] ss:$16 sps:$4 sm:$0xff]  }
 0x162   : > { %v1234_v9 = vpop.f32.mrf.mxu1  ;;  %v1184_v10 = vadd.f32 %v1183_v6, %v480_v2  ;;  %v17089_v2 = vld [vmem:[%s19469_s9 + $0x46c] ss:$16 sps:$4 sm:$0xff]   ;;  %v484_v43 = vrot.slane %v19782_v16, %v19823_v39  ;;  %v17141_v55 = vld [vmem:[%s19469_s9 + $0x548] ss:$16 sps:$4 sm:$0xff]  }
 0x163   : > { %v1235_v12 = vadd.f32 %v1234_v9, %v1182_v0  ;;  %v1378_v13 = vpack.c.bf16 %v1366_v63, %v1362_v62  ;;  %v1354_v51 = vmul.f32 0.2, %v1233_v5  ;;  %v1369_v60 = vmax.f32 %v1231_v54, %v1353_v4  ;;  %v17149_v62 = vld [vmem:[%s19469_s9 + $0x52c] ss:$16 sps:$4 sm:$0xff]   ;;  %v17147_v9 = vld [vmem:[%s19469_s9 + $0x528] ss:$16 sps:$4 sm:$0xff]  }
 0x164   : > { %v1236_v52 = vpop.f32.mrf.mxu1 }
 0x165   : > { %v1357_v53 = vmul.f32 0.2, %v1235_v12  ;;  %v1237_v59 = vadd.f32 %v1236_v52, %v1184_v10  ;;  %2209 = vmatprep.mubr.bf16.mxu0 %v1378_v13  ;;  %v1370_v61 = vmax.f32 %v1233_v5, %v1354_v51 }
 0x166   : > { %2210 = vmatmul.mubr.bf16.vlgmr.msra.gmra.mxu0 %v19792_v48 }
 0x167   : > { %v1373_v1 = vmax.f32 %v1235_v12, %v1357_v53  ;;  %v1358_v21 = vmul.f32 0.2, %v1237_v59  ;;  %2284 = vmatpush1.bf16.msra.mxu0 %v17063_v14 }
 0x168   : > { %2285 = vmatprep.subr.bf16.mxu0 %v17071_v18 }
 0x169   : > { %v1374_v11 = vmax.f32 %v1237_v59, %v1358_v21  ;;  %v19798_v15 = vpack.c.bf16 %v1373_v1, %v1369_v60 }
 0x16b   : > { %2286 = vmatpush1.bf16.msra.mxu0 %v17069_v22  ;;  %v19800_v24 = vpack.c.bf16 %v1374_v11, %v1370_v61  ;;  %v17153_v22 = vld [vmem:[%s19469_s9 + $0x508] ss:$16 sps:$4 sm:$0xff]  }
 0x16c   : > { %2287 = vmatprep.subr.bf16.mxu0 %v17077_v23 }
 0x16d   : > { %2219 = vmatprep.mubr.bf16.mxu0 %v19800_v24 }
 0x16e   : > { %2220 = vmatmul.mubr.bf16.gmra.mxu0 %v19798_v15 }
 0x16f   : > { %2288 = vmatpush1.bf16.msra.mxu0 %v17075_v25  ;;  %2315 = vmatprep.mubr.bf16.mxu0 %v1378_v13  ;;  %v17155_v13 = vld [vmem:[%s19469_s9 + $0x50c] ss:$16 sps:$4 sm:$0xff]  }
 0x170   : > { %2289 = vmatprep.subr.bf16.mxu0 %v17083_v7 }
 0x173   : > { %2290 = vmatpush1.bf16.msra.mxu0 %v17081_v19 }
 0x174   : > { %2291 = vmatprep.subr.bf16.mxu0 %v17089_v2 }
 0x177   : > { %2292 = vmatpush1.bf16.msra.mxu0 %v17087_v20 }
 0x178   : > { %2293 = vmatprep.subr.bf16.mxu0 %v17095_v17 }
 0x17b   : > { %2294 = vmatpush1.bf16.msra.mxu0 %v17093_v29 }
 0x17c   : > { %2295 = vmatprep.subr.bf16.mxu0 %v17101_v30 }
 0x17f   : > { %2296 = vmatpush1.bf16.msra.mxu0 %v17099_v8 }
 0x180   : > { %2297 = vmatprep.subr.bf16.mxu0 %v17107_v31 }
 0x183   : > { %2298 = vmatpush1.bf16.msra.mxu0 %v17105_v28 }
 0x184   : > { %2299 = vmatprep.subr.bf16.mxu0 %v17113_v32 }
 0x187   : > { %2300 = vmatpush2.bf16.msra.mxu0 %v17111_v33  ;;  %v17156_v33 = vld [vmem:[%s19469_s9 + $0x6e8] ss:$16 sps:$4 sm:$0xff]  }
 0x188   : > { %2301 = vmatprep.subr.bf16.mxu0 %v17119_v34 }
 0x18b   : > { %2302 = vmatpush2.bf16.msra.mxu0 %v17117_v35 }
 0x18c   : > { %2303 = vmatprep.subr.bf16.mxu0 %v17125_v36 }
 0x18f   : > { %2304 = vmatpush2.bf16.msra.mxu0 %v17123_v37  ;;  %v17161_v37 = vld [vmem:[%s19469_s9 + $0x6cc] ss:$16 sps:$4 sm:$0xff]  }
 0x190   : > { %2305 = vmatprep.subr.bf16.mxu0 %v17131_v38 }
 0x193   : > { %2306 = vmatpush2.bf16.msra.mxu0 %v17129_v40  ;;  %v1273_v46 = vpop.f32.mrf.mxu0 }
 0x194   : > { %2307 = vmatprep.subr.bf16.mxu0 %v17137_v42  ;;  %v1274_v49 = vadd.f32 %v1273_v46, %v484_v43  ;;  %v17159_v46 = vld [vmem:[%s19469_s9 + $0x6c8] ss:$16 sps:$4 sm:$0xff]  }
 0x195   : > { %v1275_v54 = vpop.f32.mrf.mxu0 }
 0x196   : > { %v1326_v50 = vpop.f32.mrf.mxu1  ;;  %v1276_v26 = vadd.f32 %v1275_v54, %v488_v45  ;;  %v17162_v54 = vld [vmem:[%s19469_s9 + $0x6a8] ss:$16 sps:$4 sm:$0xff]  }
 0x197   : > { %2308 = vmatpush2.bf16.msra.mxu0 %v17135_v44  ;;  %v1277_v57 = vpop.f32.mrf.mxu0  ;;  %v1327_v3 = vadd.f32 %v1326_v50, %v1274_v49 }
 0x198   : > { %v1328_v56 = vpop.f32.mrf.mxu1  ;;  %2309 = vmatprep.subr.bf16.mxu0 %v17143_v47  ;;  %v1278_v0 = vadd.f32 %v1277_v57, %v484_v43  ;;  %v17164_v47 = vld [vmem:[%s19469_s9 + $0x6ac] ss:$16 sps:$4 sm:$0xff]   ;;  %v17165_v57 = vld [vmem:[%s19469_s9 + $0x688] ss:$16 sps:$4 sm:$0xff]  }
 0x199   : > { %v1329_v63 = vadd.f32 %v1328_v56, %v1276_v26  ;;  %v1279_v16 = vpop.f32.mrf.mxu0  ;;  %v1347_v53 = vmul.f32 0.2, %v1327_v3  ;;  %v17167_v26 = vld [vmem:[%s19469_s9 + $0x68c] ss:$16 sps:$4 sm:$0xff]   ;;  %v17209_v56 = vld [vmem:[%s19469_s9 + $0x8c4] ss:$16 sps:$4 sm:$0xff]  }
 0x19a   : > { %v1330_v4 = vpop.f32.mrf.mxu1  ;;  %v1280_v6 = vadd.f32 %v1279_v16, %v488_v45  ;;  %v17215_v16 = vld [vmem:[%s19469_s9 + $0x884] ss:$16 sps:$4 sm:$0xff]  }
 0x19b   : > { %v1331_v5 = vadd.f32 %v1330_v4, %v1278_v0  ;;  %2310 = vmatpush2.bf16.msra.mxu0 %v17141_v55  ;;  %v1283_v12 = vpop.f32.mrf.mxu0  ;;  %v1348_v14 = vmul.f32 0.2, %v1329_v63  ;;  %v1363_v20 = vmax.f32 %v1327_v3, %v1347_v53  ;;  %v17206_v55 = vld [vmem:[%s19469_s9 + $0x8e4] ss:$16 sps:$4 sm:$0xff]   ;;  %v17173_v3 = vld [vmem:[%s19469_s9 + $0x64c] ss:$16 sps:$4 sm:$0xff]  }
 0x19c   : > { %v1332_v10 = vpop.f32.mrf.mxu1  ;;  %2311 = vmatprep.subr.bf16.mxu0 %v17149_v62  ;;  %v1284_v18 = vadd.f32 %v1283_v12, %v484_v43  ;;  %v17170_v62 = vld [vmem:[%s19469_s9 + $0x66c] ss:$16 sps:$4 sm:$0xff]   ;;  %v17212_v0 = vld [vmem:[%s19469_s9 + $0x8a4] ss:$16 sps:$4 sm:$0xff]   ;;  %v17210_v4 = vld [vmem:[%s19469_s9 + $0x8a0] ss:$16 sps:$4 sm:$0xff]  }
 0x19d   : > { %v1351_v51 = vmul.f32 0.2, %v1331_v5  ;;  %v1333_v52 = vadd.f32 %v1332_v10, %v1280_v6  ;;  %v1285_v59 = vpop.f32.mrf.mxu0  ;;  %v1364_v7 = vmax.f32 %v1329_v63, %v1348_v14  ;;  %v17207_v63 = vld [vmem:[%s19469_s9 + $0x8c0] ss:$16 sps:$4 sm:$0xff]   ;;  %v17176_v6 = vld [vmem:[%s19469_s9 + $0x62c] ss:$16 sps:$4 sm:$0xff]  }
 0x19e   : > { %v1336_v60 = vpop.f32.mrf.mxu1  ;;  %v1286_v1 = vadd.f32 %v1285_v59, %v488_v45  ;;  %v17218_v10 = vld [vmem:[%s19469_s9 + $0x864] ss:$16 sps:$4 sm:$0xff]   ;;  %v17174_v12 = vld [vmem:[%s19469_s9 + $0x628] ss:$16 sps:$4 sm:$0xff]   ;;  %v17216_v14 = vld [vmem:[%s19469_s9 + $0x860] ss:$16 sps:$4 sm:$0xff]  }
 0x19f   : > { %v1352_v61 = vmul.f32 0.2, %v1333_v52  ;;  %v1337_v21 = vadd.f32 %v1336_v60, %v1284_v18  ;;  %2312 = vmatpush2.bf16.msra.mxu0 %v17147_v9  ;;  %v1367_v23 = vmax.f32 %v1331_v5, %v1351_v51  ;;  %v1287_v11 = vpop.f32.mrf.mxu0  ;;  %v17171_v5 = vld [vmem:[%s19469_s9 + $0x648] ss:$16 sps:$4 sm:$0xff]   ;;  %v17213_v9 = vld [vmem:[%s19469_s9 + $0x880] ss:$16 sps:$4 sm:$0xff]  }
 0x1a0   : > { %v1338_v25 = vpop.f32.mrf.mxu1  ;;  %2313 = vmatprep.subr.bf16.mxu0 %v17155_v13  ;;  %v1288_v2 = vadd.f32 %v1287_v11, %v484_v43  ;;  %v17179_v13 = vld [vmem:[%s19469_s9 + $0x60c] ss:$16 sps:$4 sm:$0xff]   ;;  %v17221_v51 = vld [vmem:[%s19469_s9 + $0x844] ss:$16 sps:$4 sm:$0xff]   ;;  %v17219_v53 = vld [vmem:[%s19469_s9 + $0x840] ss:$16 sps:$4 sm:$0xff]  }
 0x1a1   : > { %v1368_v19 = vmax.f32 %v1333_v52, %v1352_v61  ;;  %v1355_v17 = vmul.f32 0.2, %v1337_v21  ;;  %v1339_v29 = vadd.f32 %v1338_v25, %v1286_v1  ;;  %v1289_v30 = vpop.f32.mrf.mxu0  ;;  %v19842_v34 = vpack.c.bf16 %v1367_v23, %v1363_v20  ;;  %v17177_v52 = vld [vmem:[%s19469_s9 + $0x608] ss:$16 sps:$4 sm:$0xff]   ;;  %v17182_v18 = vld [vmem:[%s19469_s9 + $0x7ec] ss:$16 sps:$4 sm:$0xff]  }
 0x1a2   : > { %v1340_v8 = vpop.f32.mrf.mxu1  ;;  %v1290_v31 = vadd.f32 %v1289_v30, %v488_v45  ;;  %v17224_v59 = vld [vmem:[%s19469_s9 + $0x824] ss:$16 sps:$4 sm:$0xff]   ;;  %v17180_v60 = vld [vmem:[%s19469_s9 + $0x7e8] ss:$16 sps:$4 sm:$0xff]   ;;  %v17185_v61 = vld [vmem:[%s19469_s9 + $0x7cc] ss:$16 sps:$4 sm:$0xff]  }
 0x1a3   : > { %v1341_v28 = vadd.f32 %v1340_v8, %v1288_v2  ;;  %2314 = vmatpush2.bf16.msra.mxu0 %v17153_v22  ;;  %v1380_v32 = vpack.c.bf16 %v1368_v19, %v1364_v7  ;;  %v1356_v35 = vmul.f32 0.2, %v1339_v29  ;;  %v1371_v42 = vmax.f32 %v1337_v21, %v1355_v17  ;;  %v17222_v1 = vld [vmem:[%s19469_s9 + $0x820] ss:$16 sps:$4 sm:$0xff]   ;;  %v17227_v21 = vld [vmem:[%s19469_s9 + $0x804] ss:$16 sps:$4 sm:$0xff]  }
 0x1a4   : > { %v1342_v36 = vpop.f32.mrf.mxu1  ;;  %3221 = vmatprep.subr.bf16.mxu0 %v17206_v55  ;;  %v17183_v22 = vld [vmem:[%s19469_s9 + $0x7c8] ss:$16 sps:$4 sm:$0xff]   ;;  %v17188_v23 = vld [vmem:[%s19469_s9 + $0x7ac] ss:$16 sps:$4 sm:$0xff]   ;;  %v17225_v11 = vld [vmem:[%s19469_s9 + $0x800] ss:$16 sps:$4 sm:$0xff]  }
 0x1a5   : > { %v1359_v38 = vmul.f32 0.2, %v1341_v28  ;;  %v1343_v40 = vadd.f32 %v1342_v36, %v1290_v31  ;;  %2262 = vmatprep.mubr.bf16.mxu1 %v1380_v32  ;;  %v1372_v43 = vmax.f32 %v1339_v29, %v1356_v35  ;;  %v17230_v25 = vld [vmem:[%s19469_s9 + $0x9e4] ss:$16 sps:$4 sm:$0xff]   ;;  %v17186_v7 = vld [vmem:[%s19469_s9 + $0x7a8] ss:$16 sps:$4 sm:$0xff]  }
 0x1a6   : > { %2316 = vmatmul.mubr.bf16.vlgmr.msra.gmra.mxu0 %v19792_v48  ;;  %2263 = vmatmul.mubr.bf16.vlgmr.msra.gmra.mxu1 %v19842_v34  ;;  %v17191_v19 = vld [vmem:[%s19469_s9 + $0x78c] ss:$16 sps:$4 sm:$0xff]   ;;  %v17228_v2 = vld [vmem:[%s19469_s9 + $0x9e0] ss:$16 sps:$4 sm:$0xff]   ;;  %v17233_v20 = vld [vmem:[%s19469_s9 + $0x9c4] ss:$16 sps:$4 sm:$0xff]  }
 0x1a7   : > { %v1375_v44 = vmax.f32 %v1341_v28, %v1359_v38  ;;  %v1360_v45 = vmul.f32 0.2, %v1343_v40  ;;  %2325 = vmatprep.mubr.bf16.mxu0 %v19800_v24  ;;  %2337 = vmatpush1.bf16.msra.mxu1 %v17156_v33  ;;  %v17204_v24 = vld [vmem:[%s19469_s9 + $0x8e0] ss:$16 sps:$4 sm:$0xff]   ;;  %v17189_v17 = vld [vmem:[%s19469_s9 + $0x788] ss:$16 sps:$4 sm:$0xff]  }
 0x1a8   : > { %2338 = vmatprep.subr.bf16.mxu1 %v17161_v37  ;;  %3222 = vmatpush1.bf16.msra.mxu0 %v17204_v24  ;;  %v17194_v29 = vld [vmem:[%s19469_s9 + $0x76c] ss:$16 sps:$4 sm:$0xff]   ;;  %v17231_v30 = vld [vmem:[%s19469_s9 + $0x9c0] ss:$16 sps:$4 sm:$0xff]   ;;  %v17236_v8 = vld [vmem:[%s19469_s9 + $0x9a4] ss:$16 sps:$4 sm:$0xff]  }
 0x1a9   : > { %v1376_v49 = vmax.f32 %v1343_v40, %v1360_v45  ;;  %v19850_v50 = vpack.c.bf16 %v1375_v44, %v1371_v42  ;;  %3223 = vmatprep.subr.bf16.mxu0 %v17209_v56  ;;  %v17192_v31 = vld [vmem:[%s19469_s9 + $0x768] ss:$16 sps:$4 sm:$0xff]   ;;  %v17197_v28 = vld [vmem:[%s19469_s9 + $0x74c] ss:$16 sps:$4 sm:$0xff]   ;;  %v17239_v33 = vld [vmem:[%s19469_s9 + $0x984] ss:$16 sps:$4 sm:$0xff]  }
 0x1aa   : > { %v17195_v35 = vld [vmem:[%s19469_s9 + $0x748] ss:$16 sps:$4 sm:$0xff]   ;;  %v17200_v36 = vld [vmem:[%s19469_s9 + $0x72c] ss:$16 sps:$4 sm:$0xff]   ;;  %v17237_v37 = vld [vmem:[%s19469_s9 + $0x980] ss:$16 sps:$4 sm:$0xff]  }
 0x1ab   : > { %2339 = vmatpush1.bf16.msra.mxu1 %v17159_v46  ;;  %v19852_v48 = vpack.c.bf16 %v1376_v49, %v1372_v43  ;;  %v17198_v38 = vld [vmem:[%s19469_s9 + $0x728] ss:$16 sps:$4 sm:$0xff]   ;;  %v17203_v40 = vld [vmem:[%s19469_s9 + $0x70c] ss:$16 sps:$4 sm:$0xff]   ;;  %v17242_v43 = vld [vmem:[%s19469_s9 + $0x964] ss:$16 sps:$4 sm:$0xff]  }
 0x1ac   : > { %2340 = vmatprep.subr.bf16.mxu1 %v17164_v47  ;;  %3224 = vmatpush1.bf16.msra.mxu0 %v17207_v63  ;;  %v17201_v42 = vld [vmem:[%s19469_s9 + $0x708] ss:$16 sps:$4 sm:$0xff]   ;;  %v17240_v44 = vld [vmem:[%s19469_s9 + $0x960] ss:$16 sps:$4 sm:$0xff]   ;;  %v17245_v45 = vld [vmem:[%s19469_s9 + $0x944] ss:$16 sps:$4 sm:$0xff]  }
 0x1ad   : > { %2272 = vmatprep.mubr.bf16.mxu1 %v19852_v48  ;;  %3225 = vmatprep.subr.bf16.mxu0 %v17212_v0  ;;  %v17243_v46 = vld [vmem:[%s19469_s9 + $0x940] ss:$16 sps:$4 sm:$0xff]   ;;  %v17248_v47 = vld [vmem:[%s19469_s9 + $0x924] ss:$16 sps:$4 sm:$0xff]   ;;  %v17257_v24 = vld [vmem:[%s19469_s9 + $0x8ec] ss:$16 sps:$4 sm:$0xff]  }
 0x1ae   : > { %2326 = vmatmul.mubr.bf16.gmra.mxu0 %v19798_v15  ;;  %2273 = vmatmul.mubr.bf16.gmra.mxu1 %v19850_v50  ;;  %v17168_v15 = vld [vmem:[%s19469_s9 + $0x668] ss:$16 sps:$4 sm:$0xff]   ;;  %v17246_v49 = vld [vmem:[%s19469_s9 + $0x920] ss:$16 sps:$4 sm:$0xff]   ;;  %v17272_v63 = vld [vmem:[%s19469_s9 + $0xa84] ss:$16 sps:$4 sm:$0xff]  }
 0x1af   : > { %2341 = vmatpush1.bf16.msra.mxu1 %v17162_v54  ;;  %2368 = vmatprep.mubr.bf16.mxu1 %v1380_v32  ;;  %v17234_v32 = vld [vmem:[%s19469_s9 + $0x9a0] ss:$16 sps:$4 sm:$0xff]   ;;  %v17254_v54 = vld [vmem:[%s19469_s9 + $0xae4] ss:$16 sps:$4 sm:$0xff]  }
 0x1b0   : > { %2342 = vmatprep.subr.bf16.mxu1 %v17167_v26  ;;  %3226 = vmatpush1.bf16.msra.mxu0 %v17210_v4  ;;  %v17252_v26 = vld [vmem:[%s19469_s9 + $0xae0] ss:$16 sps:$4 sm:$0xff]   ;;  %v17284_v4 = vld [vmem:[%s19469_s9 + $0xa44] ss:$16 sps:$4 sm:$0xff]  }
 0x1b1   : > { %3227 = vmatprep.subr.bf16.mxu0 %v17215_v16  ;;  %v17258_v55 = vld [vmem:[%s19469_s9 + $0xac0] ss:$16 sps:$4 sm:$0xff]  }
 0x1b2   : > { %v17264_v56 = vld [vmem:[%s19469_s9 + $0xaa0] ss:$16 sps:$4 sm:$0xff]  }
 0x1b3   : > { %2343 = vmatpush1.bf16.msra.mxu1 %v17165_v57  ;;  %v17266_v57 = vld [vmem:[%s19469_s9 + $0xaa4] ss:$16 sps:$4 sm:$0xff]   ;;  %v17276_v0 = vld [vmem:[%s19469_s9 + $0xa60] ss:$16 sps:$4 sm:$0xff]  }
 0x1b4   : > { %2344 = vmatprep.subr.bf16.mxu1 %v17170_v62  ;;  %3228 = vmatpush1.bf16.msra.mxu0 %v17213_v9  ;;  %v17270_v62 = vld [vmem:[%s19469_s9 + $0xa80] ss:$16 sps:$4 sm:$0xff]   ;;  %v17296_v9 = vld [vmem:[%s19469_s9 + $0xa04] ss:$16 sps:$4 sm:$0xff]  }
 0x1b5   : > { %3229 = vmatprep.subr.bf16.mxu0 %v17218_v10  ;;  %v17288_v16 = vld [vmem:[%s19469_s9 + $0xa20] ss:$16 sps:$4 sm:$0xff]  }
 0x1b6   : > { %v17300_v10 = vld [vmem:[%s19469_s9 + $0xbe0] ss:$16 sps:$4 sm:$0xff]  }
 0x1b7   : > { %2345 = vmatpush1.bf16.msra.mxu1 %v17168_v15  ;;  %v17278_v15 = vld [vmem:[%s19469_s9 + $0xa64] ss:$16 sps:$4 sm:$0xff]  }
 0x1b8   : > { %2346 = vmatprep.subr.bf16.mxu1 %v17173_v3  ;;  %3230 = vmatpush1.bf16.msra.mxu0 %v17216_v14  ;;  %v17282_v3 = vld [vmem:[%s19469_s9 + $0xa40] ss:$16 sps:$4 sm:$0xff]   ;;  %v17308_v14 = vld [vmem:[%s19469_s9 + $0xbc4] ss:$16 sps:$4 sm:$0xff]  }
 0x1b9   : > { %3231 = vmatprep.subr.bf16.mxu0 %v17221_v51  ;;  %v17312_v51 = vld [vmem:[%s19469_s9 + $0xba0] ss:$16 sps:$4 sm:$0xff]  }
 0x1bb   : > { %2347 = vmatpush1.bf16.msra.mxu1 %v17171_v5  ;;  %v17290_v5 = vld [vmem:[%s19469_s9 + $0xa24] ss:$16 sps:$4 sm:$0xff]  }
 0x1bc   : > { %2348 = vmatprep.subr.bf16.mxu1 %v17176_v6  ;;  %3232 = vmatpush1.bf16.msra.mxu0 %v17219_v53  ;;  %v17294_v6 = vld [vmem:[%s19469_s9 + $0xa00] ss:$16 sps:$4 sm:$0xff]   ;;  %v17320_v53 = vld [vmem:[%s19469_s9 + $0xb84] ss:$16 sps:$4 sm:$0xff]  }
 0x1bd   : > { %3233 = vmatprep.subr.bf16.mxu0 %v17224_v59  ;;  %v17324_v59 = vld [vmem:[%s19469_s9 + $0xb60] ss:$16 sps:$4 sm:$0xff]  }
 0x1bf   : > { %2349 = vmatpush1.bf16.msra.mxu1 %v17174_v12  ;;  %v17302_v12 = vld [vmem:[%s19469_s9 + $0xbe4] ss:$16 sps:$4 sm:$0xff]  }
 0x1c0   : > { %2350 = vmatprep.subr.bf16.mxu1 %v17179_v13  ;;  %3234 = vmatpush1.bf16.msra.mxu0 %v17222_v1  ;;  %v17306_v13 = vld [vmem:[%s19469_s9 + $0xbc0] ss:$16 sps:$4 sm:$0xff]  }
 0x1c1   : > { %3235 = vmatprep.subr.bf16.mxu0 %v17227_v21  ;;  %v17330_v1 = vld [vmem:[%s19469_s9 + $0xb40] ss:$16 sps:$4 sm:$0xff]   ;;  %v17338_v21 = vld [vmem:[%s19469_s9 + $0xb24] ss:$16 sps:$4 sm:$0xff]  }
 0x1c3   : > { %2351 = vmatpush1.bf16.msra.mxu1 %v17177_v52  ;;  %v17314_v52 = vld [vmem:[%s19469_s9 + $0xba4] ss:$16 sps:$4 sm:$0xff]  }
 0x1c4   : > { %2352 = vmatprep.subr.bf16.mxu1 %v17182_v18  ;;  %3236 = vmatpush1.bf16.msra.mxu0 %v17225_v11  ;;  %v17318_v18 = vld [vmem:[%s19469_s9 + $0xb80] ss:$16 sps:$4 sm:$0xff]  }
 0x1c5   : > { %3237 = vmatprep.subr.bf16.mxu0 %v17230_v25  ;;  %v17342_v11 = vld [vmem:[%s19469_s9 + $0xb00] ss:$16 sps:$4 sm:$0xff]   ;;  %v17350_v25 = vld [vmem:[%s19469_s9 + $0xaec] ss:$16 sps:$4 sm:$0xff]  }
 0x1c7   : > { %2353 = vmatpush2.bf16.msra.mxu1 %v17180_v60  ;;  %v17326_v60 = vld [vmem:[%s19469_s9 + $0xb64] ss:$16 sps:$4 sm:$0xff]  }
 0x1c8   : > { %2354 = vmatprep.subr.bf16.mxu1 %v17185_v61  ;;  %3238 = vmatpush2.bf16.msra.mxu0 %v17228_v2  ;;  %v17332_v61 = vld [vmem:[%s19469_s9 + $0xb44] ss:$16 sps:$4 sm:$0xff]  }
 0x1c9   : > { %3239 = vmatprep.subr.bf16.mxu0 %v17233_v20  ;;  %v19954_v20 = vld [vmem:[%s19475_s6 + $0x4] sm:$0xf] }
 0x1cb   : > { %2355 = vmatpush2.bf16.msra.mxu1 %v17183_v22  ;;  %v17336_v22 = vld [vmem:[%s19469_s9 + $0xb20] ss:$16 sps:$4 sm:$0xff]  }
 0x1cc   : > { %2356 = vmatprep.subr.bf16.mxu1 %v17188_v23  ;;  %3240 = vmatpush2.bf16.msra.mxu0 %v17231_v30  ;;  %v17344_v23 = vld [vmem:[%s19469_s9 + $0xb04] ss:$16 sps:$4 sm:$0xff]   ;;  %v1520_v30 = vrot.slane %v19954_v20, %v19779_v27 }
 0x1cd   : > { %3241 = vmatprep.subr.bf16.mxu0 %v17236_v8 }
 0x1cf   : > { %2357 = vmatpush2.bf16.msra.mxu1 %v17186_v7 }
 0x1d0   : > { %2358 = vmatprep.subr.bf16.mxu1 %v17191_v19  ;;  %3242 = vmatpush2.bf16.msra.mxu0 %v17234_v32 }
 0x1d1   : > { %3243 = vmatprep.subr.bf16.mxu0 %v17239_v33 }
 0x1d3   : > { %2359 = vmatpush2.bf16.msra.mxu1 %v17189_v17 }
 0x1d4   : > { %2360 = vmatprep.subr.bf16.mxu1 %v17194_v29  ;;  %3244 = vmatpush2.bf16.msra.mxu0 %v17237_v37  ;;  %v1524_v29 = vrot.slane %v19954_v20, %v19785_v58 }
 0x1d5   : > { %3245 = vmatprep.subr.bf16.mxu0 %v17242_v43 }
 0x1d7   : > { %2361 = vmatpush2.bf16.msra.mxu1 %v17192_v31 }
 0x1d8   : > { %2362 = vmatprep.subr.bf16.mxu1 %v17197_v28  ;;  %3246 = vmatpush2.bf16.msra.mxu0 %v17240_v44 }
 0x1d9   : > { %3247 = vmatprep.subr.bf16.mxu0 %v17245_v45 }
 0x1db   : > { %2363 = vmatpush2.bf16.msra.mxu1 %v17195_v35 }
 0x1dc   : > { %2364 = vmatprep.subr.bf16.mxu1 %v17200_v36  ;;  %3248 = vmatpush2.bf16.msra.mxu0 %v17243_v46 }
 0x1dd   : > { %3249 = vmatprep.subr.bf16.mxu0 %v17248_v47 }
 0x1df   : > { %2365 = vmatpush2.bf16.msra.mxu1 %v17198_v38 }
 0x1e0   : > { %2366 = vmatprep.subr.bf16.mxu1 %v17203_v40  ;;  %3250 = vmatpush2.bf16.msra.mxu0 %v17246_v49 }
 0x1e3   : > { %2367 = vmatpush2.bf16.msra.mxu1 %v17201_v42 }
 0x1e4   : > { %3274 = vmatprep.subr.bf16.mxu1 %v17254_v54 }
 0x1e6   : > { %2369 = vmatmul.mubr.bf16.vlgmr.msra.gmra.mxu1 %v19842_v34  ;;  %v17251_v34 = vld [vmem:[%s19469_s9 + $0x904] ss:$16 sps:$4 sm:$0xff]  }
 0x1e7   : > { %2378 = vmatprep.mubr.bf16.mxu1 %v19852_v48  ;;  %v17249_v48 = vld [vmem:[%s19469_s9 + $0x900] ss:$16 sps:$4 sm:$0xff]   ;;  %3251 = vmatprep.subr.bf16.mxu0 %v17251_v34 }
 0x1e8   : > { %3252 = vmatpush2.bf16.msra.mxu0 %v17249_v48  ;;  %3275 = vmatpush1.bf16.msra.mxu1 %v17252_v26 }
 0x1e9   : > { %3327 = vmatprep.subr.bf16.mxu0 %v17257_v24 }
 0x1ee   : > { %2379 = vmatmul.mubr.bf16.gmra.mxu1 %v19850_v50  ;;  %v17260_v50 = vld [vmem:[%s19469_s9 + $0xac4] ss:$16 sps:$4 sm:$0xff]  }
 0x1ef   : > { %3276 = vmatprep.subr.bf16.mxu1 %v17260_v50 }
 0x1f0   : > { %3277 = vmatpush1.bf16.msra.mxu1 %v17258_v55 }
 0x1f1   : > { %3278 = vmatprep.subr.bf16.mxu1 %v17266_v57 }
 0x1f4   : > { %3279 = vmatpush1.bf16.msra.mxu1 %v17264_v56 }
 0x1f5   : > { %3280 = vmatprep.subr.bf16.mxu1 %v17272_v63 }
 0x1f8   : > { %3281 = vmatpush1.bf16.msra.mxu1 %v17270_v62 }
 0x1f9   : > { %3282 = vmatprep.subr.bf16.mxu1 %v17278_v15 }
 0x1fc   : > { %3283 = vmatpush1.bf16.msra.mxu1 %v17276_v0 }
 0x1fd   : > { %3284 = vmatprep.subr.bf16.mxu1 %v17284_v4 }
 0x200   : > { %3285 = vmatpush1.bf16.msra.mxu1 %v17282_v3 }
 0x201   : > { %3286 = vmatprep.subr.bf16.mxu1 %v17290_v5 }
 0x204   : > { %3287 = vmatpush1.bf16.msra.mxu1 %v17288_v16 }
 0x205   : > { %3288 = vmatprep.subr.bf16.mxu1 %v17296_v9  ;;  %v17255_v9 = vld [vmem:[%s19469_s9 + $0x8e8] ss:$16 sps:$4 sm:$0xff]  }
 0x208   : > { %3289 = vmatpush1.bf16.msra.mxu1 %v17294_v6 }
 0x209   : > { %3290 = vmatprep.subr.bf16.mxu1 %v17302_v12 }
 0x20c   : > { %3291 = vmatpush2.bf16.msra.mxu1 %v17300_v10 }
 0x20d   : > { %3292 = vmatprep.subr.bf16.mxu1 %v17308_v14 }
 0x210   : > { %3293 = vmatpush2.bf16.msra.mxu1 %v17306_v13  ;;  %v17263_v13 = vld [vmem:[%s19469_s9 + $0x8cc] ss:$16 sps:$4 sm:$0xff]  }
 0x211   : > { %3294 = vmatprep.subr.bf16.mxu1 %v17314_v52 }
 0x214   : > { %3295 = vmatpush2.bf16.msra.mxu1 %v17312_v51 }
 0x215   : > { %3296 = vmatprep.subr.bf16.mxu1 %v17320_v53 }
 0x218   : > { %3297 = vmatpush2.bf16.msra.mxu1 %v17318_v18 }
 0x219   : > { %3298 = vmatprep.subr.bf16.mxu1 %v17326_v60 }
 0x21c   : > { %3299 = vmatpush2.bf16.msra.mxu1 %v17324_v59  ;;  %v17261_v59 = vld [vmem:[%s19469_s9 + $0x8c8] ss:$16 sps:$4 sm:$0xff]  }
 0x21d   : > { %3300 = vmatprep.subr.bf16.mxu1 %v17332_v61  ;;  %v17269_v61 = vld [vmem:[%s19469_s9 + $0x8ac] ss:$16 sps:$4 sm:$0xff]  }
 0x220   : > { %3301 = vmatpush2.bf16.msra.mxu1 %v17330_v1 }
 0x221   : > { %3302 = vmatprep.subr.bf16.mxu1 %v17338_v21 }
 0x224   : > { %3303 = vmatpush2.bf16.msra.mxu1 %v17336_v22 }
 0x225   : > { %3304 = vmatprep.subr.bf16.mxu1 %v17344_v23 }
 0x226   : > { %v2211_v7 = vpop.f32.mrf.mxu0 }
 0x227   : > { %v2212_v32 = vadd.f32 %v2211_v7, %v1520_v30  ;;  %v17275_v7 = vld [vmem:[%s19469_s9 + $0x88c] ss:$16 sps:$4 sm:$0xff]  }
 0x228   : > { %3305 = vmatpush2.bf16.msra.mxu1 %v17342_v11  ;;  %v2213_v19 = vpop.f32.mrf.mxu0  ;;  %v17267_v11 = vld [vmem:[%s19469_s9 + $0x8a8] ss:$16 sps:$4 sm:$0xff]  }
 0x229   : > { %3380 = vmatprep.subr.bf16.mxu1 %v17350_v25  ;;  %v2214_v28 = vadd.f32 %v2213_v19, %v1524_v29  ;;  %v17273_v19 = vld [vmem:[%s19469_s9 + $0x888] ss:$16 sps:$4 sm:$0xff]  }
 0x22a   : > { %v2215_v2 = vpop.f32.mrf.mxu0 }
 0x22b   : > { %v2216_v36 = vadd.f32 %v2215_v2, %v1520_v30  ;;  %v17281_v2 = vld [vmem:[%s19469_s9 + $0x86c] ss:$16 sps:$4 sm:$0xff]  }
 0x22c   : > { %v2217_v17 = vpop.f32.mrf.mxu0 }
 0x22d   : > { %v2218_v42 = vadd.f32 %v2217_v17, %v1524_v29  ;;  %v17279_v17 = vld [vmem:[%s19469_s9 + $0x868] ss:$16 sps:$4 sm:$0xff]  }
 0x22e   : > { %v2221_v8 = vpop.f32.mrf.mxu0 }
 0x22f   : > { %v2222_v26 = vadd.f32 %v2221_v8, %v1520_v30  ;;  %v17293_v8 = vld [vmem:[%s19469_s9 + $0x82c] ss:$16 sps:$4 sm:$0xff]  }
 0x230   : > { %v2223_v33 = vpop.f32.mrf.mxu0 }
 0x231   : > { %v2224_v24 = vadd.f32 %v2223_v33, %v1524_v29  ;;  %v17305_v33 = vld [vmem:[%s19469_s9 + $0x9ec] ss:$16 sps:$4 sm:$0xff]  }
 0x232   : > { %v2225_v44 = vpop.f32.mrf.mxu0 }
 0x233   : > { %v2226_v57 = vadd.f32 %v2225_v44, %v1520_v30  ;;  %v17285_v30 = vld [vmem:[%s19469_s9 + $0x848] ss:$16 sps:$4 sm:$0xff]  }
 0x234   : > { %v2227_v50 = vpop.f32.mrf.mxu0 }
 0x235   : > { %v2228_v16 = vadd.f32 %v2227_v50, %v1524_v29  ;;  %v17287_v29 = vld [vmem:[%s19469_s9 + $0x84c] ss:$16 sps:$4 sm:$0xff]  }
 0x266   : > { %v2264_v31 = vpop.f32.mrf.mxu1 }
 0x267   : > { %v2265_v38 = vadd.f32 %v2264_v31, %v2212_v32  ;;  %v17291_v31 = vld [vmem:[%s19469_s9 + $0x828] ss:$16 sps:$4 sm:$0xff]  }
 0x268   : > { %v2266_v35 = vpop.f32.mrf.mxu1  ;;  %v17297_v32 = vld [vmem:[%s19469_s9 + $0x808] ss:$16 sps:$4 sm:$0xff]  }
 0x269   : > { %v2267_v37 = vadd.f32 %v2266_v35, %v2214_v28  ;;  %v2389_v34 = vmul.f32 0.2, %v2265_v38  ;;  %v17299_v28 = vld [vmem:[%s19469_s9 + $0x80c] ss:$16 sps:$4 sm:$0xff]   ;;  %v17303_v35 = vld [vmem:[%s19469_s9 + $0x9e8] ss:$16 sps:$4 sm:$0xff]  }
 0x26a   : > { %v2268_v40 = vpop.f32.mrf.mxu1 }
 0x26b   : > { %v2269_v43 = vadd.f32 %v2268_v40, %v2216_v36  ;;  %v2390_v46 = vmul.f32 0.2, %v2267_v37  ;;  %v2405_v0 = vmax.f32 %v2265_v38, %v2389_v34  ;;  %v2317_v36 = vpop.f32.mrf.mxu0  ;;  %v17309_v38 = vld [vmem:[%s19469_s9 + $0x9c8] ss:$16 sps:$4 sm:$0xff]   ;;  %v1532_v34 = vrot.slane %v19954_v20, %v19827_v41 }
 0x26c   : > { %v2270_v45 = vpop.f32.mrf.mxu1 }
 0x26d   : > { %v2393_v47 = vmul.f32 0.2, %v2269_v43  ;;  %v2271_v49 = vadd.f32 %v2270_v45, %v2218_v42  ;;  %v2406_v62 = vmax.f32 %v2267_v37, %v2390_v46  ;;  %v17311_v37 = vld [vmem:[%s19469_s9 + $0x9cc] ss:$16 sps:$4 sm:$0xff]   ;;  %v2319_v40 = vpop.f32.mrf.mxu0  ;;  %v17321_v46 = vld [vmem:[%s19469_s9 + $0x988] ss:$16 sps:$4 sm:$0xff]  }
 0x26e   : > { %v2274_v48 = vpop.f32.mrf.mxu1  ;;  %v17317_v42 = vld [vmem:[%s19469_s9 + $0x9ac] ss:$16 sps:$4 sm:$0xff]  }
 0x26f   : > { %v2394_v54 = vmul.f32 0.2, %v2271_v49  ;;  %v2409_v55 = vmax.f32 %v2269_v43, %v2393_v47  ;;  %v2275_v15 = vadd.f32 %v2274_v48, %v2222_v26  ;;  %v17315_v43 = vld [vmem:[%s19469_s9 + $0x9a8] ss:$16 sps:$4 sm:$0xff]   ;;  %v2321_v44 = vpop.f32.mrf.mxu0  ;;  %v17323_v45 = vld [vmem:[%s19469_s9 + $0x98c] ss:$16 sps:$4 sm:$0xff]  }
 0x270   : > { %v2276_v56 = vpop.f32.mrf.mxu1  ;;  %v17327_v48 = vld [vmem:[%s19469_s9 + $0x968] ss:$16 sps:$4 sm:$0xff]  }
 0x271   : > { %v2410_v63 = vmax.f32 %v2271_v49, %v2394_v54  ;;  %v2277_v3 = vadd.f32 %v2276_v56, %v2224_v24  ;;  %v19961_v10 = vpack.c.bf16 %v2409_v55, %v2405_v0  ;;  %v2397_v18 = vmul.f32 0.2, %v2275_v15  ;;  %v2323_v47 = vpop.f32.mrf.mxu0  ;;  %v17329_v49 = vld [vmem:[%s19469_s9 + $0x96c] ss:$16 sps:$4 sm:$0xff]   ;;  %v17333_v56 = vld [vmem:[%s19469_s9 + $0x948] ss:$16 sps:$4 sm:$0xff]  }
 0x272   : > { %v2278_v4 = vpop.f32.mrf.mxu1  ;;  %v1528_v54 = vrot.slane %v19954_v20, %v19823_v39  ;;  %v17335_v24 = vld [vmem:[%s19469_s9 + $0x94c] ss:$16 sps:$4 sm:$0xff]   ;;  %v2320_v55 = vadd.f32 %v2319_v40, %v1532_v34 }
 0x273   : > { %v2279_v5 = vadd.f32 %v2278_v4, %v2226_v57  ;;  %v2422_v6 = vpack.c.bf16 %v2410_v63, %v2406_v62  ;;  %v2398_v14 = vmul.f32 0.2, %v2277_v3  ;;  %v2413_v22 = vmax.f32 %v2275_v15, %v2397_v18  ;;  %v2327_v26 = vpop.f32.mrf.mxu0  ;;  %v17341_v0 = vld [vmem:[%s19469_s9 + $0x92c] ss:$16 sps:$4 sm:$0xff]  }
 0x274   : > { %v2280_v12 = vpop.f32.mrf.mxu1  ;;  %v2318_v57 = vadd.f32 %v2317_v36, %v1528_v54  ;;  %v2322_v15 = vadd.f32 %v2321_v44, %v1528_v54 }
 0x275   : > { %v2401_v51 = vmul.f32 0.2, %v2279_v5  ;;  %v2281_v52 = vadd.f32 %v2280_v12, %v2228_v16  ;;  %3253 = vmatprep.mubr.bf16.mxu0 %v2422_v6  ;;  %v2414_v1 = vmax.f32 %v2277_v3, %v2398_v14  ;;  %v2329_v62 = vpop.f32.mrf.mxu0 }
 0x276   : > { %3254 = vmatmul.mubr.bf16.vlgmr.msra.gmra.mxu0 %v19961_v10 }
 0x277   : > { %v2402_v53 = vmul.f32 0.2, %v2281_v52  ;;  %3328 = vmatpush1.bf16.msra.mxu0 %v17255_v9  ;;  %v2417_v60 = vmax.f32 %v2279_v5, %v2401_v51  ;;  %v2324_v5 = vadd.f32 %v2323_v47, %v1532_v34  ;;  %v2331_v9 = vpop.f32.mrf.mxu0  ;;  %v17356_v47 = vld [vmem:[%s19469_s9 + $0xaac] ss:$16 sps:$4 sm:$0xff]  }
 0x278   : > { %3329 = vmatprep.subr.bf16.mxu0 %v17263_v13  ;;  %v17347_v13 = vld [vmem:[%s19469_s9 + $0x90c] ss:$16 sps:$4 sm:$0xff]  }
 0x279   : > { %v2418_v21 = vmax.f32 %v2281_v52, %v2402_v53  ;;  %v19970_v25 = vpack.c.bf16 %v2417_v60, %v2413_v22 }
 0x27b   : > { %3330 = vmatpush1.bf16.msra.mxu0 %v17261_v59  ;;  %v19967_v23 = vpack.c.bf16 %v2418_v21, %v2414_v1  ;;  %v2330_v59 = vadd.f32 %v2329_v62, %v1532_v34  ;;  %v2328_v1 = vadd.f32 %v2327_v26, %v1528_v54  ;;  %v2333_v21 = vpop.f32.mrf.mxu0  ;;  %v17396_v62 = vld [vmem:[%s19469_s9 + $0xce0] ss:$16 sps:$4 sm:$0xff]  }
 0x27c   : > { %3331 = vmatprep.subr.bf16.mxu0 %v17269_v61  ;;  %v17345_v61 = vld [vmem:[%s19469_s9 + $0x908] ss:$16 sps:$4 sm:$0xff]  }
 0x27d   : > { %3263 = vmatprep.mubr.bf16.mxu0 %v19967_v23 }
 0x27e   : > { %3264 = vmatmul.mubr.bf16.gmra.mxu0 %v19970_v25 }
 0x27f   : > { %3332 = vmatpush1.bf16.msra.mxu0 %v17267_v11  ;;  %3359 = vmatprep.mubr.bf16.mxu0 %v2422_v6  ;;  %v17339_v6 = vld [vmem:[%s19469_s9 + $0x928] ss:$16 sps:$4 sm:$0xff]  }
 0x280   : > { %3333 = vmatprep.subr.bf16.mxu0 %v17275_v7  ;;  %v2332_v7 = vadd.f32 %v2331_v9, %v1528_v54  ;;  %v17405_v9 = vld [vmem:[%s19469_s9 + $0xc80] ss:$16 sps:$4 sm:$0xff]  }
 0x283   : > { %3334 = vmatpush1.bf16.msra.mxu0 %v17273_v19 }
 0x284   : > { %3335 = vmatprep.subr.bf16.mxu0 %v17281_v2 }
 0x287   : > { %3336 = vmatpush1.bf16.msra.mxu0 %v17279_v17 }
 0x288   : > { %3337 = vmatprep.subr.bf16.mxu0 %v17287_v29 }
 0x28b   : > { %3338 = vmatpush1.bf16.msra.mxu0 %v17285_v30 }
 0x28c   : > { %3339 = vmatprep.subr.bf16.mxu0 %v17293_v8 }
 0x28f   : > { %3340 = vmatpush1.bf16.msra.mxu0 %v17291_v31  ;;  %v2334_v31 = vadd.f32 %v2333_v21, %v1532_v34  ;;  %v17414_v21 = vld [vmem:[%s19469_s9 + $0xc20] ss:$16 sps:$4 sm:$0xff]  }
 0x290   : > { %3341 = vmatprep.subr.bf16.mxu0 %v17299_v28 }
 0x293   : > { %3342 = vmatpush1.bf16.msra.mxu0 %v17297_v32 }
 0x294   : > { %3343 = vmatprep.subr.bf16.mxu0 %v17305_v33  ;;  %v17348_v33 = vld [vmem:[%s19469_s9 + $0xae8] ss:$16 sps:$4 sm:$0xff]  }
 0x297   : > { %3344 = vmatpush2.bf16.msra.mxu0 %v17303_v35 }
 0x298   : > { %3345 = vmatprep.subr.bf16.mxu0 %v17311_v37  ;;  %v17353_v37 = vld [vmem:[%s19469_s9 + $0xacc] ss:$16 sps:$4 sm:$0xff]  }
 0x29b   : > { %3346 = vmatpush2.bf16.msra.mxu0 %v17309_v38 }
 0x29c   : > { %3347 = vmatprep.subr.bf16.mxu0 %v17317_v42 }
 0x29f   : > { %3348 = vmatpush2.bf16.msra.mxu0 %v17315_v43 }
 0x2a0   : > { %3349 = vmatprep.subr.bf16.mxu0 %v17323_v45  ;;  %v17351_v45 = vld [vmem:[%s19469_s9 + $0xac8] ss:$16 sps:$4 sm:$0xff]  }
 0x2a3   : > { %3350 = vmatpush2.bf16.msra.mxu0 %v17321_v46 }
 0x2a4   : > { %3351 = vmatprep.subr.bf16.mxu0 %v17329_v49 }
 0x2a6   : > { %v2370_v50 = vpop.f32.mrf.mxu1 }
 0x2a7   : > { %3352 = vmatpush2.bf16.msra.mxu0 %v17327_v48  ;;  %v2371_v4 = vadd.f32 %v2370_v50, %v2318_v57  ;;  %v17362_v50 = vld [vmem:[%s19469_s9 + $0xa6c] ss:$16 sps:$4 sm:$0xff]   ;;  %v17398_v57 = vld [vmem:[%s19469_s9 + $0xce4] ss:$16 sps:$4 sm:$0xff]  }
 0x2a8   : > { %v2372_v63 = vpop.f32.mrf.mxu1  ;;  %3353 = vmatprep.subr.bf16.mxu0 %v17335_v24  ;;  %v17357_v24 = vld [vmem:[%s19469_s9 + $0xa88] ss:$16 sps:$4 sm:$0xff]  }
 0x2a9   : > { %v2373_v3 = vadd.f32 %v2372_v63, %v2320_v55  ;;  %v2391_v18 = vmul.f32 0.2, %v2371_v4  ;;  %v17360_v55 = vld [vmem:[%s19469_s9 + $0xa68] ss:$16 sps:$4 sm:$0xff]   ;;  %v17401_v63 = vld [vmem:[%s19469_s9 + $0xcc4] ss:$16 sps:$4 sm:$0xff]  }
 0x2aa   : > { %v2374_v16 = vpop.f32.mrf.mxu1 }
 0x2ab   : > { %v2375_v20 = vadd.f32 %v2374_v16, %v2322_v15  ;;  %3354 = vmatpush2.bf16.msra.mxu0 %v17333_v56  ;;  %v2392_v14 = vmul.f32 0.2, %v2373_v3  ;;  %v2407_v29 = vmax.f32 %v2371_v4, %v2391_v18  ;;  %v17365_v56 = vld [vmem:[%s19469_s9 + $0xa4c] ss:$16 sps:$4 sm:$0xff]   ;;  %v17366_v4 = vld [vmem:[%s19469_s9 + $0xa28] ss:$16 sps:$4 sm:$0xff]  }
 0x2ac   : > { %v2376_v12 = vpop.f32.mrf.mxu1  ;;  %3355 = vmatprep.subr.bf16.mxu0 %v17341_v0  ;;  %v17399_v0 = vld [vmem:[%s19469_s9 + $0xcc0] ss:$16 sps:$4 sm:$0xff]   ;;  %v17368_v15 = vld [vmem:[%s19469_s9 + $0xa2c] ss:$16 sps:$4 sm:$0xff]   ;;  %v17413_v18 = vld [vmem:[%s19469_s9 + $0xc44] ss:$16 sps:$4 sm:$0xff]  }
 0x2ad   : > { %v2395_v51 = vmul.f32 0.2, %v2375_v20  ;;  %v2377_v52 = vadd.f32 %v2376_v12, %v2324_v5  ;;  %v2408_v19 = vmax.f32 %v2373_v3, %v2392_v14  ;;  %v17404_v3 = vld [vmem:[%s19469_s9 + $0xca4] ss:$16 sps:$4 sm:$0xff]   ;;  %v17402_v16 = vld [vmem:[%s19469_s9 + $0xca0] ss:$16 sps:$4 sm:$0xff]  }
 0x2ae   : > { %v2380_v53 = vpop.f32.mrf.mxu1  ;;  %v17371_v5 = vld [vmem:[%s19469_s9 + $0xa0c] ss:$16 sps:$4 sm:$0xff]   ;;  %v17372_v14 = vld [vmem:[%s19469_s9 + $0xbe8] ss:$16 sps:$4 sm:$0xff]  }
 0x2af   : > { %v2396_v60 = vmul.f32 0.2, %v2377_v52  ;;  %3356 = vmatpush2.bf16.msra.mxu0 %v17339_v6  ;;  %v2411_v22 = vmax.f32 %v2375_v20, %v2395_v51  ;;  %v2381_v30 = vadd.f32 %v2380_v53, %v2328_v1  ;;  %v17407_v20 = vld [vmem:[%s19469_s9 + $0xc84] ss:$16 sps:$4 sm:$0xff]   ;;  %v17369_v6 = vld [vmem:[%s19469_s9 + $0xa08] ss:$16 sps:$4 sm:$0xff]  }
 0x2b0   : > { %v2382_v11 = vpop.f32.mrf.mxu1  ;;  %3357 = vmatprep.subr.bf16.mxu0 %v17347_v13  ;;  %v17374_v12 = vld [vmem:[%s19469_s9 + $0xbec] ss:$16 sps:$4 sm:$0xff]   ;;  %v17410_v13 = vld [vmem:[%s19469_s9 + $0xc64] ss:$16 sps:$4 sm:$0xff]   ;;  %v17408_v51 = vld [vmem:[%s19469_s9 + $0xc60] ss:$16 sps:$4 sm:$0xff]  }
 0x2b1   : > { %v2412_v2 = vmax.f32 %v2377_v52, %v2396_v60  ;;  %v2383_v17 = vadd.f32 %v2382_v11, %v2330_v59  ;;  %v20005_v35 = vpack.c.bf16 %v2411_v22, %v2407_v29  ;;  %v2399_v43 = vmul.f32 0.2, %v2381_v30  ;;  %v17377_v52 = vld [vmem:[%s19469_s9 + $0xbcc] ss:$16 sps:$4 sm:$0xff]   ;;  %v17375_v53 = vld [vmem:[%s19469_s9 + $0xbc8] ss:$16 sps:$4 sm:$0xff]  }
 0x2b2   : > { %v2384_v8 = vpop.f32.mrf.mxu1  ;;  %v17411_v59 = vld [vmem:[%s19469_s9 + $0xc40] ss:$16 sps:$4 sm:$0xff]   ;;  %v17380_v60 = vld [vmem:[%s19469_s9 + $0xbac] ss:$16 sps:$4 sm:$0xff]   ;;  %v17378_v1 = vld [vmem:[%s19469_s9 + $0xba8] ss:$16 sps:$4 sm:$0xff]  }
 0x2b3   : > { %v2385_v28 = vadd.f32 %v2384_v8, %v2332_v7  ;;  %3358 = vmatpush2.bf16.msra.mxu0 %v17345_v61  ;;  %v2424_v32 = vpack.c.bf16 %v2412_v2, %v2408_v19  ;;  %v2400_v38 = vmul.f32 0.2, %v2383_v17  ;;  %v2415_v48 = vmax.f32 %v2381_v30, %v2399_v43  ;;  %v17416_v61 = vld [vmem:[%s19469_s9 + $0xc24] ss:$16 sps:$4 sm:$0xff]   ;;  %v17383_v22 = vld [vmem:[%s19469_s9 + $0xb8c] ss:$16 sps:$4 sm:$0xff]  }
 0x2b4   : > { %v2386_v36 = vpop.f32.mrf.mxu1  ;;  %4265 = vmatprep.subr.bf16.mxu0 %v17398_v57  ;;  %v17419_v11 = vld [vmem:[%s19469_s9 + $0xc04] ss:$16 sps:$4 sm:$0xff]   ;;  %v17381_v7 = vld [vmem:[%s19469_s9 + $0xb88] ss:$16 sps:$4 sm:$0xff]   ;;  %v17417_v19 = vld [vmem:[%s19469_s9 + $0xc00] ss:$16 sps:$4 sm:$0xff]  }
 0x2b5   : > { %v2403_v40 = vmul.f32 0.2, %v2385_v28  ;;  %v2387_v42 = vadd.f32 %v2386_v36, %v2334_v31  ;;  %3306 = vmatprep.mubr.bf16.mxu1 %v2424_v32  ;;  %v2416_v49 = vmax.f32 %v2383_v17, %v2400_v38  ;;  %v17386_v2 = vld [vmem:[%s19469_s9 + $0xb6c] ss:$16 sps:$4 sm:$0xff]   ;;  %v17422_v17 = vld [vmem:[%s19469_s9 + $0xde4] ss:$16 sps:$4 sm:$0xff]  }
 0x2b6   : > { %3307 = vmatmul.mubr.bf16.vlgmr.msra.gmra.mxu1 %v20005_v35  ;;  %3360 = vmatmul.mubr.bf16.vlgmr.msra.gmra.mxu0 %v19961_v10  ;;  %v17354_v10 = vld [vmem:[%s19469_s9 + $0xaa8] ss:$16 sps:$4 sm:$0xff]   ;;  %v17420_v30 = vld [vmem:[%s19469_s9 + $0xde0] ss:$16 sps:$4 sm:$0xff]   ;;  %v17389_v8 = vld [vmem:[%s19469_s9 + $0xb4c] ss:$16 sps:$4 sm:$0xff]  }
 0x2b7   : > { %v2404_v44 = vmul.f32 0.2, %v2387_v42  ;;  %3381 = vmatpush1.bf16.msra.mxu1 %v17348_v33  ;;  %3369 = vmatprep.mubr.bf16.mxu0 %v19967_v23  ;;  %v2419_v46 = vmax.f32 %v2385_v28, %v2403_v40  ;;  %v17359_v23 = vld [vmem:[%s19469_s9 + $0xa8c] ss:$16 sps:$4 sm:$0xff]   ;;  %v17384_v29 = vld [vmem:[%s19469_s9 + $0xb68] ss:$16 sps:$4 sm:$0xff]  }
 0x2b8   : > { %3382 = vmatprep.subr.bf16.mxu1 %v17353_v37  ;;  %4266 = vmatpush1.bf16.msra.mxu0 %v17396_v62  ;;  %v17425_v31 = vld [vmem:[%s19469_s9 + $0xdc4] ss:$16 sps:$4 sm:$0xff]   ;;  %v17387_v28 = vld [vmem:[%s19469_s9 + $0xb48] ss:$16 sps:$4 sm:$0xff]   ;;  %v17392_v33 = vld [vmem:[%s19469_s9 + $0xb2c] ss:$16 sps:$4 sm:$0xff]  }
 0x2b9   : > { %v2420_v34 = vmax.f32 %v2387_v42, %v2404_v44  ;;  %v20016_v26 = vpack.c.bf16 %v2419_v46, %v2415_v48  ;;  %4267 = vmatprep.subr.bf16.mxu0 %v17401_v63  ;;  %v17428_v36 = vld [vmem:[%s19469_s9 + $0xda4] ss:$16 sps:$4 sm:$0xff]   ;;  %v17390_v37 = vld [vmem:[%s19469_s9 + $0xb28] ss:$16 sps:$4 sm:$0xff]   ;;  %v17426_v38 = vld [vmem:[%s19469_s9 + $0xda0] ss:$16 sps:$4 sm:$0xff]  }
 0x2ba   : > { %v17395_v40 = vld [vmem:[%s19469_s9 + $0xb0c] ss:$16 sps:$4 sm:$0xff]   ;;  %v17431_v42 = vld [vmem:[%s19469_s9 + $0xd84] ss:$16 sps:$4 sm:$0xff]   ;;  %v17393_v43 = vld [vmem:[%s19469_s9 + $0xb08] ss:$16 sps:$4 sm:$0xff]  }
 0x2bb   : > { %3383 = vmatpush1.bf16.msra.mxu1 %v17351_v45  ;;  %v20013_v54 = vpack.c.bf16 %v2420_v34, %v2416_v49  ;;  %v17429_v44 = vld [vmem:[%s19469_s9 + $0xd80] ss:$16 sps:$4 sm:$0xff]   ;;  %v17434_v45 = vld [vmem:[%s19469_s9 + $0xd64] ss:$16 sps:$4 sm:$0xff]  }
 0x2bc   : > { %3384 = vmatprep.subr.bf16.mxu1 %v17356_v47  ;;  %4268 = vmatpush1.bf16.msra.mxu0 %v17399_v0  ;;  %v17432_v46 = vld [vmem:[%s19469_s9 + $0xd60] ss:$16 sps:$4 sm:$0xff]   ;;  %v17437_v47 = vld [vmem:[%s19469_s9 + $0xd44] ss:$16 sps:$4 sm:$0xff]  }
 0x2bd   : > { %3316 = vmatprep.mubr.bf16.mxu1 %v20013_v54  ;;  %4269 = vmatprep.subr.bf16.mxu0 %v17404_v3  ;;  %v17435_v49 = vld [vmem:[%s19469_s9 + $0xd40] ss:$16 sps:$4 sm:$0xff]   ;;  %v17440_v34 = vld [vmem:[%s19469_s9 + $0xd24] ss:$16 sps:$4 sm:$0xff]  }
 0x2be   : > { %3317 = vmatmul.mubr.bf16.gmra.mxu1 %v20016_v26  ;;  %3370 = vmatmul.mubr.bf16.gmra.mxu0 %v19970_v25  ;;  %v17363_v25 = vld [vmem:[%s19469_s9 + $0xa48] ss:$16 sps:$4 sm:$0xff]   ;;  %v17438_v48 = vld [vmem:[%s19469_s9 + $0xd20] ss:$16 sps:$4 sm:$0xff]   ;;  %v17464_v62 = vld [vmem:[%s19469_s9 + $0xe84] ss:$16 sps:$4 sm:$0xff]  }
 0x2bf   : > { %3385 = vmatpush1.bf16.msra.mxu1 %v17354_v10  ;;  %3412 = vmatprep.mubr.bf16.mxu1 %v2424_v32  ;;  %v17423_v32 = vld [vmem:[%s19469_s9 + $0xdc0] ss:$16 sps:$4 sm:$0xff]  }
 0x2c0   : > { %3386 = vmatprep.subr.bf16.mxu1 %v17359_v23  ;;  %4270 = vmatpush1.bf16.msra.mxu0 %v17402_v16  ;;  %v17441_v10 = vld [vmem:[%s19469_s9 + $0xd00] ss:$16 sps:$4 sm:$0xff]  }
 0x2c1   : > { %4271 = vmatprep.subr.bf16.mxu0 %v17407_v20  ;;  %v17444_v23 = vld [vmem:[%s19469_s9 + $0xee0] ss:$16 sps:$4 sm:$0xff]  }
 0x2c2   : > { %v17462_v57 = vld [vmem:[%s19469_s9 + $0xe80] ss:$16 sps:$4 sm:$0xff]  }
 0x2c3   : > { %3387 = vmatpush1.bf16.msra.mxu1 %v17357_v24  ;;  %v17449_v24 = vld [vmem:[%s19469_s9 + $0xcec] ss:$16 sps:$4 sm:$0xff]   ;;  %v17468_v63 = vld [vmem:[%s19469_s9 + $0xe60] ss:$16 sps:$4 sm:$0xff]  }
 0x2c4   : > { %3388 = vmatprep.subr.bf16.mxu1 %v17362_v50  ;;  %4272 = vmatpush1.bf16.msra.mxu0 %v17405_v9  ;;  %v17452_v50 = vld [vmem:[%s19469_s9 + $0xec4] ss:$16 sps:$4 sm:$0xff]   ;;  %v17474_v0 = vld [vmem:[%s19469_s9 + $0xe40] ss:$16 sps:$4 sm:$0xff]  }
 0x2c5   : > { %4273 = vmatprep.subr.bf16.mxu0 %v17410_v13  ;;  %v17480_v3 = vld [vmem:[%s19469_s9 + $0xe20] ss:$16 sps:$4 sm:$0xff]  }
 0x2c6   : > { %v17486_v16 = vld [vmem:[%s19469_s9 + $0xe00] ss:$16 sps:$4 sm:$0xff]  }
 0x2c7   : > { %3389 = vmatpush1.bf16.msra.mxu1 %v17360_v55  ;;  %v17456_v55 = vld [vmem:[%s19469_s9 + $0xea0] ss:$16 sps:$4 sm:$0xff]  }
 0x2c8   : > { %3390 = vmatprep.subr.bf16.mxu1 %v17365_v56  ;;  %4274 = vmatpush1.bf16.msra.mxu0 %v17408_v51  ;;  %v17458_v56 = vld [vmem:[%s19469_s9 + $0xea4] ss:$16 sps:$4 sm:$0xff]   ;;  %v17492_v20 = vld [vmem:[%s19469_s9 + $0xfe0] ss:$16 sps:$4 sm:$0xff]  }
 0x2c9   : > { %4275 = vmatprep.subr.bf16.mxu0 %v17413_v18  ;;  %v17498_v9 = vld [vmem:[%s19469_s9 + $0xfc0] ss:$16 sps:$4 sm:$0xff]  }
 0x2ca   : > { %v17504_v13 = vld [vmem:[%s19469_s9 + $0xfa0] ss:$16 sps:$4 sm:$0xff]  }
 0x2cb   : > { %3391 = vmatpush1.bf16.msra.mxu1 %v17363_v25  ;;  %v17470_v25 = vld [vmem:[%s19469_s9 + $0xe64] ss:$16 sps:$4 sm:$0xff]   ;;  %v17510_v51 = vld [vmem:[%s19469_s9 + $0xf80] ss:$16 sps:$4 sm:$0xff]  }
 0x2cc   : > { %3392 = vmatprep.subr.bf16.mxu1 %v17368_v15  ;;  %4276 = vmatpush1.bf16.msra.mxu0 %v17411_v59  ;;  %v17476_v15 = vld [vmem:[%s19469_s9 + $0xe44] ss:$16 sps:$4 sm:$0xff]   ;;  %v17516_v18 = vld [vmem:[%s19469_s9 + $0xf60] ss:$16 sps:$4 sm:$0xff]  }
 0x2cd   : > { %4277 = vmatprep.subr.bf16.mxu0 %v17416_v61  ;;  %v17524_v59 = vld [vmem:[%s19469_s9 + $0xf44] ss:$16 sps:$4 sm:$0xff]  }
 0x2ce   : > { %v17530_v61 = vld [vmem:[%s19469_s9 + $0xf24] ss:$16 sps:$4 sm:$0xff]  }
 0x2cf   : > { %3393 = vmatpush1.bf16.msra.mxu1 %v17366_v4  ;;  %v17482_v4 = vld [vmem:[%s19469_s9 + $0xe24] ss:$16 sps:$4 sm:$0xff]  }
 0x2d0   : > { %3394 = vmatprep.subr.bf16.mxu1 %v17371_v5  ;;  %4278 = vmatpush1.bf16.msra.mxu0 %v17414_v21  ;;  %v17488_v5 = vld [vmem:[%s19469_s9 + $0xe04] ss:$16 sps:$4 sm:$0xff]  }
 0x2d1   : > { %4279 = vmatprep.subr.bf16.mxu0 %v17419_v11  ;;  %v17536_v21 = vld [vmem:[%s19469_s9 + $0xf04] ss:$16 sps:$4 sm:$0xff]   ;;  %v17542_v11 = vld [vmem:[%s19469_s9 + $0xeec] ss:$16 sps:$4 sm:$0xff]  }
 0x2d3   : > { %3395 = vmatpush1.bf16.msra.mxu1 %v17369_v6  ;;  %v17494_v6 = vld [vmem:[%s19469_s9 + $0xfe4] ss:$16 sps:$4 sm:$0xff]  }
 0x2d4   : > { %3396 = vmatprep.subr.bf16.mxu1 %v17374_v12  ;;  %4280 = vmatpush1.bf16.msra.mxu0 %v17417_v19  ;;  %v17500_v12 = vld [vmem:[%s19469_s9 + $0xfc4] ss:$16 sps:$4 sm:$0xff]  }
 0x2d5   : > { %4281 = vmatprep.subr.bf16.mxu0 %v17422_v17 }
 0x2d7   : > { %3397 = vmatpush2.bf16.msra.mxu1 %v17372_v14  ;;  %v17506_v14 = vld [vmem:[%s19469_s9 + $0xfa4] ss:$16 sps:$4 sm:$0xff]  }
 0x2d8   : > { %3398 = vmatprep.subr.bf16.mxu1 %v17377_v52  ;;  %4282 = vmatpush2.bf16.msra.mxu0 %v17420_v30  ;;  %v17512_v52 = vld [vmem:[%s19469_s9 + $0xf84] ss:$16 sps:$4 sm:$0xff]  }
 0x2d9   : > { %4283 = vmatprep.subr.bf16.mxu0 %v17425_v31 }
 0x2db   : > { %3399 = vmatpush2.bf16.msra.mxu1 %v17375_v53  ;;  %v17518_v53 = vld [vmem:[%s19469_s9 + $0xf64] ss:$16 sps:$4 sm:$0xff]  }
 0x2dc   : > { %3400 = vmatprep.subr.bf16.mxu1 %v17380_v60  ;;  %4284 = vmatpush2.bf16.msra.mxu0 %v17423_v32  ;;  %v17522_v60 = vld [vmem:[%s19469_s9 + $0xf40] ss:$16 sps:$4 sm:$0xff]  }
 0x2dd   : > { %4285 = vmatprep.subr.bf16.mxu0 %v17428_v36 }
 0x2df   : > { %3401 = vmatpush2.bf16.msra.mxu1 %v17378_v1  ;;  %v17528_v1 = vld [vmem:[%s19469_s9 + $0xf20] ss:$16 sps:$4 sm:$0xff]  }
 0x2e0   : > { %3402 = vmatprep.subr.bf16.mxu1 %v17383_v22  ;;  %4286 = vmatpush2.bf16.msra.mxu0 %v17426_v38  ;;  %v17534_v22 = vld [vmem:[%s19469_s9 + $0xf00] ss:$16 sps:$4 sm:$0xff]  }
 0x2e1   : > { %4287 = vmatprep.subr.bf16.mxu0 %v17431_v42 }
 0x2e3   : > { %3403 = vmatpush2.bf16.msra.mxu1 %v17381_v7 }
 0x2e4   : > { %3404 = vmatprep.subr.bf16.mxu1 %v17386_v2  ;;  %4288 = vmatpush2.bf16.msra.mxu0 %v17429_v44 }
 0x2e5   : > { %4289 = vmatprep.subr.bf16.mxu0 %v17434_v45 }
 0x2e7   : > { %3405 = vmatpush2.bf16.msra.mxu1 %v17384_v29  ;;  %v20117_v29 = vld [vmem:[%s19475_s6 + $0x8] sm:$0xf] }
 0x2e8   : > { %3406 = vmatprep.subr.bf16.mxu1 %v17389_v8  ;;  %4290 = vmatpush2.bf16.msra.mxu0 %v17432_v46  ;;  %v2568_v30 = vrot.slane %v20117_v29, %v19785_v58  ;;  %v2564_v31 = vrot.slane %v20117_v29, %v19779_v27 }
 0x2e9   : > { %4291 = vmatprep.subr.bf16.mxu0 %v17437_v47 }
 0x2eb   : > { %3407 = vmatpush2.bf16.msra.mxu1 %v17387_v28 }
 0x2ec   : > { %3408 = vmatprep.subr.bf16.mxu1 %v17392_v33  ;;  %4292 = vmatpush2.bf16.msra.mxu0 %v17435_v49 }
 0x2ed   : > { %4293 = vmatprep.subr.bf16.mxu0 %v17440_v34 }
 0x2ef   : > { %3409 = vmatpush2.bf16.msra.mxu1 %v17390_v37 }
 0x2f0   : > { %3410 = vmatprep.subr.bf16.mxu1 %v17395_v40  ;;  %4294 = vmatpush2.bf16.msra.mxu0 %v17438_v48 }
 0x2f3   : > { %3411 = vmatpush2.bf16.msra.mxu1 %v17393_v43 }
 0x2f6   : > { %3413 = vmatmul.mubr.bf16.vlgmr.msra.gmra.mxu1 %v20005_v35  ;;  %v17443_v35 = vld [vmem:[%s19469_s9 + $0xd04] ss:$16 sps:$4 sm:$0xff]  }
 0x2f7   : > { %3422 = vmatprep.mubr.bf16.mxu1 %v20013_v54  ;;  %4295 = vmatprep.subr.bf16.mxu0 %v17443_v35  ;;  %v17446_v54 = vld [vmem:[%s19469_s9 + $0xee4] ss:$16 sps:$4 sm:$0xff]  }
 0x2f8   : > { %4296 = vmatpush2.bf16.msra.mxu0 %v17441_v10  ;;  %4318 = vmatprep.subr.bf16.mxu1 %v17446_v54 }
 0x2f9   : > { %4319 = vmatpush1.bf16.msra.mxu1 %v17444_v23  ;;  %4371 = vmatprep.subr.bf16.mxu0 %v17449_v24 }
 0x2fa   : > { %4320 = vmatprep.subr.bf16.mxu1 %v17452_v50 }
 0x2fe   : > { %3423 = vmatmul.mubr.bf16.gmra.mxu1 %v20016_v26  ;;  %v17450_v26 = vld [vmem:[%s19469_s9 + $0xec0] ss:$16 sps:$4 sm:$0xff]  }
 0x2ff   : > { %4321 = vmatpush1.bf16.msra.mxu1 %v17450_v26 }
 0x300   : > { %4322 = vmatprep.subr.bf16.mxu1 %v17458_v56 }
 0x303   : > { %4323 = vmatpush1.bf16.msra.mxu1 %v17456_v55 }
 0x304   : > { %4324 = vmatprep.subr.bf16.mxu1 %v17464_v62 }
 0x307   : > { %4325 = vmatpush1.bf16.msra.mxu1 %v17462_v57 }
 0x308   : > { %4326 = vmatprep.subr.bf16.mxu1 %v17470_v25 }
 0x30b   : > { %4327 = vmatpush1.bf16.msra.mxu1 %v17468_v63 }
 0x30c   : > { %4328 = vmatprep.subr.bf16.mxu1 %v17476_v15 }
 0x30f   : > { %4329 = vmatpush1.bf16.msra.mxu1 %v17474_v0 }
 0x310   : > { %4330 = vmatprep.subr.bf16.mxu1 %v17482_v4 }
 0x313   : > { %4331 = vmatpush1.bf16.msra.mxu1 %v17480_v3 }
 0x314   : > { %4332 = vmatprep.subr.bf16.mxu1 %v17488_v5 }
 0x317   : > { %4333 = vmatpush1.bf16.msra.mxu1 %v17486_v16 }
 0x318   : > { %4334 = vmatprep.subr.bf16.mxu1 %v17494_v6 }
 0x31b   : > { %4335 = vmatpush2.bf16.msra.mxu1 %v17492_v20  ;;  %v17447_v20 = vld [vmem:[%s19469_s9 + $0xce8] ss:$16 sps:$4 sm:$0xff]  }
 0x31c   : > { %4336 = vmatprep.subr.bf16.mxu1 %v17500_v12 }
 0x31f   : > { %4337 = vmatpush2.bf16.msra.mxu1 %v17498_v9 }
 0x320   : > { %4338 = vmatprep.subr.bf16.mxu1 %v17506_v14  ;;  %v17455_v14 = vld [vmem:[%s19469_s9 + $0xccc] ss:$16 sps:$4 sm:$0xff]  }
 0x323   : > { %4339 = vmatpush2.bf16.msra.mxu1 %v17504_v13 }
 0x324   : > { %4340 = vmatprep.subr.bf16.mxu1 %v17512_v52 }
 0x327   : > { %4341 = vmatpush2.bf16.msra.mxu1 %v17510_v51 }
 0x328   : > { %4342 = vmatprep.subr.bf16.mxu1 %v17518_v53 }
 0x32b   : > { %4343 = vmatpush2.bf16.msra.mxu1 %v17516_v18  ;;  %v17453_v18 = vld [vmem:[%s19469_s9 + $0xcc8] ss:$16 sps:$4 sm:$0xff]  }
 0x32c   : > { %4344 = vmatprep.subr.bf16.mxu1 %v17524_v59 }
 0x32f   : > { %4345 = vmatpush2.bf16.msra.mxu1 %v17522_v60 }
 0x330   : > { %4346 = vmatprep.subr.bf16.mxu1 %v17530_v61  ;;  %v17461_v61 = vld [vmem:[%s19469_s9 + $0xcac] ss:$16 sps:$4 sm:$0xff]  }
 0x333   : > { %4347 = vmatpush2.bf16.msra.mxu1 %v17528_v1 }
 0x334   : > { %4348 = vmatprep.subr.bf16.mxu1 %v17536_v21 }
 0x336   : > { %v3255_v7 = vpop.f32.mrf.mxu0 }
 0x337   : > { %4349 = vmatpush2.bf16.msra.mxu1 %v17534_v22  ;;  %v3256_v37 = vadd.f32 %v3255_v7, %v2564_v31  ;;  %v17459_v22 = vld [vmem:[%s19469_s9 + $0xca8] ss:$16 sps:$4 sm:$0xff]   ;;  %v17467_v7 = vld [vmem:[%s19469_s9 + $0xc8c] ss:$16 sps:$4 sm:$0xff]  }
 0x338   : > { %4424 = vmatprep.subr.bf16.mxu1 %v17542_v11  ;;  %v3257_v19 = vpop.f32.mrf.mxu0 }
 0x339   : > { %v3258_v32 = vadd.f32 %v3257_v19, %v2568_v30  ;;  %v17465_v19 = vld [vmem:[%s19469_s9 + $0xc88] ss:$16 sps:$4 sm:$0xff]  }
 0x33a   : > { %v3259_v2 = vpop.f32.mrf.mxu0 }
 0x33b   : > { %v3260_v38 = vadd.f32 %v3259_v2, %v2564_v31  ;;  %v17473_v2 = vld [vmem:[%s19469_s9 + $0xc6c] ss:$16 sps:$4 sm:$0xff]  }
 0x33c   : > { %v3261_v17 = vpop.f32.mrf.mxu0 }
 0x33d   : > { %v3262_v43 = vadd.f32 %v3261_v17, %v2568_v30  ;;  %v17471_v17 = vld [vmem:[%s19469_s9 + $0xc68] ss:$16 sps:$4 sm:$0xff]  }
 0x33e   : > { %v3265_v8 = vpop.f32.mrf.mxu0 }
 0x33f   : > { %v3266_v24 = vadd.f32 %v3265_v8, %v2564_v31  ;;  %v17477_v8 = vld [vmem:[%s19469_s9 + $0xc48] ss:$16 sps:$4 sm:$0xff]  }
 0x340   : > { %v3267_v33 = vpop.f32.mrf.mxu0 }
 0x341   : > { %v3268_v10 = vadd.f32 %v3267_v33, %v2568_v30  ;;  %v17489_v33 = vld [vmem:[%s19469_s9 + $0xc08] ss:$16 sps:$4 sm:$0xff]  }
 0x342   : > { %v3269_v46 = vpop.f32.mrf.mxu0 }
 0x343   : > { %v3270_v55 = vadd.f32 %v3269_v46, %v2564_v31  ;;  %v17485_v31 = vld [vmem:[%s19469_s9 + $0xc2c] ss:$16 sps:$4 sm:$0xff]   ;;  %v17507_v46 = vld [vmem:[%s19469_s9 + $0xda8] ss:$16 sps:$4 sm:$0xff]  }
 0x344   : > { %v3271_v50 = vpop.f32.mrf.mxu0 }
 0x345   : > { %v3272_v0 = vadd.f32 %v3271_v50, %v2568_v30  ;;  %v17479_v30 = vld [vmem:[%s19469_s9 + $0xc4c] ss:$16 sps:$4 sm:$0xff]  }
 0x376   : > { %v3308_v28 = vpop.f32.mrf.mxu1 }
 0x377   : > { %v3309_v44 = vadd.f32 %v3308_v28, %v3256_v37  ;;  %v17483_v28 = vld [vmem:[%s19469_s9 + $0xc28] ss:$16 sps:$4 sm:$0xff]   ;;  %v3361_v37 = vpop.f32.mrf.mxu0 }
 0x378   : > { %v3310_v36 = vpop.f32.mrf.mxu1 }
 0x379   : > { %v3311_v40 = vadd.f32 %v3310_v36, %v3258_v32  ;;  %v3433_v54 = vmul.f32 0.2, %v3309_v44  ;;  %v17491_v32 = vld [vmem:[%s19469_s9 + $0xc0c] ss:$16 sps:$4 sm:$0xff]  }
 0x37a   : > { %v3312_v42 = vpop.f32.mrf.mxu1  ;;  %v17497_v36 = vld [vmem:[%s19469_s9 + $0xdec] ss:$16 sps:$4 sm:$0xff]  }
 0x37b   : > { %v3313_v45 = vadd.f32 %v3312_v42, %v3260_v38  ;;  %v3434_v48 = vmul.f32 0.2, %v3311_v40  ;;  %v3449_v15 = vmax.f32 %v3309_v44, %v3433_v54  ;;  %v17495_v38 = vld [vmem:[%s19469_s9 + $0xde8] ss:$16 sps:$4 sm:$0xff]   ;;  %v3363_v42 = vpop.f32.mrf.mxu0  ;;  %v17509_v44 = vld [vmem:[%s19469_s9 + $0xdac] ss:$16 sps:$4 sm:$0xff]  }
 0x37c   : > { %v3314_v47 = vpop.f32.mrf.mxu1 }
 0x37d   : > { %v3437_v49 = vmul.f32 0.2, %v3313_v45  ;;  %v3315_v34 = vadd.f32 %v3314_v47, %v3262_v43  ;;  %v3450_v63 = vmax.f32 %v3311_v40, %v3434_v48  ;;  %v17503_v40 = vld [vmem:[%s19469_s9 + $0xdcc] ss:$16 sps:$4 sm:$0xff]   ;;  %v17501_v43 = vld [vmem:[%s19469_s9 + $0xdc8] ss:$16 sps:$4 sm:$0xff]  }
 0x37e   : > { %v3318_v35 = vpop.f32.mrf.mxu1  ;;  %v17515_v47 = vld [vmem:[%s19469_s9 + $0xd8c] ss:$16 sps:$4 sm:$0xff]  }
 0x37f   : > { %v3438_v23 = vmul.f32 0.2, %v3315_v34  ;;  %v3453_v56 = vmax.f32 %v3313_v45, %v3437_v49  ;;  %v3319_v3 = vadd.f32 %v3318_v35, %v3266_v24  ;;  %v3365_v45 = vpop.f32.mrf.mxu0  ;;  %v17521_v48 = vld [vmem:[%s19469_s9 + $0xd6c] ss:$16 sps:$4 sm:$0xff]   ;;  %v2576_v35 = vrot.slane %v20117_v29, %v19827_v41 }
 0x380   : > { %v3320_v26 = vpop.f32.mrf.mxu1  ;;  %v17527_v24 = vld [vmem:[%s19469_s9 + $0xd4c] ss:$16 sps:$4 sm:$0xff]  }
 0x381   : > { %v3454_v57 = vmax.f32 %v3315_v34, %v3438_v23  ;;  %v3321_v62 = vadd.f32 %v3320_v26, %v3268_v10  ;;  %v20124_v6 = vpack.c.bf16 %v3453_v56, %v3449_v15  ;;  %v3441_v51 = vmul.f32 0.2, %v3319_v3  ;;  %v3367_v49 = vpop.f32.mrf.mxu0  ;;  %v17513_v34 = vld [vmem:[%s19469_s9 + $0xd88] ss:$16 sps:$4 sm:$0xff]  }
 0x382   : > { %v3322_v25 = vpop.f32.mrf.mxu1  ;;  %v2572_v10 = vrot.slane %v20117_v29, %v19823_v39  ;;  %v17519_v23 = vld [vmem:[%s19469_s9 + $0xd68] ss:$16 sps:$4 sm:$0xff]   ;;  %v3364_v26 = vadd.f32 %v3363_v42, %v2576_v35 }
 0x383   : > { %v3323_v4 = vadd.f32 %v3322_v25, %v3270_v55  ;;  %v3466_v5 = vpack.c.bf16 %v3454_v57, %v3450_v63  ;;  %v3442_v9 = vmul.f32 0.2, %v3321_v62  ;;  %v3457_v1 = vmax.f32 %v3319_v3, %v3441_v51  ;;  %v3371_v54 = vpop.f32.mrf.mxu0 }
 0x384   : > { %v3324_v16 = vpop.f32.mrf.mxu1  ;;  %v3362_v55 = vadd.f32 %v3361_v37, %v2572_v10  ;;  %v3366_v63 = vadd.f32 %v3365_v45, %v2572_v10  ;;  %v3368_v3 = vadd.f32 %v3367_v49, %v2576_v35 }
 0x385   : > { %v3445_v12 = vmul.f32 0.2, %v3323_v4  ;;  %v3325_v13 = vadd.f32 %v3324_v16, %v3272_v0  ;;  %4297 = vmatprep.mubr.bf16.mxu0 %v3466_v5  ;;  %v3458_v53 = vmax.f32 %v3321_v62, %v3442_v9  ;;  %v3373_v56 = vpop.f32.mrf.mxu0  ;;  %v17525_v62 = vld [vmem:[%s19469_s9 + $0xd48] ss:$16 sps:$4 sm:$0xff]   ;;  %v17533_v0 = vld [vmem:[%s19469_s9 + $0xd2c] ss:$16 sps:$4 sm:$0xff]  }
 0x386   : > { %4298 = vmatmul.mubr.bf16.vlgmr.msra.gmra.mxu0 %v20124_v6 }
 0x387   : > { %v3446_v52 = vmul.f32 0.2, %v3325_v13  ;;  %4372 = vmatpush1.bf16.msra.mxu0 %v17447_v20  ;;  %v3461_v59 = vmax.f32 %v3323_v4, %v3445_v12  ;;  %v3375_v16 = vpop.f32.mrf.mxu0  ;;  %v17531_v20 = vld [vmem:[%s19469_s9 + $0xd28] ss:$16 sps:$4 sm:$0xff]  }
 0x388   : > { %4373 = vmatprep.subr.bf16.mxu0 %v17455_v14  ;;  %v17539_v14 = vld [vmem:[%s19469_s9 + $0xd0c] ss:$16 sps:$4 sm:$0xff]  }
 0x389   : > { %v3462_v60 = vmax.f32 %v3325_v13, %v3446_v52  ;;  %v20134_v11 = vpack.c.bf16 %v3461_v59, %v3457_v1  ;;  %v3372_v59 = vadd.f32 %v3371_v54, %v2572_v10 }
 0x38b   : > { %v20130_v21 = vpack.c.bf16 %v3462_v60, %v3458_v53  ;;  %4374 = vmatpush1.bf16.msra.mxu0 %v17453_v18  ;;  %v3374_v18 = vadd.f32 %v3373_v56, %v2576_v35  ;;  %v3377_v60 = vpop.f32.mrf.mxu0  ;;  %v17555_v56 = vld [vmem:[%s19469_s9 + $0xe48] ss:$16 sps:$4 sm:$0xff]  }
 0x38c   : > { %4375 = vmatprep.subr.bf16.mxu0 %v17461_v61 }
 0x38d   : > { %4307 = vmatprep.mubr.bf16.mxu0 %v20130_v21 }
 0x38e   : > { %4308 = vmatmul.mubr.bf16.gmra.mxu0 %v20134_v11 }
 0x38f   : > { %4376 = vmatpush1.bf16.msra.mxu0 %v17459_v22  ;;  %4403 = vmatprep.mubr.bf16.mxu0 %v3466_v5  ;;  %v17537_v22 = vld [vmem:[%s19469_s9 + $0xd08] ss:$16 sps:$4 sm:$0xff]  }
 0x390   : > { %4377 = vmatprep.subr.bf16.mxu0 %v17467_v7  ;;  %v3376_v7 = vadd.f32 %v3375_v16, %v2572_v10  ;;  %v17575_v16 = vld [vmem:[%s19469_s9 + $0xf8c] ss:$16 sps:$4 sm:$0xff]  }
 0x393   : > { %4378 = vmatpush1.bf16.msra.mxu0 %v17465_v19 }
 0x394   : > { %4379 = vmatprep.subr.bf16.mxu0 %v17473_v2 }
 0x397   : > { %4380 = vmatpush1.bf16.msra.mxu0 %v17471_v17 }
 0x398   : > { %4381 = vmatprep.subr.bf16.mxu0 %v17479_v30 }
 0x39b   : > { %4382 = vmatpush1.bf16.msra.mxu0 %v17477_v8 }
 0x39c   : > { %4383 = vmatprep.subr.bf16.mxu0 %v17485_v31 }
 0x39f   : > { %4384 = vmatpush1.bf16.msra.mxu0 %v17483_v28  ;;  %v3378_v28 = vadd.f32 %v3377_v60, %v2576_v35 }
 0x3a0   : > { %4385 = vmatprep.subr.bf16.mxu0 %v17491_v32 }
 0x3a3   : > { %4386 = vmatpush1.bf16.msra.mxu0 %v17489_v33 }
 0x3a4   : > { %4387 = vmatprep.subr.bf16.mxu0 %v17497_v36  ;;  %v17540_v36 = vld [vmem:[%s19469_s9 + $0xee8] ss:$16 sps:$4 sm:$0xff]  }
 0x3a7   : > { %4388 = vmatpush2.bf16.msra.mxu0 %v17495_v38 }
 0x3a8   : > { %4389 = vmatprep.subr.bf16.mxu0 %v17503_v40  ;;  %v17545_v40 = vld [vmem:[%s19469_s9 + $0xecc] ss:$16 sps:$4 sm:$0xff]  }
 0x3ab   : > { %4390 = vmatpush2.bf16.msra.mxu0 %v17501_v43 }
 0x3ac   : > { %4391 = vmatprep.subr.bf16.mxu0 %v17509_v44 }
 0x3af   : > { %4392 = vmatpush2.bf16.msra.mxu0 %v17507_v46 }
 0x3b0   : > { %4393 = vmatprep.subr.bf16.mxu0 %v17515_v47  ;;  %v17543_v47 = vld [vmem:[%s19469_s9 + $0xec8] ss:$16 sps:$4 sm:$0xff]  }
 0x3b3   : > { %4394 = vmatpush2.bf16.msra.mxu0 %v17513_v34  ;;  %v17548_v34 = vld [vmem:[%s19469_s9 + $0xeac] ss:$16 sps:$4 sm:$0xff]  }
 0x3b4   : > { %4395 = vmatprep.subr.bf16.mxu0 %v17521_v48 }
 0x3b6   : > { %v3414_v50 = vpop.f32.mrf.mxu1 }
 0x3b7   : > { %4396 = vmatpush2.bf16.msra.mxu0 %v17519_v23  ;;  %v3415_v29 = vadd.f32 %v3414_v50, %v3362_v55  ;;  %v17546_v23 = vld [vmem:[%s19469_s9 + $0xea8] ss:$16 sps:$4 sm:$0xff]   ;;  %v17554_v50 = vld [vmem:[%s19469_s9 + $0xe6c] ss:$16 sps:$4 sm:$0xff]  }
 0x3b8   : > { %v3416_v57 = vpop.f32.mrf.mxu1  ;;  %4397 = vmatprep.subr.bf16.mxu0 %v17527_v24  ;;  %v17551_v24 = vld [vmem:[%s19469_s9 + $0xe8c] ss:$16 sps:$4 sm:$0xff]  }
 0x3b9   : > { %v3417_v25 = vadd.f32 %v3416_v57, %v3364_v26  ;;  %v3435_v51 = vmul.f32 0.2, %v3415_v29  ;;  %v17552_v26 = vld [vmem:[%s19469_s9 + $0xe68] ss:$16 sps:$4 sm:$0xff]   ;;  %v17557_v55 = vld [vmem:[%s19469_s9 + $0xe4c] ss:$16 sps:$4 sm:$0xff]  }
 0x3ba   : > { %v3418_v15 = vpop.f32.mrf.mxu1  ;;  %v17560_v57 = vld [vmem:[%s19469_s9 + $0xe2c] ss:$16 sps:$4 sm:$0xff]  }
 0x3bb   : > { %v3419_v4 = vadd.f32 %v3418_v15, %v3366_v63  ;;  %4398 = vmatpush2.bf16.msra.mxu0 %v17525_v62  ;;  %v3436_v9 = vmul.f32 0.2, %v3417_v25  ;;  %v3451_v30 = vmax.f32 %v3415_v29, %v3435_v51  ;;  %v17563_v62 = vld [vmem:[%s19469_s9 + $0xe0c] ss:$16 sps:$4 sm:$0xff]   ;;  %v17561_v63 = vld [vmem:[%s19469_s9 + $0xe08] ss:$16 sps:$4 sm:$0xff]  }
 0x3bc   : > { %v3420_v5 = vpop.f32.mrf.mxu1  ;;  %4399 = vmatprep.subr.bf16.mxu0 %v17533_v0  ;;  %v17564_v0 = vld [vmem:[%s19469_s9 + $0xfe8] ss:$16 sps:$4 sm:$0xff]   ;;  %v17569_v29 = vld [vmem:[%s19469_s9 + $0xfcc] ss:$16 sps:$4 sm:$0xff]  }
 0x3bd   : > { %v3439_v12 = vmul.f32 0.2, %v3419_v4  ;;  %v3421_v13 = vadd.f32 %v3420_v5, %v3368_v3  ;;  %v3452_v19 = vmax.f32 %v3417_v25, %v3436_v9  ;;  %v17566_v25 = vld [vmem:[%s19469_s9 + $0xfec] ss:$16 sps:$4 sm:$0xff]   ;;  %v17567_v15 = vld [vmem:[%s19469_s9 + $0xfc8] ss:$16 sps:$4 sm:$0xff]  }
 0x3be   : > { %v3424_v52 = vpop.f32.mrf.mxu1  ;;  %v17572_v3 = vld [vmem:[%s19469_s9 + $0xfac] ss:$16 sps:$4 sm:$0xff]   ;;  %v17573_v5 = vld [vmem:[%s19469_s9 + $0xf88] ss:$16 sps:$4 sm:$0xff]  }
 0x3bf   : > { %v3440_v53 = vmul.f32 0.2, %v3421_v13  ;;  %v3455_v61 = vmax.f32 %v3419_v4, %v3439_v12  ;;  %4400 = vmatpush2.bf16.msra.mxu0 %v17531_v20  ;;  %v3425_v8 = vadd.f32 %v3424_v52, %v3372_v59  ;;  %v17570_v4 = vld [vmem:[%s19469_s9 + $0xfa8] ss:$16 sps:$4 sm:$0xff]   ;;  %v17578_v20 = vld [vmem:[%s19469_s9 + $0xf6c] ss:$16 sps:$4 sm:$0xff]  }
 0x3c0   : > { %v3426_v1 = vpop.f32.mrf.mxu1  ;;  %4401 = vmatprep.subr.bf16.mxu0 %v17539_v14  ;;  %v17576_v9 = vld [vmem:[%s19469_s9 + $0xf68] ss:$16 sps:$4 sm:$0xff]   ;;  %v17581_v12 = vld [vmem:[%s19469_s9 + $0xf4c] ss:$16 sps:$4 sm:$0xff]  }
 0x3c1   : > { %v3456_v2 = vmax.f32 %v3421_v13, %v3440_v53  ;;  %v3427_v17 = vadd.f32 %v3426_v1, %v3374_v18  ;;  %v20168_v37 = vpack.c.bf16 %v3455_v61, %v3451_v30  ;;  %v3443_v45 = vmul.f32 0.2, %v3425_v8  ;;  %v17579_v13 = vld [vmem:[%s19469_s9 + $0xf48] ss:$16 sps:$4 sm:$0xff]   ;;  %v17584_v14 = vld [vmem:[%s19469_s9 + $0xf2c] ss:$16 sps:$4 sm:$0xff]  }
 0x3c2   : > { %v3428_v31 = vpop.f32.mrf.mxu1  ;;  %v17582_v51 = vld [vmem:[%s19469_s9 + $0xf28] ss:$16 sps:$4 sm:$0xff]   ;;  %v17587_v52 = vld [vmem:[%s19469_s9 + $0xf0c] ss:$16 sps:$4 sm:$0xff]  }
 0x3c3   : > { %v3429_v32 = vadd.f32 %v3428_v31, %v3376_v7  ;;  %v3468_v33 = vpack.c.bf16 %v3456_v2, %v3452_v19  ;;  %4402 = vmatpush2.bf16.msra.mxu0 %v17537_v22  ;;  %v3444_v42 = vmul.f32 0.2, %v3427_v17  ;;  %v3459_v10 = vmax.f32 %v3425_v8, %v3443_v45  ;;  %v17585_v18 = vld [vmem:[%s19469_s9 + $0xf08] ss:$16 sps:$4 sm:$0xff]   ;;  %v14797_v61 = vld [vmem:[%s19475_s6 + $0xc] sm:$0xf] }
 0x3c4   : > { %v3430_v38 = vpop.f32.mrf.mxu1  ;;  %v3608_v22 = vrot.slane %v14797_v61, %v19779_v27  ;;  %v3612_v7 = vrot.slane %v14797_v61, %v19785_v58 }
 0x3c5   : > { %v3447_v43 = vmul.f32 0.2, %v3429_v32  ;;  %v3431_v44 = vadd.f32 %v3430_v38, %v3378_v28  ;;  %4350 = vmatprep.mubr.bf16.mxu1 %v3468_v33  ;;  %v3460_v48 = vmax.f32 %v3427_v17, %v3444_v42 }
 0x3c6   : > { %4351 = vmatmul.mubr.bf16.vlgmr.msra.gmra.mxu1 %v20168_v37  ;;  %4404 = vmatmul.mubr.bf16.vlgmr.msra.gmra.mxu0 %v20124_v6 }
 0x3c7   : > { %v3448_v46 = vmul.f32 0.2, %v3431_v44  ;;  %4425 = vmatpush1.bf16.msra.mxu1 %v17540_v36  ;;  %v3463_v49 = vmax.f32 %v3429_v32, %v3447_v43  ;;  %4413 = vmatprep.mubr.bf16.mxu0 %v20130_v21  ;;  %v17549_v21 = vld [vmem:[%s19469_s9 + $0xe88] ss:$16 sps:$4 sm:$0xff]  }
 0x3c8   : > { %4426 = vmatprep.subr.bf16.mxu1 %v17545_v40 }
 0x3c9   : > { %v3464_v35 = vmax.f32 %v3431_v44, %v3448_v46  ;;  %v3471_v6 = vpack.c.bf16 %v3463_v49, %v3459_v10 }
 0x3cb   : > { %4427 = vmatpush1.bf16.msra.mxu1 %v17543_v47  ;;  %v3472_v54 = vpack.c.bf16 %v3464_v35, %v3460_v48 }
 0x3cc   : > { %4428 = vmatprep.subr.bf16.mxu1 %v17548_v34 }
 0x3cd   : > { %4360 = vmatprep.mubr.bf16.mxu1 %v3472_v54 }
 0x3ce   : > { %4361 = vmatmul.mubr.bf16.gmra.mxu1 %v3471_v6  ;;  %4414 = vmatmul.mubr.bf16.gmra.mxu0 %v20134_v11  ;;  %v17558_v11 = vld [vmem:[%s19469_s9 + $0xe28] ss:$16 sps:$4 sm:$0xff]  }
 0x3cf   : > { %4429 = vmatpush1.bf16.msra.mxu1 %v17546_v23  ;;  %4456 = vmatprep.mubr.bf16.mxu1 %v3468_v33 }
 0x3d0   : > { %4430 = vmatprep.subr.bf16.mxu1 %v17551_v24 }
 0x3d3   : > { %4431 = vmatpush1.bf16.msra.mxu1 %v17549_v21 }
 0x3d4   : > { %4432 = vmatprep.subr.bf16.mxu1 %v17554_v50 }
 0x3d7   : > { %4433 = vmatpush1.bf16.msra.mxu1 %v17552_v26 }
 0x3d8   : > { %4434 = vmatprep.subr.bf16.mxu1 %v17557_v55 }
 0x3db   : > { %4435 = vmatpush1.bf16.msra.mxu1 %v17555_v56 }
 0x3dc   : > { %4436 = vmatprep.subr.bf16.mxu1 %v17560_v57 }
 0x3df   : > { %4437 = vmatpush1.bf16.msra.mxu1 %v17558_v11 }
 0x3e0   : > { %4438 = vmatprep.subr.bf16.mxu1 %v17563_v62 }
 0x3e3   : > { %4439 = vmatpush1.bf16.msra.mxu1 %v17561_v63 }
 0x3e4   : > { %4440 = vmatprep.subr.bf16.mxu1 %v17566_v25 }
 0x3e7   : > { %4441 = vmatpush2.bf16.msra.mxu1 %v17564_v0 }
 0x3e8   : > { %4442 = vmatprep.subr.bf16.mxu1 %v17569_v29 }
 0x3eb   : > { %4443 = vmatpush2.bf16.msra.mxu1 %v17567_v15 }
 0x3ec   : > { %4444 = vmatprep.subr.bf16.mxu1 %v17572_v3 }
 0x3ef   : > { %4445 = vmatpush2.bf16.msra.mxu1 %v17570_v4 }
 0x3f0   : > { %4446 = vmatprep.subr.bf16.mxu1 %v17575_v16 }
 0x3f3   : > { %4447 = vmatpush2.bf16.msra.mxu1 %v17573_v5 }
 0x3f4   : > { %4448 = vmatprep.subr.bf16.mxu1 %v17578_v20 }
 0x3f7   : > { %4449 = vmatpush2.bf16.msra.mxu1 %v17576_v9  ;;  %v3616_v9 = vrot.slane %v14797_v61, %v19823_v39 }
 0x3f8   : > { %4450 = vmatprep.subr.bf16.mxu1 %v17581_v12  ;;  %v3620_v12 = vrot.slane %v14797_v61, %v19827_v41 }
 0x3fb   : > { %4451 = vmatpush2.bf16.msra.mxu1 %v17579_v13 }
 0x3fc   : > { %4452 = vmatprep.subr.bf16.mxu1 %v17584_v14 }
 0x3ff   : > { %4453 = vmatpush2.bf16.msra.mxu1 %v17582_v51 }
 0x400   : > { %4454 = vmatprep.subr.bf16.mxu1 %v17587_v52 }
 0x403   : > { %4455 = vmatpush2.bf16.msra.mxu1 %v17585_v18 }
 0x406   : > { %4457 = vmatmul.mubr.bf16.vlgmr.msra.gmra.mxu1 %v20168_v37 }
 0x407   : > { %4466 = vmatprep.mubr.bf16.mxu1 %v3472_v54 }
 0x40e   : > { %4467 = vmatmul.mubr.bf16.gmra.mxu1 %v3471_v6 }
 0x446   : > { %v4299_v53 = vpop.f32.mrf.mxu0 }
 0x447   : > { %v4300_v2 = vadd.f32 %v4299_v53, %v3608_v22 }
 0x448   : > { %v4301_v59 = vpop.f32.mrf.mxu0 }
 0x449   : > { %v4302_v30 = vadd.f32 %v4301_v59, %v3612_v7 }
 0x44a   : > { %v4303_v60 = vpop.f32.mrf.mxu0 }
 0x44b   : > { %v4304_v32 = vadd.f32 %v4303_v60, %v3608_v22 }
 0x44c   : > { %v4305_v1 = vpop.f32.mrf.mxu0 }
 0x44d   : > { %v4306_v38 = vadd.f32 %v4305_v1, %v3612_v7 }
 0x44e   : > { %v4309_v19 = vpop.f32.mrf.mxu0 }
 0x44f   : > { %v4310_v27 = vadd.f32 %v4309_v19, %v3608_v22 }
 0x450   : > { %v4311_v31 = vpop.f32.mrf.mxu0 }
 0x451   : > { %v4312_v34 = vadd.f32 %v4311_v31, %v3612_v7 }
 0x452   : > { %v4313_v44 = vpop.f32.mrf.mxu0 }
 0x453   : > { %v4314_v6 = vadd.f32 %v4313_v44, %v3608_v22 }
 0x454   : > { %v4315_v54 = vpop.f32.mrf.mxu0 }
 0x455   : > { %v4316_v55 = vadd.f32 %v4315_v54, %v3612_v7 }
 0x486   : > { %v4352_v17 = vpop.f32.mrf.mxu1  ;;  %v4405_v4 = vpop.f32.mrf.mxu0 }
 0x487   : > { %v4353_v8 = vadd.f32 %v4352_v17, %v4300_v2  ;;  %v4406_v14 = vadd.f32 %v4405_v4, %v3616_v9 }
 0x488   : > { %v4354_v28 = vpop.f32.mrf.mxu1  ;;  %v4407_v16 = vpop.f32.mrf.mxu0 }
 0x489   : > { %v4477_v33 = vmul.f32 0.2, %v4353_v8  ;;  %v4355_v36 = vadd.f32 %v4354_v28, %v4302_v30  ;;  %v4408_v52 = vadd.f32 %v4407_v16, %v3620_v12 }
 0x48a   : > { %v4356_v37 = vpop.f32.mrf.mxu1  ;;  %v4409_v5 = vpop.f32.mrf.mxu0 }
 0x48b   : > { %v4493_v40 = vmax.f32 %v4353_v8, %v4477_v33  ;;  %v4478_v42 = vmul.f32 0.2, %v4355_v36  ;;  %v4357_v43 = vadd.f32 %v4356_v37, %v4304_v32  ;;  %v4410_v60 = vadd.f32 %v4409_v5, %v3616_v9 }
 0x48c   : > { %v4358_v45 = vpop.f32.mrf.mxu1  ;;  %v4411_v20 = vpop.f32.mrf.mxu0 }
 0x48d   : > { %4509 = vst [vmem:[#allocation8] sm:$0xff] %v4493_v40  ;;  %v4494_v58 = vmax.f32 %v4355_v36, %v4478_v42  ;;  %v4481_v46 = vmul.f32 0.2, %v4357_v43  ;;  %v4359_v47 = vadd.f32 %v4358_v45, %v4306_v38  ;;  %v4412_v19 = vadd.f32 %v4411_v20, %v3620_v12 }
 0x48e   : > { %v4362_v49 = vpop.f32.mrf.mxu1  ;;  %v4415_v13 = vpop.f32.mrf.mxu0 }
 0x48f   : > { %4510 = vst [vmem:[#allocation8 + $0x8] sm:$0xff] %v4494_v58  ;;  %v4497_v48 = vmax.f32 %v4357_v43, %v4481_v46  ;;  %v4482_v35 = vmul.f32 0.2, %v4359_v47  ;;  %v4363_v10 = vadd.f32 %v4362_v49, %v4310_v27  ;;  %v4416_v39 = vadd.f32 %v4415_v13, %v3616_v9 }
 0x490   : > { %v4364_v23 = vpop.f32.mrf.mxu1  ;;  %v4417_v53 = vpop.f32.mrf.mxu0 }
 0x491   : > { %4513 = vst [vmem:[#allocation8 + $0x20] sm:$0xff] %v4497_v48  ;;  %v4498_v24 = vmax.f32 %v4359_v47, %v4482_v35  ;;  %v4485_v21 = vmul.f32 0.2, %v4363_v10  ;;  %v4365_v50 = vadd.f32 %v4364_v23, %v4312_v34  ;;  %v4418_v33 = vadd.f32 %v4417_v53, %v3620_v12 }
 0x492   : > { %v4366_v26 = vpop.f32.mrf.mxu1  ;;  %v4419_v8 = vpop.f32.mrf.mxu0 }
 0x493   : > { %4514 = vst [vmem:[#allocation8 + $0x28] sm:$0xff] %v4498_v24  ;;  %v4501_v56 = vmax.f32 %v4363_v10, %v4485_v21  ;;  %v4486_v57 = vmul.f32 0.2, %v4365_v50  ;;  %v4367_v11 = vadd.f32 %v4366_v26, %v4314_v6  ;;  %v4420_v43 = vadd.f32 %v4419_v8, %v3616_v9 }
 0x494   : > { %v4368_v62 = vpop.f32.mrf.mxu1  ;;  %v4421_v40 = vpop.f32.mrf.mxu0 }
 0x495   : > { %4517 = vst [vmem:[#allocation8 + $0x40] sm:$0xff] %v4501_v56  ;;  %v4502_v63 = vmax.f32 %v4365_v50, %v4486_v57  ;;  %v4489_v25 = vmul.f32 0.2, %v4367_v11  ;;  %v4369_v0 = vadd.f32 %v4368_v62, %v4316_v55  ;;  %v4422_v46 = vadd.f32 %v4421_v40, %v3620_v12 }
 0x497   : > { %4518 = vst [vmem:[#allocation8 + $0x48] sm:$0xff] %v4502_v63  ;;  %v4505_v29 = vmax.f32 %v4367_v11, %v4489_v25  ;;  %v4490_v15 = vmul.f32 0.2, %v4369_v0 }
 0x499   : > { %4521 = vst [vmem:[#allocation8 + $0x60] sm:$0xff] %v4505_v29  ;;  %v4506_v3 = vmax.f32 %v4369_v0, %v4490_v15 }
 0x49b   : > { %4522 = vst [vmem:[#allocation8 + $0x68] sm:$0xff] %v4506_v3 }
 0x4c6   : > { %v4458_v51 = vpop.f32.mrf.mxu1 }
 0x4c7   : > { %v4459_v18 = vadd.f32 %v4458_v51, %v4406_v14 }
 0x4c8   : > { %v4460_v59 = vpop.f32.mrf.mxu1 }
 0x4c9   : > { %v4479_v1 = vmul.f32 0.2, %v4459_v18  ;;  %v4461_v22 = vadd.f32 %v4460_v59, %v4408_v52 }
 0x4ca   : > { %v4462_v7 = vpop.f32.mrf.mxu1 }
 0x4cb   : > { %v4495_v2 = vmax.f32 %v4459_v18, %v4479_v1  ;;  %v4480_v17 = vmul.f32 0.2, %v4461_v22  ;;  %v4463_v30 = vadd.f32 %v4462_v7, %v4410_v60 }
 0x4cc   : > { %v4464_v31 = vpop.f32.mrf.mxu1 }
 0x4cd   : > { %4511 = vst [vmem:[#allocation8 + $0x10] sm:$0xff] %v4495_v2  ;;  %v4496_v41 = vmax.f32 %v4461_v22, %v4480_v17  ;;  %v4483_v61 = vmul.f32 0.2, %v4463_v30  ;;  %v4465_v28 = vadd.f32 %v4464_v31, %v4412_v19 }
 0x4ce   : > { %v4468_v32 = vpop.f32.mrf.mxu1 }
 0x4cf   : > { %4512 = vst [vmem:[#allocation8 + $0x18] sm:$0xff] %v4496_v41  ;;  %v4499_v36 = vmax.f32 %v4463_v30, %v4483_v61  ;;  %v4484_v37 = vmul.f32 0.2, %v4465_v28  ;;  %v4469_v38 = vadd.f32 %v4468_v32, %v4416_v39 }
 0x4d0   : > { %v4470_v42 = vpop.f32.mrf.mxu1 }
 0x4d1   : > { %4515 = vst [vmem:[#allocation8 + $0x30] sm:$0xff] %v4499_v36  ;;  %v4500_v44 = vmax.f32 %v4465_v28, %v4484_v37  ;;  %v4487_v45 = vmul.f32 0.2, %v4469_v38  ;;  %v4471_v27 = vadd.f32 %v4470_v42, %v4418_v33 }
 0x4d2   : > { %v4472_v58 = vpop.f32.mrf.mxu1 }
 0x4d3   : > { %4516 = vst [vmem:[#allocation8 + $0x38] sm:$0xff] %v4500_v44  ;;  %v4503_v47 = vmax.f32 %v4469_v38, %v4487_v45  ;;  %v4488_v49 = vmul.f32 0.2, %v4471_v27  ;;  %v4473_v34 = vadd.f32 %v4472_v58, %v4420_v43 }
 0x4d4   : > { %v4474_v48 = vpop.f32.mrf.mxu1 }
 0x4d5   : > { %4519 = vst [vmem:[#allocation8 + $0x50] sm:$0xff] %v4503_v47  ;;  %v4504_v35 = vmax.f32 %v4471_v27, %v4488_v49  ;;  %v4491_v10 = vmul.f32 0.2, %v4473_v34  ;;  %v4475_v54 = vadd.f32 %v4474_v48, %v4422_v46 }
 0x4d7   : > { %4520 = vst [vmem:[#allocation8 + $0x58] sm:$0xff] %v4504_v35  ;;  %v4507_v23 = vmax.f32 %v4473_v34, %v4491_v10  ;;  %v4492_v6 = vmul.f32 0.2, %v4475_v54 }
 0x4d9   : > { %4523 = vst [vmem:[#allocation8 + $0x70] sm:$0xff] %v4507_v23  ;;  %v4508_v24 = vmax.f32 %v4475_v54, %v4492_v6 }
 0x4db   : > { %4524 = vst [vmem:[#allocation8 + $0x78] sm:$0xff] %v4508_v24 }
 0x4dc PF: > { %p14926_p2 = scmp.ne.s32.totalorder %s19304_s15, 1 }
 0x4de   : > { %4528 = sbr.rel (%p14926_p2) target bundleno = 2413 (0x96d), region = 52 }
 0x4e3   : > { %v17596_v21 = vld [vmem:[%s19469_s9 + $0xe4] ss:$16 sps:$4 sm:$0xff]   ;;  %v17600_v26 = vld [vmem:[%s19469_s9 + $0xe0] ss:$16 sps:$4 sm:$0xff]   ;;  %v20259_v43 = vld [vmem:[#allocation2 + $0x88] sm:$0xff] }
 0x4e4   : > { %v17598_v50 = vld [vmem:[%s19469_s9 + $0x2e4] ss:$16 sps:$4 sm:$0xff]   ;;  %5401 = vmatprep.subr.bf16.mxu0 %v17596_v21  ;;  %v17601_v55 = vld [vmem:[%s19469_s9 + $0x2e0] ss:$16 sps:$4 sm:$0xff]   ;;  %v20263_v27 = vld [vmem:[#allocation2 + $0xa8] sm:$0xff]  ;;  %v4547_v47 = vmul.f32 %v20259_v43, %v20259_v43 }
 0x4e5   : > { %5454 = vmatprep.subr.bf16.mxu1 %v17598_v50  ;;  %v17602_v56 = vld [vmem:[%s19469_s9 + $0xc4] ss:$16 sps:$4 sm:$0xff]   ;;  %5402 = vmatpush1.bf16.msra.mxu0 %v17600_v26  ;;  %v17606_v11 = vld [vmem:[%s19469_s9 + $0xc0] ss:$16 sps:$4 sm:$0xff]   ;;  %v20265_v58 = vld [vmem:[#allocation2 + $0xc8] sm:$0xff]  ;;  %v4551_v49 = vmul.f32 %v20263_v27, %v20263_v27 }
 0x4e6   : > { %5455 = vmatpush1.bf16.msra.mxu1 %v17601_v55  ;;  %v17604_v57 = vld [vmem:[%s19469_s9 + $0x2c4] ss:$16 sps:$4 sm:$0xff]   ;;  %5403 = vmatprep.subr.bf16.mxu0 %v17602_v56  ;;  %v17607_v62 = vld [vmem:[%s19469_s9 + $0x2c0] ss:$16 sps:$4 sm:$0xff]   ;;  %v20267_v46 = vld [vmem:[#allocation2 + $0xe8] sm:$0xff]  ;;  %v4555_v34 = vmul.f32 %v20265_v58, %v20265_v58 }
 0x4e7   : > { %5456 = vmatprep.subr.bf16.mxu1 %v17604_v57  ;;  %v17608_v63 = vld [vmem:[%s19469_s9 + $0xa4] ss:$16 sps:$4 sm:$0xff]   ;;  %v17612_v0 = vld [vmem:[%s19469_s9 + $0xa0] ss:$16 sps:$4 sm:$0xff]   ;;  %v4559_v48 = vmul.f32 %v20267_v46, %v20267_v46  ;;  %v20277_v35 = vld [vmem:[#allocation2 + $0x98] sm:$0xff]  ;;  %v4565_v57 = vadd.f32 %v4551_v49, %v4547_v47 }
 0x4e8   : > { %v17610_v25 = vld [vmem:[%s19469_s9 + $0x2a4] ss:$16 sps:$4 sm:$0xff]   ;;  %v17613_v29 = vld [vmem:[%s19469_s9 + $0x2a0] ss:$16 sps:$4 sm:$0xff]   ;;  %v20279_v10 = vld [vmem:[#allocation2 + $0xb8] sm:$0xff]  ;;  %v4549_v6 = vmul.f32 %v20277_v35, %v20277_v35 }
 0x4e9   : > { %5404 = vmatpush1.bf16.msra.mxu0 %v17606_v11  ;;  %v17614_v15 = vld [vmem:[%s19469_s9 + $0x84] ss:$16 sps:$4 sm:$0xff]   ;;  %v17618_v4 = vld [vmem:[%s19469_s9 + $0x80] ss:$16 sps:$4 sm:$0xff]   ;;  %v20281_v54 = vld [vmem:[#allocation2 + $0xd8] sm:$0xff]  ;;  %v4553_v24 = vmul.f32 %v20279_v10, %v20279_v10 }
 0x4ea   : > { %5457 = vmatpush1.bf16.msra.mxu1 %v17607_v62  ;;  %5405 = vmatprep.subr.bf16.mxu0 %v17608_v63  ;;  %v17616_v3 = vld [vmem:[%s19469_s9 + $0x284] ss:$16 sps:$4 sm:$0xff]   ;;  %v17619_v16 = vld [vmem:[%s19469_s9 + $0x280] ss:$16 sps:$4 sm:$0xff]   ;;  %v20283_v23 = vld [vmem:[#allocation2 + $0xf8] sm:$0xff]  ;;  %v4557_v21 = vmul.f32 %v20281_v54, %v20281_v54 }
 0x4eb   : > { %5458 = vmatprep.subr.bf16.mxu1 %v17610_v25  ;;  %v17620_v5 = vld [vmem:[%s19469_s9 + $0x64] ss:$16 sps:$4 sm:$0xff]   ;;  %v17624_v9 = vld [vmem:[%s19469_s9 + $0x60] ss:$16 sps:$4 sm:$0xff]   ;;  %v4561_v11 = vmul.f32 %v20283_v23, %v20283_v23 }
 0x4ec   : > { %v17622_v20 = vld [vmem:[%s19469_s9 + $0x264] ss:$16 sps:$4 sm:$0xff]   ;;  %v17625_v12 = vld [vmem:[%s19469_s9 + $0x260] ss:$16 sps:$4 sm:$0xff]  }
 0x4ed   : > { %5406 = vmatpush1.bf16.msra.mxu0 %v17612_v0  ;;  %v17626_v13 = vld [vmem:[%s19469_s9 + $0x44] ss:$16 sps:$4 sm:$0xff]   ;;  %v17630_v51 = vld [vmem:[%s19469_s9 + $0x40] ss:$16 sps:$4 sm:$0xff]  }
 0x4ee   : > { %5459 = vmatpush1.bf16.msra.mxu1 %v17613_v29  ;;  %5407 = vmatprep.subr.bf16.mxu0 %v17614_v15  ;;  %v17628_v14 = vld [vmem:[%s19469_s9 + $0x244] ss:$16 sps:$4 sm:$0xff]   ;;  %v17631_v52 = vld [vmem:[%s19469_s9 + $0x240] ss:$16 sps:$4 sm:$0xff]   ;;  %v4571_v15 = vadd.f32 %v4553_v24, %v4549_v6 }
 0x4ef   : > { %5460 = vmatprep.subr.bf16.mxu1 %v17616_v3  ;;  %v17632_v18 = vld [vmem:[%s19469_s9 + $0x24] ss:$16 sps:$4 sm:$0xff]   ;;  %v17636_v59 = vld [vmem:[%s19469_s9 + $0x20] ss:$16 sps:$4 sm:$0xff]  }
 0x4f0   : > { %v17634_v53 = vld [vmem:[%s19469_s9 + $0x224] ss:$16 sps:$4 sm:$0xff]   ;;  %v17637_v60 = vld [vmem:[%s19469_s9 + $0x220] ss:$16 sps:$4 sm:$0xff]  }
 0x4f1   : > { %5408 = vmatpush1.bf16.msra.mxu0 %v17618_v4  ;;  %v17638_v1 = vld [vmem:[%s19469_s9 + $0x4] ss:$16 sps:$4 sm:$0xff]   ;;  %v17642_v7 = vld [vmem:[%s19469_s9] ss:$16 sps:$4 sm:$0xff]  }
 0x4f2   : > { %5461 = vmatpush1.bf16.msra.mxu1 %v17619_v16  ;;  %5409 = vmatprep.subr.bf16.mxu0 %v17620_v5  ;;  %v17640_v22 = vld [vmem:[%s19469_s9 + $0x204] ss:$16 sps:$4 sm:$0xff]   ;;  %v17643_v19 = vld [vmem:[%s19469_s9 + $0x200] ss:$16 sps:$4 sm:$0xff]  }
 0x4f3   : > { %5462 = vmatprep.subr.bf16.mxu1 %v17622_v20  ;;  %v17644_v2 = vld [vmem:[%s19469_s9 + $0x1e4] ss:$16 sps:$4 sm:$0xff]   ;;  %v17648_v30 = vld [vmem:[%s19469_s9 + $0x1e0] ss:$16 sps:$4 sm:$0xff]  }
 0x4f4   : > { %v17646_v17 = vld [vmem:[%s19469_s9 + $0x3e4] ss:$16 sps:$4 sm:$0xff]   ;;  %v17649_v8 = vld [vmem:[%s19469_s9 + $0x3e0] ss:$16 sps:$4 sm:$0xff]  }
 0x4f5   : > { %5410 = vmatpush1.bf16.msra.mxu0 %v17624_v9  ;;  %v17650_v31 = vld [vmem:[%s19469_s9 + $0x1c4] ss:$16 sps:$4 sm:$0xff]   ;;  %v17654_v41 = vld [vmem:[%s19469_s9 + $0x1c0] ss:$16 sps:$4 sm:$0xff]  }
 0x4f6   : > { %5463 = vmatpush1.bf16.msra.mxu1 %v17625_v12  ;;  %5411 = vmatprep.subr.bf16.mxu0 %v17626_v13  ;;  %v17652_v39 = vld [vmem:[%s19469_s9 + $0x3c4] ss:$16 sps:$4 sm:$0xff]   ;;  %v17655_v61 = vld [vmem:[%s19469_s9 + $0x3c0] ss:$16 sps:$4 sm:$0xff]   ;;  %v4566_v13 = vadd.f32 %v4565_v57, %v4555_v34  ;;  %v17694_v34 = vld [vmem:[%s19469_s9 + $0xec] ss:$16 sps:$4 sm:$0xff]  }
 0x4f7   : > { %5464 = vmatprep.subr.bf16.mxu1 %v17628_v14  ;;  %v17656_v28 = vld [vmem:[%s19469_s9 + $0x1a4] ss:$16 sps:$4 sm:$0xff]   ;;  %v17660_v33 = vld [vmem:[%s19469_s9 + $0x1a0] ss:$16 sps:$4 sm:$0xff]  }
 0x4f8   : > { %v17658_v32 = vld [vmem:[%s19469_s9 + $0x3a4] ss:$16 sps:$4 sm:$0xff]   ;;  %v17661_v36 = vld [vmem:[%s19469_s9 + $0x3a0] ss:$16 sps:$4 sm:$0xff]  }
 0x4f9   : > { %5412 = vmatpush1.bf16.msra.mxu0 %v17630_v51  ;;  %v17662_v37 = vld [vmem:[%s19469_s9 + $0x184] ss:$16 sps:$4 sm:$0xff]   ;;  %v17666_v40 = vld [vmem:[%s19469_s9 + $0x180] ss:$16 sps:$4 sm:$0xff]  }
 0x4fa   : > { %5465 = vmatpush1.bf16.msra.mxu1 %v17631_v52  ;;  %5413 = vmatprep.subr.bf16.mxu0 %v17632_v18  ;;  %v17664_v38 = vld [vmem:[%s19469_s9 + $0x384] ss:$16 sps:$4 sm:$0xff]   ;;  %v17667_v42 = vld [vmem:[%s19469_s9 + $0x380] ss:$16 sps:$4 sm:$0xff]   ;;  %v4572_v18 = vadd.f32 %v4571_v15, %v4557_v21 }
 0x4fb   : > { %5466 = vmatprep.subr.bf16.mxu1 %v17634_v53  ;;  %v17668_v44 = vld [vmem:[%s19469_s9 + $0x164] ss:$16 sps:$4 sm:$0xff]   ;;  %v17672_v55 = vld [vmem:[%s19469_s9 + $0x160] ss:$16 sps:$4 sm:$0xff]  }
 0x4fc   : > { %v17670_v45 = vld [vmem:[%s19469_s9 + $0x364] ss:$16 sps:$4 sm:$0xff]   ;;  %v17673_v56 = vld [vmem:[%s19469_s9 + $0x360] ss:$16 sps:$4 sm:$0xff]  }
 0x4fd   : > { %5414 = vmatpush1.bf16.msra.mxu0 %v17636_v59  ;;  %v20291_v50 = vld [vmem:[#allocation2 + $0x80] sm:$0xff]  ;;  %v20307_v29 = vld [vmem:[#allocation2 + $0x90] sm:$0xff]  ;;  %v4567_v59 = vadd.f32 %v4566_v13, %v4559_v48  ;;  %v17697_v48 = vld [vmem:[%s19469_s9 + $0x2ec] ss:$16 sps:$4 sm:$0xff]  }
 0x4fe   : > { %5467 = vmatpush1.bf16.msra.mxu1 %v17637_v60  ;;  %5415 = vmatprep.subr.bf16.mxu0 %v17638_v1  ;;  %v20293_v26 = vld [vmem:[#allocation2 + $0xa0] sm:$0xff]  ;;  %v4546_v25 = vmul.f32 %v20291_v50, %v20291_v50  ;;  %v20313_v16 = vld [vmem:[#allocation2 + $0xb0] sm:$0xff]  ;;  %v4548_v9 = vmul.f32 %v20307_v29, %v20307_v29 }
 0x4ff   : > { %5468 = vmatprep.subr.bf16.mxu1 %v17640_v22  ;;  %v20299_v62 = vld [vmem:[#allocation2 + $0xc0] sm:$0xff]  ;;  %v4550_v0 = vmul.f32 %v20293_v26, %v20293_v26  ;;  %v20315_v5 = vld [vmem:[#allocation2 + $0xd0] sm:$0xff]  ;;  %v4552_v51 = vmul.f32 %v20313_v16, %v20313_v16 }
 0x500   : > { %v20301_v63 = vld [vmem:[#allocation2 + $0xe0] sm:$0xff]  ;;  %v4554_v3 = vmul.f32 %v20299_v62, %v20299_v62  ;;  %v20317_v20 = vld [vmem:[#allocation2 + $0xf0] sm:$0xff]  ;;  %v4556_v53 = vmul.f32 %v20315_v5, %v20315_v5 }
 0x501   : > { %5416 = vmatpush1.bf16.msra.mxu0 %v17642_v7  ;;  %v4558_v4 = vmul.f32 %v20301_v63, %v20301_v63  ;;  %v17674_v12 = vld [vmem:[%s19469_s9 + $0x144] ss:$16 sps:$4 sm:$0xff]   ;;  %v4562_v14 = vadd.f32 %v4550_v0, %v4546_v25  ;;  %v4560_v1 = vmul.f32 %v20317_v20, %v20317_v20  ;;  %v4568_v22 = vadd.f32 %v4552_v51, %v4548_v9  ;;  %v17678_v7 = vld [vmem:[%s19469_s9 + $0x140] ss:$16 sps:$4 sm:$0xff]  }
 0x502   : > { %5469 = vmatpush1.bf16.msra.mxu1 %v17643_v19  ;;  %5417 = vmatprep.subr.bf16.mxu0 %v17644_v2  ;;  %v17676_v52 = vld [vmem:[%s19469_s9 + $0x344] ss:$16 sps:$4 sm:$0xff]   ;;  %v17679_v19 = vld [vmem:[%s19469_s9 + $0x340] ss:$16 sps:$4 sm:$0xff]   ;;  %v4573_v2 = vadd.f32 %v4572_v18, %v4561_v11 }
 0x503   : > { %5470 = vmatprep.subr.bf16.mxu1 %v17646_v17  ;;  %v4563_v60 = vadd.f32 %v4562_v14, %v4554_v3  ;;  %v17680_v17 = vld [vmem:[%s19469_s9 + $0x124] ss:$16 sps:$4 sm:$0xff]   ;;  %v17690_v47 = vld [vmem:[%s19469_s9 + $0x100] ss:$16 sps:$4 sm:$0xff]   ;;  %v17703_v14 = vld [vmem:[%s19469_s9 + $0x2cc] ss:$16 sps:$4 sm:$0xff]  }
 0x504   : > { %v17691_v49 = vld [vmem:[%s19469_s9 + $0x300] ss:$16 sps:$4 sm:$0xff]  }
 0x505   : > { %5418 = vmatpush2.bf16.msra.mxu0 %v17648_v30  ;;  %v4576_v30 = vmul.f32 0.25, %v4567_v59  ;;  %v17709_v59 = vld [vmem:[%s19469_s9 + $0x2ac] ss:$16 sps:$4 sm:$0xff]  }
 0x506   : > { %5471 = vmatpush2.bf16.msra.mxu1 %v17649_v8  ;;  %5419 = vmatprep.subr.bf16.mxu0 %v17650_v31  ;;  %v4564_v8 = vadd.f32 %v4563_v60, %v4558_v4  ;;  %v4569_v31 = vadd.f32 %v4568_v22, %v4556_v53  ;;  %v17704_v60 = vld [vmem:[%s19469_s9 + $0xa8] ss:$16 sps:$4 sm:$0xff]   ;;  %v17715_v22 = vld [vmem:[%s19469_s9 + $0x28c] ss:$16 sps:$4 sm:$0xff]  }
 0x507   : > { %5472 = vmatprep.subr.bf16.mxu1 %v17652_v39  ;;  %v17682_v39 = vld [vmem:[%s19469_s9 + $0x324] ss:$16 sps:$4 sm:$0xff]  }
 0x509   : > { %5420 = vmatpush2.bf16.msra.mxu0 %v17654_v41  ;;  %v4578_v41 = vmul.f32 0.25, %v4573_v2  ;;  %v17713_v2 = vld [vmem:[%s19469_s9 + $0x288] ss:$16 sps:$4 sm:$0xff]  }
 0x50a   : > { %5473 = vmatpush2.bf16.msra.mxu1 %v17655_v61  ;;  %5421 = vmatprep.subr.bf16.mxu0 %v17656_v28  ;;  %v4580_v61 = vadd.f32 1e-08, %v4576_v30  ;;  %v4575_v28 = vmul.f32 0.25, %v4564_v8  ;;  %v17716_v30 = vld [vmem:[%s19469_s9 + $0x68] ss:$16 sps:$4 sm:$0xff]  }
 0x50b   : > { %5474 = vmatprep.subr.bf16.mxu1 %v17658_v32  ;;  %v4570_v32 = vadd.f32 %v4569_v31, %v4560_v1  ;;  %v17724_v8 = vld [vmem:[%s19469_s9 + $0x4c] ss:$16 sps:$4 sm:$0xff]   ;;  %v17719_v31 = vld [vmem:[%s19469_s9 + $0x268] ss:$16 sps:$4 sm:$0xff]  }
 0x50c   : > { %18364 = vrsqrt.f32 %v4580_v61  ;;  %v17730_v61 = vld [vmem:[%s19469_s9 + $0x2c] ss:$16 sps:$4 sm:$0xff]  }
 0x50d   : > { %5422 = vmatpush2.bf16.msra.mxu0 %v17660_v33  ;;  %v17684_v33 = vld [vmem:[%s19469_s9 + $0x120] ss:$16 sps:$4 sm:$0xff]  }
 0x50e   : > { %5475 = vmatpush2.bf16.msra.mxu1 %v17661_v36  ;;  %5423 = vmatprep.subr.bf16.mxu0 %v17662_v37  ;;  %v4582_v36 = vadd.f32 1e-08, %v4578_v41  ;;  %v17685_v37 = vld [vmem:[%s19469_s9 + $0x320] ss:$16 sps:$4 sm:$0xff]   ;;  %v17722_v41 = vld [vmem:[%s19469_s9 + $0x48] ss:$16 sps:$4 sm:$0xff]  }
 0x50f   : > { %5476 = vmatprep.subr.bf16.mxu1 %v17664_v38  ;;  %v4579_v38 = vadd.f32 1e-08, %v4575_v28  ;;  %v17725_v28 = vld [vmem:[%s19469_s9 + $0x248] ss:$16 sps:$4 sm:$0xff]  }
 0x510   : > { %18366 = vrsqrt.f32 %v4582_v36  ;;  %v17736_v36 = vld [vmem:[%s19469_s9 + $0xc] ss:$16 sps:$4 sm:$0xff]  }
 0x511   : > { %5424 = vmatpush2.bf16.msra.mxu0 %v17666_v40  ;;  %v4577_v40 = vmul.f32 0.25, %v4570_v32  ;;  %18368 = vrsqrt.f32 %v4579_v38  ;;  %v17733_v32 = vld [vmem:[%s19469_s9 + $0x22c] ss:$16 sps:$4 sm:$0xff]  }
 0x512   : > { %5477 = vmatpush2.bf16.msra.mxu1 %v17667_v42  ;;  %5425 = vmatprep.subr.bf16.mxu0 %v17668_v44  ;;  %v17686_v42 = vld [vmem:[%s19469_s9 + $0x104] ss:$16 sps:$4 sm:$0xff]   ;;  %v17739_v38 = vld [vmem:[%s19469_s9 + $0x20c] ss:$16 sps:$4 sm:$0xff]  }
 0x513   : > { %5478 = vmatprep.subr.bf16.mxu1 %v17670_v45  ;;  %v17688_v44 = vld [vmem:[%s19469_s9 + $0x304] ss:$16 sps:$4 sm:$0xff]   ;;  %v4581_v45 = vadd.f32 1e-08, %v4577_v40  ;;  %v17734_v40 = vld [vmem:[%s19469_s9 + $0x8] ss:$16 sps:$4 sm:$0xff]  }
 0x515   : > { %5426 = vmatpush2.bf16.msra.mxu0 %v17672_v55  ;;  %18370 = vrsqrt.f32 %v4581_v45  ;;  %v17745_v45 = vld [vmem:[%s19469_s9 + $0x3ec] ss:$16 sps:$4 sm:$0xff]  }
 0x516   : > { %5479 = vmatpush2.bf16.msra.mxu1 %v17673_v56  ;;  %5427 = vmatprep.subr.bf16.mxu0 %v17674_v12 }
 0x517   : > { %5480 = vmatprep.subr.bf16.mxu1 %v17676_v52 }
 0x519   : > { %5428 = vmatpush2.bf16.msra.mxu0 %v17678_v7  ;;  %v18365_v6 = vpop.eup %18364  ;;  %v17710_v7 = vld [vmem:[%s19469_s9 + $0x88] ss:$16 sps:$4 sm:$0xff]  }
 0x51a   : > { %5481 = vmatpush2.bf16.msra.mxu1 %v17679_v19  ;;  %5429 = vmatprep.subr.bf16.mxu0 %v17680_v17  ;;  %v4588_v21 = vmul.f32 %v18365_v6, %v20259_v43  ;;  %v4592_v55 = vmul.f32 %v18365_v6, %v20263_v27  ;;  %v4596_v56 = vmul.f32 %v18365_v6, %v20265_v58  ;;  %v17718_v19 = vld [vmem:[%s19469_s9 + $0x6c] ss:$16 sps:$4 sm:$0xff]  }
 0x51b   : > { %5482 = vmatprep.subr.bf16.mxu1 %v17682_v39  ;;  %v4600_v57 = vmul.f32 %v18365_v6, %v20267_v46  ;;  %v17692_v46 = vld [vmem:[%s19469_s9 + $0xe8] ss:$16 sps:$4 sm:$0xff]   ;;  %v17721_v17 = vld [vmem:[%s19469_s9 + $0x26c] ss:$16 sps:$4 sm:$0xff]  }
 0x51c   : > { %v4604_v4 = vpack.c.bf16 %v4592_v55, %v4588_v21  ;;  %v17727_v39 = vld [vmem:[%s19469_s9 + $0x24c] ss:$16 sps:$4 sm:$0xff]   ;;  %v17749_v21 = vld [vmem:[%s19469_s9 + $0x3c8] ss:$16 sps:$4 sm:$0xff]  }
 0x51d   : > { %5430 = vmatpush2.bf16.msra.mxu0 %v17684_v33  ;;  %v18367_v24 = vpop.eup %18366  ;;  %v20352_v12 = vpack.c.bf16 %v4600_v57, %v4596_v56  ;;  %v17728_v33 = vld [vmem:[%s19469_s9 + $0x28] ss:$16 sps:$4 sm:$0xff]   ;;  %v17751_v6 = vld [vmem:[%s19469_s9 + $0x3cc] ss:$16 sps:$4 sm:$0xff]  }
 0x51e   : > { %5483 = vmatpush2.bf16.msra.mxu1 %v17685_v37  ;;  %5431 = vmatprep.subr.bf16.mxu0 %v17686_v42  ;;  %v18369_v11 = vpop.eup %18368  ;;  %v4590_v25 = vmul.f32 %v18367_v24, %v20277_v35  ;;  %v4594_v0 = vmul.f32 %v18367_v24, %v20279_v10  ;;  %v4598_v15 = vmul.f32 %v18367_v24, %v20281_v54  ;;  %v17731_v37 = vld [vmem:[%s19469_s9 + $0x228] ss:$16 sps:$4 sm:$0xff]   ;;  %v17742_v42 = vld [vmem:[%s19469_s9 + $0x1ec] ss:$16 sps:$4 sm:$0xff]  }
 0x51f   : > { %5484 = vmatprep.subr.bf16.mxu1 %v17688_v44  ;;  %v4602_v3 = vmul.f32 %v18367_v24, %v20283_v23  ;;  %v4587_v43 = vmul.f32 %v18369_v11, %v20291_v50  ;;  %v4591_v27 = vmul.f32 %v18369_v11, %v20293_v26  ;;  %5433 = vmatprep.mubr.bf16.mxu0 %v4604_v4  ;;  %v17700_v23 = vld [vmem:[%s19469_s9 + $0xcc] ss:$16 sps:$4 sm:$0xff]   ;;  %v17695_v50 = vld [vmem:[%s19469_s9 + $0x2e8] ss:$16 sps:$4 sm:$0xff]  }
 0x520   : > { %v4606_v9 = vpack.c.bf16 %v4594_v0, %v4590_v25  ;;  %v4595_v51 = vmul.f32 %v18369_v11, %v20299_v62  ;;  %v4599_v52 = vmul.f32 %v18369_v11, %v20301_v63  ;;  %v17701_v62 = vld [vmem:[%s19469_s9 + $0x2c8] ss:$16 sps:$4 sm:$0xff]   ;;  %v17754_v24 = vld [vmem:[%s19469_s9 + $0x1ac] ss:$16 sps:$4 sm:$0xff]  }
 0x521   : > { %5432 = vmatpush2.bf16.msra.mxu0 %v17690_v47  ;;  %v20354_v35 = vpack.c.bf16 %v4591_v27, %v4587_v43  ;;  %v20360_v13 = vpack.c.bf16 %v4602_v3, %v4598_v15  ;;  %v17737_v44 = vld [vmem:[%s19469_s9 + $0x208] ss:$16 sps:$4 sm:$0xff]   ;;  %v17757_v55 = vld [vmem:[%s19469_s9 + $0x3ac] ss:$16 sps:$4 sm:$0xff]  }
 0x522   : > { %5485 = vmatpush2.bf16.msra.mxu1 %v17691_v49  ;;  %5507 = vmatprep.subr.bf16.mxu0 %v17694_v34  ;;  %v18371_v58 = vpop.eup %18370  ;;  %v20376_v63 = vpack.c.bf16 %v4599_v52, %v4595_v51  ;;  %v17740_v47 = vld [vmem:[%s19469_s9 + $0x1e8] ss:$16 sps:$4 sm:$0xff]   ;;  %v17748_v34 = vld [vmem:[%s19469_s9 + $0x1cc] ss:$16 sps:$4 sm:$0xff]  }
 0x523   : > { %5560 = vmatprep.subr.bf16.mxu1 %v17697_v48  ;;  %v4589_v10 = vmul.f32 %v18371_v58, %v20307_v29  ;;  %v4593_v54 = vmul.f32 %v18371_v58, %v20313_v16  ;;  %5486 = vmatprep.mubr.bf16.mxu1 %v4606_v9  ;;  %v17698_v29 = vld [vmem:[%s19469_s9 + $0xc8] ss:$16 sps:$4 sm:$0xff]   ;;  %v17706_v16 = vld [vmem:[%s19469_s9 + $0xac] ss:$16 sps:$4 sm:$0xff]   ;;  %v4597_v18 = vmul.f32 %v18371_v58, %v20315_v5 }
 0x524   : > { %5434 = vmatmul.mubr.bf16.vlgmr.msra.gmra.mxu0 %v20354_v35  ;;  %v4601_v53 = vmul.f32 %v18371_v58, %v20317_v20  ;;  %v17712_v5 = vld [vmem:[%s19469_s9 + $0x8c] ss:$16 sps:$4 sm:$0xff]   ;;  %v17707_v20 = vld [vmem:[%s19469_s9 + $0x2a8] ss:$16 sps:$4 sm:$0xff]  }
 0x525   : > { %v20363_v26 = vpack.c.bf16 %v4593_v54, %v4589_v10  ;;  %5508 = vmatpush1.bf16.msra.mxu0 %v17692_v46  ;;  %5443 = vmatprep.mubr.bf16.mxu0 %v20352_v12  ;;  %v17743_v49 = vld [vmem:[%s19469_s9 + $0x3e8] ss:$16 sps:$4 sm:$0xff]   ;;  %v17760_v57 = vld [vmem:[%s19469_s9 + $0x18c] ss:$16 sps:$4 sm:$0xff]  }
 0x526   : > { %5509 = vmatprep.subr.bf16.mxu0 %v17700_v23  ;;  %v20380_v1 = vpack.c.bf16 %v4601_v53, %v4597_v18  ;;  %v17746_v48 = vld [vmem:[%s19469_s9 + $0x1c8] ss:$16 sps:$4 sm:$0xff]   ;;  %v17763_v25 = vld [vmem:[%s19469_s9 + $0x38c] ss:$16 sps:$4 sm:$0xff]   ;;  %v17788_v53 = vld [vmem:[%s19469_s9 + $0x4e0] ss:$16 sps:$4 sm:$0xff]  }
 0x527   : > { %5487 = vmatmul.mubr.bf16.vlgmr.msra.gmra.mxu1 %v20363_v26  ;;  %v17752_v56 = vld [vmem:[%s19469_s9 + $0x1a8] ss:$16 sps:$4 sm:$0xff]   ;;  %v17766_v15 = vld [vmem:[%s19469_s9 + $0x16c] ss:$16 sps:$4 sm:$0xff]  }
 0x528   : > { %5561 = vmatpush1.bf16.msra.mxu1 %v17695_v50  ;;  %5496 = vmatprep.mubr.bf16.mxu1 %v20360_v13  ;;  %v17755_v11 = vld [vmem:[%s19469_s9 + $0x3a8] ss:$16 sps:$4 sm:$0xff]   ;;  %v17772_v27 = vld [vmem:[%s19469_s9 + $0x14c] ss:$16 sps:$4 sm:$0xff]  }
 0x529   : > { %5562 = vmatprep.subr.bf16.mxu1 %v17703_v14  ;;  %5510 = vmatpush1.bf16.msra.mxu0 %v17698_v29  ;;  %v17758_v0 = vld [vmem:[%s19469_s9 + $0x188] ss:$16 sps:$4 sm:$0xff]   ;;  %v17778_v10 = vld [vmem:[%s19469_s9 + $0x12c] ss:$16 sps:$4 sm:$0xff]  }
 0x52a   : > { %5511 = vmatprep.subr.bf16.mxu0 %v17706_v16  ;;  %v17761_v3 = vld [vmem:[%s19469_s9 + $0x388] ss:$16 sps:$4 sm:$0xff]   ;;  %v17781_v23 = vld [vmem:[%s19469_s9 + $0x32c] ss:$16 sps:$4 sm:$0xff]   ;;  %v17790_v16 = vld [vmem:[%s19469_s9 + $0x4e4] ss:$16 sps:$4 sm:$0xff]  }
 0x52b   : > { %v17764_v43 = vld [vmem:[%s19469_s9 + $0x168] ss:$16 sps:$4 sm:$0xff]   ;;  %v17784_v14 = vld [vmem:[%s19469_s9 + $0x10c] ss:$16 sps:$4 sm:$0xff]  }
 0x52c   : > { %5563 = vmatpush1.bf16.msra.mxu1 %v17701_v62  ;;  %5444 = vmatmul.mubr.bf16.gmra.mxu0 %v20376_v63  ;;  %v17767_v58 = vld [vmem:[%s19469_s9 + $0x368] ss:$16 sps:$4 sm:$0xff]   ;;  %v17787_v52 = vld [vmem:[%s19469_s9 + $0x30c] ss:$16 sps:$4 sm:$0xff]   ;;  %v17793_v62 = vld [vmem:[%s19469_s9 + $0x4c4] ss:$16 sps:$4 sm:$0xff]  }
 0x52d   : > { %5564 = vmatprep.subr.bf16.mxu1 %v17709_v59  ;;  %5512 = vmatpush1.bf16.msra.mxu0 %v17704_v60  ;;  %v17770_v46 = vld [vmem:[%s19469_s9 + $0x148] ss:$16 sps:$4 sm:$0xff]   ;;  %v17791_v59 = vld [vmem:[%s19469_s9 + $0x4c0] ss:$16 sps:$4 sm:$0xff]   ;;  %v17796_v60 = vld [vmem:[%s19469_s9 + $0x4a4] ss:$16 sps:$4 sm:$0xff]  }
 0x52e   : > { %5539 = vmatprep.mubr.bf16.mxu0 %v4604_v4  ;;  %5513 = vmatprep.subr.bf16.mxu0 %v17712_v5  ;;  %v17769_v4 = vld [vmem:[%s19469_s9 + $0x36c] ss:$16 sps:$4 sm:$0xff]   ;;  %v17773_v54 = vld [vmem:[%s19469_s9 + $0x348] ss:$16 sps:$4 sm:$0xff]   ;;  %v17794_v5 = vld [vmem:[%s19469_s9 + $0x4a0] ss:$16 sps:$4 sm:$0xff]  }
 0x52f   : > { %5497 = vmatmul.mubr.bf16.gmra.mxu1 %v20380_v1  ;;  %v17776_v50 = vld [vmem:[%s19469_s9 + $0x128] ss:$16 sps:$4 sm:$0xff]  }
 0x530   : > { %5565 = vmatpush1.bf16.msra.mxu1 %v17707_v20  ;;  %5592 = vmatprep.mubr.bf16.mxu1 %v4606_v9  ;;  %v17775_v9 = vld [vmem:[%s19469_s9 + $0x34c] ss:$16 sps:$4 sm:$0xff]   ;;  %v17779_v51 = vld [vmem:[%s19469_s9 + $0x328] ss:$16 sps:$4 sm:$0xff]   ;;  %v17805_v20 = vld [vmem:[%s19469_s9 + $0x444] ss:$16 sps:$4 sm:$0xff]  }
 0x531   : > { %5566 = vmatprep.subr.bf16.mxu1 %v17715_v22  ;;  %5514 = vmatpush1.bf16.msra.mxu0 %v17710_v7  ;;  %v17782_v29 = vld [vmem:[%s19469_s9 + $0x108] ss:$16 sps:$4 sm:$0xff]   ;;  %v17803_v22 = vld [vmem:[%s19469_s9 + $0x440] ss:$16 sps:$4 sm:$0xff]   ;;  %v17838_v7 = vld [vmem:[%s19469_s9 + $0x6e4] ss:$16 sps:$4 sm:$0xff]  }
 0x532   : > { %5515 = vmatprep.subr.bf16.mxu0 %v17718_v19  ;;  %v17785_v18 = vld [vmem:[%s19469_s9 + $0x308] ss:$16 sps:$4 sm:$0xff]   ;;  %v17836_v19 = vld [vmem:[%s19469_s9 + $0x6e0] ss:$16 sps:$4 sm:$0xff]  }
 0x534   : > { %5567 = vmatpush1.bf16.msra.mxu1 %v17713_v2  ;;  %v17842_v2 = vld [vmem:[%s19469_s9 + $0x6c0] ss:$16 sps:$4 sm:$0xff]  }
 0x535   : > { %5568 = vmatprep.subr.bf16.mxu1 %v17721_v17  ;;  %5516 = vmatpush1.bf16.msra.mxu0 %v17716_v30  ;;  %v17844_v17 = vld [vmem:[%s19469_s9 + $0x6c4] ss:$16 sps:$4 sm:$0xff]  }
 0x536   : > { %5517 = vmatprep.subr.bf16.mxu0 %v17724_v8  ;;  %v17811_v30 = vld [vmem:[%s19469_s9 + $0x404] ss:$16 sps:$4 sm:$0xff]   ;;  %v17809_v8 = vld [vmem:[%s19469_s9 + $0x400] ss:$16 sps:$4 sm:$0xff]  }
 0x538   : > { %5569 = vmatpush1.bf16.msra.mxu1 %v17719_v31  ;;  %v17848_v31 = vld [vmem:[%s19469_s9 + $0x6a0] ss:$16 sps:$4 sm:$0xff]  }
 0x539   : > { %5570 = vmatprep.subr.bf16.mxu1 %v17727_v39  ;;  %5518 = vmatpush1.bf16.msra.mxu0 %v17722_v41  ;;  %v17850_v39 = vld [vmem:[%s19469_s9 + $0x6a4] ss:$16 sps:$4 sm:$0xff]  }
 0x53a   : > { %5519 = vmatprep.subr.bf16.mxu0 %v17730_v61  ;;  %v17814_v41 = vld [vmem:[%s19469_s9 + $0x5e4] ss:$16 sps:$4 sm:$0xff]   ;;  %v17812_v61 = vld [vmem:[%s19469_s9 + $0x5e0] ss:$16 sps:$4 sm:$0xff]  }
 0x53c   : > { %5571 = vmatpush1.bf16.msra.mxu1 %v17725_v28  ;;  %v17856_v28 = vld [vmem:[%s19469_s9 + $0x684] ss:$16 sps:$4 sm:$0xff]  }
 0x53d   : > { %5572 = vmatprep.subr.bf16.mxu1 %v17733_v32  ;;  %5520 = vmatpush1.bf16.msra.mxu0 %v17728_v33  ;;  %v17817_v32 = vld [vmem:[%s19469_s9 + $0x5c4] ss:$16 sps:$4 sm:$0xff]   ;;  %v17854_v33 = vld [vmem:[%s19469_s9 + $0x680] ss:$16 sps:$4 sm:$0xff]  }
 0x53e   : > { %5521 = vmatprep.subr.bf16.mxu0 %v17736_v36  ;;  %v17815_v36 = vld [vmem:[%s19469_s9 + $0x5c0] ss:$16 sps:$4 sm:$0xff]  }
 0x540   : > { %5573 = vmatpush1.bf16.msra.mxu1 %v17731_v37  ;;  %v17862_v37 = vld [vmem:[%s19469_s9 + $0x664] ss:$16 sps:$4 sm:$0xff]  }
 0x541   : > { %5574 = vmatprep.subr.bf16.mxu1 %v17739_v38  ;;  %5522 = vmatpush1.bf16.msra.mxu0 %v17734_v40  ;;  %v17820_v38 = vld [vmem:[%s19469_s9 + $0x5a4] ss:$16 sps:$4 sm:$0xff]   ;;  %v17860_v40 = vld [vmem:[%s19469_s9 + $0x660] ss:$16 sps:$4 sm:$0xff]  }
 0x542   : > { %5523 = vmatprep.subr.bf16.mxu0 %v17742_v42  ;;  %v17818_v42 = vld [vmem:[%s19469_s9 + $0x5a0] ss:$16 sps:$4 sm:$0xff]  }
 0x544   : > { %5575 = vmatpush1.bf16.msra.mxu1 %v17737_v44  ;;  %v17868_v44 = vld [vmem:[%s19469_s9 + $0x644] ss:$16 sps:$4 sm:$0xff]  }
 0x545   : > { %5576 = vmatprep.subr.bf16.mxu1 %v17745_v45  ;;  %5524 = vmatpush2.bf16.msra.mxu0 %v17740_v47  ;;  %v17823_v45 = vld [vmem:[%s19469_s9 + $0x584] ss:$16 sps:$4 sm:$0xff]   ;;  %v17866_v47 = vld [vmem:[%s19469_s9 + $0x640] ss:$16 sps:$4 sm:$0xff]  }
 0x546   : > { %5525 = vmatprep.subr.bf16.mxu0 %v17748_v34  ;;  %v17874_v34 = vld [vmem:[%s19469_s9 + $0x624] ss:$16 sps:$4 sm:$0xff]  }
 0x548   : > { %5577 = vmatpush2.bf16.msra.mxu1 %v17743_v49  ;;  %v17821_v49 = vld [vmem:[%s19469_s9 + $0x580] ss:$16 sps:$4 sm:$0xff]  }
 0x549   : > { %5578 = vmatprep.subr.bf16.mxu1 %v17751_v6  ;;  %5526 = vmatpush2.bf16.msra.mxu0 %v17746_v48  ;;  %v17826_v48 = vld [vmem:[%s19469_s9 + $0x564] ss:$16 sps:$4 sm:$0xff]   ;;  %v17872_v6 = vld [vmem:[%s19469_s9 + $0x620] ss:$16 sps:$4 sm:$0xff]  }
 0x54a   : > { %5527 = vmatprep.subr.bf16.mxu0 %v17754_v24  ;;  %v17824_v24 = vld [vmem:[%s19469_s9 + $0x560] ss:$16 sps:$4 sm:$0xff]  }
 0x54c   : > { %5579 = vmatpush2.bf16.msra.mxu1 %v17749_v21  ;;  %v17880_v21 = vld [vmem:[%s19469_s9 + $0x604] ss:$16 sps:$4 sm:$0xff]  }
 0x54d   : > { %5580 = vmatprep.subr.bf16.mxu1 %v17757_v55  ;;  %5528 = vmatpush2.bf16.msra.mxu0 %v17752_v56  ;;  %v17829_v55 = vld [vmem:[%s19469_s9 + $0x544] ss:$16 sps:$4 sm:$0xff]   ;;  %v17878_v56 = vld [vmem:[%s19469_s9 + $0x600] ss:$16 sps:$4 sm:$0xff]  }
 0x54e   : > { %5529 = vmatprep.subr.bf16.mxu0 %v17760_v57  ;;  %v17827_v57 = vld [vmem:[%s19469_s9 + $0x540] ss:$16 sps:$4 sm:$0xff]  }
 0x550   : > { %5581 = vmatpush2.bf16.msra.mxu1 %v17755_v11  ;;  %v17886_v11 = vld [vmem:[%s19469_s9 + $0x7e4] ss:$16 sps:$4 sm:$0xff]  }
 0x551   : > { %5582 = vmatprep.subr.bf16.mxu1 %v17763_v25  ;;  %5530 = vmatpush2.bf16.msra.mxu0 %v17758_v0  ;;  %v17832_v25 = vld [vmem:[%s19469_s9 + $0x524] ss:$16 sps:$4 sm:$0xff]   ;;  %v17884_v0 = vld [vmem:[%s19469_s9 + $0x7e0] ss:$16 sps:$4 sm:$0xff]  }
 0x552   : > { %5531 = vmatprep.subr.bf16.mxu0 %v17766_v15  ;;  %v17830_v15 = vld [vmem:[%s19469_s9 + $0x520] ss:$16 sps:$4 sm:$0xff]  }
 0x554   : > { %5583 = vmatpush2.bf16.msra.mxu1 %v17761_v3  ;;  %v17892_v3 = vld [vmem:[%s19469_s9 + $0x7c4] ss:$16 sps:$4 sm:$0xff]  }
 0x555   : > { %5584 = vmatprep.subr.bf16.mxu1 %v17769_v4  ;;  %5532 = vmatpush2.bf16.msra.mxu0 %v17764_v43  ;;  %v17835_v4 = vld [vmem:[%s19469_s9 + $0x504] ss:$16 sps:$4 sm:$0xff]   ;;  %v17890_v43 = vld [vmem:[%s19469_s9 + $0x7c0] ss:$16 sps:$4 sm:$0xff]  }
 0x556   : > { %5533 = vmatprep.subr.bf16.mxu0 %v17772_v27  ;;  %v17833_v27 = vld [vmem:[%s19469_s9 + $0x500] ss:$16 sps:$4 sm:$0xff]  }
 0x558   : > { %5585 = vmatpush2.bf16.msra.mxu1 %v17767_v58  ;;  %v17898_v58 = vld [vmem:[%s19469_s9 + $0x7a4] ss:$16 sps:$4 sm:$0xff]  }
 0x559   : > { %5586 = vmatprep.subr.bf16.mxu1 %v17775_v9  ;;  %5534 = vmatpush2.bf16.msra.mxu0 %v17770_v46  ;;  %v17841_v9 = vld [vmem:[%s19469_s9 + $0x4ec] ss:$16 sps:$4 sm:$0xff]   ;;  %v17896_v46 = vld [vmem:[%s19469_s9 + $0x7a0] ss:$16 sps:$4 sm:$0xff]  }
 0x55a   : > { %5535 = vmatprep.subr.bf16.mxu0 %v17778_v10  ;;  %v17904_v10 = vld [vmem:[%s19469_s9 + $0x784] ss:$16 sps:$4 sm:$0xff]  }
 0x55c   : > { %5587 = vmatpush2.bf16.msra.mxu1 %v17773_v54  ;;  %v17902_v54 = vld [vmem:[%s19469_s9 + $0x780] ss:$16 sps:$4 sm:$0xff]  }
 0x55d   : > { %5588 = vmatprep.subr.bf16.mxu1 %v17781_v23  ;;  %5536 = vmatpush2.bf16.msra.mxu0 %v17776_v50  ;;  %v17910_v23 = vld [vmem:[%s19469_s9 + $0x764] ss:$16 sps:$4 sm:$0xff]   ;;  %v17908_v50 = vld [vmem:[%s19469_s9 + $0x760] ss:$16 sps:$4 sm:$0xff]  }
 0x55e   : > { %5537 = vmatprep.subr.bf16.mxu0 %v17784_v14  ;;  %v17916_v14 = vld [vmem:[%s19469_s9 + $0x744] ss:$16 sps:$4 sm:$0xff]  }
 0x560   : > { %5589 = vmatpush2.bf16.msra.mxu1 %v17779_v51  ;;  %v17914_v51 = vld [vmem:[%s19469_s9 + $0x740] ss:$16 sps:$4 sm:$0xff]  }
 0x561   : > { %5590 = vmatprep.subr.bf16.mxu1 %v17787_v52  ;;  %5538 = vmatpush2.bf16.msra.mxu0 %v17782_v29  ;;  %v17922_v52 = vld [vmem:[%s19469_s9 + $0x724] ss:$16 sps:$4 sm:$0xff]   ;;  %v17920_v29 = vld [vmem:[%s19469_s9 + $0x720] ss:$16 sps:$4 sm:$0xff]  }
 0x562   : > { %6445 = vmatprep.subr.bf16.mxu0 %v17790_v16  ;;  %v17928_v16 = vld [vmem:[%s19469_s9 + $0x704] ss:$16 sps:$4 sm:$0xff]  }
 0x564   : > { %5591 = vmatpush2.bf16.msra.mxu1 %v17785_v18  ;;  %5540 = vmatmul.mubr.bf16.vlgmr.msra.gmra.mxu0 %v20354_v35  ;;  %v17799_v35 = vld [vmem:[%s19469_s9 + $0x484] ss:$16 sps:$4 sm:$0xff]   ;;  %v17926_v18 = vld [vmem:[%s19469_s9 + $0x700] ss:$16 sps:$4 sm:$0xff]  }
 0x565   : > { %5549 = vmatprep.mubr.bf16.mxu0 %v20352_v12  ;;  %6446 = vmatpush1.bf16.msra.mxu0 %v17788_v53  ;;  %v17797_v12 = vld [vmem:[%s19469_s9 + $0x480] ss:$16 sps:$4 sm:$0xff]   ;;  %v17934_v53 = vld [vmem:[%s19469_s9 + $0x6ec] ss:$16 sps:$4 sm:$0xff]  }
 0x566   : > { %6447 = vmatprep.subr.bf16.mxu0 %v17793_v62  ;;  %6498 = vmatprep.subr.bf16.mxu1 %v17838_v7  ;;  %v4741_v62 = vlaneseq }
 0x567   : > { %5593 = vmatmul.mubr.bf16.vlgmr.msra.gmra.mxu1 %v20363_v26  ;;  %v17802_v26 = vld [vmem:[%s19469_s9 + $0x464] ss:$16 sps:$4 sm:$0xff]  }
 0x568   : > { %5602 = vmatprep.mubr.bf16.mxu1 %v20360_v13  ;;  %v17800_v13 = vld [vmem:[%s19469_s9 + $0x460] ss:$16 sps:$4 sm:$0xff]   ;;  %6499 = vmatpush1.bf16.msra.mxu1 %v17836_v19 }
 0x569   : > { %6448 = vmatpush1.bf16.msra.mxu0 %v17791_v59  ;;  %6500 = vmatprep.subr.bf16.mxu1 %v17844_v17  ;;  %v20509_v59 = vshrl.u32 %v4741_v62, 7  ;;  %v17859_v62 = vld [vmem:[%s19469_s9 + $0x48c] ss:$16 sps:$4 sm:$0xff]  }
 0x56a   : > { %6449 = vmatprep.subr.bf16.mxu0 %v17796_v60 }
 0x56b   : > { %v20512_v60 = vsub.s32 0, %v20509_v59 }
 0x56c   : > { %5550 = vmatmul.mubr.bf16.gmra.mxu0 %v20376_v63  ;;  %v17808_v63 = vld [vmem:[%s19469_s9 + $0x424] ss:$16 sps:$4 sm:$0xff]   ;;  %6501 = vmatpush1.bf16.msra.mxu1 %v17842_v2 }
 0x56d   : > { %6450 = vmatpush1.bf16.msra.mxu0 %v17794_v5  ;;  %6502 = vmatprep.subr.bf16.mxu1 %v17850_v39  ;;  %v20515_v5 = vld [vmem:[%s19475_s6] sm:$0xf] }
 0x56e   : > { %6451 = vmatprep.subr.bf16.mxu0 %v17799_v35  ;;  %v20518_v35 = vsub.s32 1, %v20509_v59 }
 0x56f   : > { %5603 = vmatmul.mubr.bf16.gmra.mxu1 %v20380_v1  ;;  %v17806_v1 = vld [vmem:[%s19469_s9 + $0x420] ss:$16 sps:$4 sm:$0xff]  }
 0x570   : > { %6503 = vmatpush1.bf16.msra.mxu1 %v17848_v31 }
 0x571   : > { %6452 = vmatpush1.bf16.msra.mxu0 %v17797_v12  ;;  %6504 = vmatprep.subr.bf16.mxu1 %v17856_v28  ;;  %v4744_v12 = vrot.slane %v20515_v5, %v20512_v60 }
 0x572   : > { %6453 = vmatprep.subr.bf16.mxu0 %v17802_v26  ;;  %v4748_v26 = vrot.slane %v20515_v5, %v20518_v35 }
 0x574   : > { %6505 = vmatpush1.bf16.msra.mxu1 %v17854_v33 }
 0x575   : > { %6454 = vmatpush1.bf16.msra.mxu0 %v17800_v13  ;;  %6506 = vmatprep.subr.bf16.mxu1 %v17862_v37 }
 0x576   : > { %6455 = vmatprep.subr.bf16.mxu0 %v17805_v20 }
 0x578   : > { %6507 = vmatpush1.bf16.msra.mxu1 %v17860_v40 }
 0x579   : > { %6456 = vmatpush1.bf16.msra.mxu0 %v17803_v22  ;;  %6508 = vmatprep.subr.bf16.mxu1 %v17868_v44 }
 0x57a   : > { %6457 = vmatprep.subr.bf16.mxu0 %v17808_v63 }
 0x57c   : > { %6509 = vmatpush1.bf16.msra.mxu1 %v17866_v47 }
 0x57d   : > { %6458 = vmatpush1.bf16.msra.mxu0 %v17806_v1  ;;  %6510 = vmatprep.subr.bf16.mxu1 %v17874_v34 }
 0x57e   : > { %6459 = vmatprep.subr.bf16.mxu0 %v17811_v30 }
 0x580   : > { %6511 = vmatpush1.bf16.msra.mxu1 %v17872_v6 }
 0x581   : > { %6460 = vmatpush1.bf16.msra.mxu0 %v17809_v8  ;;  %6512 = vmatprep.subr.bf16.mxu1 %v17880_v21 }
 0x582   : > { %6461 = vmatprep.subr.bf16.mxu0 %v17814_v41 }
 0x584   : > { %6513 = vmatpush1.bf16.msra.mxu1 %v17878_v56 }
 0x585   : > { %6462 = vmatpush2.bf16.msra.mxu0 %v17812_v61  ;;  %6514 = vmatprep.subr.bf16.mxu1 %v17886_v11 }
 0x586   : > { %6463 = vmatprep.subr.bf16.mxu0 %v17817_v32 }
 0x588   : > { %6515 = vmatpush2.bf16.msra.mxu1 %v17884_v0 }
 0x589   : > { %6464 = vmatpush2.bf16.msra.mxu0 %v17815_v36  ;;  %6516 = vmatprep.subr.bf16.mxu1 %v17892_v3 }
 0x58a   : > { %6465 = vmatprep.subr.bf16.mxu0 %v17820_v38 }
 0x58c   : > { %6517 = vmatpush2.bf16.msra.mxu1 %v17890_v43 }
 0x58d   : > { %6466 = vmatpush2.bf16.msra.mxu0 %v17818_v42  ;;  %6518 = vmatprep.subr.bf16.mxu1 %v17898_v58 }
 0x58e   : > { %6467 = vmatprep.subr.bf16.mxu0 %v17823_v45 }
 0x590   : > { %6519 = vmatpush2.bf16.msra.mxu1 %v17896_v46 }
 0x591   : > { %6468 = vmatpush2.bf16.msra.mxu0 %v17821_v49  ;;  %6520 = vmatprep.subr.bf16.mxu1 %v17904_v10 }
 0x592   : > { %6469 = vmatprep.subr.bf16.mxu0 %v17826_v48 }
 0x594   : > { %6521 = vmatpush2.bf16.msra.mxu1 %v17902_v54 }
 0x595   : > { %6470 = vmatpush2.bf16.msra.mxu0 %v17824_v24  ;;  %6522 = vmatprep.subr.bf16.mxu1 %v17910_v23 }
 0x596   : > { %6471 = vmatprep.subr.bf16.mxu0 %v17829_v55 }
 0x598   : > { %6523 = vmatpush2.bf16.msra.mxu1 %v17908_v50 }
 0x599   : > { %6472 = vmatpush2.bf16.msra.mxu0 %v17827_v57  ;;  %6524 = vmatprep.subr.bf16.mxu1 %v17916_v14 }
 0x59a   : > { %6473 = vmatprep.subr.bf16.mxu0 %v17832_v25 }
 0x59c   : > { %6525 = vmatpush2.bf16.msra.mxu1 %v17914_v51  ;;  %v17845_v51 = vld [vmem:[%s19469_s9 + $0x4c8] ss:$16 sps:$4 sm:$0xff]  }
 0x59d   : > { %6474 = vmatpush2.bf16.msra.mxu0 %v17830_v15  ;;  %6526 = vmatprep.subr.bf16.mxu1 %v17922_v52  ;;  %v17853_v52 = vld [vmem:[%s19469_s9 + $0x4ac] ss:$16 sps:$4 sm:$0xff]  }
 0x59e   : > { %6475 = vmatprep.subr.bf16.mxu0 %v17835_v4  ;;  %v17839_v4 = vld [vmem:[%s19469_s9 + $0x4e8] ss:$16 sps:$4 sm:$0xff]  }
 0x5a0   : > { %6527 = vmatpush2.bf16.msra.mxu1 %v17920_v29 }
 0x5a1   : > { %6476 = vmatpush2.bf16.msra.mxu0 %v17833_v27  ;;  %6528 = vmatprep.subr.bf16.mxu1 %v17928_v16 }
 0x5a2   : > { %6551 = vmatprep.subr.bf16.mxu0 %v17841_v9  ;;  %v17847_v9 = vld [vmem:[%s19469_s9 + $0x4cc] ss:$16 sps:$4 sm:$0xff]  }
 0x5a4   : > { %6529 = vmatpush2.bf16.msra.mxu1 %v17926_v18 }
 0x5a5   : > { %6604 = vmatprep.subr.bf16.mxu1 %v17934_v53  ;;  %v17851_v53 = vld [vmem:[%s19469_s9 + $0x4a8] ss:$16 sps:$4 sm:$0xff]  }
 0x5e4   : > { %v5435_v13 = vpop.f32.mrf.mxu0 }
 0x5e5   : > { %v5436_v20 = vadd.f32 %v5435_v13, %v4744_v12  ;;  %v17863_v13 = vld [vmem:[%s19469_s9 + $0x468] ss:$16 sps:$4 sm:$0xff]  }
 0x5e6   : > { %v5437_v7 = vpop.f32.mrf.mxu0 }
 0x5e7   : > { %v5488_v22 = vpop.f32.mrf.mxu1  ;;  %v5438_v63 = vadd.f32 %v5437_v7, %v4748_v26  ;;  %v17877_v7 = vld [vmem:[%s19469_s9 + $0x42c] ss:$16 sps:$4 sm:$0xff]  }
 0x5e8   : > { %v5439_v1 = vpop.f32.mrf.mxu0  ;;  %v5489_v30 = vadd.f32 %v5488_v22, %v5436_v20  ;;  %v17871_v20 = vld [vmem:[%s19469_s9 + $0x44c] ss:$16 sps:$4 sm:$0xff]   ;;  %v17869_v22 = vld [vmem:[%s19469_s9 + $0x448] ss:$16 sps:$4 sm:$0xff]  }
 0x5e9   : > { %v5490_v19 = vpop.f32.mrf.mxu1  ;;  %v5440_v17 = vadd.f32 %v5439_v1, %v4744_v12  ;;  %v17881_v1 = vld [vmem:[%s19469_s9 + $0x408] ss:$16 sps:$4 sm:$0xff]  }
 0x5ea   : > { %v5491_v2 = vadd.f32 %v5490_v19, %v5438_v63  ;;  %v5441_v31 = vpop.f32.mrf.mxu0  ;;  %v5613_v38 = vmul.f32 0.2, %v5489_v30  ;;  %v17875_v63 = vld [vmem:[%s19469_s9 + $0x428] ss:$16 sps:$4 sm:$0xff]   ;;  %v17883_v19 = vld [vmem:[%s19469_s9 + $0x40c] ss:$16 sps:$4 sm:$0xff]  }
 0x5eb   : > { %v5492_v8 = vpop.f32.mrf.mxu1  ;;  %v5442_v41 = vadd.f32 %v5441_v31, %v4748_v26  ;;  %v17901_v31 = vld [vmem:[%s19469_s9 + $0x5ac] ss:$16 sps:$4 sm:$0xff]  }
 0x5ec   : > { %v5493_v39 = vadd.f32 %v5492_v8, %v5440_v17  ;;  %v5445_v28 = vpop.f32.mrf.mxu0  ;;  %v5614_v32 = vmul.f32 0.2, %v5491_v2  ;;  %v5629_v55 = vmax.f32 %v5489_v30, %v5613_v38  ;;  %v17887_v17 = vld [vmem:[%s19469_s9 + $0x5e8] ss:$16 sps:$4 sm:$0xff]   ;;  %v17895_v30 = vld [vmem:[%s19469_s9 + $0x5cc] ss:$16 sps:$4 sm:$0xff]  }
 0x5ed   : > { %v5494_v61 = vpop.f32.mrf.mxu1  ;;  %v5446_v37 = vadd.f32 %v5445_v28, %v4744_v12  ;;  %v17893_v8 = vld [vmem:[%s19469_s9 + $0x5c8] ss:$16 sps:$4 sm:$0xff]  }
 0x5ee   : > { %v5617_v33 = vmul.f32 0.2, %v5493_v39  ;;  %v5495_v36 = vadd.f32 %v5494_v61, %v5442_v41  ;;  %v5447_v40 = vpop.f32.mrf.mxu0  ;;  %v5630_v6 = vmax.f32 %v5491_v2, %v5614_v32  ;;  %v17889_v2 = vld [vmem:[%s19469_s9 + $0x5ec] ss:$16 sps:$4 sm:$0xff]   ;;  %v20556_v61 = vsub.s32 2, %v20509_v59 }
 0x5ef   : > { %v5498_v42 = vpop.f32.mrf.mxu1  ;;  %v5448_v45 = vadd.f32 %v5447_v40, %v4748_v26  ;;  %v17907_v41 = vld [vmem:[%s19469_s9 + $0x58c] ss:$16 sps:$4 sm:$0xff]   ;;  %v17905_v28 = vld [vmem:[%s19469_s9 + $0x588] ss:$16 sps:$4 sm:$0xff]   ;;  %v20560_v32 = vsub.s32 3, %v20509_v59 }
 0x5f0   : > { %v5618_v44 = vmul.f32 0.2, %v5495_v36  ;;  %v5499_v47 = vadd.f32 %v5498_v42, %v5446_v37  ;;  %v5633_v49 = vmax.f32 %v5493_v39, %v5617_v33  ;;  %v5449_v34 = vpop.f32.mrf.mxu0  ;;  %v17899_v39 = vld [vmem:[%s19469_s9 + $0x5a8] ss:$16 sps:$4 sm:$0xff]   ;;  %v17913_v33 = vld [vmem:[%s19469_s9 + $0x56c] ss:$16 sps:$4 sm:$0xff]  }
 0x5f1   : > { %v5500_v48 = vpop.f32.mrf.mxu1  ;;  %v5450_v21 = vadd.f32 %v5449_v34, %v4744_v12  ;;  %v17857_v12 = vld [vmem:[%s19469_s9 + $0x488] ss:$16 sps:$4 sm:$0xff]   ;;  %v4756_v38 = vrot.slane %v20515_v5, %v20560_v32  ;;  %v17919_v42 = vld [vmem:[%s19469_s9 + $0x54c] ss:$16 sps:$4 sm:$0xff]  }
 0x5f2   : > { %v5634_v24 = vmax.f32 %v5495_v36, %v5618_v44  ;;  %v5621_v56 = vmul.f32 0.2, %v5499_v47  ;;  %v5501_v57 = vadd.f32 %v5500_v48, %v5448_v45  ;;  %v5451_v11 = vpop.f32.mrf.mxu0  ;;  %v20525_v43 = vpack.c.bf16 %v5633_v49, %v5629_v55  ;;  %v17911_v37 = vld [vmem:[%s19469_s9 + $0x568] ss:$16 sps:$4 sm:$0xff]  }
 0x5f3   : > { %v5502_v25 = vpop.f32.mrf.mxu1  ;;  %v5452_v0 = vadd.f32 %v5451_v11, %v4748_v26  ;;  %v17865_v26 = vld [vmem:[%s19469_s9 + $0x46c] ss:$16 sps:$4 sm:$0xff]   ;;  %v4752_v36 = vrot.slane %v20515_v5, %v20556_v61  ;;  %v17917_v49 = vld [vmem:[%s19469_s9 + $0x548] ss:$16 sps:$4 sm:$0xff]  }
 0x5f4   : > { %v5503_v15 = vadd.f32 %v5502_v25, %v5450_v21  ;;  %v5646_v3 = vpack.c.bf16 %v5634_v24, %v5630_v6  ;;  %v5622_v27 = vmul.f32 0.2, %v5501_v57  ;;  %v5637_v54 = vmax.f32 %v5499_v47, %v5621_v56  ;;  %v17925_v6 = vld [vmem:[%s19469_s9 + $0x52c] ss:$16 sps:$4 sm:$0xff]   ;;  %v17923_v25 = vld [vmem:[%s19469_s9 + $0x528] ss:$16 sps:$4 sm:$0xff]  }
 0x5f5   : > { %v5504_v58 = vpop.f32.mrf.mxu1 }
 0x5f6   : > { %v5625_v46 = vmul.f32 0.2, %v5503_v15  ;;  %v5505_v10 = vadd.f32 %v5504_v58, %v5452_v0  ;;  %6477 = vmatprep.mubr.bf16.mxu0 %v5646_v3  ;;  %v5638_v23 = vmax.f32 %v5501_v57, %v5622_v27 }
 0x5f7   : > { %6478 = vmatmul.mubr.bf16.vlgmr.msra.gmra.mxu0 %v20525_v43 }
 0x5f8   : > { %v5641_v50 = vmax.f32 %v5503_v15, %v5625_v46  ;;  %v5626_v14 = vmul.f32 0.2, %v5505_v10  ;;  %6552 = vmatpush1.bf16.msra.mxu0 %v17839_v4 }
 0x5f9   : > { %6553 = vmatprep.subr.bf16.mxu0 %v17847_v9 }
 0x5fa   : > { %v5642_v29 = vmax.f32 %v5505_v10, %v5626_v14  ;;  %v20531_v16 = vpack.c.bf16 %v5641_v50, %v5637_v54 }
 0x5fc   : > { %6554 = vmatpush1.bf16.msra.mxu0 %v17845_v51  ;;  %v20533_v18 = vpack.c.bf16 %v5642_v29, %v5638_v23  ;;  %v17929_v51 = vld [vmem:[%s19469_s9 + $0x508] ss:$16 sps:$4 sm:$0xff]  }
 0x5fd   : > { %6555 = vmatprep.subr.bf16.mxu0 %v17853_v52 }
 0x5fe   : > { %6487 = vmatprep.mubr.bf16.mxu0 %v20533_v18 }
 0x5ff   : > { %6488 = vmatmul.mubr.bf16.gmra.mxu0 %v20531_v16 }
 0x600   : > { %6556 = vmatpush1.bf16.msra.mxu0 %v17851_v53  ;;  %6583 = vmatprep.mubr.bf16.mxu0 %v5646_v3  ;;  %v17931_v3 = vld [vmem:[%s19469_s9 + $0x50c] ss:$16 sps:$4 sm:$0xff]  }
 0x601   : > { %6557 = vmatprep.subr.bf16.mxu0 %v17859_v62 }
 0x604   : > { %6558 = vmatpush1.bf16.msra.mxu0 %v17857_v12 }
 0x605   : > { %6559 = vmatprep.subr.bf16.mxu0 %v17865_v26 }
 0x608   : > { %6560 = vmatpush1.bf16.msra.mxu0 %v17863_v13 }
 0x609   : > { %6561 = vmatprep.subr.bf16.mxu0 %v17871_v20 }
 0x60c   : > { %6562 = vmatpush1.bf16.msra.mxu0 %v17869_v22 }
 0x60d   : > { %6563 = vmatprep.subr.bf16.mxu0 %v17877_v7 }
 0x610   : > { %6564 = vmatpush1.bf16.msra.mxu0 %v17875_v63 }
 0x611   : > { %6565 = vmatprep.subr.bf16.mxu0 %v17883_v19 }
 0x614   : > { %6566 = vmatpush1.bf16.msra.mxu0 %v17881_v1 }
 0x615   : > { %6567 = vmatprep.subr.bf16.mxu0 %v17889_v2 }
 0x618   : > { %6568 = vmatpush2.bf16.msra.mxu0 %v17887_v17  ;;  %v17932_v17 = vld [vmem:[%s19469_s9 + $0x6e8] ss:$16 sps:$4 sm:$0xff]  }
 0x619   : > { %6569 = vmatprep.subr.bf16.mxu0 %v17895_v30 }
 0x61c   : > { %6570 = vmatpush2.bf16.msra.mxu0 %v17893_v8 }
 0x61d   : > { %6571 = vmatprep.subr.bf16.mxu0 %v17901_v31 }
 0x620   : > { %6572 = vmatpush2.bf16.msra.mxu0 %v17899_v39  ;;  %v17937_v39 = vld [vmem:[%s19469_s9 + $0x6cc] ss:$16 sps:$4 sm:$0xff]  }
 0x621   : > { %6573 = vmatprep.subr.bf16.mxu0 %v17907_v41 }
 0x624   : > { %6574 = vmatpush2.bf16.msra.mxu0 %v17905_v28  ;;  %v5541_v40 = vpop.f32.mrf.mxu0 }
 0x625   : > { %6575 = vmatprep.subr.bf16.mxu0 %v17913_v33  ;;  %v5542_v44 = vadd.f32 %v5541_v40, %v4752_v36  ;;  %v17935_v40 = vld [vmem:[%s19469_s9 + $0x6c8] ss:$16 sps:$4 sm:$0xff]  }
 0x626   : > { %v5543_v47 = vpop.f32.mrf.mxu0 }
 0x627   : > { %v5594_v45 = vpop.f32.mrf.mxu1  ;;  %v5544_v59 = vadd.f32 %v5543_v47, %v4756_v38  ;;  %v17938_v47 = vld [vmem:[%s19469_s9 + $0x6a8] ss:$16 sps:$4 sm:$0xff]  }
 0x628   : > { %6576 = vmatpush2.bf16.msra.mxu0 %v17911_v37  ;;  %v5545_v48 = vpop.f32.mrf.mxu0  ;;  %v5595_v55 = vadd.f32 %v5594_v45, %v5542_v44 }
 0x629   : > { %v5596_v34 = vpop.f32.mrf.mxu1  ;;  %6577 = vmatprep.subr.bf16.mxu0 %v17919_v42  ;;  %v5546_v21 = vadd.f32 %v5545_v48, %v4752_v36  ;;  %v17940_v42 = vld [vmem:[%s19469_s9 + $0x6ac] ss:$16 sps:$4 sm:$0xff]   ;;  %v17941_v48 = vld [vmem:[%s19469_s9 + $0x688] ss:$16 sps:$4 sm:$0xff]  }
 0x62a   : > { %v5597_v24 = vadd.f32 %v5596_v34, %v5544_v59  ;;  %v5547_v5 = vpop.f32.mrf.mxu0  ;;  %v5615_v46 = vmul.f32 0.2, %v5595_v55  ;;  %v17943_v59 = vld [vmem:[%s19469_s9 + $0x68c] ss:$16 sps:$4 sm:$0xff]   ;;  %v17985_v34 = vld [vmem:[%s19469_s9 + $0x8c4] ss:$16 sps:$4 sm:$0xff]  }
 0x62b   : > { %v5598_v56 = vpop.f32.mrf.mxu1  ;;  %v5548_v11 = vadd.f32 %v5547_v5, %v4756_v38  ;;  %v17991_v5 = vld [vmem:[%s19469_s9 + $0x884] ss:$16 sps:$4 sm:$0xff]  }
 0x62c   : > { %v5599_v57 = vadd.f32 %v5598_v56, %v5546_v21  ;;  %6578 = vmatpush2.bf16.msra.mxu0 %v17917_v49  ;;  %v5551_v15 = vpop.f32.mrf.mxu0  ;;  %v5616_v4 = vmul.f32 0.2, %v5597_v24  ;;  %v5631_v13 = vmax.f32 %v5595_v55, %v5615_v46  ;;  %v17982_v49 = vld [vmem:[%s19469_s9 + $0x8e4] ss:$16 sps:$4 sm:$0xff]   ;;  %v17949_v55 = vld [vmem:[%s19469_s9 + $0x64c] ss:$16 sps:$4 sm:$0xff]  }
 0x62d   : > { %v5600_v0 = vpop.f32.mrf.mxu1  ;;  %6579 = vmatprep.subr.bf16.mxu0 %v17925_v6  ;;  %v5552_v9 = vadd.f32 %v5551_v15, %v4752_v36  ;;  %v17946_v6 = vld [vmem:[%s19469_s9 + $0x66c] ss:$16 sps:$4 sm:$0xff]   ;;  %v17988_v21 = vld [vmem:[%s19469_s9 + $0x8a4] ss:$16 sps:$4 sm:$0xff]   ;;  %v17986_v56 = vld [vmem:[%s19469_s9 + $0x8a0] ss:$16 sps:$4 sm:$0xff]  }
 0x62e   : > { %v5619_v27 = vmul.f32 0.2, %v5599_v57  ;;  %v5601_v58 = vadd.f32 %v5600_v0, %v5548_v11  ;;  %v5553_v10 = vpop.f32.mrf.mxu0  ;;  %v5632_v62 = vmax.f32 %v5597_v24, %v5616_v4  ;;  %v17983_v24 = vld [vmem:[%s19469_s9 + $0x8c0] ss:$16 sps:$4 sm:$0xff]   ;;  %v17952_v11 = vld [vmem:[%s19469_s9 + $0x62c] ss:$16 sps:$4 sm:$0xff]  }
 0x62f   : > { %v5604_v54 = vpop.f32.mrf.mxu1  ;;  %v5554_v50 = vadd.f32 %v5553_v10, %v4756_v38  ;;  %v17994_v0 = vld [vmem:[%s19469_s9 + $0x864] ss:$16 sps:$4 sm:$0xff]   ;;  %v17950_v15 = vld [vmem:[%s19469_s9 + $0x628] ss:$16 sps:$4 sm:$0xff]   ;;  %v17992_v4 = vld [vmem:[%s19469_s9 + $0x860] ss:$16 sps:$4 sm:$0xff]  }
 0x630   : > { %v5620_v23 = vmul.f32 0.2, %v5601_v58  ;;  %v5605_v14 = vadd.f32 %v5604_v54, %v5552_v9  ;;  %6580 = vmatpush2.bf16.msra.mxu0 %v17923_v25  ;;  %v5635_v52 = vmax.f32 %v5599_v57, %v5619_v27  ;;  %v5555_v29 = vpop.f32.mrf.mxu0  ;;  %v17947_v57 = vld [vmem:[%s19469_s9 + $0x648] ss:$16 sps:$4 sm:$0xff]   ;;  %v17989_v25 = vld [vmem:[%s19469_s9 + $0x880] ss:$16 sps:$4 sm:$0xff]  }
 0x631   : > { %v5606_v53 = vpop.f32.mrf.mxu1  ;;  %6581 = vmatprep.subr.bf16.mxu0 %v17931_v3  ;;  %v5556_v26 = vadd.f32 %v5555_v29, %v4752_v36  ;;  %v17955_v3 = vld [vmem:[%s19469_s9 + $0x60c] ss:$16 sps:$4 sm:$0xff]   ;;  %v17997_v27 = vld [vmem:[%s19469_s9 + $0x844] ss:$16 sps:$4 sm:$0xff]   ;;  %v17995_v46 = vld [vmem:[%s19469_s9 + $0x840] ss:$16 sps:$4 sm:$0xff]  }
 0x632   : > { %v5636_v12 = vmax.f32 %v5601_v58, %v5620_v23  ;;  %v5623_v20 = vmul.f32 0.2, %v5605_v14  ;;  %v5607_v22 = vadd.f32 %v5606_v53, %v5554_v50  ;;  %v5557_v7 = vpop.f32.mrf.mxu0  ;;  %v20575_v30 = vpack.c.bf16 %v5635_v52, %v5631_v13  ;;  %v17953_v58 = vld [vmem:[%s19469_s9 + $0x608] ss:$16 sps:$4 sm:$0xff]   ;;  %v17958_v9 = vld [vmem:[%s19469_s9 + $0x7ec] ss:$16 sps:$4 sm:$0xff]  }
 0x633   : > { %v5608_v63 = vpop.f32.mrf.mxu1  ;;  %v5558_v19 = vadd.f32 %v5557_v7, %v4756_v38  ;;  %v18000_v10 = vld [vmem:[%s19469_s9 + $0x824] ss:$16 sps:$4 sm:$0xff]   ;;  %v17956_v54 = vld [vmem:[%s19469_s9 + $0x7e8] ss:$16 sps:$4 sm:$0xff]   ;;  %v17961_v23 = vld [vmem:[%s19469_s9 + $0x7cc] ss:$16 sps:$4 sm:$0xff]  }
 0x634   : > { %v5609_v1 = vadd.f32 %v5608_v63, %v5556_v26  ;;  %6582 = vmatpush2.bf16.msra.mxu0 %v17929_v51  ;;  %v5648_v2 = vpack.c.bf16 %v5636_v12, %v5632_v62  ;;  %v5624_v8 = vmul.f32 0.2, %v5607_v22  ;;  %v5639_v33 = vmax.f32 %v5605_v14, %v5623_v20  ;;  %v17998_v50 = vld [vmem:[%s19469_s9 + $0x820] ss:$16 sps:$4 sm:$0xff]   ;;  %v18003_v14 = vld [vmem:[%s19469_s9 + $0x804] ss:$16 sps:$4 sm:$0xff]  }
 0x635   : > { %v5610_v31 = vpop.f32.mrf.mxu1  ;;  %7489 = vmatprep.subr.bf16.mxu0 %v17982_v49  ;;  %v17959_v51 = vld [vmem:[%s19469_s9 + $0x7c8] ss:$16 sps:$4 sm:$0xff]   ;;  %v17964_v52 = vld [vmem:[%s19469_s9 + $0x7ac] ss:$16 sps:$4 sm:$0xff]   ;;  %v18001_v29 = vld [vmem:[%s19469_s9 + $0x800] ss:$16 sps:$4 sm:$0xff]  }
 0x636   : > { %v5627_v41 = vmul.f32 0.2, %v5609_v1  ;;  %v5611_v28 = vadd.f32 %v5610_v31, %v5558_v19  ;;  %6530 = vmatprep.mubr.bf16.mxu1 %v5648_v2  ;;  %v5640_v36 = vmax.f32 %v5607_v22, %v5624_v8  ;;  %v18006_v53 = vld [vmem:[%s19469_s9 + $0x9e4] ss:$16 sps:$4 sm:$0xff]   ;;  %v17962_v62 = vld [vmem:[%s19469_s9 + $0x7a8] ss:$16 sps:$4 sm:$0xff]  }
 0x637   : > { %6584 = vmatmul.mubr.bf16.vlgmr.msra.gmra.mxu0 %v20525_v43  ;;  %6531 = vmatmul.mubr.bf16.vlgmr.msra.gmra.mxu1 %v20575_v30  ;;  %v17967_v12 = vld [vmem:[%s19469_s9 + $0x78c] ss:$16 sps:$4 sm:$0xff]   ;;  %v18004_v26 = vld [vmem:[%s19469_s9 + $0x9e0] ss:$16 sps:$4 sm:$0xff]   ;;  %v18009_v13 = vld [vmem:[%s19469_s9 + $0x9c4] ss:$16 sps:$4 sm:$0xff]  }
 0x638   : > { %v5643_v37 = vmax.f32 %v5609_v1, %v5627_v41  ;;  %v5628_v38 = vmul.f32 0.2, %v5611_v28  ;;  %6593 = vmatprep.mubr.bf16.mxu0 %v20533_v18  ;;  %6605 = vmatpush1.bf16.msra.mxu1 %v17932_v17  ;;  %v17980_v18 = vld [vmem:[%s19469_s9 + $0x8e0] ss:$16 sps:$4 sm:$0xff]   ;;  %v17965_v20 = vld [vmem:[%s19469_s9 + $0x788] ss:$16 sps:$4 sm:$0xff]  }
 0x639   : > { %6606 = vmatprep.subr.bf16.mxu1 %v17937_v39  ;;  %7490 = vmatpush1.bf16.msra.mxu0 %v17980_v18  ;;  %v17970_v22 = vld [vmem:[%s19469_s9 + $0x76c] ss:$16 sps:$4 sm:$0xff]   ;;  %v18007_v7 = vld [vmem:[%s19469_s9 + $0x9c0] ss:$16 sps:$4 sm:$0xff]   ;;  %v18012_v63 = vld [vmem:[%s19469_s9 + $0x9a4] ss:$16 sps:$4 sm:$0xff]  }
 0x63a   : > { %v5644_v44 = vmax.f32 %v5611_v28, %v5628_v38  ;;  %v20583_v45 = vpack.c.bf16 %v5643_v37, %v5639_v33  ;;  %7491 = vmatprep.subr.bf16.mxu0 %v17985_v34  ;;  %v17968_v19 = vld [vmem:[%s19469_s9 + $0x768] ss:$16 sps:$4 sm:$0xff]   ;;  %v17973_v1 = vld [vmem:[%s19469_s9 + $0x74c] ss:$16 sps:$4 sm:$0xff]   ;;  %v18015_v17 = vld [vmem:[%s19469_s9 + $0x984] ss:$16 sps:$4 sm:$0xff]  }
 0x63b   : > { %v17971_v8 = vld [vmem:[%s19469_s9 + $0x748] ss:$16 sps:$4 sm:$0xff]   ;;  %v17976_v31 = vld [vmem:[%s19469_s9 + $0x72c] ss:$16 sps:$4 sm:$0xff]   ;;  %v18013_v39 = vld [vmem:[%s19469_s9 + $0x980] ss:$16 sps:$4 sm:$0xff]  }
 0x63c   : > { %6607 = vmatpush1.bf16.msra.mxu1 %v17935_v40  ;;  %v20585_v43 = vpack.c.bf16 %v5644_v44, %v5640_v36  ;;  %v17974_v41 = vld [vmem:[%s19469_s9 + $0x728] ss:$16 sps:$4 sm:$0xff]   ;;  %v17979_v28 = vld [vmem:[%s19469_s9 + $0x70c] ss:$16 sps:$4 sm:$0xff]   ;;  %v18018_v36 = vld [vmem:[%s19469_s9 + $0x964] ss:$16 sps:$4 sm:$0xff]  }
 0x63d   : > { %6608 = vmatprep.subr.bf16.mxu1 %v17940_v42  ;;  %7492 = vmatpush1.bf16.msra.mxu0 %v17983_v24  ;;  %v17977_v33 = vld [vmem:[%s19469_s9 + $0x708] ss:$16 sps:$4 sm:$0xff]   ;;  %v18016_v37 = vld [vmem:[%s19469_s9 + $0x960] ss:$16 sps:$4 sm:$0xff]   ;;  %v18021_v38 = vld [vmem:[%s19469_s9 + $0x944] ss:$16 sps:$4 sm:$0xff]  }
 0x63e   : > { %6540 = vmatprep.mubr.bf16.mxu1 %v20585_v43  ;;  %7493 = vmatprep.subr.bf16.mxu0 %v17988_v21  ;;  %v18019_v40 = vld [vmem:[%s19469_s9 + $0x940] ss:$16 sps:$4 sm:$0xff]   ;;  %v18024_v42 = vld [vmem:[%s19469_s9 + $0x924] ss:$16 sps:$4 sm:$0xff]   ;;  %v18033_v18 = vld [vmem:[%s19469_s9 + $0x8ec] ss:$16 sps:$4 sm:$0xff]  }
 0x63f   : > { %6594 = vmatmul.mubr.bf16.gmra.mxu0 %v20531_v16  ;;  %6541 = vmatmul.mubr.bf16.gmra.mxu1 %v20583_v45  ;;  %v17944_v16 = vld [vmem:[%s19469_s9 + $0x668] ss:$16 sps:$4 sm:$0xff]   ;;  %v18022_v44 = vld [vmem:[%s19469_s9 + $0x920] ss:$16 sps:$4 sm:$0xff]   ;;  %v18048_v24 = vld [vmem:[%s19469_s9 + $0xa84] ss:$16 sps:$4 sm:$0xff]  }
 0x640   : > { %6609 = vmatpush1.bf16.msra.mxu1 %v17938_v47  ;;  %6636 = vmatprep.mubr.bf16.mxu1 %v5648_v2  ;;  %v18010_v2 = vld [vmem:[%s19469_s9 + $0x9a0] ss:$16 sps:$4 sm:$0xff]   ;;  %v18030_v47 = vld [vmem:[%s19469_s9 + $0xae4] ss:$16 sps:$4 sm:$0xff]  }
 0x641   : > { %6610 = vmatprep.subr.bf16.mxu1 %v17943_v59  ;;  %7494 = vmatpush1.bf16.msra.mxu0 %v17986_v56  ;;  %v18028_v59 = vld [vmem:[%s19469_s9 + $0xae0] ss:$16 sps:$4 sm:$0xff]   ;;  %v18060_v56 = vld [vmem:[%s19469_s9 + $0xa44] ss:$16 sps:$4 sm:$0xff]  }
 0x642   : > { %7495 = vmatprep.subr.bf16.mxu0 %v17991_v5  ;;  %v18034_v49 = vld [vmem:[%s19469_s9 + $0xac0] ss:$16 sps:$4 sm:$0xff]  }
 0x643   : > { %v18040_v34 = vld [vmem:[%s19469_s9 + $0xaa0] ss:$16 sps:$4 sm:$0xff]  }
 0x644   : > { %6611 = vmatpush1.bf16.msra.mxu1 %v17941_v48  ;;  %v18042_v48 = vld [vmem:[%s19469_s9 + $0xaa4] ss:$16 sps:$4 sm:$0xff]   ;;  %v18052_v21 = vld [vmem:[%s19469_s9 + $0xa60] ss:$16 sps:$4 sm:$0xff]  }
 0x645   : > { %6612 = vmatprep.subr.bf16.mxu1 %v17946_v6  ;;  %7496 = vmatpush1.bf16.msra.mxu0 %v17989_v25  ;;  %v18046_v6 = vld [vmem:[%s19469_s9 + $0xa80] ss:$16 sps:$4 sm:$0xff]   ;;  %v18072_v25 = vld [vmem:[%s19469_s9 + $0xa04] ss:$16 sps:$4 sm:$0xff]  }
 0x646   : > { %7497 = vmatprep.subr.bf16.mxu0 %v17994_v0  ;;  %v18064_v5 = vld [vmem:[%s19469_s9 + $0xa20] ss:$16 sps:$4 sm:$0xff]  }
 0x647   : > { %v18076_v0 = vld [vmem:[%s19469_s9 + $0xbe0] ss:$16 sps:$4 sm:$0xff]  }
 0x648   : > { %6613 = vmatpush1.bf16.msra.mxu1 %v17944_v16  ;;  %v18054_v16 = vld [vmem:[%s19469_s9 + $0xa64] ss:$16 sps:$4 sm:$0xff]  }
 0x649   : > { %6614 = vmatprep.subr.bf16.mxu1 %v17949_v55  ;;  %7498 = vmatpush1.bf16.msra.mxu0 %v17992_v4  ;;  %v18058_v55 = vld [vmem:[%s19469_s9 + $0xa40] ss:$16 sps:$4 sm:$0xff]   ;;  %v18084_v4 = vld [vmem:[%s19469_s9 + $0xbc4] ss:$16 sps:$4 sm:$0xff]  }
 0x64a   : > { %7499 = vmatprep.subr.bf16.mxu0 %v17997_v27  ;;  %v18088_v27 = vld [vmem:[%s19469_s9 + $0xba0] ss:$16 sps:$4 sm:$0xff]  }
 0x64c   : > { %6615 = vmatpush1.bf16.msra.mxu1 %v17947_v57  ;;  %v18066_v57 = vld [vmem:[%s19469_s9 + $0xa24] ss:$16 sps:$4 sm:$0xff]  }
 0x64d   : > { %6616 = vmatprep.subr.bf16.mxu1 %v17952_v11  ;;  %7500 = vmatpush1.bf16.msra.mxu0 %v17995_v46  ;;  %v18070_v11 = vld [vmem:[%s19469_s9 + $0xa00] ss:$16 sps:$4 sm:$0xff]   ;;  %v18096_v46 = vld [vmem:[%s19469_s9 + $0xb84] ss:$16 sps:$4 sm:$0xff]  }
 0x64e   : > { %7501 = vmatprep.subr.bf16.mxu0 %v18000_v10  ;;  %v18100_v10 = vld [vmem:[%s19469_s9 + $0xb60] ss:$16 sps:$4 sm:$0xff]  }
 0x650   : > { %6617 = vmatpush1.bf16.msra.mxu1 %v17950_v15  ;;  %v18078_v15 = vld [vmem:[%s19469_s9 + $0xbe4] ss:$16 sps:$4 sm:$0xff]  }
 0x651   : > { %6618 = vmatprep.subr.bf16.mxu1 %v17955_v3  ;;  %7502 = vmatpush1.bf16.msra.mxu0 %v17998_v50  ;;  %v18082_v3 = vld [vmem:[%s19469_s9 + $0xbc0] ss:$16 sps:$4 sm:$0xff]  }
 0x652   : > { %7503 = vmatprep.subr.bf16.mxu0 %v18003_v14  ;;  %v18106_v50 = vld [vmem:[%s19469_s9 + $0xb40] ss:$16 sps:$4 sm:$0xff]   ;;  %v18114_v14 = vld [vmem:[%s19469_s9 + $0xb24] ss:$16 sps:$4 sm:$0xff]  }
 0x654   : > { %6619 = vmatpush1.bf16.msra.mxu1 %v17953_v58  ;;  %v18090_v58 = vld [vmem:[%s19469_s9 + $0xba4] ss:$16 sps:$4 sm:$0xff]  }
 0x655   : > { %6620 = vmatprep.subr.bf16.mxu1 %v17958_v9  ;;  %7504 = vmatpush1.bf16.msra.mxu0 %v18001_v29  ;;  %v18094_v9 = vld [vmem:[%s19469_s9 + $0xb80] ss:$16 sps:$4 sm:$0xff]  }
 0x656   : > { %7505 = vmatprep.subr.bf16.mxu0 %v18006_v53  ;;  %v18118_v29 = vld [vmem:[%s19469_s9 + $0xb00] ss:$16 sps:$4 sm:$0xff]   ;;  %v18126_v53 = vld [vmem:[%s19469_s9 + $0xaec] ss:$16 sps:$4 sm:$0xff]  }
 0x658   : > { %6621 = vmatpush2.bf16.msra.mxu1 %v17956_v54  ;;  %v18102_v54 = vld [vmem:[%s19469_s9 + $0xb64] ss:$16 sps:$4 sm:$0xff]  }
 0x659   : > { %6622 = vmatprep.subr.bf16.mxu1 %v17961_v23  ;;  %7506 = vmatpush2.bf16.msra.mxu0 %v18004_v26  ;;  %v18108_v23 = vld [vmem:[%s19469_s9 + $0xb44] ss:$16 sps:$4 sm:$0xff]  }
 0x65a   : > { %7507 = vmatprep.subr.bf16.mxu0 %v18009_v13  ;;  %v20687_v13 = vld [vmem:[%s19475_s6 + $0x4] sm:$0xf] }
 0x65c   : > { %6623 = vmatpush2.bf16.msra.mxu1 %v17959_v51  ;;  %v18112_v51 = vld [vmem:[%s19469_s9 + $0xb20] ss:$16 sps:$4 sm:$0xff]  }
 0x65d   : > { %6624 = vmatprep.subr.bf16.mxu1 %v17964_v52  ;;  %7508 = vmatpush2.bf16.msra.mxu0 %v18007_v7  ;;  %v18120_v52 = vld [vmem:[%s19469_s9 + $0xb04] ss:$16 sps:$4 sm:$0xff]   ;;  %v5788_v7 = vrot.slane %v20687_v13, %v20512_v60 }
 0x65e   : > { %7509 = vmatprep.subr.bf16.mxu0 %v18012_v63 }
 0x660   : > { %6625 = vmatpush2.bf16.msra.mxu1 %v17962_v62 }
 0x661   : > { %6626 = vmatprep.subr.bf16.mxu1 %v17967_v12  ;;  %7510 = vmatpush2.bf16.msra.mxu0 %v18010_v2 }
 0x662   : > { %7511 = vmatprep.subr.bf16.mxu0 %v18015_v17 }
 0x664   : > { %6627 = vmatpush2.bf16.msra.mxu1 %v17965_v20 }
 0x665   : > { %6628 = vmatprep.subr.bf16.mxu1 %v17970_v22  ;;  %7512 = vmatpush2.bf16.msra.mxu0 %v18013_v39  ;;  %v5792_v22 = vrot.slane %v20687_v13, %v20518_v35 }
 0x666   : > { %7513 = vmatprep.subr.bf16.mxu0 %v18018_v36 }
 0x668   : > { %6629 = vmatpush2.bf16.msra.mxu1 %v17968_v19 }
 0x669   : > { %6630 = vmatprep.subr.bf16.mxu1 %v17973_v1  ;;  %7514 = vmatpush2.bf16.msra.mxu0 %v18016_v37 }
 0x66a   : > { %7515 = vmatprep.subr.bf16.mxu0 %v18021_v38 }
 0x66c   : > { %6631 = vmatpush2.bf16.msra.mxu1 %v17971_v8 }
 0x66d   : > { %6632 = vmatprep.subr.bf16.mxu1 %v17976_v31  ;;  %7516 = vmatpush2.bf16.msra.mxu0 %v18019_v40 }
 0x66e   : > { %7517 = vmatprep.subr.bf16.mxu0 %v18024_v42 }
 0x670   : > { %6633 = vmatpush2.bf16.msra.mxu1 %v17974_v41 }
 0x671   : > { %6634 = vmatprep.subr.bf16.mxu1 %v17979_v28  ;;  %7518 = vmatpush2.bf16.msra.mxu0 %v18022_v44 }
 0x674   : > { %6635 = vmatpush2.bf16.msra.mxu1 %v17977_v33 }
 0x675   : > { %7542 = vmatprep.subr.bf16.mxu1 %v18030_v47 }
 0x677   : > { %6637 = vmatmul.mubr.bf16.vlgmr.msra.gmra.mxu1 %v20575_v30  ;;  %v18027_v30 = vld [vmem:[%s19469_s9 + $0x904] ss:$16 sps:$4 sm:$0xff]  }
 0x678   : > { %6646 = vmatprep.mubr.bf16.mxu1 %v20585_v43  ;;  %v18025_v43 = vld [vmem:[%s19469_s9 + $0x900] ss:$16 sps:$4 sm:$0xff]   ;;  %7519 = vmatprep.subr.bf16.mxu0 %v18027_v30 }
 0x679   : > { %7520 = vmatpush2.bf16.msra.mxu0 %v18025_v43  ;;  %7543 = vmatpush1.bf16.msra.mxu1 %v18028_v59 }
 0x67a   : > { %7595 = vmatprep.subr.bf16.mxu0 %v18033_v18 }
 0x67f   : > { %6647 = vmatmul.mubr.bf16.gmra.mxu1 %v20583_v45  ;;  %v18036_v45 = vld [vmem:[%s19469_s9 + $0xac4] ss:$16 sps:$4 sm:$0xff]  }
 0x680   : > { %7544 = vmatprep.subr.bf16.mxu1 %v18036_v45 }
 0x681   : > { %7545 = vmatpush1.bf16.msra.mxu1 %v18034_v49 }
 0x682   : > { %7546 = vmatprep.subr.bf16.mxu1 %v18042_v48 }
 0x685   : > { %7547 = vmatpush1.bf16.msra.mxu1 %v18040_v34 }
 0x686   : > { %7548 = vmatprep.subr.bf16.mxu1 %v18048_v24 }
 0x689   : > { %7549 = vmatpush1.bf16.msra.mxu1 %v18046_v6 }
 0x68a   : > { %7550 = vmatprep.subr.bf16.mxu1 %v18054_v16 }
 0x68d   : > { %7551 = vmatpush1.bf16.msra.mxu1 %v18052_v21 }
 0x68e   : > { %7552 = vmatprep.subr.bf16.mxu1 %v18060_v56 }
 0x691   : > { %7553 = vmatpush1.bf16.msra.mxu1 %v18058_v55 }
 0x692   : > { %7554 = vmatprep.subr.bf16.mxu1 %v18066_v57 }
 0x695   : > { %7555 = vmatpush1.bf16.msra.mxu1 %v18064_v5 }
 0x696   : > { %7556 = vmatprep.subr.bf16.mxu1 %v18072_v25  ;;  %v18031_v25 = vld [vmem:[%s19469_s9 + $0x8e8] ss:$16 sps:$4 sm:$0xff]  }
 0x699   : > { %7557 = vmatpush1.bf16.msra.mxu1 %v18070_v11 }
 0x69a   : > { %7558 = vmatprep.subr.bf16.mxu1 %v18078_v15 }
 0x69d   : > { %7559 = vmatpush2.bf16.msra.mxu1 %v18076_v0 }
 0x69e   : > { %7560 = vmatprep.subr.bf16.mxu1 %v18084_v4 }
 0x6a1   : > { %7561 = vmatpush2.bf16.msra.mxu1 %v18082_v3  ;;  %v18039_v3 = vld [vmem:[%s19469_s9 + $0x8cc] ss:$16 sps:$4 sm:$0xff]  }
 0x6a2   : > { %7562 = vmatprep.subr.bf16.mxu1 %v18090_v58 }
 0x6a5   : > { %7563 = vmatpush2.bf16.msra.mxu1 %v18088_v27 }
 0x6a6   : > { %7564 = vmatprep.subr.bf16.mxu1 %v18096_v46 }
 0x6a9   : > { %7565 = vmatpush2.bf16.msra.mxu1 %v18094_v9 }
 0x6aa   : > { %7566 = vmatprep.subr.bf16.mxu1 %v18102_v54 }
 0x6ad   : > { %7567 = vmatpush2.bf16.msra.mxu1 %v18100_v10  ;;  %v18037_v10 = vld [vmem:[%s19469_s9 + $0x8c8] ss:$16 sps:$4 sm:$0xff]  }
 0x6ae   : > { %7568 = vmatprep.subr.bf16.mxu1 %v18108_v23  ;;  %v18045_v23 = vld [vmem:[%s19469_s9 + $0x8ac] ss:$16 sps:$4 sm:$0xff]  }
 0x6b1   : > { %7569 = vmatpush2.bf16.msra.mxu1 %v18106_v50 }
 0x6b2   : > { %7570 = vmatprep.subr.bf16.mxu1 %v18114_v14 }
 0x6b5   : > { %7571 = vmatpush2.bf16.msra.mxu1 %v18112_v51 }
 0x6b6   : > { %7572 = vmatprep.subr.bf16.mxu1 %v18120_v52 }
 0x6b7   : > { %v6479_v62 = vpop.f32.mrf.mxu0 }
 0x6b8   : > { %v6480_v2 = vadd.f32 %v6479_v62, %v5788_v7  ;;  %v18051_v62 = vld [vmem:[%s19469_s9 + $0x88c] ss:$16 sps:$4 sm:$0xff]  }
 0x6b9   : > { %7573 = vmatpush2.bf16.msra.mxu1 %v18118_v29  ;;  %v6481_v12 = vpop.f32.mrf.mxu0  ;;  %v18043_v29 = vld [vmem:[%s19469_s9 + $0x8a8] ss:$16 sps:$4 sm:$0xff]  }
 0x6ba   : > { %7648 = vmatprep.subr.bf16.mxu1 %v18126_v53  ;;  %v6482_v1 = vadd.f32 %v6481_v12, %v5792_v22  ;;  %v18049_v12 = vld [vmem:[%s19469_s9 + $0x888] ss:$16 sps:$4 sm:$0xff]  }
 0x6bb   : > { %v6483_v26 = vpop.f32.mrf.mxu0 }
 0x6bc   : > { %v6484_v31 = vadd.f32 %v6483_v26, %v5788_v7  ;;  %v18057_v26 = vld [vmem:[%s19469_s9 + $0x86c] ss:$16 sps:$4 sm:$0xff]  }
 0x6bd   : > { %v6485_v20 = vpop.f32.mrf.mxu0 }
 0x6be   : > { %v6486_v33 = vadd.f32 %v6485_v20, %v5792_v22  ;;  %v18055_v20 = vld [vmem:[%s19469_s9 + $0x868] ss:$16 sps:$4 sm:$0xff]  }
 0x6bf   : > { %v6489_v63 = vpop.f32.mrf.mxu0 }
 0x6c0   : > { %v6490_v59 = vadd.f32 %v6489_v63, %v5788_v7  ;;  %v18069_v63 = vld [vmem:[%s19469_s9 + $0x82c] ss:$16 sps:$4 sm:$0xff]  }
 0x6c1   : > { %v6491_v17 = vpop.f32.mrf.mxu0 }
 0x6c2   : > { %v6492_v18 = vadd.f32 %v6491_v17, %v5792_v22  ;;  %v18081_v17 = vld [vmem:[%s19469_s9 + $0x9ec] ss:$16 sps:$4 sm:$0xff]  }
 0x6c3   : > { %v6493_v37 = vpop.f32.mrf.mxu0 }
 0x6c4   : > { %v6494_v48 = vadd.f32 %v6493_v37, %v5788_v7  ;;  %v18061_v7 = vld [vmem:[%s19469_s9 + $0x848] ss:$16 sps:$4 sm:$0xff]  }
 0x6c5   : > { %v6495_v45 = vpop.f32.mrf.mxu0 }
 0x6c6   : > { %v6496_v5 = vadd.f32 %v6495_v45, %v5792_v22  ;;  %v18063_v22 = vld [vmem:[%s19469_s9 + $0x84c] ss:$16 sps:$4 sm:$0xff]  }
 0x6f7   : > { %v6532_v19 = vpop.f32.mrf.mxu1 }
 0x6f8   : > { %v6533_v41 = vadd.f32 %v6532_v19, %v6480_v2  ;;  %v18067_v19 = vld [vmem:[%s19469_s9 + $0x828] ss:$16 sps:$4 sm:$0xff]  }
 0x6f9   : > { %v6534_v8 = vpop.f32.mrf.mxu1  ;;  %v18073_v2 = vld [vmem:[%s19469_s9 + $0x808] ss:$16 sps:$4 sm:$0xff]  }
 0x6fa   : > { %v6535_v39 = vadd.f32 %v6534_v8, %v6482_v1  ;;  %v6657_v30 = vmul.f32 0.2, %v6533_v41  ;;  %v18075_v1 = vld [vmem:[%s19469_s9 + $0x80c] ss:$16 sps:$4 sm:$0xff]   ;;  %v18079_v8 = vld [vmem:[%s19469_s9 + $0x9e8] ss:$16 sps:$4 sm:$0xff]  }
 0x6fb   : > { %v6536_v28 = vpop.f32.mrf.mxu1 }
 0x6fc   : > { %v6537_v36 = vadd.f32 %v6536_v28, %v6484_v31  ;;  %v6658_v40 = vmul.f32 0.2, %v6535_v39  ;;  %v6673_v21 = vmax.f32 %v6533_v41, %v6657_v30  ;;  %v6585_v31 = vpop.f32.mrf.mxu0  ;;  %v18085_v41 = vld [vmem:[%s19469_s9 + $0x9c8] ss:$16 sps:$4 sm:$0xff]   ;;  %v5800_v30 = vrot.slane %v20687_v13, %v20560_v32 }
 0x6fd   : > { %v6538_v38 = vpop.f32.mrf.mxu1 }
 0x6fe   : > { %v6661_v42 = vmul.f32 0.2, %v6537_v36  ;;  %v6539_v44 = vadd.f32 %v6538_v38, %v6486_v33  ;;  %v6674_v6 = vmax.f32 %v6535_v39, %v6658_v40  ;;  %v18087_v39 = vld [vmem:[%s19469_s9 + $0x9cc] ss:$16 sps:$4 sm:$0xff]   ;;  %v6587_v28 = vpop.f32.mrf.mxu0  ;;  %v18097_v40 = vld [vmem:[%s19469_s9 + $0x988] ss:$16 sps:$4 sm:$0xff]  }
 0x6ff   : > { %v6542_v43 = vpop.f32.mrf.mxu1  ;;  %v18093_v33 = vld [vmem:[%s19469_s9 + $0x9ac] ss:$16 sps:$4 sm:$0xff]  }
 0x700   : > { %v6662_v47 = vmul.f32 0.2, %v6539_v44  ;;  %v6677_v49 = vmax.f32 %v6537_v36, %v6661_v42  ;;  %v6543_v16 = vadd.f32 %v6542_v43, %v6490_v59  ;;  %v18091_v36 = vld [vmem:[%s19469_s9 + $0x9a8] ss:$16 sps:$4 sm:$0xff]   ;;  %v6589_v37 = vpop.f32.mrf.mxu0  ;;  %v18099_v38 = vld [vmem:[%s19469_s9 + $0x98c] ss:$16 sps:$4 sm:$0xff]  }
 0x701   : > { %v6544_v34 = vpop.f32.mrf.mxu1  ;;  %v18103_v43 = vld [vmem:[%s19469_s9 + $0x968] ss:$16 sps:$4 sm:$0xff]  }
 0x702   : > { %v6678_v24 = vmax.f32 %v6539_v44, %v6662_v47  ;;  %v6545_v55 = vadd.f32 %v6544_v34, %v6492_v18  ;;  %v20694_v0 = vpack.c.bf16 %v6677_v49, %v6673_v21  ;;  %v6665_v9 = vmul.f32 0.2, %v6543_v16  ;;  %v6591_v42 = vpop.f32.mrf.mxu0  ;;  %v18105_v44 = vld [vmem:[%s19469_s9 + $0x96c] ss:$16 sps:$4 sm:$0xff]   ;;  %v18109_v34 = vld [vmem:[%s19469_s9 + $0x948] ss:$16 sps:$4 sm:$0xff]  }
 0x703   : > { %v6546_v56 = vpop.f32.mrf.mxu1  ;;  %v5796_v47 = vrot.slane %v20687_v13, %v20556_v61  ;;  %v18111_v18 = vld [vmem:[%s19469_s9 + $0x94c] ss:$16 sps:$4 sm:$0xff]   ;;  %v6588_v49 = vadd.f32 %v6587_v28, %v5800_v30 }
 0x704   : > { %v6547_v57 = vadd.f32 %v6546_v56, %v6494_v48  ;;  %v6690_v11 = vpack.c.bf16 %v6678_v24, %v6674_v6  ;;  %v6666_v4 = vmul.f32 0.2, %v6545_v55  ;;  %v6681_v51 = vmax.f32 %v6543_v16, %v6665_v9  ;;  %v6595_v59 = vpop.f32.mrf.mxu0  ;;  %v18117_v21 = vld [vmem:[%s19469_s9 + $0x92c] ss:$16 sps:$4 sm:$0xff]  }
 0x705   : > { %v6548_v15 = vpop.f32.mrf.mxu1  ;;  %v6586_v48 = vadd.f32 %v6585_v31, %v5796_v47  ;;  %v6590_v16 = vadd.f32 %v6589_v37, %v5796_v47 }
 0x706   : > { %v6669_v27 = vmul.f32 0.2, %v6547_v57  ;;  %v6549_v58 = vadd.f32 %v6548_v15, %v6496_v5  ;;  %7521 = vmatprep.mubr.bf16.mxu0 %v6690_v11  ;;  %v6682_v50 = vmax.f32 %v6545_v55, %v6666_v4  ;;  %v6597_v6 = vpop.f32.mrf.mxu0 }
 0x707   : > { %7522 = vmatmul.mubr.bf16.vlgmr.msra.gmra.mxu0 %v20694_v0 }
 0x708   : > { %v6670_v46 = vmul.f32 0.2, %v6549_v58  ;;  %7596 = vmatpush1.bf16.msra.mxu0 %v18031_v25  ;;  %v6685_v54 = vmax.f32 %v6547_v57, %v6669_v27  ;;  %v6592_v57 = vadd.f32 %v6591_v42, %v5800_v30  ;;  %v6599_v25 = vpop.f32.mrf.mxu0  ;;  %v18132_v42 = vld [vmem:[%s19469_s9 + $0xaac] ss:$16 sps:$4 sm:$0xff]  }
 0x709   : > { %7597 = vmatprep.subr.bf16.mxu0 %v18039_v3  ;;  %v18123_v3 = vld [vmem:[%s19469_s9 + $0x90c] ss:$16 sps:$4 sm:$0xff]  }
 0x70a   : > { %v6686_v14 = vmax.f32 %v6549_v58, %v6670_v46  ;;  %v20703_v53 = vpack.c.bf16 %v6685_v54, %v6681_v51 }
 0x70c   : > { %7598 = vmatpush1.bf16.msra.mxu0 %v18037_v10  ;;  %v20700_v52 = vpack.c.bf16 %v6686_v14, %v6682_v50  ;;  %v6598_v10 = vadd.f32 %v6597_v6, %v5800_v30  ;;  %v6596_v50 = vadd.f32 %v6595_v59, %v5796_v47  ;;  %v6601_v14 = vpop.f32.mrf.mxu0  ;;  %v18172_v6 = vld [vmem:[%s19469_s9 + $0xce0] ss:$16 sps:$4 sm:$0xff]  }
 0x70d   : > { %7599 = vmatprep.subr.bf16.mxu0 %v18045_v23  ;;  %v18121_v23 = vld [vmem:[%s19469_s9 + $0x908] ss:$16 sps:$4 sm:$0xff]  }
 0x70e   : > { %7531 = vmatprep.mubr.bf16.mxu0 %v20700_v52 }
 0x70f   : > { %7532 = vmatmul.mubr.bf16.gmra.mxu0 %v20703_v53 }
 0x710   : > { %7600 = vmatpush1.bf16.msra.mxu0 %v18043_v29  ;;  %7627 = vmatprep.mubr.bf16.mxu0 %v6690_v11  ;;  %v18115_v11 = vld [vmem:[%s19469_s9 + $0x928] ss:$16 sps:$4 sm:$0xff]  }
 0x711   : > { %7601 = vmatprep.subr.bf16.mxu0 %v18051_v62  ;;  %v6600_v62 = vadd.f32 %v6599_v25, %v5796_v47  ;;  %v18181_v25 = vld [vmem:[%s19469_s9 + $0xc80] ss:$16 sps:$4 sm:$0xff]  }
 0x714   : > { %7602 = vmatpush1.bf16.msra.mxu0 %v18049_v12 }
 0x715   : > { %7603 = vmatprep.subr.bf16.mxu0 %v18057_v26 }
 0x718   : > { %7604 = vmatpush1.bf16.msra.mxu0 %v18055_v20 }
 0x719   : > { %7605 = vmatprep.subr.bf16.mxu0 %v18063_v22 }
 0x71c   : > { %7606 = vmatpush1.bf16.msra.mxu0 %v18061_v7 }
 0x71d   : > { %7607 = vmatprep.subr.bf16.mxu0 %v18069_v63 }
 0x720   : > { %7608 = vmatpush1.bf16.msra.mxu0 %v18067_v19  ;;  %v6602_v19 = vadd.f32 %v6601_v14, %v5800_v30  ;;  %v18190_v14 = vld [vmem:[%s19469_s9 + $0xc20] ss:$16 sps:$4 sm:$0xff]  }
 0x721   : > { %7609 = vmatprep.subr.bf16.mxu0 %v18075_v1 }
 0x724   : > { %7610 = vmatpush1.bf16.msra.mxu0 %v18073_v2 }
 0x725   : > { %7611 = vmatprep.subr.bf16.mxu0 %v18081_v17  ;;  %v18124_v17 = vld [vmem:[%s19469_s9 + $0xae8] ss:$16 sps:$4 sm:$0xff]  }
 0x728   : > { %7612 = vmatpush2.bf16.msra.mxu0 %v18079_v8 }
 0x729   : > { %7613 = vmatprep.subr.bf16.mxu0 %v18087_v39  ;;  %v18129_v39 = vld [vmem:[%s19469_s9 + $0xacc] ss:$16 sps:$4 sm:$0xff]  }
 0x72c   : > { %7614 = vmatpush2.bf16.msra.mxu0 %v18085_v41 }
 0x72d   : > { %7615 = vmatprep.subr.bf16.mxu0 %v18093_v33 }
 0x730   : > { %7616 = vmatpush2.bf16.msra.mxu0 %v18091_v36 }
 0x731   : > { %7617 = vmatprep.subr.bf16.mxu0 %v18099_v38  ;;  %v18127_v38 = vld [vmem:[%s19469_s9 + $0xac8] ss:$16 sps:$4 sm:$0xff]  }
 0x734   : > { %7618 = vmatpush2.bf16.msra.mxu0 %v18097_v40 }
 0x735   : > { %7619 = vmatprep.subr.bf16.mxu0 %v18105_v44 }
 0x737   : > { %v6638_v45 = vpop.f32.mrf.mxu1 }
 0x738   : > { %7620 = vmatpush2.bf16.msra.mxu0 %v18103_v43  ;;  %v6639_v56 = vadd.f32 %v6638_v45, %v6586_v48  ;;  %v18138_v45 = vld [vmem:[%s19469_s9 + $0xa6c] ss:$16 sps:$4 sm:$0xff]   ;;  %v18174_v48 = vld [vmem:[%s19469_s9 + $0xce4] ss:$16 sps:$4 sm:$0xff]  }
 0x739   : > { %v6640_v24 = vpop.f32.mrf.mxu1  ;;  %7621 = vmatprep.subr.bf16.mxu0 %v18111_v18  ;;  %v18133_v18 = vld [vmem:[%s19469_s9 + $0xa88] ss:$16 sps:$4 sm:$0xff]  }
 0x73a   : > { %v6641_v55 = vadd.f32 %v6640_v24, %v6588_v49  ;;  %v6659_v9 = vmul.f32 0.2, %v6639_v56  ;;  %v18136_v49 = vld [vmem:[%s19469_s9 + $0xa68] ss:$16 sps:$4 sm:$0xff]   ;;  %v18177_v24 = vld [vmem:[%s19469_s9 + $0xcc4] ss:$16 sps:$4 sm:$0xff]  }
 0x73b   : > { %v6642_v5 = vpop.f32.mrf.mxu1 }
 0x73c   : > { %v6643_v13 = vadd.f32 %v6642_v5, %v6590_v16  ;;  %7622 = vmatpush2.bf16.msra.mxu0 %v18109_v34  ;;  %v6660_v4 = vmul.f32 0.2, %v6641_v55  ;;  %v6675_v22 = vmax.f32 %v6639_v56, %v6659_v9  ;;  %v18141_v34 = vld [vmem:[%s19469_s9 + $0xa4c] ss:$16 sps:$4 sm:$0xff]   ;;  %v18142_v56 = vld [vmem:[%s19469_s9 + $0xa28] ss:$16 sps:$4 sm:$0xff]  }
 0x73d   : > { %v6644_v15 = vpop.f32.mrf.mxu1  ;;  %7623 = vmatprep.subr.bf16.mxu0 %v18117_v21  ;;  %v18175_v21 = vld [vmem:[%s19469_s9 + $0xcc0] ss:$16 sps:$4 sm:$0xff]   ;;  %v18144_v16 = vld [vmem:[%s19469_s9 + $0xa2c] ss:$16 sps:$4 sm:$0xff]   ;;  %v18189_v9 = vld [vmem:[%s19469_s9 + $0xc44] ss:$16 sps:$4 sm:$0xff]  }
 0x73e   : > { %v6663_v27 = vmul.f32 0.2, %v6643_v13  ;;  %v6645_v58 = vadd.f32 %v6644_v15, %v6592_v57  ;;  %v6676_v12 = vmax.f32 %v6641_v55, %v6660_v4  ;;  %v18180_v55 = vld [vmem:[%s19469_s9 + $0xca4] ss:$16 sps:$4 sm:$0xff]   ;;  %v18178_v5 = vld [vmem:[%s19469_s9 + $0xca0] ss:$16 sps:$4 sm:$0xff]  }
 0x73f   : > { %v6648_v46 = vpop.f32.mrf.mxu1  ;;  %v18147_v57 = vld [vmem:[%s19469_s9 + $0xa0c] ss:$16 sps:$4 sm:$0xff]   ;;  %v18148_v4 = vld [vmem:[%s19469_s9 + $0xbe8] ss:$16 sps:$4 sm:$0xff]  }
 0x740   : > { %v6664_v54 = vmul.f32 0.2, %v6645_v58  ;;  %7624 = vmatpush2.bf16.msra.mxu0 %v18115_v11  ;;  %v6679_v51 = vmax.f32 %v6643_v13, %v6663_v27  ;;  %v6649_v7 = vadd.f32 %v6648_v46, %v6596_v50  ;;  %v18183_v13 = vld [vmem:[%s19469_s9 + $0xc84] ss:$16 sps:$4 sm:$0xff]   ;;  %v18145_v11 = vld [vmem:[%s19469_s9 + $0xa08] ss:$16 sps:$4 sm:$0xff]  }
 0x741   : > { %v6650_v29 = vpop.f32.mrf.mxu1  ;;  %7625 = vmatprep.subr.bf16.mxu0 %v18123_v3  ;;  %v18150_v15 = vld [vmem:[%s19469_s9 + $0xbec] ss:$16 sps:$4 sm:$0xff]   ;;  %v18186_v3 = vld [vmem:[%s19469_s9 + $0xc64] ss:$16 sps:$4 sm:$0xff]   ;;  %v18184_v27 = vld [vmem:[%s19469_s9 + $0xc60] ss:$16 sps:$4 sm:$0xff]  }
 0x742   : > { %v6680_v26 = vmax.f32 %v6645_v58, %v6664_v54  ;;  %v6651_v20 = vadd.f32 %v6650_v29, %v6598_v10  ;;  %v20738_v8 = vpack.c.bf16 %v6679_v51, %v6675_v22  ;;  %v6667_v36 = vmul.f32 0.2, %v6649_v7  ;;  %v18153_v58 = vld [vmem:[%s19469_s9 + $0xbcc] ss:$16 sps:$4 sm:$0xff]   ;;  %v18151_v46 = vld [vmem:[%s19469_s9 + $0xbc8] ss:$16 sps:$4 sm:$0xff]  }
 0x743   : > { %v6652_v63 = vpop.f32.mrf.mxu1  ;;  %v18187_v10 = vld [vmem:[%s19469_s9 + $0xc40] ss:$16 sps:$4 sm:$0xff]   ;;  %v18156_v54 = vld [vmem:[%s19469_s9 + $0xbac] ss:$16 sps:$4 sm:$0xff]   ;;  %v18154_v50 = vld [vmem:[%s19469_s9 + $0xba8] ss:$16 sps:$4 sm:$0xff]  }
 0x744   : > { %v6653_v1 = vadd.f32 %v6652_v63, %v6600_v62  ;;  %7626 = vmatpush2.bf16.msra.mxu0 %v18121_v23  ;;  %v6692_v2 = vpack.c.bf16 %v6680_v26, %v6676_v12  ;;  %v6668_v41 = vmul.f32 0.2, %v6651_v20  ;;  %v6683_v43 = vmax.f32 %v6649_v7, %v6667_v36  ;;  %v18192_v23 = vld [vmem:[%s19469_s9 + $0xc24] ss:$16 sps:$4 sm:$0xff]   ;;  %v18159_v51 = vld [vmem:[%s19469_s9 + $0xb8c] ss:$16 sps:$4 sm:$0xff]  }
 0x745   : > { %v6654_v31 = vpop.f32.mrf.mxu1  ;;  %8533 = vmatprep.subr.bf16.mxu0 %v18174_v48  ;;  %v18195_v29 = vld [vmem:[%s19469_s9 + $0xc04] ss:$16 sps:$4 sm:$0xff]   ;;  %v18157_v62 = vld [vmem:[%s19469_s9 + $0xb88] ss:$16 sps:$4 sm:$0xff]   ;;  %v18193_v12 = vld [vmem:[%s19469_s9 + $0xc00] ss:$16 sps:$4 sm:$0xff]  }
 0x746   : > { %v6671_v28 = vmul.f32 0.2, %v6653_v1  ;;  %v6655_v33 = vadd.f32 %v6654_v31, %v6602_v19  ;;  %7574 = vmatprep.mubr.bf16.mxu1 %v6692_v2  ;;  %v6684_v44 = vmax.f32 %v6651_v20, %v6668_v41  ;;  %v18162_v26 = vld [vmem:[%s19469_s9 + $0xb6c] ss:$16 sps:$4 sm:$0xff]   ;;  %v18198_v20 = vld [vmem:[%s19469_s9 + $0xde4] ss:$16 sps:$4 sm:$0xff]  }
 0x747   : > { %7575 = vmatmul.mubr.bf16.vlgmr.msra.gmra.mxu1 %v20738_v8  ;;  %7628 = vmatmul.mubr.bf16.vlgmr.msra.gmra.mxu0 %v20694_v0  ;;  %v18130_v0 = vld [vmem:[%s19469_s9 + $0xaa8] ss:$16 sps:$4 sm:$0xff]   ;;  %v18196_v7 = vld [vmem:[%s19469_s9 + $0xde0] ss:$16 sps:$4 sm:$0xff]   ;;  %v18165_v63 = vld [vmem:[%s19469_s9 + $0xb4c] ss:$16 sps:$4 sm:$0xff]  }
 0x748   : > { %v6672_v37 = vmul.f32 0.2, %v6655_v33  ;;  %7649 = vmatpush1.bf16.msra.mxu1 %v18124_v17  ;;  %7637 = vmatprep.mubr.bf16.mxu0 %v20700_v52  ;;  %v6687_v40 = vmax.f32 %v6653_v1, %v6671_v28  ;;  %v18135_v52 = vld [vmem:[%s19469_s9 + $0xa8c] ss:$16 sps:$4 sm:$0xff]   ;;  %v18160_v22 = vld [vmem:[%s19469_s9 + $0xb68] ss:$16 sps:$4 sm:$0xff]  }
 0x749   : > { %7650 = vmatprep.subr.bf16.mxu1 %v18129_v39  ;;  %8534 = vmatpush1.bf16.msra.mxu0 %v18172_v6  ;;  %v18201_v19 = vld [vmem:[%s19469_s9 + $0xdc4] ss:$16 sps:$4 sm:$0xff]   ;;  %v18163_v1 = vld [vmem:[%s19469_s9 + $0xb48] ss:$16 sps:$4 sm:$0xff]   ;;  %v18168_v17 = vld [vmem:[%s19469_s9 + $0xb2c] ss:$16 sps:$4 sm:$0xff]  }
 0x74a   : > { %v6688_v30 = vmax.f32 %v6655_v33, %v6672_v37  ;;  %v20749_v59 = vpack.c.bf16 %v6687_v40, %v6683_v43  ;;  %8535 = vmatprep.subr.bf16.mxu0 %v18177_v24  ;;  %v18204_v31 = vld [vmem:[%s19469_s9 + $0xda4] ss:$16 sps:$4 sm:$0xff]   ;;  %v18166_v39 = vld [vmem:[%s19469_s9 + $0xb28] ss:$16 sps:$4 sm:$0xff]   ;;  %v18202_v41 = vld [vmem:[%s19469_s9 + $0xda0] ss:$16 sps:$4 sm:$0xff]  }
 0x74b   : > { %v18171_v28 = vld [vmem:[%s19469_s9 + $0xb0c] ss:$16 sps:$4 sm:$0xff]   ;;  %v18207_v33 = vld [vmem:[%s19469_s9 + $0xd84] ss:$16 sps:$4 sm:$0xff]   ;;  %v18169_v36 = vld [vmem:[%s19469_s9 + $0xb08] ss:$16 sps:$4 sm:$0xff]  }
 0x74c   : > { %7651 = vmatpush1.bf16.msra.mxu1 %v18127_v38  ;;  %v20746_v47 = vpack.c.bf16 %v6688_v30, %v6684_v44  ;;  %v18205_v37 = vld [vmem:[%s19469_s9 + $0xd80] ss:$16 sps:$4 sm:$0xff]   ;;  %v18210_v38 = vld [vmem:[%s19469_s9 + $0xd64] ss:$16 sps:$4 sm:$0xff]  }
 0x74d   : > { %7652 = vmatprep.subr.bf16.mxu1 %v18132_v42  ;;  %8536 = vmatpush1.bf16.msra.mxu0 %v18175_v21  ;;  %v18208_v40 = vld [vmem:[%s19469_s9 + $0xd60] ss:$16 sps:$4 sm:$0xff]   ;;  %v18213_v42 = vld [vmem:[%s19469_s9 + $0xd44] ss:$16 sps:$4 sm:$0xff]  }
 0x74e   : > { %7584 = vmatprep.mubr.bf16.mxu1 %v20746_v47  ;;  %8537 = vmatprep.subr.bf16.mxu0 %v18180_v55  ;;  %v18211_v44 = vld [vmem:[%s19469_s9 + $0xd40] ss:$16 sps:$4 sm:$0xff]   ;;  %v18216_v30 = vld [vmem:[%s19469_s9 + $0xd24] ss:$16 sps:$4 sm:$0xff]  }
 0x74f   : > { %7585 = vmatmul.mubr.bf16.gmra.mxu1 %v20749_v59  ;;  %7638 = vmatmul.mubr.bf16.gmra.mxu0 %v20703_v53  ;;  %v18139_v53 = vld [vmem:[%s19469_s9 + $0xa48] ss:$16 sps:$4 sm:$0xff]   ;;  %v18214_v43 = vld [vmem:[%s19469_s9 + $0xd20] ss:$16 sps:$4 sm:$0xff]   ;;  %v18240_v6 = vld [vmem:[%s19469_s9 + $0xe84] ss:$16 sps:$4 sm:$0xff]  }
 0x750   : > { %7653 = vmatpush1.bf16.msra.mxu1 %v18130_v0  ;;  %7680 = vmatprep.mubr.bf16.mxu1 %v6692_v2  ;;  %v18199_v2 = vld [vmem:[%s19469_s9 + $0xdc0] ss:$16 sps:$4 sm:$0xff]  }
 0x751   : > { %7654 = vmatprep.subr.bf16.mxu1 %v18135_v52  ;;  %8538 = vmatpush1.bf16.msra.mxu0 %v18178_v5  ;;  %v18217_v0 = vld [vmem:[%s19469_s9 + $0xd00] ss:$16 sps:$4 sm:$0xff]  }
 0x752   : > { %8539 = vmatprep.subr.bf16.mxu0 %v18183_v13  ;;  %v18220_v52 = vld [vmem:[%s19469_s9 + $0xee0] ss:$16 sps:$4 sm:$0xff]  }
 0x753   : > { %v18238_v48 = vld [vmem:[%s19469_s9 + $0xe80] ss:$16 sps:$4 sm:$0xff]  }
 0x754   : > { %7655 = vmatpush1.bf16.msra.mxu1 %v18133_v18  ;;  %v18225_v18 = vld [vmem:[%s19469_s9 + $0xcec] ss:$16 sps:$4 sm:$0xff]   ;;  %v18244_v24 = vld [vmem:[%s19469_s9 + $0xe60] ss:$16 sps:$4 sm:$0xff]  }
 0x755   : > { %7656 = vmatprep.subr.bf16.mxu1 %v18138_v45  ;;  %8540 = vmatpush1.bf16.msra.mxu0 %v18181_v25  ;;  %v18228_v45 = vld [vmem:[%s19469_s9 + $0xec4] ss:$16 sps:$4 sm:$0xff]   ;;  %v18250_v21 = vld [vmem:[%s19469_s9 + $0xe40] ss:$16 sps:$4 sm:$0xff]  }
 0x756   : > { %8541 = vmatprep.subr.bf16.mxu0 %v18186_v3  ;;  %v18256_v55 = vld [vmem:[%s19469_s9 + $0xe20] ss:$16 sps:$4 sm:$0xff]  }
 0x757   : > { %v18262_v5 = vld [vmem:[%s19469_s9 + $0xe00] ss:$16 sps:$4 sm:$0xff]  }
 0x758   : > { %7657 = vmatpush1.bf16.msra.mxu1 %v18136_v49  ;;  %v18232_v49 = vld [vmem:[%s19469_s9 + $0xea0] ss:$16 sps:$4 sm:$0xff]  }
 0x759   : > { %7658 = vmatprep.subr.bf16.mxu1 %v18141_v34  ;;  %8542 = vmatpush1.bf16.msra.mxu0 %v18184_v27  ;;  %v18234_v34 = vld [vmem:[%s19469_s9 + $0xea4] ss:$16 sps:$4 sm:$0xff]   ;;  %v18268_v13 = vld [vmem:[%s19469_s9 + $0xfe0] ss:$16 sps:$4 sm:$0xff]  }
 0x75a   : > { %8543 = vmatprep.subr.bf16.mxu0 %v18189_v9  ;;  %v18274_v25 = vld [vmem:[%s19469_s9 + $0xfc0] ss:$16 sps:$4 sm:$0xff]  }
 0x75b   : > { %v18280_v3 = vld [vmem:[%s19469_s9 + $0xfa0] ss:$16 sps:$4 sm:$0xff]  }
 0x75c   : > { %7659 = vmatpush1.bf16.msra.mxu1 %v18139_v53  ;;  %v18246_v53 = vld [vmem:[%s19469_s9 + $0xe64] ss:$16 sps:$4 sm:$0xff]   ;;  %v18286_v27 = vld [vmem:[%s19469_s9 + $0xf80] ss:$16 sps:$4 sm:$0xff]  }
 0x75d   : > { %7660 = vmatprep.subr.bf16.mxu1 %v18144_v16  ;;  %8544 = vmatpush1.bf16.msra.mxu0 %v18187_v10  ;;  %v18252_v16 = vld [vmem:[%s19469_s9 + $0xe44] ss:$16 sps:$4 sm:$0xff]   ;;  %v18292_v9 = vld [vmem:[%s19469_s9 + $0xf60] ss:$16 sps:$4 sm:$0xff]  }
 0x75e   : > { %8545 = vmatprep.subr.bf16.mxu0 %v18192_v23  ;;  %v18300_v10 = vld [vmem:[%s19469_s9 + $0xf44] ss:$16 sps:$4 sm:$0xff]  }
 0x75f   : > { %v18306_v23 = vld [vmem:[%s19469_s9 + $0xf24] ss:$16 sps:$4 sm:$0xff]  }
 0x760   : > { %7661 = vmatpush1.bf16.msra.mxu1 %v18142_v56  ;;  %v18258_v56 = vld [vmem:[%s19469_s9 + $0xe24] ss:$16 sps:$4 sm:$0xff]  }
 0x761   : > { %7662 = vmatprep.subr.bf16.mxu1 %v18147_v57  ;;  %8546 = vmatpush1.bf16.msra.mxu0 %v18190_v14  ;;  %v18264_v57 = vld [vmem:[%s19469_s9 + $0xe04] ss:$16 sps:$4 sm:$0xff]  }
 0x762   : > { %8547 = vmatprep.subr.bf16.mxu0 %v18195_v29  ;;  %v18312_v14 = vld [vmem:[%s19469_s9 + $0xf04] ss:$16 sps:$4 sm:$0xff]   ;;  %v18318_v29 = vld [vmem:[%s19469_s9 + $0xeec] ss:$16 sps:$4 sm:$0xff]  }
 0x764   : > { %7663 = vmatpush1.bf16.msra.mxu1 %v18145_v11  ;;  %v18270_v11 = vld [vmem:[%s19469_s9 + $0xfe4] ss:$16 sps:$4 sm:$0xff]  }
 0x765   : > { %7664 = vmatprep.subr.bf16.mxu1 %v18150_v15  ;;  %8548 = vmatpush1.bf16.msra.mxu0 %v18193_v12  ;;  %v18276_v15 = vld [vmem:[%s19469_s9 + $0xfc4] ss:$16 sps:$4 sm:$0xff]  }
 0x766   : > { %8549 = vmatprep.subr.bf16.mxu0 %v18198_v20 }
 0x768   : > { %7665 = vmatpush2.bf16.msra.mxu1 %v18148_v4  ;;  %v18282_v4 = vld [vmem:[%s19469_s9 + $0xfa4] ss:$16 sps:$4 sm:$0xff]  }
 0x769   : > { %7666 = vmatprep.subr.bf16.mxu1 %v18153_v58  ;;  %8550 = vmatpush2.bf16.msra.mxu0 %v18196_v7  ;;  %v18288_v58 = vld [vmem:[%s19469_s9 + $0xf84] ss:$16 sps:$4 sm:$0xff]  }
 0x76a   : > { %8551 = vmatprep.subr.bf16.mxu0 %v18201_v19 }
 0x76c   : > { %7667 = vmatpush2.bf16.msra.mxu1 %v18151_v46  ;;  %v18294_v46 = vld [vmem:[%s19469_s9 + $0xf64] ss:$16 sps:$4 sm:$0xff]  }
 0x76d   : > { %7668 = vmatprep.subr.bf16.mxu1 %v18156_v54  ;;  %8552 = vmatpush2.bf16.msra.mxu0 %v18199_v2  ;;  %v18298_v54 = vld [vmem:[%s19469_s9 + $0xf40] ss:$16 sps:$4 sm:$0xff]  }
 0x76e   : > { %8553 = vmatprep.subr.bf16.mxu0 %v18204_v31 }
 0x770   : > { %7669 = vmatpush2.bf16.msra.mxu1 %v18154_v50  ;;  %v18304_v50 = vld [vmem:[%s19469_s9 + $0xf20] ss:$16 sps:$4 sm:$0xff]  }
 0x771   : > { %7670 = vmatprep.subr.bf16.mxu1 %v18159_v51  ;;  %8554 = vmatpush2.bf16.msra.mxu0 %v18202_v41  ;;  %v18310_v51 = vld [vmem:[%s19469_s9 + $0xf00] ss:$16 sps:$4 sm:$0xff]  }
 0x772   : > { %8555 = vmatprep.subr.bf16.mxu0 %v18207_v33 }
 0x774   : > { %7671 = vmatpush2.bf16.msra.mxu1 %v18157_v62 }
 0x775   : > { %7672 = vmatprep.subr.bf16.mxu1 %v18162_v26  ;;  %8556 = vmatpush2.bf16.msra.mxu0 %v18205_v37 }
 0x776   : > { %8557 = vmatprep.subr.bf16.mxu0 %v18210_v38 }
 0x778   : > { %7673 = vmatpush2.bf16.msra.mxu1 %v18160_v22  ;;  %v20850_v22 = vld [vmem:[%s19475_s6 + $0x8] sm:$0xf] }
 0x779   : > { %7674 = vmatprep.subr.bf16.mxu1 %v18165_v63  ;;  %8558 = vmatpush2.bf16.msra.mxu0 %v18208_v40  ;;  %v6836_v7 = vrot.slane %v20850_v22, %v20518_v35  ;;  %v6832_v19 = vrot.slane %v20850_v22, %v20512_v60 }
 0x77a   : > { %8559 = vmatprep.subr.bf16.mxu0 %v18213_v42 }
 0x77c   : > { %7675 = vmatpush2.bf16.msra.mxu1 %v18163_v1 }
 0x77d   : > { %7676 = vmatprep.subr.bf16.mxu1 %v18168_v17  ;;  %8560 = vmatpush2.bf16.msra.mxu0 %v18211_v44 }
 0x77e   : > { %8561 = vmatprep.subr.bf16.mxu0 %v18216_v30 }
 0x780   : > { %7677 = vmatpush2.bf16.msra.mxu1 %v18166_v39 }
 0x781   : > { %7678 = vmatprep.subr.bf16.mxu1 %v18171_v28  ;;  %8562 = vmatpush2.bf16.msra.mxu0 %v18214_v43 }
 0x784   : > { %7679 = vmatpush2.bf16.msra.mxu1 %v18169_v36 }
 0x787   : > { %7681 = vmatmul.mubr.bf16.vlgmr.msra.gmra.mxu1 %v20738_v8  ;;  %v18219_v8 = vld [vmem:[%s19469_s9 + $0xd04] ss:$16 sps:$4 sm:$0xff]  }
 0x788   : > { %7690 = vmatprep.mubr.bf16.mxu1 %v20746_v47  ;;  %8563 = vmatprep.subr.bf16.mxu0 %v18219_v8  ;;  %v18222_v47 = vld [vmem:[%s19469_s9 + $0xee4] ss:$16 sps:$4 sm:$0xff]  }
 0x789   : > { %8564 = vmatpush2.bf16.msra.mxu0 %v18217_v0  ;;  %8586 = vmatprep.subr.bf16.mxu1 %v18222_v47 }
 0x78a   : > { %8587 = vmatpush1.bf16.msra.mxu1 %v18220_v52  ;;  %8639 = vmatprep.subr.bf16.mxu0 %v18225_v18 }
 0x78b   : > { %8588 = vmatprep.subr.bf16.mxu1 %v18228_v45 }
 0x78f   : > { %7691 = vmatmul.mubr.bf16.gmra.mxu1 %v20749_v59  ;;  %v18226_v59 = vld [vmem:[%s19469_s9 + $0xec0] ss:$16 sps:$4 sm:$0xff]  }
 0x790   : > { %8589 = vmatpush1.bf16.msra.mxu1 %v18226_v59 }
 0x791   : > { %8590 = vmatprep.subr.bf16.mxu1 %v18234_v34 }
 0x794   : > { %8591 = vmatpush1.bf16.msra.mxu1 %v18232_v49 }
 0x795   : > { %8592 = vmatprep.subr.bf16.mxu1 %v18240_v6 }
 0x798   : > { %8593 = vmatpush1.bf16.msra.mxu1 %v18238_v48 }
 0x799   : > { %8594 = vmatprep.subr.bf16.mxu1 %v18246_v53 }
 0x79c   : > { %8595 = vmatpush1.bf16.msra.mxu1 %v18244_v24 }
 0x79d   : > { %8596 = vmatprep.subr.bf16.mxu1 %v18252_v16 }
 0x7a0   : > { %8597 = vmatpush1.bf16.msra.mxu1 %v18250_v21 }
 0x7a1   : > { %8598 = vmatprep.subr.bf16.mxu1 %v18258_v56 }
 0x7a4   : > { %8599 = vmatpush1.bf16.msra.mxu1 %v18256_v55 }
 0x7a5   : > { %8600 = vmatprep.subr.bf16.mxu1 %v18264_v57 }
 0x7a8   : > { %8601 = vmatpush1.bf16.msra.mxu1 %v18262_v5 }
 0x7a9   : > { %8602 = vmatprep.subr.bf16.mxu1 %v18270_v11 }
 0x7ac   : > { %8603 = vmatpush2.bf16.msra.mxu1 %v18268_v13  ;;  %v18223_v13 = vld [vmem:[%s19469_s9 + $0xce8] ss:$16 sps:$4 sm:$0xff]  }
 0x7ad   : > { %8604 = vmatprep.subr.bf16.mxu1 %v18276_v15 }
 0x7b0   : > { %8605 = vmatpush2.bf16.msra.mxu1 %v18274_v25 }
 0x7b1   : > { %8606 = vmatprep.subr.bf16.mxu1 %v18282_v4  ;;  %v18231_v4 = vld [vmem:[%s19469_s9 + $0xccc] ss:$16 sps:$4 sm:$0xff]  }
 0x7b4   : > { %8607 = vmatpush2.bf16.msra.mxu1 %v18280_v3 }
 0x7b5   : > { %8608 = vmatprep.subr.bf16.mxu1 %v18288_v58 }
 0x7b8   : > { %8609 = vmatpush2.bf16.msra.mxu1 %v18286_v27 }
 0x7b9   : > { %8610 = vmatprep.subr.bf16.mxu1 %v18294_v46 }
 0x7bc   : > { %8611 = vmatpush2.bf16.msra.mxu1 %v18292_v9  ;;  %v18229_v9 = vld [vmem:[%s19469_s9 + $0xcc8] ss:$16 sps:$4 sm:$0xff]  }
 0x7bd   : > { %8612 = vmatprep.subr.bf16.mxu1 %v18300_v10 }
 0x7c0   : > { %8613 = vmatpush2.bf16.msra.mxu1 %v18298_v54 }
 0x7c1   : > { %8614 = vmatprep.subr.bf16.mxu1 %v18306_v23  ;;  %v18237_v23 = vld [vmem:[%s19469_s9 + $0xcac] ss:$16 sps:$4 sm:$0xff]  }
 0x7c4   : > { %8615 = vmatpush2.bf16.msra.mxu1 %v18304_v50 }
 0x7c5   : > { %8616 = vmatprep.subr.bf16.mxu1 %v18312_v14 }
 0x7c7   : > { %v7523_v62 = vpop.f32.mrf.mxu0 }
 0x7c8   : > { %8617 = vmatpush2.bf16.msra.mxu1 %v18310_v51  ;;  %v7524_v39 = vadd.f32 %v7523_v62, %v6832_v19  ;;  %v18235_v51 = vld [vmem:[%s19469_s9 + $0xca8] ss:$16 sps:$4 sm:$0xff]   ;;  %v18243_v62 = vld [vmem:[%s19469_s9 + $0xc8c] ss:$16 sps:$4 sm:$0xff]  }
 0x7c9   : > { %8692 = vmatprep.subr.bf16.mxu1 %v18318_v29  ;;  %v7525_v12 = vpop.f32.mrf.mxu0 }
 0x7ca   : > { %v7526_v2 = vadd.f32 %v7525_v12, %v6836_v7  ;;  %v18241_v12 = vld [vmem:[%s19469_s9 + $0xc88] ss:$16 sps:$4 sm:$0xff]  }
 0x7cb   : > { %v7527_v26 = vpop.f32.mrf.mxu0 }
 0x7cc   : > { %v7528_v41 = vadd.f32 %v7527_v26, %v6832_v19  ;;  %v18249_v26 = vld [vmem:[%s19469_s9 + $0xc6c] ss:$16 sps:$4 sm:$0xff]  }
 0x7cd   : > { %v7529_v20 = vpop.f32.mrf.mxu0 }
 0x7ce   : > { %v7530_v36 = vadd.f32 %v7529_v20, %v6836_v7  ;;  %v18247_v20 = vld [vmem:[%s19469_s9 + $0xc68] ss:$16 sps:$4 sm:$0xff]  }
 0x7cf   : > { %v7533_v63 = vpop.f32.mrf.mxu0 }
 0x7d0   : > { %v7534_v18 = vadd.f32 %v7533_v63, %v6832_v19  ;;  %v18253_v63 = vld [vmem:[%s19469_s9 + $0xc48] ss:$16 sps:$4 sm:$0xff]  }
 0x7d1   : > { %v7535_v17 = vpop.f32.mrf.mxu0 }
 0x7d2   : > { %v7536_v0 = vadd.f32 %v7535_v17, %v6836_v7  ;;  %v18265_v17 = vld [vmem:[%s19469_s9 + $0xc08] ss:$16 sps:$4 sm:$0xff]  }
 0x7d3   : > { %v7537_v40 = vpop.f32.mrf.mxu0 }
 0x7d4   : > { %v7538_v49 = vadd.f32 %v7537_v40, %v6832_v19  ;;  %v18261_v19 = vld [vmem:[%s19469_s9 + $0xc2c] ss:$16 sps:$4 sm:$0xff]   ;;  %v18283_v40 = vld [vmem:[%s19469_s9 + $0xda8] ss:$16 sps:$4 sm:$0xff]  }
 0x7d5   : > { %v7539_v45 = vpop.f32.mrf.mxu0 }
 0x7d6   : > { %v7540_v21 = vadd.f32 %v7539_v45, %v6836_v7  ;;  %v18255_v7 = vld [vmem:[%s19469_s9 + $0xc4c] ss:$16 sps:$4 sm:$0xff]  }
 0x807   : > { %v7576_v1 = vpop.f32.mrf.mxu1 }
 0x808   : > { %v7577_v37 = vadd.f32 %v7576_v1, %v7524_v39  ;;  %v18259_v1 = vld [vmem:[%s19469_s9 + $0xc28] ss:$16 sps:$4 sm:$0xff]   ;;  %v7629_v39 = vpop.f32.mrf.mxu0 }
 0x809   : > { %v7578_v31 = vpop.f32.mrf.mxu1 }
 0x80a   : > { %v7579_v28 = vadd.f32 %v7578_v31, %v7526_v2  ;;  %v7701_v47 = vmul.f32 0.2, %v7577_v37  ;;  %v18267_v2 = vld [vmem:[%s19469_s9 + $0xc0c] ss:$16 sps:$4 sm:$0xff]  }
 0x80b   : > { %v7580_v33 = vpop.f32.mrf.mxu1  ;;  %v18273_v31 = vld [vmem:[%s19469_s9 + $0xdec] ss:$16 sps:$4 sm:$0xff]  }
 0x80c   : > { %v7581_v38 = vadd.f32 %v7580_v33, %v7528_v41  ;;  %v7702_v43 = vmul.f32 0.2, %v7579_v28  ;;  %v7717_v16 = vmax.f32 %v7577_v37, %v7701_v47  ;;  %v18271_v41 = vld [vmem:[%s19469_s9 + $0xde8] ss:$16 sps:$4 sm:$0xff]   ;;  %v7631_v33 = vpop.f32.mrf.mxu0  ;;  %v18285_v37 = vld [vmem:[%s19469_s9 + $0xdac] ss:$16 sps:$4 sm:$0xff]  }
 0x80d   : > { %v7582_v42 = vpop.f32.mrf.mxu1 }
 0x80e   : > { %v7705_v44 = vmul.f32 0.2, %v7581_v38  ;;  %v7583_v30 = vadd.f32 %v7582_v42, %v7530_v36  ;;  %v7718_v24 = vmax.f32 %v7579_v28, %v7702_v43  ;;  %v18279_v28 = vld [vmem:[%s19469_s9 + $0xdcc] ss:$16 sps:$4 sm:$0xff]   ;;  %v18277_v36 = vld [vmem:[%s19469_s9 + $0xdc8] ss:$16 sps:$4 sm:$0xff]  }
 0x80f   : > { %v7586_v8 = vpop.f32.mrf.mxu1  ;;  %v18291_v42 = vld [vmem:[%s19469_s9 + $0xd8c] ss:$16 sps:$4 sm:$0xff]  }
 0x810   : > { %v7706_v52 = vmul.f32 0.2, %v7583_v30  ;;  %v7721_v34 = vmax.f32 %v7581_v38, %v7705_v44  ;;  %v7587_v55 = vadd.f32 %v7586_v8, %v7534_v18  ;;  %v7633_v38 = vpop.f32.mrf.mxu0  ;;  %v18297_v43 = vld [vmem:[%s19469_s9 + $0xd6c] ss:$16 sps:$4 sm:$0xff]   ;;  %v6844_v8 = vrot.slane %v20850_v22, %v20560_v32 }
 0x811   : > { %v7588_v59 = vpop.f32.mrf.mxu1  ;;  %v18303_v18 = vld [vmem:[%s19469_s9 + $0xd4c] ss:$16 sps:$4 sm:$0xff]  }
 0x812   : > { %v7722_v48 = vmax.f32 %v7583_v30, %v7706_v52  ;;  %v7589_v6 = vadd.f32 %v7588_v59, %v7536_v0  ;;  %v20857_v11 = vpack.c.bf16 %v7721_v34, %v7717_v16  ;;  %v7709_v27 = vmul.f32 0.2, %v7587_v55  ;;  %v7635_v44 = vpop.f32.mrf.mxu0  ;;  %v18289_v30 = vld [vmem:[%s19469_s9 + $0xd88] ss:$16 sps:$4 sm:$0xff]  }
 0x813   : > { %v7590_v53 = vpop.f32.mrf.mxu1  ;;  %v6840_v0 = vrot.slane %v20850_v22, %v20556_v61  ;;  %v18295_v52 = vld [vmem:[%s19469_s9 + $0xd68] ss:$16 sps:$4 sm:$0xff]   ;;  %v7632_v59 = vadd.f32 %v7631_v33, %v6844_v8 }
 0x814   : > { %v7591_v56 = vadd.f32 %v7590_v53, %v7538_v49  ;;  %v7734_v57 = vpack.c.bf16 %v7722_v48, %v7718_v24  ;;  %v7710_v25 = vmul.f32 0.2, %v7589_v6  ;;  %v7725_v50 = vmax.f32 %v7587_v55, %v7709_v27  ;;  %v7639_v47 = vpop.f32.mrf.mxu0 }
 0x815   : > { %v7592_v5 = vpop.f32.mrf.mxu1  ;;  %v7630_v49 = vadd.f32 %v7629_v39, %v6840_v0  ;;  %v7634_v24 = vadd.f32 %v7633_v38, %v6840_v0  ;;  %v7636_v55 = vadd.f32 %v7635_v44, %v6844_v8 }
 0x816   : > { %v7713_v15 = vmul.f32 0.2, %v7591_v56  ;;  %v7593_v3 = vadd.f32 %v7592_v5, %v7540_v21  ;;  %8565 = vmatprep.mubr.bf16.mxu0 %v7734_v57  ;;  %v7726_v46 = vmax.f32 %v7589_v6, %v7710_v25  ;;  %v7641_v34 = vpop.f32.mrf.mxu0  ;;  %v18301_v6 = vld [vmem:[%s19469_s9 + $0xd48] ss:$16 sps:$4 sm:$0xff]   ;;  %v18309_v21 = vld [vmem:[%s19469_s9 + $0xd2c] ss:$16 sps:$4 sm:$0xff]  }
 0x817   : > { %8566 = vmatmul.mubr.bf16.vlgmr.msra.gmra.mxu0 %v20857_v11 }
 0x818   : > { %v7714_v58 = vmul.f32 0.2, %v7593_v3  ;;  %8640 = vmatpush1.bf16.msra.mxu0 %v18223_v13  ;;  %v7729_v10 = vmax.f32 %v7591_v56, %v7713_v15  ;;  %v7643_v5 = vpop.f32.mrf.mxu0  ;;  %v18307_v13 = vld [vmem:[%s19469_s9 + $0xd28] ss:$16 sps:$4 sm:$0xff]  }
 0x819   : > { %8641 = vmatprep.subr.bf16.mxu0 %v18231_v4  ;;  %v18315_v4 = vld [vmem:[%s19469_s9 + $0xd0c] ss:$16 sps:$4 sm:$0xff]  }
 0x81a   : > { %v7730_v54 = vmax.f32 %v7593_v3, %v7714_v58  ;;  %v20867_v29 = vpack.c.bf16 %v7729_v10, %v7725_v50  ;;  %v7640_v10 = vadd.f32 %v7639_v47, %v6840_v0 }
 0x81c   : > { %v20863_v14 = vpack.c.bf16 %v7730_v54, %v7726_v46  ;;  %8642 = vmatpush1.bf16.msra.mxu0 %v18229_v9  ;;  %v7642_v9 = vadd.f32 %v7641_v34, %v6844_v8  ;;  %v7645_v54 = vpop.f32.mrf.mxu0  ;;  %v18331_v34 = vld [vmem:[%s19469_s9 + $0xe48] ss:$16 sps:$4 sm:$0xff]  }
 0x81d   : > { %8643 = vmatprep.subr.bf16.mxu0 %v18237_v23 }
 0x81e   : > { %8575 = vmatprep.mubr.bf16.mxu0 %v20863_v14 }
 0x81f   : > { %8576 = vmatmul.mubr.bf16.gmra.mxu0 %v20867_v29 }
 0x820   : > { %8644 = vmatpush1.bf16.msra.mxu0 %v18235_v51  ;;  %8671 = vmatprep.mubr.bf16.mxu0 %v7734_v57  ;;  %v18313_v51 = vld [vmem:[%s19469_s9 + $0xd08] ss:$16 sps:$4 sm:$0xff]  }
 0x821   : > { %8645 = vmatprep.subr.bf16.mxu0 %v18243_v62  ;;  %v7644_v62 = vadd.f32 %v7643_v5, %v6840_v0  ;;  %v18351_v5 = vld [vmem:[%s19469_s9 + $0xf8c] ss:$16 sps:$4 sm:$0xff]  }
 0x824   : > { %8646 = vmatpush1.bf16.msra.mxu0 %v18241_v12 }
 0x825   : > { %8647 = vmatprep.subr.bf16.mxu0 %v18249_v26 }
 0x828   : > { %8648 = vmatpush1.bf16.msra.mxu0 %v18247_v20 }
 0x829   : > { %8649 = vmatprep.subr.bf16.mxu0 %v18255_v7 }
 0x82c   : > { %8650 = vmatpush1.bf16.msra.mxu0 %v18253_v63 }
 0x82d   : > { %8651 = vmatprep.subr.bf16.mxu0 %v18261_v19 }
 0x830   : > { %8652 = vmatpush1.bf16.msra.mxu0 %v18259_v1  ;;  %v7646_v1 = vadd.f32 %v7645_v54, %v6844_v8 }
 0x831   : > { %8653 = vmatprep.subr.bf16.mxu0 %v18267_v2 }
 0x834   : > { %8654 = vmatpush1.bf16.msra.mxu0 %v18265_v17 }
 0x835   : > { %8655 = vmatprep.subr.bf16.mxu0 %v18273_v31  ;;  %v18316_v31 = vld [vmem:[%s19469_s9 + $0xee8] ss:$16 sps:$4 sm:$0xff]  }
 0x838   : > { %8656 = vmatpush2.bf16.msra.mxu0 %v18271_v41 }
 0x839   : > { %8657 = vmatprep.subr.bf16.mxu0 %v18279_v28  ;;  %v18321_v28 = vld [vmem:[%s19469_s9 + $0xecc] ss:$16 sps:$4 sm:$0xff]  }
 0x83c   : > { %8658 = vmatpush2.bf16.msra.mxu0 %v18277_v36 }
 0x83d   : > { %8659 = vmatprep.subr.bf16.mxu0 %v18285_v37 }
 0x840   : > { %8660 = vmatpush2.bf16.msra.mxu0 %v18283_v40 }
 0x841   : > { %8661 = vmatprep.subr.bf16.mxu0 %v18291_v42  ;;  %v18319_v42 = vld [vmem:[%s19469_s9 + $0xec8] ss:$16 sps:$4 sm:$0xff]  }
 0x844   : > { %8662 = vmatpush2.bf16.msra.mxu0 %v18289_v30  ;;  %v18324_v30 = vld [vmem:[%s19469_s9 + $0xeac] ss:$16 sps:$4 sm:$0xff]  }
 0x845   : > { %8663 = vmatprep.subr.bf16.mxu0 %v18297_v43 }
 0x847   : > { %v7682_v45 = vpop.f32.mrf.mxu1 }
 0x848   : > { %8664 = vmatpush2.bf16.msra.mxu0 %v18295_v52  ;;  %v7683_v22 = vadd.f32 %v7682_v45, %v7630_v49  ;;  %v18322_v52 = vld [vmem:[%s19469_s9 + $0xea8] ss:$16 sps:$4 sm:$0xff]   ;;  %v18330_v45 = vld [vmem:[%s19469_s9 + $0xe6c] ss:$16 sps:$4 sm:$0xff]  }
 0x849   : > { %v7684_v48 = vpop.f32.mrf.mxu1  ;;  %8665 = vmatprep.subr.bf16.mxu0 %v18303_v18  ;;  %v18327_v18 = vld [vmem:[%s19469_s9 + $0xe8c] ss:$16 sps:$4 sm:$0xff]  }
 0x84a   : > { %v7685_v53 = vadd.f32 %v7684_v48, %v7632_v59  ;;  %v7703_v27 = vmul.f32 0.2, %v7683_v22  ;;  %v18328_v59 = vld [vmem:[%s19469_s9 + $0xe68] ss:$16 sps:$4 sm:$0xff]   ;;  %v18333_v49 = vld [vmem:[%s19469_s9 + $0xe4c] ss:$16 sps:$4 sm:$0xff]  }
 0x84b   : > { %v7686_v16 = vpop.f32.mrf.mxu1  ;;  %v18336_v48 = vld [vmem:[%s19469_s9 + $0xe2c] ss:$16 sps:$4 sm:$0xff]  }
 0x84c   : > { %v7687_v56 = vadd.f32 %v7686_v16, %v7634_v24  ;;  %8666 = vmatpush2.bf16.msra.mxu0 %v18301_v6  ;;  %v7704_v25 = vmul.f32 0.2, %v7685_v53  ;;  %v7719_v7 = vmax.f32 %v7683_v22, %v7703_v27  ;;  %v18339_v6 = vld [vmem:[%s19469_s9 + $0xe0c] ss:$16 sps:$4 sm:$0xff]   ;;  %v18337_v24 = vld [vmem:[%s19469_s9 + $0xe08] ss:$16 sps:$4 sm:$0xff]  }
 0x84d   : > { %v7688_v57 = vpop.f32.mrf.mxu1  ;;  %8667 = vmatprep.subr.bf16.mxu0 %v18309_v21  ;;  %v18340_v21 = vld [vmem:[%s19469_s9 + $0xfe8] ss:$16 sps:$4 sm:$0xff]   ;;  %v18345_v22 = vld [vmem:[%s19469_s9 + $0xfcc] ss:$16 sps:$4 sm:$0xff]  }
 0x84e   : > { %v7707_v15 = vmul.f32 0.2, %v7687_v56  ;;  %v7689_v3 = vadd.f32 %v7688_v57, %v7636_v55  ;;  %v7720_v12 = vmax.f32 %v7685_v53, %v7704_v25  ;;  %v18342_v53 = vld [vmem:[%s19469_s9 + $0xfec] ss:$16 sps:$4 sm:$0xff]   ;;  %v18343_v16 = vld [vmem:[%s19469_s9 + $0xfc8] ss:$16 sps:$4 sm:$0xff]  }
 0x84f   : > { %v7692_v58 = vpop.f32.mrf.mxu1  ;;  %v18348_v55 = vld [vmem:[%s19469_s9 + $0xfac] ss:$16 sps:$4 sm:$0xff]   ;;  %v18349_v57 = vld [vmem:[%s19469_s9 + $0xf88] ss:$16 sps:$4 sm:$0xff]  }
 0x850   : > { %v7708_v46 = vmul.f32 0.2, %v7689_v3  ;;  %v7723_v23 = vmax.f32 %v7687_v56, %v7707_v15  ;;  %8668 = vmatpush2.bf16.msra.mxu0 %v18307_v13  ;;  %v7693_v63 = vadd.f32 %v7692_v58, %v7640_v10  ;;  %v18346_v56 = vld [vmem:[%s19469_s9 + $0xfa8] ss:$16 sps:$4 sm:$0xff]   ;;  %v18354_v13 = vld [vmem:[%s19469_s9 + $0xf6c] ss:$16 sps:$4 sm:$0xff]  }
 0x851   : > { %v7694_v50 = vpop.f32.mrf.mxu1  ;;  %8669 = vmatprep.subr.bf16.mxu0 %v18315_v4  ;;  %v18352_v25 = vld [vmem:[%s19469_s9 + $0xf68] ss:$16 sps:$4 sm:$0xff]   ;;  %v18357_v15 = vld [vmem:[%s19469_s9 + $0xf4c] ss:$16 sps:$4 sm:$0xff]  }
 0x852   : > { %v7724_v26 = vmax.f32 %v7689_v3, %v7708_v46  ;;  %v7695_v20 = vadd.f32 %v7694_v50, %v7642_v9  ;;  %v20901_v39 = vpack.c.bf16 %v7723_v23, %v7719_v7  ;;  %v7711_v38 = vmul.f32 0.2, %v7693_v63  ;;  %v18355_v3 = vld [vmem:[%s19469_s9 + $0xf48] ss:$16 sps:$4 sm:$0xff]   ;;  %v18360_v4 = vld [vmem:[%s19469_s9 + $0xf2c] ss:$16 sps:$4 sm:$0xff]  }
 0x853   : > { %v7696_v19 = vpop.f32.mrf.mxu1  ;;  %v18358_v27 = vld [vmem:[%s19469_s9 + $0xf28] ss:$16 sps:$4 sm:$0xff]   ;;  %v18363_v58 = vld [vmem:[%s19469_s9 + $0xf0c] ss:$16 sps:$4 sm:$0xff]  }
 0x854   : > { %v7697_v2 = vadd.f32 %v7696_v19, %v7644_v62  ;;  %v7736_v17 = vpack.c.bf16 %v7724_v26, %v7720_v12  ;;  %8670 = vmatpush2.bf16.msra.mxu0 %v18313_v51  ;;  %v7712_v33 = vmul.f32 0.2, %v7695_v20  ;;  %v7727_v0 = vmax.f32 %v7693_v63, %v7711_v38  ;;  %v18361_v9 = vld [vmem:[%s19469_s9 + $0xf08] ss:$16 sps:$4 sm:$0xff]   ;;  %v15697_v23 = vld [vmem:[%s19475_s6 + $0xc] sm:$0xf] }
 0x855   : > { %v7698_v41 = vpop.f32.mrf.mxu1  ;;  %v7876_v51 = vrot.slane %v15697_v23, %v20512_v60  ;;  %v7880_v62 = vrot.slane %v15697_v23, %v20518_v35 }
 0x856   : > { %v7715_v36 = vmul.f32 0.2, %v7697_v2  ;;  %v7699_v37 = vadd.f32 %v7698_v41, %v7646_v1  ;;  %8618 = vmatprep.mubr.bf16.mxu1 %v7736_v17  ;;  %v7728_v43 = vmax.f32 %v7695_v20, %v7712_v33 }
 0x857   : > { %8619 = vmatmul.mubr.bf16.vlgmr.msra.gmra.mxu1 %v20901_v39  ;;  %8672 = vmatmul.mubr.bf16.vlgmr.msra.gmra.mxu0 %v20857_v11 }
 0x858   : > { %v7716_v40 = vmul.f32 0.2, %v7699_v37  ;;  %8693 = vmatpush1.bf16.msra.mxu1 %v18316_v31  ;;  %v7731_v44 = vmax.f32 %v7697_v2, %v7715_v36  ;;  %8681 = vmatprep.mubr.bf16.mxu0 %v20863_v14  ;;  %v18325_v14 = vld [vmem:[%s19469_s9 + $0xe88] ss:$16 sps:$4 sm:$0xff]  }
 0x859   : > { %8694 = vmatprep.subr.bf16.mxu1 %v18321_v28 }
 0x85a   : > { %v7732_v8 = vmax.f32 %v7699_v37, %v7716_v40  ;;  %v7739_v11 = vpack.c.bf16 %v7731_v44, %v7727_v0 }
 0x85c   : > { %8695 = vmatpush1.bf16.msra.mxu1 %v18319_v42  ;;  %v7740_v47 = vpack.c.bf16 %v7732_v8, %v7728_v43 }
 0x85d   : > { %8696 = vmatprep.subr.bf16.mxu1 %v18324_v30 }
 0x85e   : > { %8628 = vmatprep.mubr.bf16.mxu1 %v7740_v47 }
 0x85f   : > { %8629 = vmatmul.mubr.bf16.gmra.mxu1 %v7739_v11  ;;  %8682 = vmatmul.mubr.bf16.gmra.mxu0 %v20867_v29  ;;  %v18334_v29 = vld [vmem:[%s19469_s9 + $0xe28] ss:$16 sps:$4 sm:$0xff]  }
 0x860   : > { %8697 = vmatpush1.bf16.msra.mxu1 %v18322_v52  ;;  %8724 = vmatprep.mubr.bf16.mxu1 %v7736_v17 }
 0x861   : > { %8698 = vmatprep.subr.bf16.mxu1 %v18327_v18 }
 0x864   : > { %8699 = vmatpush1.bf16.msra.mxu1 %v18325_v14 }
 0x865   : > { %8700 = vmatprep.subr.bf16.mxu1 %v18330_v45 }
 0x868   : > { %8701 = vmatpush1.bf16.msra.mxu1 %v18328_v59 }
 0x869   : > { %8702 = vmatprep.subr.bf16.mxu1 %v18333_v49 }
 0x86c   : > { %8703 = vmatpush1.bf16.msra.mxu1 %v18331_v34 }
 0x86d   : > { %8704 = vmatprep.subr.bf16.mxu1 %v18336_v48 }
 0x870   : > { %8705 = vmatpush1.bf16.msra.mxu1 %v18334_v29 }
 0x871   : > { %8706 = vmatprep.subr.bf16.mxu1 %v18339_v6 }
 0x874   : > { %8707 = vmatpush1.bf16.msra.mxu1 %v18337_v24 }
 0x875   : > { %8708 = vmatprep.subr.bf16.mxu1 %v18342_v53 }
 0x878   : > { %8709 = vmatpush2.bf16.msra.mxu1 %v18340_v21 }
 0x879   : > { %8710 = vmatprep.subr.bf16.mxu1 %v18345_v22 }
 0x87c   : > { %8711 = vmatpush2.bf16.msra.mxu1 %v18343_v16 }
 0x87d   : > { %8712 = vmatprep.subr.bf16.mxu1 %v18348_v55 }
 0x880   : > { %8713 = vmatpush2.bf16.msra.mxu1 %v18346_v56 }
 0x881   : > { %8714 = vmatprep.subr.bf16.mxu1 %v18351_v5 }
 0x884   : > { %8715 = vmatpush2.bf16.msra.mxu1 %v18349_v57 }
 0x885   : > { %8716 = vmatprep.subr.bf16.mxu1 %v18354_v13 }
 0x888   : > { %8717 = vmatpush2.bf16.msra.mxu1 %v18352_v25  ;;  %v7884_v25 = vrot.slane %v15697_v23, %v20556_v61 }
 0x889   : > { %8718 = vmatprep.subr.bf16.mxu1 %v18357_v15  ;;  %v7888_v15 = vrot.slane %v15697_v23, %v20560_v32 }
 0x88c   : > { %8719 = vmatpush2.bf16.msra.mxu1 %v18355_v3 }
 0x88d   : > { %8720 = vmatprep.subr.bf16.mxu1 %v18360_v4 }
 0x890   : > { %8721 = vmatpush2.bf16.msra.mxu1 %v18358_v27 }
 0x891   : > { %8722 = vmatprep.subr.bf16.mxu1 %v18363_v58 }
 0x894   : > { %8723 = vmatpush2.bf16.msra.mxu1 %v18361_v9 }
 0x897   : > { %8725 = vmatmul.mubr.bf16.vlgmr.msra.gmra.mxu1 %v20901_v39 }
 0x898   : > { %8734 = vmatprep.mubr.bf16.mxu1 %v7740_v47 }
 0x89f   : > { %8735 = vmatmul.mubr.bf16.gmra.mxu1 %v7739_v11 }
 0x8d7   : > { %v8567_v46 = vpop.f32.mrf.mxu0 }
 0x8d8   : > { %v8568_v26 = vadd.f32 %v8567_v46, %v7876_v51 }
 0x8d9   : > { %v8569_v10 = vpop.f32.mrf.mxu0 }
 0x8da   : > { %v8570_v7 = vadd.f32 %v8569_v10, %v7880_v62 }
 0x8db   : > { %v8571_v54 = vpop.f32.mrf.mxu0 }
 0x8dc   : > { %v8572_v2 = vadd.f32 %v8571_v54, %v7876_v51 }
 0x8dd   : > { %v8573_v50 = vpop.f32.mrf.mxu0 }
 0x8de   : > { %v8574_v41 = vadd.f32 %v8573_v50, %v7880_v62 }
 0x8df   : > { %v8577_v12 = vpop.f32.mrf.mxu0 }
 0x8e0   : > { %v8578_v60 = vadd.f32 %v8577_v12, %v7876_v51 }
 0x8e1   : > { %v8579_v19 = vpop.f32.mrf.mxu0 }
 0x8e2   : > { %v8580_v30 = vadd.f32 %v8579_v19, %v7880_v62 }
 0x8e3   : > { %v8581_v37 = vpop.f32.mrf.mxu0 }
 0x8e4   : > { %v8582_v11 = vadd.f32 %v8581_v37, %v7876_v51 }
 0x8e5   : > { %v8583_v47 = vpop.f32.mrf.mxu0 }
 0x8e6   : > { %v8584_v49 = vadd.f32 %v8583_v47, %v7880_v62 }
 0x917   : > { %v8620_v20 = vpop.f32.mrf.mxu1  ;;  %v8673_v56 = vpop.f32.mrf.mxu0 }
 0x918   : > { %v8621_v63 = vadd.f32 %v8620_v20, %v8568_v26  ;;  %v8674_v4 = vadd.f32 %v8673_v56, %v7884_v25 }
 0x919   : > { %v8622_v1 = vpop.f32.mrf.mxu1  ;;  %v8675_v5 = vpop.f32.mrf.mxu0 }
 0x91a   : > { %v8745_v17 = vmul.f32 0.2, %v8621_v63  ;;  %v8623_v31 = vadd.f32 %v8622_v1, %v8570_v7  ;;  %v8676_v58 = vadd.f32 %v8675_v5, %v7888_v15 }
 0x91b   : > { %v8624_v39 = vpop.f32.mrf.mxu1  ;;  %v8677_v57 = vpop.f32.mrf.mxu0 }
 0x91c   : > { %v8761_v28 = vmax.f32 %v8621_v63, %v8745_v17  ;;  %v8746_v33 = vmul.f32 0.2, %v8623_v31  ;;  %v8625_v36 = vadd.f32 %v8624_v39, %v8572_v2  ;;  %v8678_v54 = vadd.f32 %v8677_v57, %v7884_v25 }
 0x91d   : > { %v8626_v38 = vpop.f32.mrf.mxu1  ;;  %v8679_v13 = vpop.f32.mrf.mxu0 }
 0x91e   : > { %8778 = vst [vmem:[#allocation8 + $0x80] sm:$0xff] %v8761_v28  ;;  %v8762_v35 = vmax.f32 %v8623_v31, %v8746_v33  ;;  %v8749_v40 = vmul.f32 0.2, %v8625_v36  ;;  %v8627_v42 = vadd.f32 %v8626_v38, %v8574_v41  ;;  %v8680_v12 = vadd.f32 %v8679_v13, %v7888_v15 }
 0x91f   : > { %v8630_v44 = vpop.f32.mrf.mxu1  ;;  %v8683_v3 = vpop.f32.mrf.mxu0 }
 0x920   : > { %8779 = vst [vmem:[#allocation8 + $0x88] sm:$0xff] %v8762_v35  ;;  %v8765_v43 = vmax.f32 %v8625_v36, %v8749_v40  ;;  %v8750_v8 = vmul.f32 0.2, %v8627_v42  ;;  %v8631_v0 = vadd.f32 %v8630_v44, %v8578_v60  ;;  %v8684_v61 = vadd.f32 %v8683_v3, %v7884_v25 }
 0x921   : > { %v8632_v52 = vpop.f32.mrf.mxu1  ;;  %v8685_v46 = vpop.f32.mrf.mxu0 }
 0x922   : > { %8782 = vst [vmem:[#allocation8 + $0xa0] sm:$0xff] %v8765_v43  ;;  %v8766_v18 = vmax.f32 %v8627_v42, %v8750_v8  ;;  %v8753_v14 = vmul.f32 0.2, %v8631_v0  ;;  %v8633_v45 = vadd.f32 %v8632_v52, %v8580_v30  ;;  %v8686_v17 = vadd.f32 %v8685_v46, %v7888_v15 }
 0x923   : > { %v8634_v59 = vpop.f32.mrf.mxu1  ;;  %v8687_v63 = vpop.f32.mrf.mxu0 }
 0x924   : > { %8783 = vst [vmem:[#allocation8 + $0xa8] sm:$0xff] %v8766_v18  ;;  %v8769_v34 = vmax.f32 %v8631_v0, %v8753_v14  ;;  %v8754_v48 = vmul.f32 0.2, %v8633_v45  ;;  %v8635_v29 = vadd.f32 %v8634_v59, %v8582_v11  ;;  %v8688_v36 = vadd.f32 %v8687_v63, %v7884_v25 }
 0x925   : > { %v8636_v6 = vpop.f32.mrf.mxu1  ;;  %v8689_v28 = vpop.f32.mrf.mxu0 }
 0x926   : > { %8786 = vst [vmem:[#allocation8 + $0xc0] sm:$0xff] %v8769_v34  ;;  %v8770_v24 = vmax.f32 %v8633_v45, %v8754_v48  ;;  %v8757_v53 = vmul.f32 0.2, %v8635_v29  ;;  %v8637_v21 = vadd.f32 %v8636_v6, %v8584_v49  ;;  %v8690_v40 = vadd.f32 %v8689_v28, %v7888_v15 }
 0x928   : > { %8787 = vst [vmem:[#allocation8 + $0xc8] sm:$0xff] %v8770_v24  ;;  %v8773_v22 = vmax.f32 %v8635_v29, %v8757_v53  ;;  %v8758_v16 = vmul.f32 0.2, %v8637_v21 }
 0x92a   : > { %8790 = vst [vmem:[#allocation8 + $0xe0] sm:$0xff] %v8773_v22  ;;  %v8774_v55 = vmax.f32 %v8637_v21, %v8758_v16 }
 0x92c   : > { %8791 = vst [vmem:[#allocation8 + $0xe8] sm:$0xff] %v8774_v55 }
 0x957   : > { %v8726_v27 = vpop.f32.mrf.mxu1 }
 0x958   : > { %v8727_v9 = vadd.f32 %v8726_v27, %v8674_v4 }
 0x959   : > { %v8728_v10 = vpop.f32.mrf.mxu1 }
 0x95a   : > { %v8747_v50 = vmul.f32 0.2, %v8727_v9  ;;  %v8729_v51 = vadd.f32 %v8728_v10, %v8676_v58 }
 0x95b   : > { %v8730_v62 = vpop.f32.mrf.mxu1 }
 0x95c   : > { %v8763_v26 = vmax.f32 %v8727_v9, %v8747_v50  ;;  %v8748_v20 = vmul.f32 0.2, %v8729_v51  ;;  %v8731_v7 = vadd.f32 %v8730_v62, %v8678_v54 }
 0x95d   : > { %v8732_v19 = vpop.f32.mrf.mxu1 }
 0x95e   : > { %8780 = vst [vmem:[#allocation8 + $0x90] sm:$0xff] %v8763_v26  ;;  %v8764_v32 = vmax.f32 %v8729_v51, %v8748_v20  ;;  %v8751_v23 = vmul.f32 0.2, %v8731_v7  ;;  %v8733_v1 = vadd.f32 %v8732_v19, %v8680_v12 }
 0x95f   : > { %v8736_v2 = vpop.f32.mrf.mxu1 }
 0x960   : > { %8781 = vst [vmem:[#allocation8 + $0x98] sm:$0xff] %v8764_v32  ;;  %v8767_v31 = vmax.f32 %v8731_v7, %v8751_v23  ;;  %v8752_v39 = vmul.f32 0.2, %v8733_v1  ;;  %v8737_v41 = vadd.f32 %v8736_v2, %v8684_v61 }
 0x961   : > { %v8738_v33 = vpop.f32.mrf.mxu1 }
 0x962   : > { %8784 = vst [vmem:[#allocation8 + $0xb0] sm:$0xff] %v8767_v31  ;;  %v8768_v37 = vmax.f32 %v8733_v1, %v8752_v39  ;;  %v8755_v38 = vmul.f32 0.2, %v8737_v41  ;;  %v8739_v60 = vadd.f32 %v8738_v33, %v8686_v17 }
 0x963   : > { %v8740_v35 = vpop.f32.mrf.mxu1 }
 0x964   : > { %8785 = vst [vmem:[#allocation8 + $0xb8] sm:$0xff] %v8768_v37  ;;  %v8771_v42 = vmax.f32 %v8737_v41, %v8755_v38  ;;  %v8756_v44 = vmul.f32 0.2, %v8739_v60  ;;  %v8741_v30 = vadd.f32 %v8740_v35, %v8688_v36 }
 0x965   : > { %v8742_v43 = vpop.f32.mrf.mxu1 }
 0x966   : > { %8788 = vst [vmem:[#allocation8 + $0xd0] sm:$0xff] %v8771_v42  ;;  %v8772_v8 = vmax.f32 %v8739_v60, %v8756_v44  ;;  %v8759_v0 = vmul.f32 0.2, %v8741_v30  ;;  %v8743_v47 = vadd.f32 %v8742_v43, %v8690_v40 }
 0x968   : > { %8789 = vst [vmem:[#allocation8 + $0xd8] sm:$0xff] %v8772_v8  ;;  %v8775_v52 = vmax.f32 %v8741_v30, %v8759_v0  ;;  %v8760_v11 = vmul.f32 0.2, %v8743_v47 }
 0x96a   : > { %8792 = vst [vmem:[#allocation8 + $0xf0] sm:$0xff] %v8775_v52  ;;  %v8776_v18 = vmax.f32 %v8743_v47, %v8760_v11 }
 0x96c   : > { %8793 = vst [vmem:[#allocation8 + $0xf8] sm:$0xff] %v8776_v18 }
 0x96d PF: > { %p15826_p5 = scmp.ne.s32.totalorder %s19304_s15, 2 }
 0x96f   : > { %8797 = sbr.rel (%p15826_p5) target bundleno = 3632 (0xe30), region = 56 }
 0x974   : > { %v18372_v14 = vld [vmem:[%s19469_s9 + $0xe4] ss:$16 sps:$4 sm:$0xff]   ;;  %v18376_v59 = vld [vmem:[%s19469_s9 + $0xe0] ss:$16 sps:$4 sm:$0xff]   ;;  %v20990_v28 = vld [vmem:[#allocation2 + $0x108] sm:$0xff] }
 0x975   : > { %v18374_v45 = vld [vmem:[%s19469_s9 + $0x2e4] ss:$16 sps:$4 sm:$0xff]   ;;  %9778 = vmatprep.subr.bf16.mxu0 %v18372_v14  ;;  %v18377_v49 = vld [vmem:[%s19469_s9 + $0x2e0] ss:$16 sps:$4 sm:$0xff]   ;;  %v20992_v33 = vld [vmem:[#allocation2 + $0x128] sm:$0xff]  ;;  %v8840_v38 = vmul.f32 %v20990_v28, %v20990_v28 }
 0x976   : > { %9861 = vmatprep.subr.bf16.mxu1 %v18374_v45  ;;  %v18378_v34 = vld [vmem:[%s19469_s9 + $0xc4] ss:$16 sps:$4 sm:$0xff]   ;;  %9779 = vmatpush1.bf16.msra.mxu0 %v18376_v59  ;;  %v18382_v29 = vld [vmem:[%s19469_s9 + $0xc0] ss:$16 sps:$4 sm:$0xff]   ;;  %v20994_v36 = vld [vmem:[#allocation2 + $0x148] sm:$0xff]  ;;  %v8844_v40 = vmul.f32 %v20992_v33, %v20992_v33 }
 0x977   : > { %9862 = vmatpush1.bf16.msra.mxu1 %v18377_v49  ;;  %v18380_v48 = vld [vmem:[%s19469_s9 + $0x2c4] ss:$16 sps:$4 sm:$0xff]   ;;  %9780 = vmatprep.subr.bf16.mxu0 %v18378_v34  ;;  %v18383_v6 = vld [vmem:[%s19469_s9 + $0x2c0] ss:$16 sps:$4 sm:$0xff]   ;;  %v20996_v37 = vld [vmem:[#allocation2 + $0x168] sm:$0xff]  ;;  %v8848_v42 = vmul.f32 %v20994_v36, %v20994_v36 }
 0x978   : > { %9863 = vmatprep.subr.bf16.mxu1 %v18380_v48  ;;  %v18384_v24 = vld [vmem:[%s19469_s9 + $0xa4] ss:$16 sps:$4 sm:$0xff]   ;;  %v18388_v21 = vld [vmem:[%s19469_s9 + $0xa0] ss:$16 sps:$4 sm:$0xff]   ;;  %v21008_v43 = vld [vmem:[#allocation2 + $0x188] sm:$0xff]  ;;  %v8852_v0 = vmul.f32 %v20996_v37, %v20996_v37  ;;  %v8888_v47 = vadd.f32 %v8844_v40, %v8840_v38 }
 0x979   : > { %v18386_v53 = vld [vmem:[%s19469_s9 + $0x2a4] ss:$16 sps:$4 sm:$0xff]   ;;  %v18389_v22 = vld [vmem:[%s19469_s9 + $0x2a0] ss:$16 sps:$4 sm:$0xff]   ;;  %v21013_v52 = vld [vmem:[#allocation2 + $0x118] sm:$0xff] }
 0x97a   : > { %9781 = vmatpush1.bf16.msra.mxu0 %v18382_v29  ;;  %v18390_v16 = vld [vmem:[%s19469_s9 + $0x84] ss:$16 sps:$4 sm:$0xff]   ;;  %v18394_v56 = vld [vmem:[%s19469_s9 + $0x80] ss:$16 sps:$4 sm:$0xff]   ;;  %v21015_v11 = vld [vmem:[#allocation2 + $0x138] sm:$0xff]  ;;  %v8842_v49 = vmul.f32 %v21013_v52, %v21013_v52 }
 0x97b   : > { %9864 = vmatpush1.bf16.msra.mxu1 %v18383_v6  ;;  %9782 = vmatprep.subr.bf16.mxu0 %v18384_v24  ;;  %v18392_v55 = vld [vmem:[%s19469_s9 + $0x284] ss:$16 sps:$4 sm:$0xff]   ;;  %v18395_v5 = vld [vmem:[%s19469_s9 + $0x280] ss:$16 sps:$4 sm:$0xff]   ;;  %v21017_v18 = vld [vmem:[#allocation2 + $0x158] sm:$0xff]  ;;  %v8846_v34 = vmul.f32 %v21015_v11, %v21015_v11  ;;  %v8856_v24 = vmul.f32 %v21008_v43, %v21008_v43 }
 0x97c   : > { %9865 = vmatprep.subr.bf16.mxu1 %v18386_v53  ;;  %v18396_v57 = vld [vmem:[%s19469_s9 + $0x64] ss:$16 sps:$4 sm:$0xff]   ;;  %v18400_v25 = vld [vmem:[%s19469_s9 + $0x60] ss:$16 sps:$4 sm:$0xff]   ;;  %v21020_v45 = vld [vmem:[#allocation2 + $0x1a8] sm:$0xff]  ;;  %v8889_v53 = vadd.f32 %v8888_v47, %v8848_v42 }
 0x97d   : > { %v18398_v13 = vld [vmem:[%s19469_s9 + $0x264] ss:$16 sps:$4 sm:$0xff]   ;;  %v18401_v15 = vld [vmem:[%s19469_s9 + $0x260] ss:$16 sps:$4 sm:$0xff]   ;;  %v21022_v59 = vld [vmem:[#allocation2 + $0x178] sm:$0xff] }
 0x97e   : > { %9783 = vmatpush1.bf16.msra.mxu0 %v18388_v21  ;;  %v18402_v3 = vld [vmem:[%s19469_s9 + $0x44] ss:$16 sps:$4 sm:$0xff]   ;;  %v18406_v27 = vld [vmem:[%s19469_s9 + $0x40] ss:$16 sps:$4 sm:$0xff]   ;;  %v21030_v6 = vld [vmem:[#allocation2 + $0x1c8] sm:$0xff]  ;;  %v8850_v21 = vmul.f32 %v21017_v18, %v21017_v18 }
 0x97f   : > { %9866 = vmatpush1.bf16.msra.mxu1 %v18389_v22  ;;  %9784 = vmatprep.subr.bf16.mxu0 %v18390_v16  ;;  %v18404_v4 = vld [vmem:[%s19469_s9 + $0x244] ss:$16 sps:$4 sm:$0xff]   ;;  %v18407_v58 = vld [vmem:[%s19469_s9 + $0x240] ss:$16 sps:$4 sm:$0xff]   ;;  %v21036_v22 = vld [vmem:[#allocation2 + $0x198] sm:$0xff] }
 0x980   : > { %9867 = vmatprep.subr.bf16.mxu1 %v18392_v55  ;;  %v18408_v9 = vld [vmem:[%s19469_s9 + $0x24] ss:$16 sps:$4 sm:$0xff]   ;;  %v18412_v10 = vld [vmem:[%s19469_s9 + $0x20] ss:$16 sps:$4 sm:$0xff]   ;;  %v21094_v42 = vld [vmem:[#allocation2 + $0x1f8] sm:$0xff] }
 0x981   : > { %v18410_v46 = vld [vmem:[%s19469_s9 + $0x224] ss:$16 sps:$4 sm:$0xff]   ;;  %v18413_v54 = vld [vmem:[%s19469_s9 + $0x220] ss:$16 sps:$4 sm:$0xff]  }
 0x982   : > { %9785 = vmatpush1.bf16.msra.mxu0 %v18394_v56  ;;  %v18414_v50 = vld [vmem:[%s19469_s9 + $0x4] ss:$16 sps:$4 sm:$0xff]   ;;  %v18418_v62 = vld [vmem:[%s19469_s9] ss:$16 sps:$4 sm:$0xff]  }
 0x983   : > { %9868 = vmatpush1.bf16.msra.mxu1 %v18395_v5  ;;  %9786 = vmatprep.subr.bf16.mxu0 %v18396_v57  ;;  %v18416_v51 = vld [vmem:[%s19469_s9 + $0x204] ss:$16 sps:$4 sm:$0xff]   ;;  %v18419_v12 = vld [vmem:[%s19469_s9 + $0x200] ss:$16 sps:$4 sm:$0xff]   ;;  %v21043_v5 = vld [vmem:[#allocation2 + $0x1e8] sm:$0xff] }
 0x984   : > { %9869 = vmatprep.subr.bf16.mxu1 %v18398_v13  ;;  %v18420_v26 = vld [vmem:[%s19469_s9 + $0x1e4] ss:$16 sps:$4 sm:$0xff]   ;;  %v18424_v7 = vld [vmem:[%s19469_s9 + $0x1e0] ss:$16 sps:$4 sm:$0xff]   ;;  %v21045_v57 = vld [vmem:[#allocation2 + $0x208] sm:$0xff]  ;;  %v8860_v13 = vmul.f32 %v21020_v45, %v21020_v45 }
 0x985   : > { %v18422_v20 = vld [vmem:[%s19469_s9 + $0x3e4] ss:$16 sps:$4 sm:$0xff]   ;;  %v18425_v63 = vld [vmem:[%s19469_s9 + $0x3e0] ss:$16 sps:$4 sm:$0xff]  }
 0x986   : > { %9787 = vmatpush1.bf16.msra.mxu0 %v18400_v25  ;;  %v18426_v19 = vld [vmem:[%s19469_s9 + $0x1c4] ss:$16 sps:$4 sm:$0xff]   ;;  %v18430_v32 = vld [vmem:[%s19469_s9 + $0x1c0] ss:$16 sps:$4 sm:$0xff]   ;;  %v8890_v25 = vadd.f32 %v8889_v53, %v8852_v0 }
 0x987   : > { %9870 = vmatpush1.bf16.msra.mxu1 %v18401_v15  ;;  %9788 = vmatprep.subr.bf16.mxu0 %v18402_v3  ;;  %v18428_v61 = vld [vmem:[%s19469_s9 + $0x3c4] ss:$16 sps:$4 sm:$0xff]   ;;  %v18431_v23 = vld [vmem:[%s19469_s9 + $0x3c0] ss:$16 sps:$4 sm:$0xff]   ;;  %v8854_v15 = vmul.f32 %v21022_v59, %v21022_v59  ;;  %v8906_v3 = vadd.f32 %v8846_v34, %v8842_v49 }
 0x988   : > { %9871 = vmatprep.subr.bf16.mxu1 %v18404_v4  ;;  %v18432_v1 = vld [vmem:[%s19469_s9 + $0x1a4] ss:$16 sps:$4 sm:$0xff]   ;;  %v18436_v17 = vld [vmem:[%s19469_s9 + $0x1a0] ss:$16 sps:$4 sm:$0xff]  }
 0x989   : > { %v18434_v2 = vld [vmem:[%s19469_s9 + $0x3a4] ss:$16 sps:$4 sm:$0xff]   ;;  %v18437_v31 = vld [vmem:[%s19469_s9 + $0x3a0] ss:$16 sps:$4 sm:$0xff]  }
 0x98a   : > { %9789 = vmatpush1.bf16.msra.mxu0 %v18406_v27  ;;  %v18438_v39 = vld [vmem:[%s19469_s9 + $0x184] ss:$16 sps:$4 sm:$0xff]   ;;  %v18442_v60 = vld [vmem:[%s19469_s9 + $0x180] ss:$16 sps:$4 sm:$0xff]  }
 0x98b   : > { %9872 = vmatpush1.bf16.msra.mxu1 %v18407_v58  ;;  %9790 = vmatprep.subr.bf16.mxu0 %v18408_v9  ;;  %v18440_v41 = vld [vmem:[%s19469_s9 + $0x384] ss:$16 sps:$4 sm:$0xff]   ;;  %v18443_v35 = vld [vmem:[%s19469_s9 + $0x380] ss:$16 sps:$4 sm:$0xff]   ;;  %v21054_v58 = vld [vmem:[#allocation2 + $0x228] sm:$0xff]  ;;  %v8864_v9 = vmul.f32 %v21030_v6, %v21030_v6 }
 0x98c   : > { %9873 = vmatprep.subr.bf16.mxu1 %v18410_v46  ;;  %v18444_v44 = vld [vmem:[%s19469_s9 + $0x164] ss:$16 sps:$4 sm:$0xff]   ;;  %v18448_v8 = vld [vmem:[%s19469_s9 + $0x160] ss:$16 sps:$4 sm:$0xff]   ;;  %v21058_v46 = vld [vmem:[#allocation2 + $0x1b8] sm:$0xff] }
 0x98d   : > { %v18446_v30 = vld [vmem:[%s19469_s9 + $0x364] ss:$16 sps:$4 sm:$0xff]   ;;  %v18449_v14 = vld [vmem:[%s19469_s9 + $0x360] ss:$16 sps:$4 sm:$0xff]  }
 0x98e   : > { %9791 = vmatpush1.bf16.msra.mxu0 %v18412_v10  ;;  %v18450_v48 = vld [vmem:[%s19469_s9 + $0x144] ss:$16 sps:$4 sm:$0xff]   ;;  %v18454_v56 = vld [vmem:[%s19469_s9 + $0x140] ss:$16 sps:$4 sm:$0xff]  }
 0x98f   : > { %9874 = vmatpush1.bf16.msra.mxu1 %v18413_v54  ;;  %9792 = vmatprep.subr.bf16.mxu0 %v18414_v50  ;;  %v18452_v29 = vld [vmem:[%s19469_s9 + $0x344] ss:$16 sps:$4 sm:$0xff]   ;;  %v18455_v27 = vld [vmem:[%s19469_s9 + $0x340] ss:$16 sps:$4 sm:$0xff]  }
 0x990   : > { %9875 = vmatprep.subr.bf16.mxu1 %v18416_v51  ;;  %v21038_v16 = vld [vmem:[#allocation2 + $0x100] sm:$0xff]  ;;  %v8891_v51 = vadd.f32 %v8890_v25, %v8856_v24  ;;  %v21110_v24 = vld [vmem:[#allocation2 + $0x238] sm:$0xff] }
 0x991   : > { %v21040_v55 = vld [vmem:[#allocation2 + $0x120] sm:$0xff]  ;;  %v8839_v10 = vmul.f32 %v21038_v16, %v21038_v16 }
 0x992   : > { %9793 = vmatpush1.bf16.msra.mxu0 %v18418_v62  ;;  %v21051_v4 = vld [vmem:[#allocation2 + $0x140] sm:$0xff]  ;;  %v8843_v54 = vmul.f32 %v21040_v55, %v21040_v55  ;;  %v8858_v62 = vmul.f32 %v21036_v22, %v21036_v22 }
 0x993   : > { %9876 = vmatpush1.bf16.msra.mxu1 %v18419_v12  ;;  %9794 = vmatprep.subr.bf16.mxu0 %v18420_v26  ;;  %v18456_v50 = vld [vmem:[%s19469_s9 + $0x124] ss:$16 sps:$4 sm:$0xff]   ;;  %v8907_v12 = vadd.f32 %v8906_v3, %v8850_v21  ;;  %v18466_v25 = vld [vmem:[%s19469_s9 + $0x100] ss:$16 sps:$4 sm:$0xff]  }
 0x994   : > { %9877 = vmatprep.subr.bf16.mxu1 %v18422_v20  ;;  %v21067_v26 = vld [vmem:[#allocation2 + $0x160] sm:$0xff]  ;;  %v21069_v20 = vld [vmem:[#allocation2 + $0x110] sm:$0xff]  ;;  %v8879_v0 = vadd.f32 %v8843_v54, %v8839_v10 }
 0x995   : > { %v21088_v38 = vld [vmem:[#allocation2 + $0x180] sm:$0xff]  ;;  %v8841_v47 = vmul.f32 %v21069_v20, %v21069_v20 }
 0x996   : > { %9795 = vmatpush2.bf16.msra.mxu0 %v18424_v7  ;;  %v18458_v7 = vld [vmem:[%s19469_s9 + $0x324] ss:$16 sps:$4 sm:$0xff]   ;;  %v8855_v21 = vmul.f32 %v21088_v38, %v21088_v38 }
 0x997   : > { %9878 = vmatpush2.bf16.msra.mxu1 %v18425_v63  ;;  %9796 = vmatprep.subr.bf16.mxu0 %v18426_v19  ;;  %v8868_v63 = vmul.f32 %v21043_v5, %v21043_v5  ;;  %v8872_v19 = vmul.f32 %v21045_v57, %v21045_v57  ;;  %v18464_v40 = vld [vmem:[%s19469_s9 + $0x304] ss:$16 sps:$4 sm:$0xff]  }
 0x998   : > { %9879 = vmatprep.subr.bf16.mxu1 %v18428_v61  ;;  %v21076_v61 = vld [vmem:[#allocation2 + $0x1d8] sm:$0xff]  ;;  %v21112_v53 = vld [vmem:[#allocation2 + $0x1c0] sm:$0xff] }
 0x999   : > { %v8866_v34 = vmul.f32 %v21076_v61, %v21076_v61  ;;  %v21124_v54 = vld [vmem:[#allocation2 + $0x1e0] sm:$0xff] }
 0x99a   : > { %9797 = vmatpush2.bf16.msra.mxu0 %v18430_v32  ;;  %v8847_v32 = vmul.f32 %v21051_v4, %v21051_v4 }
 0x99b   : > { %9880 = vmatpush2.bf16.msra.mxu1 %v18431_v23  ;;  %9798 = vmatprep.subr.bf16.mxu0 %v18432_v1  ;;  %v21080_v23 = vld [vmem:[#allocation2 + $0x130] sm:$0xff] }
 0x99c   : > { %9881 = vmatprep.subr.bf16.mxu1 %v18434_v2  ;;  %v18460_v1 = vld [vmem:[%s19469_s9 + $0x120] ss:$16 sps:$4 sm:$0xff]  }
 0x99d   : > { %v18461_v2 = vld [vmem:[%s19469_s9 + $0x320] ss:$16 sps:$4 sm:$0xff]  }
 0x99e   : > { %9799 = vmatpush2.bf16.msra.mxu0 %v18436_v17  ;;  %v8876_v17 = vmul.f32 %v21054_v58, %v21054_v58 }
 0x99f   : > { %9882 = vmatpush2.bf16.msra.mxu1 %v18437_v31  ;;  %9800 = vmatprep.subr.bf16.mxu0 %v18438_v39  ;;  %v8892_v31 = vadd.f32 %v8891_v51, %v8860_v13  ;;  %v8862_v39 = vmul.f32 %v21058_v46, %v21058_v46  ;;  %v8880_v13 = vadd.f32 %v8879_v0, %v8847_v32  ;;  %v21128_v51 = vld [vmem:[#allocation2 + $0x200] sm:$0xff]  ;;  %v18470_v0 = vld [vmem:[%s19469_s9 + $0xec] ss:$16 sps:$4 sm:$0xff]  }
 0x9a0   : > { %9883 = vmatprep.subr.bf16.mxu1 %v18440_v41  ;;  %v8908_v41 = vadd.f32 %v8907_v12, %v8854_v15  ;;  %v18467_v15 = vld [vmem:[%s19469_s9 + $0x300] ss:$16 sps:$4 sm:$0xff]  }
 0x9a1   : > { %v8893_v49 = vadd.f32 %v8892_v31, %v8864_v9 }
 0x9a2   : > { %9801 = vmatpush2.bf16.msra.mxu0 %v18442_v60  ;;  %v21090_v60 = vld [vmem:[#allocation2 + $0x150] sm:$0xff] }
 0x9a3   : > { %9884 = vmatpush2.bf16.msra.mxu1 %v18443_v35  ;;  %9802 = vmatprep.subr.bf16.mxu0 %v18444_v44  ;;  %v18462_v35 = vld [vmem:[%s19469_s9 + $0x104] ss:$16 sps:$4 sm:$0xff]   ;;  %v21096_v44 = vld [vmem:[#allocation2 + $0x218] sm:$0xff]  ;;  %v8894_v3 = vadd.f32 %v8893_v49, %v8868_v63 }
 0x9a4   : > { %9885 = vmatprep.subr.bf16.mxu1 %v18446_v30  ;;  %22480 = vst [vmem:[#allocation12_spill] sm:$0xff] %v21096_v44  ;;  %v21098_v30 = vld [vmem:[#allocation2 + $0x1a0] sm:$0xff]  ;;  %v8874_v9 = vmul.f32 %v21096_v44, %v21096_v44 }
 0x9a5   : > { %v8895_v31 = vadd.f32 %v8894_v3, %v8872_v19  ;;  %v21146_v19 = vld [vmem:[#allocation2 + $0x220] sm:$0xff]  ;;  %v21154_v3 = vld [vmem:[#allocation2 + $0x1f0] sm:$0xff] }
 0x9a6   : > { %9803 = vmatpush2.bf16.msra.mxu0 %v18448_v8  ;;  %v8851_v8 = vmul.f32 %v21067_v26, %v21067_v26 }
 0x9a7   : > { %9886 = vmatpush2.bf16.msra.mxu1 %v18449_v14  ;;  %9804 = vmatprep.subr.bf16.mxu0 %v18450_v48  ;;  %v8845_v14 = vmul.f32 %v21080_v23, %v21080_v23  ;;  %v8909_v48 = vadd.f32 %v8908_v41, %v8858_v62  ;;  %v8859_v62 = vmul.f32 %v21098_v30, %v21098_v30 }
 0x9a8   : > { %9887 = vmatprep.subr.bf16.mxu1 %v18452_v29  ;;  %v21108_v29 = vld [vmem:[#allocation2 + $0x170] sm:$0xff]  ;;  %v8881_v12 = vadd.f32 %v8880_v13, %v8851_v8  ;;  %v8863_v41 = vmul.f32 %v21112_v53, %v21112_v53  ;;  %v18473_v13 = vld [vmem:[%s19469_s9 + $0x2ec] ss:$16 sps:$4 sm:$0xff]   ;;  %v8896_v44 = vadd.f32 %v8895_v31, %v8876_v17 }
 0x9a9   : > { %v8910_v10 = vadd.f32 %v8909_v48, %v8862_v39  ;;  %v8853_v63 = vmul.f32 %v21108_v29, %v21108_v29  ;;  %v8897_v32 = vadd.f32 %v8845_v14, %v8841_v47  ;;  %v8878_v47 = vmul.f32 %v21110_v24, %v21110_v24  ;;  %v21158_v31 = vld [vmem:[#allocation2 + $0x210] sm:$0xff] }
 0x9aa   : > { %9805 = vmatpush2.bf16.msra.mxu0 %v18454_v56  ;;  %v8849_v56 = vmul.f32 %v21090_v60, %v21090_v60  ;;  %v8882_v49 = vadd.f32 %v8881_v12, %v8855_v21  ;;  %v8867_v14 = vmul.f32 %v21124_v54, %v21124_v54  ;;  %v8917_v21 = vmul.f32 0.1, %v8896_v44 }
 0x9ab   : > { %9888 = vmatpush2.bf16.msra.mxu1 %v18455_v27  ;;  %9806 = vmatprep.subr.bf16.mxu0 %v18456_v50  ;;  %v8870_v27 = vmul.f32 %v21094_v42, %v21094_v42  ;;  %v21126_v50 = vld [vmem:[#allocation2 + $0x190] sm:$0xff]  ;;  %v8911_v39 = vadd.f32 %v8910_v10, %v8866_v34  ;;  %v8875_v44 = vmul.f32 %v21146_v19, %v21146_v19 }
 0x9ac   : > { %9889 = vmatprep.subr.bf16.mxu1 %v18458_v7  ;;  %v21132_v7 = vld [vmem:[#allocation2 + $0x1b0] sm:$0xff]  ;;  %v8857_v8 = vmul.f32 %v21126_v50, %v21126_v50  ;;  %v8898_v48 = vadd.f32 %v8897_v32, %v8849_v56  ;;  %v8871_v56 = vmul.f32 %v21128_v51, %v21128_v51 }
 0x9ae   : > { %9807 = vmatpush2.bf16.msra.mxu0 %v18460_v1  ;;  %v8912_v1 = vadd.f32 %v8911_v39, %v8870_v27  ;;  %v8899_v34 = vadd.f32 %v8898_v48, %v8853_v63  ;;  %v21164_v39 = vld [vmem:[#allocation2 + $0x230] sm:$0xff] }
 0x9af   : > { %9890 = vmatpush2.bf16.msra.mxu1 %v18461_v2  ;;  %9808 = vmatprep.subr.bf16.mxu0 %v18462_v35  ;;  %v21144_v2 = vld [vmem:[#allocation2 + $0x1d0] sm:$0xff]  ;;  %v8883_v35 = vadd.f32 %v8882_v49, %v8859_v62  ;;  %v8921_v62 = vadd.f32 1e-08, %v8917_v21 }
 0x9b0   : > { %9891 = vmatprep.subr.bf16.mxu1 %v18464_v40  ;;  %v8861_v40 = vmul.f32 %v21132_v7, %v21132_v7  ;;  %v8913_v17 = vadd.f32 %v8912_v1, %v8874_v9  ;;  %v8865_v10 = vmul.f32 %v21144_v2, %v21144_v2  ;;  %v8900_v12 = vadd.f32 %v8899_v34, %v8857_v8 }
 0x9b1   : > { %v8884_v27 = vadd.f32 %v8883_v35, %v8863_v41  ;;  %19140 = vrsqrt.f32 %v8921_v62 }
 0x9b2   : > { %9809 = vmatpush2.bf16.msra.mxu0 %v18466_v25  ;;  %v8914_v32 = vadd.f32 %v8913_v17, %v8878_v47  ;;  %v8901_v9 = vadd.f32 %v8900_v12, %v8861_v40 }
 0x9b3   : > { %9892 = vmatpush2.bf16.msra.mxu1 %v18467_v15  ;;  %9944 = vmatprep.subr.bf16.mxu0 %v18470_v0  ;;  %v8885_v25 = vadd.f32 %v8884_v27, %v8867_v14  ;;  %v8869_v15 = vmul.f32 %v21154_v3, %v21154_v3  ;;  %v8873_v0 = vmul.f32 %v21158_v31, %v21158_v31 }
 0x9b4   : > { %10027 = vmatprep.subr.bf16.mxu1 %v18473_v13  ;;  %v8919_v63 = vmul.f32 0.1, %v8914_v32  ;;  %v8902_v49 = vadd.f32 %v8901_v9, %v8865_v10  ;;  %v8877_v13 = vmul.f32 %v21164_v39, %v21164_v39 }
 0x9b5   : > { %v8886_v41 = vadd.f32 %v8885_v25, %v8871_v56 }
 0x9b6   : > { %v8923_v8 = vadd.f32 1e-08, %v8919_v63  ;;  %v8903_v47 = vadd.f32 %v8902_v49, %v8869_v15 }
 0x9b7   : > { %v8887_v48 = vadd.f32 %v8886_v41, %v8875_v44 }
 0x9b8   : > { %19142 = vrsqrt.f32 %v8923_v8  ;;  %v8904_v14 = vadd.f32 %v8903_v47, %v8873_v0 }
 0x9b9   : > { %v8916_v1 = vmul.f32 0.1, %v8887_v48  ;;  %v18471_v48 = vld [vmem:[%s19469_s9 + $0x2e8] ss:$16 sps:$4 sm:$0xff]  }
 0x9ba   : > { %v8905_v40 = vadd.f32 %v8904_v14, %v8877_v13 }
 0x9bb   : > { %v8920_v35 = vadd.f32 1e-08, %v8916_v1 }
 0x9bc   : > { %v8918_v34 = vmul.f32 0.1, %v8905_v40  ;;  %v18480_v40 = vld [vmem:[%s19469_s9 + $0xa8] ss:$16 sps:$4 sm:$0xff]  }
 0x9bd   : > { %19144 = vrsqrt.f32 %v8920_v35  ;;  %v18477_v35 = vld [vmem:[%s19469_s9 + $0x2c8] ss:$16 sps:$4 sm:$0xff]  }
 0x9be   : > { %v8922_v21 = vadd.f32 1e-08, %v8918_v34  ;;  %v21170_v17 = vpop.eup %19140 }
 0x9bf   : > { %v8929_v56 = vmul.f32 %v21170_v17, %v20990_v28  ;;  %v8933_v27 = vmul.f32 %v21170_v17, %v20992_v33  ;;  %v8937_v28 = vmul.f32 %v21170_v17, %v20994_v36  ;;  %v8941_v33 = vmul.f32 %v21170_v17, %v20996_v37  ;;  %v18476_v36 = vld [vmem:[%s19469_s9 + $0xcc] ss:$16 sps:$4 sm:$0xff]  }
 0x9c0   : > { %19146 = vrsqrt.f32 %v8922_v21 }
 0x9c1   : > { %v21176_v10 = vpack.c.bf16 %v8933_v27, %v8929_v56  ;;  %v21199_v9 = vpack.c.bf16 %v8941_v33, %v8937_v28 }
 0x9c3   : > { %9810 = vmatprep.mubr.bf16.mxu0 %v21176_v10 }
 0x9c5   : > { %v21178_v12 = vpop.eup %19142 }
 0x9c6   : > { %v8931_v62 = vmul.f32 %v21178_v12, %v21013_v52  ;;  %v8935_v32 = vmul.f32 %v21178_v12, %v21015_v11  ;;  %v18468_v11 = vld [vmem:[%s19469_s9 + $0xe8] ss:$16 sps:$4 sm:$0xff]   ;;  %v8939_v41 = vmul.f32 %v21178_v12, %v21017_v18 }
 0x9c7   : > { %v18474_v18 = vld [vmem:[%s19469_s9 + $0xc8] ss:$16 sps:$4 sm:$0xff]  }
 0x9c8   : > { %v21185_v44 = vpack.c.bf16 %v8935_v32, %v8931_v62  ;;  %v18483_v62 = vld [vmem:[%s19469_s9 + $0x2a8] ss:$16 sps:$4 sm:$0xff]  }
 0x9c9   : > { %v18486_v32 = vld [vmem:[%s19469_s9 + $0x88] ss:$16 sps:$4 sm:$0xff]  }
 0x9ca   : > { %v21191_v25 = vpop.eup %19144  ;;  %9893 = vmatprep.mubr.bf16.mxu1 %v21185_v44 }
 0x9cb   : > { %v8928_v15 = vmul.f32 %v21191_v25, %v21038_v16  ;;  %v8932_v52 = vmul.f32 %v21191_v25, %v21040_v55  ;;  %v8943_v16 = vmul.f32 %v21178_v12, %v21022_v59  ;;  %v8936_v49 = vmul.f32 %v21191_v25, %v21051_v4 }
 0x9cc   : > { %v8940_v8 = vmul.f32 %v21191_v25, %v21067_v26  ;;  %v8945_v4 = vmul.f32 %v21170_v17, %v21008_v43  ;;  %v8949_v26 = vmul.f32 %v21170_v17, %v21020_v45  ;;  %v18485_v43 = vld [vmem:[%s19469_s9 + $0x2ac] ss:$16 sps:$4 sm:$0xff]   ;;  %v8944_v56 = vmul.f32 %v21191_v25, %v21088_v38 }
 0x9cd   : > { %v21201_v63 = vpack.c.bf16 %v8932_v52, %v8928_v15  ;;  %v21204_v37 = vpop.eup %19146  ;;  %v21226_v13 = vpack.c.bf16 %v8943_v16, %v8939_v41  ;;  %v18488_v45 = vld [vmem:[%s19469_s9 + $0x8c] ss:$16 sps:$4 sm:$0xff]   ;;  %v8948_v27 = vmul.f32 %v21191_v25, %v21098_v30  ;;  %v8953_v38 = vmul.f32 %v21170_v17, %v21030_v6 }
 0x9ce   : > { %v8930_v55 = vmul.f32 %v21204_v37, %v21069_v20  ;;  %v8934_v0 = vmul.f32 %v21204_v37, %v21080_v23  ;;  %v18479_v20 = vld [vmem:[%s19469_s9 + $0x2cc] ss:$16 sps:$4 sm:$0xff]   ;;  %v21233_v47 = vpack.c.bf16 %v8940_v8, %v8936_v49  ;;  %v8938_v1 = vmul.f32 %v21204_v37, %v21090_v60  ;;  %v18495_v49 = vld [vmem:[%s19469_s9 + $0x268] ss:$16 sps:$4 sm:$0xff]  }
 0x9cf   : > { %9811 = vmatmul.mubr.bf16.vlgmr.msra.gmra.mxu0 %v21201_v63  ;;  %v18482_v23 = vld [vmem:[%s19469_s9 + $0xac] ss:$16 sps:$4 sm:$0xff]   ;;  %v8942_v14 = vmul.f32 %v21204_v37, %v21108_v29  ;;  %v21244_v34 = vpack.c.bf16 %v8949_v26, %v8945_v4  ;;  %v8947_v60 = vmul.f32 %v21178_v12, %v21036_v22  ;;  %v8951_v29 = vmul.f32 %v21178_v12, %v21058_v46  ;;  %v18498_v8 = vld [vmem:[%s19469_s9 + $0x48] ss:$16 sps:$4 sm:$0xff]  }
 0x9d0   : > { %9945 = vmatpush1.bf16.msra.mxu0 %v18468_v11  ;;  %9820 = vmatprep.mubr.bf16.mxu0 %v21199_v9  ;;  %v21222_v59 = vpack.c.bf16 %v8934_v0, %v8930_v55  ;;  %v18491_v22 = vld [vmem:[%s19469_s9 + $0x28c] ss:$16 sps:$4 sm:$0xff]   ;;  %v8957_v30 = vmul.f32 %v21170_v17, %v21043_v5  ;;  %v21269_v33 = vpack.c.bf16 %v8948_v27, %v8944_v56  ;;  %v18489_v11 = vld [vmem:[%s19469_s9 + $0x288] ss:$16 sps:$4 sm:$0xff]  }
 0x9d1   : > { %9946 = vmatprep.subr.bf16.mxu0 %v18476_v36  ;;  %v21251_v21 = vpack.c.bf16 %v8942_v14, %v8938_v1  ;;  %v18494_v46 = vld [vmem:[%s19469_s9 + $0x6c] ss:$16 sps:$4 sm:$0xff]   ;;  %v21262_v28 = vpack.c.bf16 %v8951_v29, %v8947_v60  ;;  %v8946_v15 = vmul.f32 %v21204_v37, %v21126_v50  ;;  %v8950_v52 = vmul.f32 %v21204_v37, %v21132_v7  ;;  %v18492_v36 = vld [vmem:[%s19469_s9 + $0x68] ss:$16 sps:$4 sm:$0xff]  }
 0x9d2   : > { %9894 = vmatmul.mubr.bf16.vlgmr.msra.gmra.mxu1 %v21222_v59  ;;  %v18497_v6 = vld [vmem:[%s19469_s9 + $0x26c] ss:$16 sps:$4 sm:$0xff]   ;;  %v21280_v41 = vpack.c.bf16 %v8957_v30, %v8953_v38  ;;  %v8955_v50 = vmul.f32 %v21178_v12, %v21076_v61  ;;  %v8959_v7 = vmul.f32 %v21178_v12, %v21094_v42  ;;  %v8952_v55 = vmul.f32 %v21191_v25, %v21112_v53  ;;  %v18528_v38 = vld [vmem:[%s19469_s9 + $0x1a8] ss:$16 sps:$4 sm:$0xff]  }
 0x9d3   : > { %10028 = vmatpush1.bf16.msra.mxu1 %v18471_v48  ;;  %9903 = vmatprep.mubr.bf16.mxu1 %v21226_v13  ;;  %v18500_v5 = vld [vmem:[%s19469_s9 + $0x4c] ss:$16 sps:$4 sm:$0xff]   ;;  %v21287_v16 = vpack.c.bf16 %v8950_v52, %v8946_v15  ;;  %v8956_v0 = vmul.f32 %v21191_v25, %v21124_v54  ;;  %v18501_v48 = vld [vmem:[%s19469_s9 + $0x248] ss:$16 sps:$4 sm:$0xff]   ;;  %v8961_v54 = vmul.f32 %v21170_v17, %v21045_v57 }
 0x9d4   : > { %9947 = vmatpush1.bf16.msra.mxu0 %v18474_v18  ;;  %10029 = vmatprep.subr.bf16.mxu1 %v18479_v20  ;;  %v18503_v61 = vld [vmem:[%s19469_s9 + $0x24c] ss:$16 sps:$4 sm:$0xff]   ;;  %v18504_v18 = vld [vmem:[%s19469_s9 + $0x28] ss:$16 sps:$4 sm:$0xff]   ;;  %v21300_v53 = vpack.c.bf16 %v8959_v7, %v8955_v50  ;;  %v8965_v20 = vmul.f32 %v21170_v17, %v21054_v58  ;;  %v8954_v26 = vmul.f32 %v21204_v37, %v21144_v2 }
 0x9d5   : > { %9948 = vmatprep.subr.bf16.mxu0 %v18482_v23  ;;  %v18506_v42 = vld [vmem:[%s19469_s9 + $0x2c] ss:$16 sps:$4 sm:$0xff]   ;;  %v21307_v23 = vpack.c.bf16 %v8956_v0, %v8952_v55  ;;  %v8958_v1 = vmul.f32 %v21204_v37, %v21154_v3  ;;  %v18507_v57 = vld [vmem:[%s19469_s9 + $0x228] ss:$16 sps:$4 sm:$0xff]   ;;  %v8967_v3 = vmul.f32 %v21178_v12, %v21110_v24  ;;  %v8964_v60 = vmul.f32 %v21191_v25, %v21146_v19 }
 0x9d6   : > { %v18509_v4 = vld [vmem:[%s19469_s9 + $0x22c] ss:$16 sps:$4 sm:$0xff]   ;;  %v18510_v58 = vld [vmem:[%s19469_s9 + $0x8] ss:$16 sps:$4 sm:$0xff]   ;;  %v21318_v17 = vpack.c.bf16 %v8965_v20, %v8961_v54  ;;  %v8966_v27 = vmul.f32 %v21204_v37, %v21164_v39 }
 0x9d7   : > { %9821 = vmatmul.mubr.bf16.gmra.mxu0 %v21233_v47  ;;  %10030 = vmatpush1.bf16.msra.mxu1 %v18477_v35  ;;  %v18512_v14 = vld [vmem:[%s19469_s9 + $0xc] ss:$16 sps:$4 sm:$0xff]   ;;  %v22481_v35 = vld [vmem:[#allocation12_spill] sm:$0xff]  ;;  %v18513_v24 = vld [vmem:[%s19469_s9 + $0x208] ss:$16 sps:$4 sm:$0xff]  }
 0x9d8   : > { %9949 = vmatpush1.bf16.msra.mxu0 %v18480_v40  ;;  %10031 = vmatprep.subr.bf16.mxu1 %v18485_v43  ;;  %v8963_v2 = vmul.f32 %v21178_v12, %v22481_v35  ;;  %v21325_v40 = vpack.c.bf16 %v8958_v1, %v8954_v26  ;;  %v18515_v43 = vld [vmem:[%s19469_s9 + $0x20c] ss:$16 sps:$4 sm:$0xff]   ;;  %v18516_v12 = vld [vmem:[%s19469_s9 + $0x1e8] ss:$16 sps:$4 sm:$0xff]   ;;  %v18564_v1 = vld [vmem:[%s19469_s9 + $0x4e0] ss:$16 sps:$4 sm:$0xff]  }
 0x9d9   : > { %9950 = vmatprep.subr.bf16.mxu0 %v18488_v45  ;;  %9830 = vmatprep.mubr.bf16.mxu0 %v21244_v34  ;;  %v8960_v45 = vmul.f32 %v21191_v25, %v21128_v51  ;;  %v18518_v29 = vld [vmem:[%s19469_s9 + $0x1ec] ss:$16 sps:$4 sm:$0xff]   ;;  %v8962_v25 = vmul.f32 %v21204_v37, %v21158_v31  ;;  %v18525_v37 = vld [vmem:[%s19469_s9 + $0x3c8] ss:$16 sps:$4 sm:$0xff]   ;;  %v18570_v35 = vld [vmem:[%s19469_s9 + $0x4a0] ss:$16 sps:$4 sm:$0xff]  }
 0x9da   : > { %9904 = vmatmul.mubr.bf16.gmra.mxu1 %v21251_v21  ;;  %v21336_v56 = vpack.c.bf16 %v8967_v3, %v8963_v2  ;;  %v18521_v19 = vld [vmem:[%s19469_s9 + $0x3ec] ss:$16 sps:$4 sm:$0xff]   ;;  %v18531_v52 = vld [vmem:[%s19469_s9 + $0x3a8] ss:$16 sps:$4 sm:$0xff]   ;;  %v18575_v2 = vld [vmem:[%s19469_s9 + $0x484] ss:$16 sps:$4 sm:$0xff]  }
 0x9db   : > { %10032 = vmatpush1.bf16.msra.mxu1 %v18483_v62  ;;  %9913 = vmatprep.mubr.bf16.mxu1 %v21262_v28  ;;  %v21339_v51 = vpack.c.bf16 %v8964_v60, %v8960_v45  ;;  %v18524_v62 = vld [vmem:[%s19469_s9 + $0x1cc] ss:$16 sps:$4 sm:$0xff]   ;;  %v18546_v55 = vld [vmem:[%s19469_s9 + $0x148] ss:$16 sps:$4 sm:$0xff]   ;;  %v18614_v3 = vld [vmem:[%s19469_s9 + $0x6e4] ss:$16 sps:$4 sm:$0xff]  }
 0x9dc   : > { %9951 = vmatpush1.bf16.msra.mxu0 %v18486_v32  ;;  %10033 = vmatprep.subr.bf16.mxu1 %v18491_v22  ;;  %v18519_v32 = vld [vmem:[%s19469_s9 + $0x3e8] ss:$16 sps:$4 sm:$0xff]   ;;  %v18527_v31 = vld [vmem:[%s19469_s9 + $0x3cc] ss:$16 sps:$4 sm:$0xff]   ;;  %v18618_v45 = vld [vmem:[%s19469_s9 + $0x6c0] ss:$16 sps:$4 sm:$0xff]  }
 0x9dd   : > { %9952 = vmatprep.subr.bf16.mxu0 %v18494_v46  ;;  %v18522_v22 = vld [vmem:[%s19469_s9 + $0x1c8] ss:$16 sps:$4 sm:$0xff]   ;;  %v21351_v46 = vpack.c.bf16 %v8966_v27, %v8962_v25  ;;  %v18530_v39 = vld [vmem:[%s19469_s9 + $0x1ac] ss:$16 sps:$4 sm:$0xff]   ;;  %v18588_v60 = vld [vmem:[%s19469_s9 + $0x5e0] ss:$16 sps:$4 sm:$0xff]  }
 0x9de   : > { %v18533_v30 = vld [vmem:[%s19469_s9 + $0x3ac] ss:$16 sps:$4 sm:$0xff]   ;;  %v18558_v54 = vld [vmem:[%s19469_s9 + $0x108] ss:$16 sps:$4 sm:$0xff]   ;;  %v18636_v25 = vld [vmem:[%s19469_s9 + $0x660] ss:$16 sps:$4 sm:$0xff]  }
 0x9df   : > { %9831 = vmatmul.mubr.bf16.gmra.mxu0 %v21269_v33  ;;  %10034 = vmatpush1.bf16.msra.mxu1 %v18489_v11  ;;  %v18536_v15 = vld [vmem:[%s19469_s9 + $0x18c] ss:$16 sps:$4 sm:$0xff]   ;;  %v18534_v11 = vld [vmem:[%s19469_s9 + $0x188] ss:$16 sps:$4 sm:$0xff]   ;;  %v18644_v27 = vld [vmem:[%s19469_s9 + $0x644] ss:$16 sps:$4 sm:$0xff]  }
 0x9e0   : > { %9953 = vmatpush1.bf16.msra.mxu0 %v18492_v36  ;;  %10035 = vmatprep.subr.bf16.mxu1 %v18497_v6  ;;  %v18539_v36 = vld [vmem:[%s19469_s9 + $0x38c] ss:$16 sps:$4 sm:$0xff]   ;;  %v18537_v6 = vld [vmem:[%s19469_s9 + $0x388] ss:$16 sps:$4 sm:$0xff]  }
 0x9e1   : > { %9954 = vmatprep.subr.bf16.mxu0 %v18500_v5  ;;  %9840 = vmatprep.mubr.bf16.mxu0 %v21280_v41  ;;  %v18540_v5 = vld [vmem:[%s19469_s9 + $0x168] ss:$16 sps:$4 sm:$0xff]   ;;  %v18545_v50 = vld [vmem:[%s19469_s9 + $0x36c] ss:$16 sps:$4 sm:$0xff]  }
 0x9e2   : > { %9914 = vmatmul.mubr.bf16.gmra.mxu1 %v21287_v16  ;;  %v18548_v7 = vld [vmem:[%s19469_s9 + $0x14c] ss:$16 sps:$4 sm:$0xff]   ;;  %v18561_v26 = vld [vmem:[%s19469_s9 + $0x308] ss:$16 sps:$4 sm:$0xff]  }
 0x9e3   : > { %10036 = vmatpush1.bf16.msra.mxu1 %v18495_v49  ;;  %9923 = vmatprep.mubr.bf16.mxu1 %v21300_v53  ;;  %v18551_v0 = vld [vmem:[%s19469_s9 + $0x34c] ss:$16 sps:$4 sm:$0xff]  }
 0x9e4   : > { %9955 = vmatpush1.bf16.msra.mxu0 %v18498_v8  ;;  %10037 = vmatprep.subr.bf16.mxu1 %v18503_v61  ;;  %v18554_v49 = vld [vmem:[%s19469_s9 + $0x12c] ss:$16 sps:$4 sm:$0xff]   ;;  %v18549_v8 = vld [vmem:[%s19469_s9 + $0x348] ss:$16 sps:$4 sm:$0xff]  }
 0x9e5   : > { %9956 = vmatprep.subr.bf16.mxu0 %v18506_v42  ;;  %v18552_v61 = vld [vmem:[%s19469_s9 + $0x128] ss:$16 sps:$4 sm:$0xff]   ;;  %v18557_v42 = vld [vmem:[%s19469_s9 + $0x32c] ss:$16 sps:$4 sm:$0xff]  }
 0x9e6   : > { %v18563_v20 = vld [vmem:[%s19469_s9 + $0x30c] ss:$16 sps:$4 sm:$0xff]  }
 0x9e7   : > { %9841 = vmatmul.mubr.bf16.gmra.mxu0 %v21307_v23  ;;  %10038 = vmatpush1.bf16.msra.mxu1 %v18501_v48  ;;  %v18560_v48 = vld [vmem:[%s19469_s9 + $0x10c] ss:$16 sps:$4 sm:$0xff]  }
 0x9e8   : > { %9957 = vmatpush1.bf16.msra.mxu0 %v18504_v18  ;;  %10039 = vmatprep.subr.bf16.mxu1 %v18509_v4  ;;  %v18555_v18 = vld [vmem:[%s19469_s9 + $0x328] ss:$16 sps:$4 sm:$0xff]   ;;  %v18566_v4 = vld [vmem:[%s19469_s9 + $0x4e4] ss:$16 sps:$4 sm:$0xff]  }
 0x9e9   : > { %9958 = vmatprep.subr.bf16.mxu0 %v18512_v14  ;;  %9850 = vmatprep.mubr.bf16.mxu0 %v21318_v17  ;;  %v18569_v14 = vld [vmem:[%s19469_s9 + $0x4c4] ss:$16 sps:$4 sm:$0xff]  }
 0x9ea   : > { %9924 = vmatmul.mubr.bf16.gmra.mxu1 %v21325_v40 }
 0x9eb   : > { %10040 = vmatpush1.bf16.msra.mxu1 %v18507_v57  ;;  %9933 = vmatprep.mubr.bf16.mxu1 %v21336_v56  ;;  %v18567_v57 = vld [vmem:[%s19469_s9 + $0x4c0] ss:$16 sps:$4 sm:$0xff]  }
 0x9ec   : > { %9959 = vmatpush1.bf16.msra.mxu0 %v18510_v58  ;;  %10041 = vmatprep.subr.bf16.mxu1 %v18515_v43  ;;  %v18572_v58 = vld [vmem:[%s19469_s9 + $0x4a4] ss:$16 sps:$4 sm:$0xff]   ;;  %v18585_v43 = vld [vmem:[%s19469_s9 + $0x400] ss:$16 sps:$4 sm:$0xff]  }
 0x9ed   : > { %9960 = vmatprep.subr.bf16.mxu0 %v18518_v29  ;;  %v18624_v29 = vld [vmem:[%s19469_s9 + $0x6a0] ss:$16 sps:$4 sm:$0xff]  }
 0x9ef   : > { %9851 = vmatmul.mubr.bf16.gmra.mxu0 %v21339_v51  ;;  %10042 = vmatpush1.bf16.msra.mxu1 %v18513_v24  ;;  %v18591_v24 = vld [vmem:[%s19469_s9 + $0x5c0] ss:$16 sps:$4 sm:$0xff]  }
 0x9f0   : > { %9961 = vmatpush2.bf16.msra.mxu0 %v18516_v12  ;;  %10043 = vmatprep.subr.bf16.mxu1 %v18521_v19  ;;  %v18596_v12 = vld [vmem:[%s19469_s9 + $0x5a4] ss:$16 sps:$4 sm:$0xff]   ;;  %v18594_v19 = vld [vmem:[%s19469_s9 + $0x5a0] ss:$16 sps:$4 sm:$0xff]  }
 0x9f1   : > { %9962 = vmatprep.subr.bf16.mxu0 %v18524_v62  ;;  %9976 = vmatprep.mubr.bf16.mxu0 %v21176_v10  ;;  %v18542_v10 = vld [vmem:[%s19469_s9 + $0x16c] ss:$16 sps:$4 sm:$0xff]   ;;  %v18597_v62 = vld [vmem:[%s19469_s9 + $0x580] ss:$16 sps:$4 sm:$0xff]  }
 0x9f2   : > { %9934 = vmatmul.mubr.bf16.gmra.mxu1 %v21351_v46 }
 0x9f3   : > { %10044 = vmatpush2.bf16.msra.mxu1 %v18519_v32  ;;  %10059 = vmatprep.mubr.bf16.mxu1 %v21185_v44  ;;  %v18543_v44 = vld [vmem:[%s19469_s9 + $0x368] ss:$16 sps:$4 sm:$0xff]   ;;  %v18642_v32 = vld [vmem:[%s19469_s9 + $0x640] ss:$16 sps:$4 sm:$0xff]  }
 0x9f4   : > { %9963 = vmatpush2.bf16.msra.mxu0 %v18522_v22  ;;  %10045 = vmatprep.subr.bf16.mxu1 %v18527_v31  ;;  %v18602_v22 = vld [vmem:[%s19469_s9 + $0x564] ss:$16 sps:$4 sm:$0xff]   ;;  %v18600_v31 = vld [vmem:[%s19469_s9 + $0x560] ss:$16 sps:$4 sm:$0xff]  }
 0x9f5   : > { %9964 = vmatprep.subr.bf16.mxu0 %v18530_v39  ;;  %v18648_v39 = vld [vmem:[%s19469_s9 + $0x620] ss:$16 sps:$4 sm:$0xff]  }
 0x9f7   : > { %10046 = vmatpush2.bf16.msra.mxu1 %v18525_v37  ;;  %v18605_v37 = vld [vmem:[%s19469_s9 + $0x544] ss:$16 sps:$4 sm:$0xff]  }
 0x9f8   : > { %9965 = vmatpush2.bf16.msra.mxu0 %v18528_v38  ;;  %10047 = vmatprep.subr.bf16.mxu1 %v18533_v30  ;;  %v18654_v38 = vld [vmem:[%s19469_s9 + $0x600] ss:$16 sps:$4 sm:$0xff]   ;;  %v18656_v30 = vld [vmem:[%s19469_s9 + $0x604] ss:$16 sps:$4 sm:$0xff]  }
 0x9f9   : > { %9966 = vmatprep.subr.bf16.mxu0 %v18536_v15  ;;  %v18603_v15 = vld [vmem:[%s19469_s9 + $0x540] ss:$16 sps:$4 sm:$0xff]  }
 0x9fb   : > { %10048 = vmatpush2.bf16.msra.mxu1 %v18531_v52  ;;  %v18608_v52 = vld [vmem:[%s19469_s9 + $0x524] ss:$16 sps:$4 sm:$0xff]  }
 0x9fc   : > { %9967 = vmatpush2.bf16.msra.mxu0 %v18534_v11  ;;  %10049 = vmatprep.subr.bf16.mxu1 %v18539_v36  ;;  %v18660_v11 = vld [vmem:[%s19469_s9 + $0x7e0] ss:$16 sps:$4 sm:$0xff]   ;;  %v18662_v36 = vld [vmem:[%s19469_s9 + $0x7e4] ss:$16 sps:$4 sm:$0xff]  }
 0x9fd   : > { %9968 = vmatprep.subr.bf16.mxu0 %v18542_v10  ;;  %v18606_v10 = vld [vmem:[%s19469_s9 + $0x520] ss:$16 sps:$4 sm:$0xff]  }
 0x9ff   : > { %10050 = vmatpush2.bf16.msra.mxu1 %v18537_v6  ;;  %v18666_v6 = vld [vmem:[%s19469_s9 + $0x7c0] ss:$16 sps:$4 sm:$0xff]  }
 0xa00   : > { %9969 = vmatpush2.bf16.msra.mxu0 %v18540_v5  ;;  %10051 = vmatprep.subr.bf16.mxu1 %v18545_v50  ;;  %v18668_v5 = vld [vmem:[%s19469_s9 + $0x7c4] ss:$16 sps:$4 sm:$0xff]  }
 0xa01   : > { %9970 = vmatprep.subr.bf16.mxu0 %v18548_v7  ;;  %v18611_v50 = vld [vmem:[%s19469_s9 + $0x504] ss:$16 sps:$4 sm:$0xff]   ;;  %v18609_v7 = vld [vmem:[%s19469_s9 + $0x500] ss:$16 sps:$4 sm:$0xff]  }
 0xa03   : > { %10052 = vmatpush2.bf16.msra.mxu1 %v18543_v44  ;;  %v18672_v44 = vld [vmem:[%s19469_s9 + $0x7a0] ss:$16 sps:$4 sm:$0xff]  }
 0xa04   : > { %9971 = vmatpush2.bf16.msra.mxu0 %v18546_v55  ;;  %10053 = vmatprep.subr.bf16.mxu1 %v18551_v0  ;;  %v18674_v55 = vld [vmem:[%s19469_s9 + $0x7a4] ss:$16 sps:$4 sm:$0xff]   ;;  %v18617_v0 = vld [vmem:[%s19469_s9 + $0x4ec] ss:$16 sps:$4 sm:$0xff]  }
 0xa05   : > { %9972 = vmatprep.subr.bf16.mxu0 %v18554_v49  ;;  %v18678_v49 = vld [vmem:[%s19469_s9 + $0x780] ss:$16 sps:$4 sm:$0xff]  }
 0xa07   : > { %10054 = vmatpush2.bf16.msra.mxu1 %v18549_v8  ;;  %v18680_v8 = vld [vmem:[%s19469_s9 + $0x784] ss:$16 sps:$4 sm:$0xff]  }
 0xa08   : > { %9973 = vmatpush2.bf16.msra.mxu0 %v18552_v61  ;;  %10055 = vmatprep.subr.bf16.mxu1 %v18557_v42  ;;  %v18686_v61 = vld [vmem:[%s19469_s9 + $0x764] ss:$16 sps:$4 sm:$0xff]   ;;  %v18684_v42 = vld [vmem:[%s19469_s9 + $0x760] ss:$16 sps:$4 sm:$0xff]  }
 0xa09   : > { %9974 = vmatprep.subr.bf16.mxu0 %v18560_v48  ;;  %v18692_v48 = vld [vmem:[%s19469_s9 + $0x744] ss:$16 sps:$4 sm:$0xff]  }
 0xa0b   : > { %10056 = vmatpush2.bf16.msra.mxu1 %v18555_v18  ;;  %v18690_v18 = vld [vmem:[%s19469_s9 + $0x740] ss:$16 sps:$4 sm:$0xff]  }
 0xa0c   : > { %9975 = vmatpush2.bf16.msra.mxu0 %v18558_v54  ;;  %10057 = vmatprep.subr.bf16.mxu1 %v18563_v20  ;;  %v18698_v54 = vld [vmem:[%s19469_s9 + $0x724] ss:$16 sps:$4 sm:$0xff]   ;;  %v18696_v20 = vld [vmem:[%s19469_s9 + $0x720] ss:$16 sps:$4 sm:$0xff]  }
 0xa0d   : > { %11002 = vmatprep.subr.bf16.mxu0 %v18566_v4  ;;  %v18704_v4 = vld [vmem:[%s19469_s9 + $0x704] ss:$16 sps:$4 sm:$0xff]  }
 0xa0f   : > { %9977 = vmatmul.mubr.bf16.vlgmr.msra.gmra.mxu0 %v21201_v63  ;;  %10058 = vmatpush2.bf16.msra.mxu1 %v18561_v26  ;;  %v18573_v63 = vld [vmem:[%s19469_s9 + $0x480] ss:$16 sps:$4 sm:$0xff]  }
 0xa10   : > { %9986 = vmatprep.mubr.bf16.mxu0 %v21199_v9  ;;  %11003 = vmatpush1.bf16.msra.mxu0 %v18564_v1  ;;  %v18578_v9 = vld [vmem:[%s19469_s9 + $0x464] ss:$16 sps:$4 sm:$0xff]   ;;  %v18702_v26 = vld [vmem:[%s19469_s9 + $0x700] ss:$16 sps:$4 sm:$0xff]   ;;  %v18710_v1 = vld [vmem:[%s19469_s9 + $0x6ec] ss:$16 sps:$4 sm:$0xff]  }
 0xa11   : > { %11004 = vmatprep.subr.bf16.mxu0 %v18569_v14  ;;  %11085 = vmatprep.subr.bf16.mxu1 %v18614_v3  ;;  %v9118_v14 = vlaneseq }
 0xa12   : > { %10060 = vmatmul.mubr.bf16.vlgmr.msra.gmra.mxu1 %v21222_v59  ;;  %v18576_v59 = vld [vmem:[%s19469_s9 + $0x460] ss:$16 sps:$4 sm:$0xff]  }
 0xa13   : > { %10069 = vmatprep.mubr.bf16.mxu1 %v21226_v13  ;;  %v18581_v13 = vld [vmem:[%s19469_s9 + $0x444] ss:$16 sps:$4 sm:$0xff]  }
 0xa14   : > { %11005 = vmatpush1.bf16.msra.mxu0 %v18567_v57  ;;  %v21466_v57 = vshrl.u32 %v9118_v14, 7 }
 0xa15   : > { %11006 = vmatprep.subr.bf16.mxu0 %v18572_v58 }
 0xa16   : > { %v21469_v58 = vsub.s32 1, %v21466_v57 }
 0xa17   : > { %9987 = vmatmul.mubr.bf16.gmra.mxu0 %v21233_v47  ;;  %v18579_v47 = vld [vmem:[%s19469_s9 + $0x440] ss:$16 sps:$4 sm:$0xff]  }
 0xa18   : > { %9996 = vmatprep.mubr.bf16.mxu0 %v21244_v34  ;;  %11007 = vmatpush1.bf16.msra.mxu0 %v18570_v35  ;;  %v18584_v34 = vld [vmem:[%s19469_s9 + $0x424] ss:$16 sps:$4 sm:$0xff]   ;;  %v21472_v35 = vsub.s32 0, %v21466_v57 }
 0xa19   : > { %11008 = vmatprep.subr.bf16.mxu0 %v18575_v2  ;;  %v21475_v2 = vld [vmem:[%s19475_s6] sm:$0xf] }
 0xa1a   : > { %10070 = vmatmul.mubr.bf16.gmra.mxu1 %v21251_v21  ;;  %v18582_v21 = vld [vmem:[%s19469_s9 + $0x420] ss:$16 sps:$4 sm:$0xff]  }
 0xa1b   : > { %10079 = vmatprep.mubr.bf16.mxu1 %v21262_v28  ;;  %v18612_v28 = vld [vmem:[%s19469_s9 + $0x6e0] ss:$16 sps:$4 sm:$0xff]  }
 0xa1c   : > { %11009 = vmatpush1.bf16.msra.mxu0 %v18573_v63  ;;  %11086 = vmatpush1.bf16.msra.mxu1 %v18612_v28 }
 0xa1d   : > { %11010 = vmatprep.subr.bf16.mxu0 %v18578_v9  ;;  %v21479_v9 = vrot.slane %v21475_v2, %v21469_v58 }
 0xa1f   : > { %9997 = vmatmul.mubr.bf16.gmra.mxu0 %v21269_v33  ;;  %v18587_v33 = vld [vmem:[%s19469_s9 + $0x404] ss:$16 sps:$4 sm:$0xff]  }
 0xa20   : > { %10006 = vmatprep.mubr.bf16.mxu0 %v21280_v41  ;;  %11011 = vmatpush1.bf16.msra.mxu0 %v18576_v59  ;;  %v18620_v41 = vld [vmem:[%s19469_s9 + $0x6c4] ss:$16 sps:$4 sm:$0xff]   ;;  %v21483_v59 = vrot.slane %v21475_v2, %v21472_v35 }
 0xa21   : > { %11012 = vmatprep.subr.bf16.mxu0 %v18581_v13  ;;  %11087 = vmatprep.subr.bf16.mxu1 %v18620_v41 }
 0xa22   : > { %10080 = vmatmul.mubr.bf16.gmra.mxu1 %v21287_v16  ;;  %v18590_v16 = vld [vmem:[%s19469_s9 + $0x5e4] ss:$16 sps:$4 sm:$0xff]  }
 0xa23   : > { %10089 = vmatprep.mubr.bf16.mxu1 %v21300_v53  ;;  %11088 = vmatpush1.bf16.msra.mxu1 %v18618_v45  ;;  %v18626_v53 = vld [vmem:[%s19469_s9 + $0x6a4] ss:$16 sps:$4 sm:$0xff]  }
 0xa24   : > { %11013 = vmatpush1.bf16.msra.mxu0 %v18579_v47  ;;  %11089 = vmatprep.subr.bf16.mxu1 %v18626_v53 }
 0xa25   : > { %11014 = vmatprep.subr.bf16.mxu0 %v18584_v34 }
 0xa27   : > { %10007 = vmatmul.mubr.bf16.gmra.mxu0 %v21307_v23  ;;  %11090 = vmatpush1.bf16.msra.mxu1 %v18624_v29  ;;  %v18593_v23 = vld [vmem:[%s19469_s9 + $0x5c4] ss:$16 sps:$4 sm:$0xff]  }
 0xa28   : > { %10016 = vmatprep.mubr.bf16.mxu0 %v21318_v17  ;;  %11015 = vmatpush1.bf16.msra.mxu0 %v18582_v21  ;;  %v18632_v17 = vld [vmem:[%s19469_s9 + $0x684] ss:$16 sps:$4 sm:$0xff]  }
 0xa29   : > { %11016 = vmatprep.subr.bf16.mxu0 %v18587_v33  ;;  %11091 = vmatprep.subr.bf16.mxu1 %v18632_v17 }
 0xa2a   : > { %10090 = vmatmul.mubr.bf16.gmra.mxu1 %v21325_v40  ;;  %v18630_v40 = vld [vmem:[%s19469_s9 + $0x680] ss:$16 sps:$4 sm:$0xff]  }
 0xa2b   : > { %10099 = vmatprep.mubr.bf16.mxu1 %v21336_v56  ;;  %11092 = vmatpush1.bf16.msra.mxu1 %v18630_v40  ;;  %v18638_v56 = vld [vmem:[%s19469_s9 + $0x664] ss:$16 sps:$4 sm:$0xff]  }
 0xa2c   : > { %11017 = vmatpush1.bf16.msra.mxu0 %v18585_v43  ;;  %11093 = vmatprep.subr.bf16.mxu1 %v18638_v56 }
 0xa2d   : > { %11018 = vmatprep.subr.bf16.mxu0 %v18590_v16 }
 0xa2f   : > { %10017 = vmatmul.mubr.bf16.gmra.mxu0 %v21339_v51  ;;  %11094 = vmatpush1.bf16.msra.mxu1 %v18636_v25  ;;  %v18599_v51 = vld [vmem:[%s19469_s9 + $0x584] ss:$16 sps:$4 sm:$0xff]  }
 0xa30   : > { %11019 = vmatpush2.bf16.msra.mxu0 %v18588_v60  ;;  %11095 = vmatprep.subr.bf16.mxu1 %v18644_v27 }
 0xa31   : > { %11020 = vmatprep.subr.bf16.mxu0 %v18593_v23 }
 0xa32   : > { %10100 = vmatmul.mubr.bf16.gmra.mxu1 %v21351_v46  ;;  %v18650_v46 = vld [vmem:[%s19469_s9 + $0x624] ss:$16 sps:$4 sm:$0xff]  }
 0xa33   : > { %11096 = vmatpush1.bf16.msra.mxu1 %v18642_v32 }
 0xa34   : > { %11021 = vmatpush2.bf16.msra.mxu0 %v18591_v24  ;;  %11097 = vmatprep.subr.bf16.mxu1 %v18650_v46 }
 0xa35   : > { %11022 = vmatprep.subr.bf16.mxu0 %v18596_v12 }
 0xa37   : > { %11098 = vmatpush1.bf16.msra.mxu1 %v18648_v39 }
 0xa38   : > { %11023 = vmatpush2.bf16.msra.mxu0 %v18594_v19  ;;  %11099 = vmatprep.subr.bf16.mxu1 %v18656_v30 }
 0xa39   : > { %11024 = vmatprep.subr.bf16.mxu0 %v18599_v51 }
 0xa3b   : > { %11100 = vmatpush1.bf16.msra.mxu1 %v18654_v38 }
 0xa3c   : > { %11025 = vmatpush2.bf16.msra.mxu0 %v18597_v62  ;;  %11101 = vmatprep.subr.bf16.mxu1 %v18662_v36 }
 0xa3d   : > { %11026 = vmatprep.subr.bf16.mxu0 %v18602_v22 }
 0xa3f   : > { %11102 = vmatpush2.bf16.msra.mxu1 %v18660_v11 }
 0xa40   : > { %11027 = vmatpush2.bf16.msra.mxu0 %v18600_v31  ;;  %11103 = vmatprep.subr.bf16.mxu1 %v18668_v5 }
 0xa41   : > { %11028 = vmatprep.subr.bf16.mxu0 %v18605_v37 }
 0xa43   : > { %11104 = vmatpush2.bf16.msra.mxu1 %v18666_v6 }
 0xa44   : > { %11029 = vmatpush2.bf16.msra.mxu0 %v18603_v15  ;;  %11105 = vmatprep.subr.bf16.mxu1 %v18674_v55  ;;  %v18615_v55 = vld [vmem:[%s19469_s9 + $0x4e8] ss:$16 sps:$4 sm:$0xff]  }
 0xa45   : > { %11030 = vmatprep.subr.bf16.mxu0 %v18608_v52 }
 0xa47   : > { %11106 = vmatpush2.bf16.msra.mxu1 %v18672_v44 }
 0xa48   : > { %11031 = vmatpush2.bf16.msra.mxu0 %v18606_v10  ;;  %11107 = vmatprep.subr.bf16.mxu1 %v18680_v8 }
 0xa49   : > { %11032 = vmatprep.subr.bf16.mxu0 %v18611_v50 }
 0xa4b   : > { %11108 = vmatpush2.bf16.msra.mxu1 %v18678_v49 }
 0xa4c   : > { %11033 = vmatpush2.bf16.msra.mxu0 %v18609_v7  ;;  %11109 = vmatprep.subr.bf16.mxu1 %v18686_v61 }
 0xa4d   : > { %11168 = vmatprep.subr.bf16.mxu0 %v18617_v0 }
 0xa4f   : > { %11110 = vmatpush2.bf16.msra.mxu1 %v18684_v42 }
 0xa50   : > { %11111 = vmatprep.subr.bf16.mxu1 %v18692_v48  ;;  %v18623_v48 = vld [vmem:[%s19469_s9 + $0x4cc] ss:$16 sps:$4 sm:$0xff]  }
 0xa53   : > { %11112 = vmatpush2.bf16.msra.mxu1 %v18690_v18 }
 0xa54   : > { %11113 = vmatprep.subr.bf16.mxu1 %v18698_v54 }
 0xa57   : > { %11114 = vmatpush2.bf16.msra.mxu1 %v18696_v20 }
 0xa58   : > { %11115 = vmatprep.subr.bf16.mxu1 %v18704_v4 }
 0xa5b   : > { %11116 = vmatpush2.bf16.msra.mxu1 %v18702_v26 }
 0xa5c   : > { %11251 = vmatprep.subr.bf16.mxu1 %v18710_v1 }
 0xa8f   : > { %v9812_v63 = vpop.f32.mrf.mxu0 }
 0xa90   : > { %v9813_v21 = vadd.f32 %v9812_v63, %v21483_v59 }
 0xa91   : > { %v9814_v13 = vpop.f32.mrf.mxu0 }
 0xa92   : > { %v9895_v47 = vpop.f32.mrf.mxu1  ;;  %v9815_v34 = vadd.f32 %v9814_v13, %v21479_v9 }
 0xa93   : > { %v9816_v3 = vpop.f32.mrf.mxu0  ;;  %v9896_v60 = vadd.f32 %v9895_v47, %v9813_v21  ;;  %v18621_v47 = vld [vmem:[%s19469_s9 + $0x4c8] ss:$16 sps:$4 sm:$0xff]  }
 0xa94   : > { %v9817_v28 = vadd.f32 %v9816_v3, %v21483_v59  ;;  %v9897_v33 = vpop.f32.mrf.mxu1 }
 0xa95   : > { %v9818_v41 = vpop.f32.mrf.mxu0  ;;  %v9898_v45 = vadd.f32 %v9897_v33, %v9815_v34  ;;  %v10110_v27 = vmul.f32 0.2, %v9896_v60  ;;  %v18629_v33 = vld [vmem:[%s19469_s9 + $0x4ac] ss:$16 sps:$4 sm:$0xff]  }
 0xa96   : > { %v9819_v43 = vadd.f32 %v9818_v41, %v21479_v9  ;;  %v9899_v16 = vpop.f32.mrf.mxu1 }
 0xa97   : > { %v9822_v53 = vpop.f32.mrf.mxu0  ;;  %v9900_v29 = vadd.f32 %v9899_v16, %v9817_v28  ;;  %v10111_v19 = vmul.f32 0.2, %v9898_v45  ;;  %v10150_v10 = vmax.f32 %v9896_v60, %v10110_v27 }
 0xa98   : > { %v9823_v23 = vadd.f32 %v9822_v53, %v21483_v59  ;;  %v9901_v17 = vpop.f32.mrf.mxu1 }
 0xa99   : > { %v9824_v24 = vpop.f32.mrf.mxu0  ;;  %v10114_v40 = vmul.f32 0.2, %v9900_v29  ;;  %v9902_v12 = vadd.f32 %v9901_v17, %v9819_v43  ;;  %v10151_v30 = vmax.f32 %v9898_v45, %v10111_v19 }
 0xa9a   : > { %v9825_v56 = vadd.f32 %v9824_v24, %v21479_v9  ;;  %v9905_v25 = vpop.f32.mrf.mxu1  ;;  %v18627_v24 = vld [vmem:[%s19469_s9 + $0x4a8] ss:$16 sps:$4 sm:$0xff]  }
 0xa9b   : > { %v9826_v51 = vpop.f32.mrf.mxu0  ;;  %v10115_v62 = vmul.f32 0.2, %v9902_v12  ;;  %v9906_v32 = vadd.f32 %v9905_v25, %v9823_v23  ;;  %v10154_v39 = vmax.f32 %v9900_v29, %v10114_v40  ;;  %v18635_v25 = vld [vmem:[%s19469_s9 + $0x48c] ss:$16 sps:$4 sm:$0xff]  }
 0xa9c   : > { %v9827_v22 = vadd.f32 %v9826_v51, %v21483_v59  ;;  %v9907_v46 = vpop.f32.mrf.mxu1 }
 0xa9d   : > { %v9828_v31 = vpop.f32.mrf.mxu0  ;;  %v10155_v37 = vmax.f32 %v9902_v12, %v10115_v62  ;;  %v9908_v38 = vadd.f32 %v9907_v46, %v9825_v56  ;;  %v10118_v15 = vmul.f32 0.2, %v9906_v32  ;;  %v21497_v49 = vpack.c.bf16 %v10154_v39, %v10150_v10 }
 0xa9e   : > { %v9829_v52 = vadd.f32 %v9828_v31, %v21479_v9  ;;  %v9909_v11 = vpop.f32.mrf.mxu1 }
 0xa9f   : > { %v9832_v36 = vpop.f32.mrf.mxu0  ;;  %v9910_v6 = vadd.f32 %v9909_v11, %v9827_v22  ;;  %v10119_v50 = vmul.f32 0.2, %v9908_v38  ;;  %v21494_v44 = vpack.c.bf16 %v10155_v37, %v10151_v30  ;;  %v10158_v18 = vmax.f32 %v9906_v32, %v10118_v15 }
 0xaa0   : > { %v9833_v5 = vadd.f32 %v9832_v36, %v21483_v59  ;;  %v9911_v7 = vpop.f32.mrf.mxu1  ;;  %v18641_v36 = vld [vmem:[%s19469_s9 + $0x46c] ss:$16 sps:$4 sm:$0xff]  }
 0xaa1   : > { %v9834_v0 = vpop.f32.mrf.mxu0  ;;  %v10122_v8 = vmul.f32 0.2, %v9910_v6  ;;  %v9912_v61 = vadd.f32 %v9911_v7, %v9829_v52  ;;  %11034 = vmatprep.mubr.bf16.mxu0 %v21494_v44  ;;  %v10159_v63 = vmax.f32 %v9908_v38, %v10119_v50  ;;  %v18633_v38 = vld [vmem:[%s19469_s9 + $0x488] ss:$16 sps:$4 sm:$0xff]  }
 0xaa2   : > { %v9835_v42 = vadd.f32 %v9834_v0, %v21479_v9  ;;  %v9915_v54 = vpop.f32.mrf.mxu1  ;;  %11035 = vmatmul.mubr.bf16.vlgmr.msra.gmra.mxu0 %v21497_v49 }
 0xaa3   : > { %v9836_v20 = vpop.f32.mrf.mxu0  ;;  %v10162_v4 = vmax.f32 %v9910_v6, %v10122_v8  ;;  %v10123_v26 = vmul.f32 0.2, %v9912_v61  ;;  %v9916_v1 = vadd.f32 %v9915_v54, %v9833_v5  ;;  %11169 = vmatpush1.bf16.msra.mxu0 %v18615_v55 }
 0xaa4   : > { %v9837_v14 = vadd.f32 %v9836_v20, %v21483_v59  ;;  %v9917_v13 = vpop.f32.mrf.mxu1  ;;  %11170 = vmatprep.subr.bf16.mxu0 %v18623_v48 }
 0xaa5   : > { %v9838_v34 = vpop.f32.mrf.mxu0  ;;  %v10163_v3 = vmax.f32 %v9912_v61, %v10123_v26  ;;  %v9918_v21 = vadd.f32 %v9917_v13, %v9835_v42  ;;  %v10126_v41 = vmul.f32 0.2, %v9916_v1  ;;  %v21508_v60 = vpack.c.bf16 %v10162_v4, %v10158_v18  ;;  %v18639_v42 = vld [vmem:[%s19469_s9 + $0x468] ss:$16 sps:$4 sm:$0xff]   ;;  %v18647_v4 = vld [vmem:[%s19469_s9 + $0x44c] ss:$16 sps:$4 sm:$0xff]  }
 0xaa6   : > { %v9839_v28 = vadd.f32 %v9838_v34, %v21479_v9  ;;  %v9919_v43 = vpop.f32.mrf.mxu1 }
 0xaa7   : > { %v9842_v45 = vpop.f32.mrf.mxu0  ;;  %v9920_v16 = vadd.f32 %v9919_v43, %v9837_v14  ;;  %v10127_v29 = vmul.f32 0.2, %v9918_v21  ;;  %11171 = vmatpush1.bf16.msra.mxu0 %v18621_v47  ;;  %v21510_v17 = vpack.c.bf16 %v10163_v3, %v10159_v63  ;;  %v10166_v51 = vmax.f32 %v9916_v1, %v10126_v41 }
 0xaa8   : > { %v9843_v53 = vadd.f32 %v9842_v45, %v21483_v59  ;;  %v9921_v23 = vpop.f32.mrf.mxu1  ;;  %11172 = vmatprep.subr.bf16.mxu0 %v18629_v33 }
 0xaa9   : > { %v9844_v40 = vpop.f32.mrf.mxu0  ;;  %v10130_v12 = vmul.f32 0.2, %v9920_v16  ;;  %v9922_v56 = vadd.f32 %v9921_v23, %v9839_v28  ;;  %11044 = vmatprep.mubr.bf16.mxu0 %v21510_v17  ;;  %v10167_v39 = vmax.f32 %v9918_v21, %v10127_v29  ;;  %v18645_v28 = vld [vmem:[%s19469_s9 + $0x448] ss:$16 sps:$4 sm:$0xff]  }
 0xaaa   : > { %v9845_v19 = vadd.f32 %v9844_v40, %v21479_v9  ;;  %v9925_v27 = vpop.f32.mrf.mxu1  ;;  %11045 = vmatmul.mubr.bf16.gmra.mxu0 %v21508_v60 }
 0xaab   : > { %v9846_v62 = vpop.f32.mrf.mxu0  ;;  %v10170_v32 = vmax.f32 %v9920_v16, %v10130_v12  ;;  %v10131_v22 = vmul.f32 0.2, %v9922_v56  ;;  %v9926_v46 = vadd.f32 %v9925_v27, %v9843_v53  ;;  %11173 = vmatpush1.bf16.msra.mxu0 %v18627_v24  ;;  %v18653_v16 = vld [vmem:[%s19469_s9 + $0x42c] ss:$16 sps:$4 sm:$0xff]  }
 0xaac   : > { %v9847_v31 = vadd.f32 %v9846_v62, %v21483_v59  ;;  %v9927_v37 = vpop.f32.mrf.mxu1  ;;  %11174 = vmatprep.subr.bf16.mxu0 %v18635_v25 }
 0xaad   : > { %v9848_v30 = vpop.f32.mrf.mxu0  ;;  %v10171_v15 = vmax.f32 %v9922_v56, %v10131_v22  ;;  %v9928_v52 = vadd.f32 %v9927_v37, %v9845_v19  ;;  %v10134_v10 = vmul.f32 0.2, %v9926_v46  ;;  %v21522_v0 = vpack.c.bf16 %v10170_v32, %v10166_v51  ;;  %v18651_v56 = vld [vmem:[%s19469_s9 + $0x428] ss:$16 sps:$4 sm:$0xff]  }
 0xaae   : > { %v9849_v11 = vadd.f32 %v9848_v30, %v21479_v9  ;;  %v9929_v6 = vpop.f32.mrf.mxu1  ;;  %v18657_v22 = vld [vmem:[%s19469_s9 + $0x408] ss:$16 sps:$4 sm:$0xff]   ;;  %v18671_v30 = vld [vmem:[%s19469_s9 + $0x5cc] ss:$16 sps:$4 sm:$0xff]  }
 0xaaf   : > { %v9852_v5 = vpop.f32.mrf.mxu0  ;;  %v10135_v50 = vmul.f32 0.2, %v9928_v52  ;;  %v9930_v7 = vadd.f32 %v9929_v6, %v9847_v31  ;;  %11175 = vmatpush1.bf16.msra.mxu0 %v18633_v38  ;;  %v21524_v61 = vpack.c.bf16 %v10171_v15, %v10167_v39  ;;  %v10174_v26 = vmax.f32 %v9926_v46, %v10134_v10  ;;  %v18665_v31 = vld [vmem:[%s19469_s9 + $0x5ec] ss:$16 sps:$4 sm:$0xff]   ;;  %v18663_v38 = vld [vmem:[%s19469_s9 + $0x5e8] ss:$16 sps:$4 sm:$0xff]  }
 0xab0   : > { %v9853_v55 = vadd.f32 %v9852_v5, %v21483_v59  ;;  %v9931_v8 = vpop.f32.mrf.mxu1  ;;  %11176 = vmatprep.subr.bf16.mxu0 %v18641_v36  ;;  %v18669_v15 = vld [vmem:[%s19469_s9 + $0x5c8] ss:$16 sps:$4 sm:$0xff]   ;;  %v18683_v36 = vld [vmem:[%s19469_s9 + $0x58c] ss:$16 sps:$4 sm:$0xff]   ;;  %v21559_v10 = vsub.s32 3, %v21466_v57  ;;  %v21562_v6 = vsub.s32 2, %v21466_v57 }
 0xab1   : > { %v9854_v48 = vpop.f32.mrf.mxu0  ;;  %v10138_v18 = vmul.f32 0.2, %v9930_v7  ;;  %v9932_v54 = vadd.f32 %v9931_v8, %v9849_v11  ;;  %v10175_v1 = vmax.f32 %v9928_v52, %v10135_v50  ;;  %11054 = vmatprep.mubr.bf16.mxu0 %v21524_v61  ;;  %v18677_v52 = vld [vmem:[%s19469_s9 + $0x5ac] ss:$16 sps:$4 sm:$0xff]   ;;  %v18675_v11 = vld [vmem:[%s19469_s9 + $0x5a8] ss:$16 sps:$4 sm:$0xff]  }
 0xab2   : > { %v9855_v20 = vadd.f32 %v9854_v48, %v21479_v9  ;;  %v9935_v14 = vpop.f32.mrf.mxu1  ;;  %11055 = vmatmul.mubr.bf16.gmra.mxu0 %v21522_v0  ;;  %v18681_v5 = vld [vmem:[%s19469_s9 + $0x588] ss:$16 sps:$4 sm:$0xff]   ;;  %v18689_v50 = vld [vmem:[%s19469_s9 + $0x56c] ss:$16 sps:$4 sm:$0xff]  }
 0xab3   : > { %v9856_v63 = vpop.f32.mrf.mxu0  ;;  %v10178_v13 = vmax.f32 %v9930_v7, %v10138_v18  ;;  %v10139_v47 = vmul.f32 0.2, %v9932_v54  ;;  %v9936_v34 = vadd.f32 %v9935_v14, %v9853_v55  ;;  %11177 = vmatpush1.bf16.msra.mxu0 %v18639_v42  ;;  %v21568_v7 = vrot.slane %v21475_v2, %v21559_v10  ;;  %v18687_v8 = vld [vmem:[%s19469_s9 + $0x568] ss:$16 sps:$4 sm:$0xff]   ;;  %v18695_v57 = vld [vmem:[%s19469_s9 + $0x54c] ss:$16 sps:$4 sm:$0xff]  }
 0xab4   : > { %v9857_v3 = vadd.f32 %v9856_v63, %v21483_v59  ;;  %v9937_v21 = vpop.f32.mrf.mxu1  ;;  %11178 = vmatprep.subr.bf16.mxu0 %v18647_v4  ;;  %v21572_v55 = vrot.slane %v21475_v2, %v21562_v6  ;;  %v18701_v63 = vld [vmem:[%s19469_s9 + $0x52c] ss:$16 sps:$4 sm:$0xff]  }
 0xab5   : > { %v9858_v33 = vpop.f32.mrf.mxu0  ;;  %v10179_v41 = vmax.f32 %v9932_v54, %v10139_v47  ;;  %v9938_v43 = vadd.f32 %v9937_v21, %v9855_v20  ;;  %v10142_v53 = vmul.f32 0.2, %v9936_v34  ;;  %v21537_v59 = vpack.c.bf16 %v10178_v13, %v10174_v26 }
 0xab6   : > { %v9859_v45 = vadd.f32 %v9858_v33, %v21479_v9  ;;  %v9939_v29 = vpop.f32.mrf.mxu1  ;;  %v18659_v9 = vld [vmem:[%s19469_s9 + $0x40c] ss:$16 sps:$4 sm:$0xff]  }
 0xab7   : > { %v10143_v23 = vmul.f32 0.2, %v9938_v43  ;;  %v9940_v24 = vadd.f32 %v9939_v29, %v9857_v3  ;;  %v21535_v40 = vpack.c.bf16 %v10179_v41, %v10175_v1  ;;  %11179 = vmatpush1.bf16.msra.mxu0 %v18645_v28  ;;  %v10182_v51 = vmax.f32 %v9936_v34, %v10142_v53  ;;  %v18693_v1 = vld [vmem:[%s19469_s9 + $0x548] ss:$16 sps:$4 sm:$0xff]   ;;  %v18707_v29 = vld [vmem:[%s19469_s9 + $0x50c] ss:$16 sps:$4 sm:$0xff]  }
 0xab8   : > { %v9941_v12 = vpop.f32.mrf.mxu1  ;;  %11180 = vmatprep.subr.bf16.mxu0 %v18653_v16  ;;  %v18699_v41 = vld [vmem:[%s19469_s9 + $0x528] ss:$16 sps:$4 sm:$0xff]  }
 0xab9   : > { %v10146_v19 = vmul.f32 0.2, %v9940_v24  ;;  %v9942_v25 = vadd.f32 %v9941_v12, %v9859_v45  ;;  %11064 = vmatprep.mubr.bf16.mxu0 %v21535_v40  ;;  %v10183_v27 = vmax.f32 %v9938_v43, %v10143_v23 }
 0xaba   : > { %11065 = vmatmul.mubr.bf16.gmra.mxu0 %v21537_v59 }
 0xabb   : > { %v10186_v62 = vmax.f32 %v9940_v24, %v10146_v19  ;;  %v10147_v32 = vmul.f32 0.2, %v9942_v25  ;;  %11181 = vmatpush1.bf16.msra.mxu0 %v18651_v56 }
 0xabc   : > { %11182 = vmatprep.subr.bf16.mxu0 %v18659_v9 }
 0xabd   : > { %v10187_v46 = vmax.f32 %v9942_v25, %v10147_v32  ;;  %v21547_v37 = vpack.c.bf16 %v10186_v62, %v10182_v51 }
 0xabf   : > { %v21545_v39 = vpack.c.bf16 %v10187_v46, %v10183_v27  ;;  %11183 = vmatpush1.bf16.msra.mxu0 %v18657_v22  ;;  %v18705_v27 = vld [vmem:[%s19469_s9 + $0x508] ss:$16 sps:$4 sm:$0xff]  }
 0xac0   : > { %11184 = vmatprep.subr.bf16.mxu0 %v18665_v31 }
 0xac1   : > { %11074 = vmatprep.mubr.bf16.mxu0 %v21545_v39 }
 0xac2   : > { %11075 = vmatmul.mubr.bf16.gmra.mxu0 %v21547_v37 }
 0xac3   : > { %11185 = vmatpush2.bf16.msra.mxu0 %v18663_v38  ;;  %11200 = vmatprep.mubr.bf16.mxu0 %v21494_v44 }
 0xac4   : > { %11186 = vmatprep.subr.bf16.mxu0 %v18671_v30 }
 0xac7   : > { %11187 = vmatpush2.bf16.msra.mxu0 %v18669_v15 }
 0xac8   : > { %11188 = vmatprep.subr.bf16.mxu0 %v18677_v52 }
 0xacb   : > { %11189 = vmatpush2.bf16.msra.mxu0 %v18675_v11 }
 0xacc   : > { %11190 = vmatprep.subr.bf16.mxu0 %v18683_v36 }
 0xacf   : > { %v9978_v44 = vpop.f32.mrf.mxu0  ;;  %11191 = vmatpush2.bf16.msra.mxu0 %v18681_v5 }
 0xad0   : > { %11192 = vmatprep.subr.bf16.mxu0 %v18689_v50  ;;  %v9979_v20 = vadd.f32 %v9978_v44, %v21572_v55 }
 0xad1   : > { %v9980_v42 = vpop.f32.mrf.mxu0 }
 0xad2   : > { %v10061_v48 = vpop.f32.mrf.mxu1  ;;  %v9981_v18 = vadd.f32 %v9980_v42, %v21568_v7  ;;  %v18708_v42 = vld [vmem:[%s19469_s9 + $0x6e8] ss:$16 sps:$4 sm:$0xff]  }
 0xad3   : > { %v9982_v54 = vpop.f32.mrf.mxu0  ;;  %11193 = vmatpush2.bf16.msra.mxu0 %v18687_v8  ;;  %v10062_v3 = vadd.f32 %v10061_v48, %v9979_v20 }
 0xad4   : > { %v9983_v4 = vadd.f32 %v9982_v54, %v21572_v55  ;;  %v10063_v26 = vpop.f32.mrf.mxu1  ;;  %11194 = vmatprep.subr.bf16.mxu0 %v18695_v57 }
 0xad5   : > { %v9984_v2 = vpop.f32.mrf.mxu0  ;;  %v10064_v13 = vadd.f32 %v10063_v26, %v9981_v18  ;;  %v10112_v56 = vmul.f32 0.2, %v10062_v3 }
 0xad6   : > { %v9985_v14 = vadd.f32 %v9984_v2, %v21568_v7  ;;  %v10065_v47 = vpop.f32.mrf.mxu1 }
 0xad7   : > { %v9988_v34 = vpop.f32.mrf.mxu0  ;;  %v10066_v21 = vadd.f32 %v10065_v47, %v9983_v4  ;;  %11195 = vmatpush2.bf16.msra.mxu0 %v18693_v1  ;;  %v10113_v23 = vmul.f32 0.2, %v10064_v13  ;;  %v10152_v11 = vmax.f32 %v10062_v3, %v10112_v56  ;;  %v18713_v4 = vld [vmem:[%s19469_s9 + $0x6cc] ss:$16 sps:$4 sm:$0xff]  }
 0xad8   : > { %v9989_v28 = vadd.f32 %v9988_v34, %v21572_v55  ;;  %v10067_v33 = vpop.f32.mrf.mxu1  ;;  %11196 = vmatprep.subr.bf16.mxu0 %v18701_v63 }
 0xad9   : > { %v9990_v43 = vpop.f32.mrf.mxu0  ;;  %v10116_v45 = vmul.f32 0.2, %v10066_v21  ;;  %v10068_v16 = vadd.f32 %v10067_v33, %v9985_v14  ;;  %v10153_v31 = vmax.f32 %v10064_v13, %v10113_v23 }
 0xada   : > { %v9991_v53 = vadd.f32 %v9990_v43, %v21568_v7  ;;  %v10071_v24 = vpop.f32.mrf.mxu1 }
 0xadb   : > { %v9992_v12 = vpop.f32.mrf.mxu0  ;;  %v10117_v19 = vmul.f32 0.2, %v10068_v16  ;;  %v10072_v25 = vadd.f32 %v10071_v24, %v9989_v28  ;;  %11197 = vmatpush2.bf16.msra.mxu0 %v18699_v41  ;;  %v10156_v32 = vmax.f32 %v10066_v21, %v10116_v45  ;;  %v18711_v21 = vld [vmem:[%s19469_s9 + $0x6c8] ss:$16 sps:$4 sm:$0xff]  }
 0xadc   : > { %v9993_v9 = vadd.f32 %v9992_v12, %v21572_v55  ;;  %v10073_v51 = vpop.f32.mrf.mxu1  ;;  %11198 = vmatprep.subr.bf16.mxu0 %v18707_v29 }
 0xadd   : > { %v9994_v62 = vpop.f32.mrf.mxu0  ;;  %v10157_v22 = vmax.f32 %v10068_v16, %v10117_v19  ;;  %v10074_v46 = vadd.f32 %v10073_v51, %v9991_v53  ;;  %v10120_v38 = vmul.f32 0.2, %v10072_v25  ;;  %v21593_v48 = vpack.c.bf16 %v10156_v32, %v10152_v11  ;;  %v18714_v19 = vld [vmem:[%s19469_s9 + $0x6a8] ss:$16 sps:$4 sm:$0xff]  }
 0xade   : > { %v9995_v30 = vadd.f32 %v9994_v62, %v21568_v7  ;;  %v10075_v15 = vpop.f32.mrf.mxu1  ;;  %v18719_v62 = vld [vmem:[%s19469_s9 + $0x68c] ss:$16 sps:$4 sm:$0xff]  }
 0xadf   : > { %v9998_v52 = vpop.f32.mrf.mxu0  ;;  %v10076_v36 = vadd.f32 %v10075_v15, %v9993_v9  ;;  %v10121_v50 = vmul.f32 0.2, %v10074_v46  ;;  %11199 = vmatpush2.bf16.msra.mxu0 %v18705_v27  ;;  %v21590_v8 = vpack.c.bf16 %v10157_v22, %v10153_v31  ;;  %v10160_v26 = vmax.f32 %v10072_v25, %v10120_v38  ;;  %v18756_v31 = vld [vmem:[%s19469_s9 + $0x8e0] ss:$16 sps:$4 sm:$0xff]   ;;  %v18758_v38 = vld [vmem:[%s19469_s9 + $0x8e4] ss:$16 sps:$4 sm:$0xff]  }
 0xae0   : > { %v9999_v5 = vadd.f32 %v9998_v52, %v21572_v55  ;;  %v10077_v44 = vpop.f32.mrf.mxu1  ;;  %12226 = vmatprep.subr.bf16.mxu0 %v18758_v38 }
 0xae1   : > { %v10000_v57 = vpop.f32.mrf.mxu0  ;;  %v10124_v18 = vmul.f32 0.2, %v10076_v36  ;;  %v10078_v54 = vadd.f32 %v10077_v44, %v9995_v30  ;;  %11117 = vmatprep.mubr.bf16.mxu1 %v21590_v8  ;;  %v10161_v34 = vmax.f32 %v10074_v46, %v10121_v50  ;;  %v18717_v50 = vld [vmem:[%s19469_s9 + $0x688] ss:$16 sps:$4 sm:$0xff]  }
 0xae2   : > { %v10001_v20 = vadd.f32 %v10000_v57, %v21568_v7  ;;  %v10081_v1 = vpop.f32.mrf.mxu1  ;;  %11201 = vmatmul.mubr.bf16.vlgmr.msra.gmra.mxu0 %v21497_v49  ;;  %11118 = vmatmul.mubr.bf16.vlgmr.msra.gmra.mxu1 %v21593_v48  ;;  %v18716_v49 = vld [vmem:[%s19469_s9 + $0x6ac] ss:$16 sps:$4 sm:$0xff]  }
 0xae3   : > { %v10002_v2 = vpop.f32.mrf.mxu0  ;;  %v10164_v14 = vmax.f32 %v10076_v36, %v10124_v18  ;;  %v10125_v63 = vmul.f32 0.2, %v10078_v54  ;;  %v21599_v13 = vadd.f32 %v10081_v1, %v9999_v5  ;;  %11210 = vmatprep.mubr.bf16.mxu0 %v21510_v17  ;;  %11252 = vmatpush1.bf16.msra.mxu1 %v18708_v42  ;;  %v18722_v18 = vld [vmem:[%s19469_s9 + $0x66c] ss:$16 sps:$4 sm:$0xff]  }
 0xae4   : > { %v10003_v47 = vadd.f32 %v10002_v2, %v21572_v55  ;;  %v10083_v3 = vpop.f32.mrf.mxu1  ;;  %11253 = vmatprep.subr.bf16.mxu1 %v18713_v4  ;;  %12227 = vmatpush1.bf16.msra.mxu0 %v18756_v31  ;;  %v18767_v31 = vld [vmem:[%s19469_s9 + $0x884] ss:$16 sps:$4 sm:$0xff]  }
 0xae5   : > { %v10004_v28 = vpop.f32.mrf.mxu0  ;;  %v10165_v33 = vmax.f32 %v10078_v54, %v10125_v63  ;;  %v10084_v41 = vadd.f32 %v10083_v3, %v10001_v20  ;;  %v10128_v45 = vmul.f32 0.2, %v21599_v13  ;;  %v21609_v17 = vpack.c.bf16 %v10164_v14, %v10160_v26  ;;  %v18759_v26 = vld [vmem:[%s19469_s9 + $0x8c0] ss:$16 sps:$4 sm:$0xff]  }
 0xae6   : > { %v10005_v43 = vadd.f32 %v10004_v28, %v21568_v7  ;;  %v10085_v16 = vpop.f32.mrf.mxu1 }
 0xae7   : > { %v10008_v53 = vpop.f32.mrf.mxu0  ;;  %v10086_v29 = vadd.f32 %v10085_v16, %v10003_v47  ;;  %v10129_v24 = vmul.f32 0.2, %v10084_v41  ;;  %11254 = vmatpush1.bf16.msra.mxu1 %v18711_v21  ;;  %v21611_v56 = vpack.c.bf16 %v10165_v33, %v10161_v34  ;;  %v10168_v32 = vmax.f32 %v21599_v13, %v10128_v45  ;;  %v18720_v34 = vld [vmem:[%s19469_s9 + $0x668] ss:$16 sps:$4 sm:$0xff]  }
 0xae8   : > { %v10009_v23 = vadd.f32 %v10008_v53, %v21572_v55  ;;  %v10087_v12 = vpop.f32.mrf.mxu1  ;;  %11255 = vmatprep.subr.bf16.mxu1 %v18716_v49  ;;  %v18762_v53 = vld [vmem:[%s19469_s9 + $0x8a0] ss:$16 sps:$4 sm:$0xff]  }
 0xae9   : > { %v10010_v25 = vpop.f32.mrf.mxu0  ;;  %v10132_v9 = vmul.f32 0.2, %v10086_v29  ;;  %v10088_v51 = vadd.f32 %v10087_v12, %v10005_v43  ;;  %11127 = vmatprep.mubr.bf16.mxu1 %v21611_v56  ;;  %v10169_v36 = vmax.f32 %v10084_v41, %v10129_v24  ;;  %v18725_v41 = vld [vmem:[%s19469_s9 + $0x64c] ss:$16 sps:$4 sm:$0xff]  }
 0xaea   : > { %v10011_v27 = vadd.f32 %v10010_v25, %v21568_v7  ;;  %v10091_v22 = vpop.f32.mrf.mxu1  ;;  %11211 = vmatmul.mubr.bf16.gmra.mxu0 %v21508_v60  ;;  %11128 = vmatmul.mubr.bf16.gmra.mxu1 %v21609_v17 }
 0xaeb   : > { %v10012_v46 = vpop.f32.mrf.mxu0  ;;  %v10172_v30 = vmax.f32 %v10086_v29, %v10132_v9  ;;  %v10133_v15 = vmul.f32 0.2, %v10088_v51  ;;  %v21621_v52 = vadd.f32 %v10091_v22, %v10009_v23  ;;  %11220 = vmatprep.mubr.bf16.mxu0 %v21524_v61  ;;  %11256 = vmatpush1.bf16.msra.mxu1 %v18714_v19  ;;  %v18761_v61 = vld [vmem:[%s19469_s9 + $0x8c4] ss:$16 sps:$4 sm:$0xff]   ;;  %v18723_v9 = vld [vmem:[%s19469_s9 + $0x648] ss:$16 sps:$4 sm:$0xff]  }
 0xaec   : > { %v10013_v11 = vadd.f32 %v10012_v46, %v21572_v55  ;;  %v10093_v5 = vpop.f32.mrf.mxu1  ;;  %11257 = vmatprep.subr.bf16.mxu1 %v18719_v62  ;;  %12228 = vmatprep.subr.bf16.mxu0 %v18761_v61  ;;  %v18764_v29 = vld [vmem:[%s19469_s9 + $0x8a4] ss:$16 sps:$4 sm:$0xff]  }
 0xaed   : > { %v10014_v44 = vpop.f32.mrf.mxu0  ;;  %v10173_v42 = vmax.f32 %v10088_v51, %v10133_v15  ;;  %v10094_v57 = vadd.f32 %v10093_v5, %v10011_v27  ;;  %v10136_v54 = vmul.f32 0.2, %v21621_v52  ;;  %v21633_v63 = vpack.c.bf16 %v10172_v30, %v10168_v32  ;;  %12229 = vmatpush1.bf16.msra.mxu0 %v18759_v26  ;;  %v18731_v5 = vld [vmem:[%s19469_s9 + $0x60c] ss:$16 sps:$4 sm:$0xff]   ;;  %v18771_v26 = vld [vmem:[%s19469_s9 + $0x840] ss:$16 sps:$4 sm:$0xff]  }
 0xaee   : > { %v10015_v60 = vadd.f32 %v10014_v44, %v21568_v7  ;;  %v10095_v20 = vpop.f32.mrf.mxu1  ;;  %12230 = vmatprep.subr.bf16.mxu0 %v18764_v29  ;;  %v18770_v44 = vld [vmem:[%s19469_s9 + $0x864] ss:$16 sps:$4 sm:$0xff]   ;;  %v18744_v29 = vld [vmem:[%s19469_s9 + $0x768] ss:$16 sps:$4 sm:$0xff]  }
 0xaef   : > { %v10018_v4 = vpop.f32.mrf.mxu0  ;;  %v10137_v1 = vmul.f32 0.2, %v10094_v57  ;;  %v10096_v2 = vadd.f32 %v10095_v20, %v10013_v11  ;;  %11258 = vmatpush1.bf16.msra.mxu1 %v18717_v50  ;;  %v21635_v47 = vpack.c.bf16 %v10173_v42, %v10169_v36  ;;  %v10176_v43 = vmax.f32 %v21621_v52, %v10136_v54  ;;  %v18726_v11 = vld [vmem:[%s19469_s9 + $0x628] ss:$16 sps:$4 sm:$0xff]   ;;  %v18768_v50 = vld [vmem:[%s19469_s9 + $0x860] ss:$16 sps:$4 sm:$0xff]  }
 0xaf0   : > { %v10019_v14 = vadd.f32 %v10018_v4, %v21572_v55  ;;  %v10097_v13 = vpop.f32.mrf.mxu1  ;;  %11259 = vmatprep.subr.bf16.mxu1 %v18722_v18  ;;  %v18729_v54 = vld [vmem:[%s19469_s9 + $0x608] ss:$16 sps:$4 sm:$0xff]   ;;  %v18734_v4 = vld [vmem:[%s19469_s9 + $0x7ec] ss:$16 sps:$4 sm:$0xff]   ;;  %v18773_v61 = vld [vmem:[%s19469_s9 + $0x844] ss:$16 sps:$4 sm:$0xff]  }
 0xaf1   : > { %v10020_v3 = vpop.f32.mrf.mxu0  ;;  %v10140_v21 = vmul.f32 0.2, %v10096_v2  ;;  %v10098_v28 = vadd.f32 %v10097_v13, %v10015_v60  ;;  %v10177_v49 = vmax.f32 %v10094_v57, %v10137_v1  ;;  %11137 = vmatprep.mubr.bf16.mxu1 %v21635_v47  ;;  %12231 = vmatpush1.bf16.msra.mxu0 %v18762_v53  ;;  %v18776_v13 = vld [vmem:[%s19469_s9 + $0x824] ss:$16 sps:$4 sm:$0xff]  }
 0xaf2   : > { %v10021_v33 = vadd.f32 %v10020_v3, %v21568_v7  ;;  %v10101_v45 = vpop.f32.mrf.mxu1  ;;  %11221 = vmatmul.mubr.bf16.gmra.mxu0 %v21522_v0  ;;  %11138 = vmatmul.mubr.bf16.gmra.mxu1 %v21633_v63  ;;  %v18728_v0 = vld [vmem:[%s19469_s9 + $0x62c] ss:$16 sps:$4 sm:$0xff]   ;;  %v18788_v53 = vld [vmem:[%s19469_s9 + $0x9a4] ss:$16 sps:$4 sm:$0xff]  }
 0xaf3   : > { %v10022_v16 = vpop.f32.mrf.mxu0  ;;  %v10180_v23 = vmax.f32 %v10096_v2, %v10140_v21  ;;  %v10141_v24 = vmul.f32 0.2, %v10098_v28  ;;  %v10102_v12 = vadd.f32 %v10101_v45, %v10019_v14  ;;  %11230 = vmatprep.mubr.bf16.mxu0 %v21535_v40  ;;  %11260 = vmatpush1.bf16.msra.mxu1 %v18720_v34  ;;  %v18737_v2 = vld [vmem:[%s19469_s9 + $0x7cc] ss:$16 sps:$4 sm:$0xff]   ;;  %v18774_v14 = vld [vmem:[%s19469_s9 + $0x820] ss:$16 sps:$4 sm:$0xff]  }
 0xaf4   : > { %v10023_v19 = vadd.f32 %v10022_v16, %v21572_v55  ;;  %v10103_v25 = vpop.f32.mrf.mxu1  ;;  %11261 = vmatprep.subr.bf16.mxu1 %v18725_v41  ;;  %v18765_v55 = vld [vmem:[%s19469_s9 + $0x880] ss:$16 sps:$4 sm:$0xff]   ;;  %12232 = vmatprep.subr.bf16.mxu0 %v18767_v31  ;;  %v18735_v34 = vld [vmem:[%s19469_s9 + $0x7c8] ss:$16 sps:$4 sm:$0xff]   ;;  %v18740_v3 = vld [vmem:[%s19469_s9 + $0x7ac] ss:$16 sps:$4 sm:$0xff]  }
 0xaf5   : > { %v10024_v51 = vpop.f32.mrf.mxu0  ;;  %v10181_v27 = vmax.f32 %v10098_v28, %v10141_v24  ;;  %v10104_v62 = vadd.f32 %v10103_v25, %v10021_v33  ;;  %v10144_v22 = vmul.f32 0.2, %v10102_v12  ;;  %v21655_v15 = vpack.c.bf16 %v10180_v23, %v10176_v43  ;;  %12233 = vmatpush1.bf16.msra.mxu0 %v18765_v55  ;;  %v18777_v21 = vld [vmem:[%s19469_s9 + $0x800] ss:$16 sps:$4 sm:$0xff]   ;;  %v18779_v28 = vld [vmem:[%s19469_s9 + $0x804] ss:$16 sps:$4 sm:$0xff]  }
 0xaf6   : > { %v10025_v32 = vadd.f32 %v10024_v51, %v21568_v7  ;;  %v10105_v46 = vpop.f32.mrf.mxu1  ;;  %12234 = vmatprep.subr.bf16.mxu0 %v18770_v44  ;;  %v18743_v33 = vld [vmem:[%s19469_s9 + $0x78c] ss:$16 sps:$4 sm:$0xff]   ;;  %v18782_v41 = vld [vmem:[%s19469_s9 + $0x9e4] ss:$16 sps:$4 sm:$0xff]   ;;  %v18783_v16 = vld [vmem:[%s19469_s9 + $0x9c0] ss:$16 sps:$4 sm:$0xff]  }
 0xaf7   : > { %v10145_v40 = vmul.f32 0.2, %v10104_v62  ;;  %v10106_v38 = vadd.f32 %v10105_v46, %v10023_v19  ;;  %v21653_v30 = vpack.c.bf16 %v10181_v27, %v10177_v49  ;;  %11262 = vmatpush1.bf16.msra.mxu1 %v18723_v9  ;;  %v10184_v42 = vmax.f32 %v10102_v12, %v10144_v22  ;;  %v18785_v43 = vld [vmem:[%s19469_s9 + $0x9c4] ss:$16 sps:$4 sm:$0xff]   ;;  %v18741_v49 = vld [vmem:[%s19469_s9 + $0x788] ss:$16 sps:$4 sm:$0xff]  }
 0xaf8   : > { %v10107_v52 = vpop.f32.mrf.mxu1  ;;  %11263 = vmatprep.subr.bf16.mxu1 %v18728_v0  ;;  %v18746_v45 = vld [vmem:[%s19469_s9 + $0x76c] ss:$16 sps:$4 sm:$0xff]   ;;  %v18786_v24 = vld [vmem:[%s19469_s9 + $0x9a0] ss:$16 sps:$4 sm:$0xff]   ;;  %v18791_v12 = vld [vmem:[%s19469_s9 + $0x984] ss:$16 sps:$4 sm:$0xff]  }
 0xaf9   : > { %v10148_v7 = vmul.f32 0.2, %v10106_v38  ;;  %v10108_v36 = vadd.f32 %v10107_v52, %v10025_v32  ;;  %11147 = vmatprep.mubr.bf16.mxu1 %v21653_v30  ;;  %v10185_v57 = vmax.f32 %v10104_v62, %v10145_v40  ;;  %12235 = vmatpush1.bf16.msra.mxu0 %v18768_v50  ;;  %v18749_v23 = vld [vmem:[%s19469_s9 + $0x74c] ss:$16 sps:$4 sm:$0xff]   ;;  %v18747_v19 = vld [vmem:[%s19469_s9 + $0x748] ss:$16 sps:$4 sm:$0xff]  }
 0xafa   : > { %11231 = vmatmul.mubr.bf16.gmra.mxu0 %v21537_v59  ;;  %11148 = vmatmul.mubr.bf16.gmra.mxu1 %v21655_v15  ;;  %v18752_v25 = vld [vmem:[%s19469_s9 + $0x72c] ss:$16 sps:$4 sm:$0xff]   ;;  %v18789_v9 = vld [vmem:[%s19469_s9 + $0x980] ss:$16 sps:$4 sm:$0xff]   ;;  %v18750_v51 = vld [vmem:[%s19469_s9 + $0x728] ss:$16 sps:$4 sm:$0xff]  }
 0xafb   : > { %v10188_v60 = vmax.f32 %v10106_v38, %v10148_v7  ;;  %v10149_v18 = vmul.f32 0.2, %v10108_v36  ;;  %11240 = vmatprep.mubr.bf16.mxu0 %v21545_v39  ;;  %11264 = vmatpush1.bf16.msra.mxu1 %v18726_v11  ;;  %v18732_v39 = vld [vmem:[%s19469_s9 + $0x7e8] ss:$16 sps:$4 sm:$0xff]   ;;  %v18755_v27 = vld [vmem:[%s19469_s9 + $0x70c] ss:$16 sps:$4 sm:$0xff]  }
 0xafc   : > { %11265 = vmatprep.subr.bf16.mxu1 %v18731_v5  ;;  %12236 = vmatprep.subr.bf16.mxu0 %v18773_v61  ;;  %v18753_v62 = vld [vmem:[%s19469_s9 + $0x708] ss:$16 sps:$4 sm:$0xff]   ;;  %v18794_v32 = vld [vmem:[%s19469_s9 + $0x964] ss:$16 sps:$4 sm:$0xff]   ;;  %v18792_v0 = vld [vmem:[%s19469_s9 + $0x960] ss:$16 sps:$4 sm:$0xff]  }
 0xafd   : > { %v10189_v20 = vmax.f32 %v10108_v36, %v10149_v18  ;;  %v21671_v59 = vpack.c.bf16 %v10188_v60, %v10184_v42  ;;  %12237 = vmatpush1.bf16.msra.mxu0 %v18771_v26  ;;  %v18797_v22 = vld [vmem:[%s19469_s9 + $0x944] ss:$16 sps:$4 sm:$0xff]   ;;  %v18795_v46 = vld [vmem:[%s19469_s9 + $0x940] ss:$16 sps:$4 sm:$0xff]   ;;  %v18809_v52 = vld [vmem:[%s19469_s9 + $0x8ec] ss:$16 sps:$4 sm:$0xff]  }
 0xafe   : > { %12238 = vmatprep.subr.bf16.mxu0 %v18776_v13  ;;  %v18800_v55 = vld [vmem:[%s19469_s9 + $0x924] ss:$16 sps:$4 sm:$0xff]   ;;  %v18798_v31 = vld [vmem:[%s19469_s9 + $0x920] ss:$16 sps:$4 sm:$0xff]  }
 0xaff   : > { %v21669_v1 = vpack.c.bf16 %v10189_v20, %v10185_v57  ;;  %11266 = vmatpush1.bf16.msra.mxu1 %v18729_v54  ;;  %v18806_v40 = vld [vmem:[%s19469_s9 + $0xae4] ss:$16 sps:$4 sm:$0xff]   ;;  %v18804_v38 = vld [vmem:[%s19469_s9 + $0xae0] ss:$16 sps:$4 sm:$0xff]  }
 0xb00   : > { %11267 = vmatprep.subr.bf16.mxu1 %v18734_v4  ;;  %v18818_v11 = vld [vmem:[%s19469_s9 + $0xaa4] ss:$16 sps:$4 sm:$0xff]   ;;  %v18816_v7 = vld [vmem:[%s19469_s9 + $0xaa0] ss:$16 sps:$4 sm:$0xff]  }
 0xb01   : > { %11157 = vmatprep.mubr.bf16.mxu1 %v21669_v1  ;;  %12239 = vmatpush1.bf16.msra.mxu0 %v18774_v14  ;;  %v18830_v36 = vld [vmem:[%s19469_s9 + $0xa64] ss:$16 sps:$4 sm:$0xff]   ;;  %v18828_v5 = vld [vmem:[%s19469_s9 + $0xa60] ss:$16 sps:$4 sm:$0xff]  }
 0xb02   : > { %11241 = vmatmul.mubr.bf16.gmra.mxu0 %v21547_v37  ;;  %11158 = vmatmul.mubr.bf16.gmra.mxu1 %v21671_v59  ;;  %v18738_v37 = vld [vmem:[%s19469_s9 + $0x7a8] ss:$16 sps:$4 sm:$0xff]   ;;  %v18834_v50 = vld [vmem:[%s19469_s9 + $0xa40] ss:$16 sps:$4 sm:$0xff]   ;;  %v18842_v44 = vld [vmem:[%s19469_s9 + $0xa24] ss:$16 sps:$4 sm:$0xff]  }
 0xb03   : > { %11268 = vmatpush2.bf16.msra.mxu1 %v18732_v39  ;;  %11283 = vmatprep.mubr.bf16.mxu1 %v21590_v8  ;;  %v18780_v8 = vld [vmem:[%s19469_s9 + $0x9e0] ss:$16 sps:$4 sm:$0xff]   ;;  %v18848_v57 = vld [vmem:[%s19469_s9 + $0xa04] ss:$16 sps:$4 sm:$0xff]  }
 0xb04   : > { %11269 = vmatprep.subr.bf16.mxu1 %v18737_v2  ;;  %12240 = vmatprep.subr.bf16.mxu0 %v18779_v28  ;;  %v18840_v42 = vld [vmem:[%s19469_s9 + $0xa20] ss:$16 sps:$4 sm:$0xff]   ;;  %v18854_v54 = vld [vmem:[%s19469_s9 + $0xbe4] ss:$16 sps:$4 sm:$0xff]  }
 0xb05   : > { %12241 = vmatpush1.bf16.msra.mxu0 %v18777_v21  ;;  %v18846_v60 = vld [vmem:[%s19469_s9 + $0xa00] ss:$16 sps:$4 sm:$0xff]   ;;  %v18860_v4 = vld [vmem:[%s19469_s9 + $0xbc4] ss:$16 sps:$4 sm:$0xff]  }
 0xb06   : > { %12242 = vmatprep.subr.bf16.mxu0 %v18782_v41  ;;  %v18852_v18 = vld [vmem:[%s19469_s9 + $0xbe0] ss:$16 sps:$4 sm:$0xff]   ;;  %v18866_v61 = vld [vmem:[%s19469_s9 + $0xba4] ss:$16 sps:$4 sm:$0xff]  }
 0xb07   : > { %11270 = vmatpush2.bf16.msra.mxu1 %v18735_v34  ;;  %v18858_v20 = vld [vmem:[%s19469_s9 + $0xbc0] ss:$16 sps:$4 sm:$0xff]   ;;  %v18878_v2 = vld [vmem:[%s19469_s9 + $0xb64] ss:$16 sps:$4 sm:$0xff]  }
 0xb08   : > { %11271 = vmatprep.subr.bf16.mxu1 %v18740_v3  ;;  %v18864_v26 = vld [vmem:[%s19469_s9 + $0xba0] ss:$16 sps:$4 sm:$0xff]   ;;  %v18884_v14 = vld [vmem:[%s19469_s9 + $0xb44] ss:$16 sps:$4 sm:$0xff]  }
 0xb09   : > { %12243 = vmatpush2.bf16.msra.mxu0 %v18780_v8  ;;  %v18876_v39 = vld [vmem:[%s19469_s9 + $0xb60] ss:$16 sps:$4 sm:$0xff]   ;;  %v18890_v34 = vld [vmem:[%s19469_s9 + $0xb24] ss:$16 sps:$4 sm:$0xff]   ;;  %v18902_v8 = vld [vmem:[%s19469_s9 + $0xaec] ss:$16 sps:$4 sm:$0xff]  }
 0xb0a   : > { %12244 = vmatprep.subr.bf16.mxu0 %v18785_v43  ;;  %v18882_v13 = vld [vmem:[%s19469_s9 + $0xb40] ss:$16 sps:$4 sm:$0xff]   ;;  %v18896_v28 = vld [vmem:[%s19469_s9 + $0xb04] ss:$16 sps:$4 sm:$0xff]  }
 0xb0b   : > { %11272 = vmatpush2.bf16.msra.mxu1 %v18738_v37  ;;  %v18888_v3 = vld [vmem:[%s19469_s9 + $0xb20] ss:$16 sps:$4 sm:$0xff]  }
 0xb0c   : > { %11273 = vmatprep.subr.bf16.mxu1 %v18743_v33  ;;  %v18894_v37 = vld [vmem:[%s19469_s9 + $0xb00] ss:$16 sps:$4 sm:$0xff]  }
 0xb0d   : > { %12245 = vmatpush2.bf16.msra.mxu0 %v18783_v16 }
 0xb0e   : > { %12246 = vmatprep.subr.bf16.mxu0 %v18788_v53 }
 0xb0f   : > { %11274 = vmatpush2.bf16.msra.mxu1 %v18741_v49 }
 0xb10   : > { %11275 = vmatprep.subr.bf16.mxu1 %v18746_v45 }
 0xb11   : > { %12247 = vmatpush2.bf16.msra.mxu0 %v18786_v24 }
 0xb12   : > { %12248 = vmatprep.subr.bf16.mxu0 %v18791_v12 }
 0xb13   : > { %11276 = vmatpush2.bf16.msra.mxu1 %v18744_v29 }
 0xb14   : > { %11277 = vmatprep.subr.bf16.mxu1 %v18749_v23 }
 0xb15   : > { %12249 = vmatpush2.bf16.msra.mxu0 %v18789_v9 }
 0xb16   : > { %12250 = vmatprep.subr.bf16.mxu0 %v18794_v32 }
 0xb17   : > { %11278 = vmatpush2.bf16.msra.mxu1 %v18747_v19 }
 0xb18   : > { %11279 = vmatprep.subr.bf16.mxu1 %v18752_v25  ;;  %v21762_v25 = vld [vmem:[%s19475_s6 + $0x4] sm:$0xf] }
 0xb19   : > { %12251 = vmatpush2.bf16.msra.mxu0 %v18792_v0 }
 0xb1a   : > { %12252 = vmatprep.subr.bf16.mxu0 %v18797_v22 }
 0xb1b   : > { %11280 = vmatpush2.bf16.msra.mxu1 %v18750_v51  ;;  %v21768_v51 = vrot.slane %v21762_v25, %v21469_v58 }
 0xb1c   : > { %11281 = vmatprep.subr.bf16.mxu1 %v18755_v27  ;;  %v21772_v27 = vrot.slane %v21762_v25, %v21472_v35 }
 0xb1d   : > { %12253 = vmatpush2.bf16.msra.mxu0 %v18795_v46 }
 0xb1e   : > { %12254 = vmatprep.subr.bf16.mxu0 %v18800_v55 }
 0xb1f   : > { %11282 = vmatpush2.bf16.msra.mxu1 %v18753_v62 }
 0xb20   : > { %12309 = vmatprep.subr.bf16.mxu1 %v18806_v40 }
 0xb21   : > { %12255 = vmatpush2.bf16.msra.mxu0 %v18798_v31 }
 0xb22   : > { %11284 = vmatmul.mubr.bf16.vlgmr.msra.gmra.mxu1 %v21593_v48  ;;  %v18803_v48 = vld [vmem:[%s19469_s9 + $0x904] ss:$16 sps:$4 sm:$0xff]  }
 0xb23   : > { %11293 = vmatprep.mubr.bf16.mxu1 %v21611_v56  ;;  %v18801_v56 = vld [vmem:[%s19469_s9 + $0x900] ss:$16 sps:$4 sm:$0xff]   ;;  %12256 = vmatprep.subr.bf16.mxu0 %v18803_v48 }
 0xb24   : > { %12310 = vmatpush1.bf16.msra.mxu1 %v18804_v38 }
 0xb25   : > { %12257 = vmatpush2.bf16.msra.mxu0 %v18801_v56 }
 0xb26   : > { %12392 = vmatprep.subr.bf16.mxu0 %v18809_v52 }
 0xb2a   : > { %11294 = vmatmul.mubr.bf16.gmra.mxu1 %v21609_v17  ;;  %v18812_v17 = vld [vmem:[%s19469_s9 + $0xac4] ss:$16 sps:$4 sm:$0xff]  }
 0xb2b   : > { %11303 = vmatprep.mubr.bf16.mxu1 %v21635_v47  ;;  %v18810_v47 = vld [vmem:[%s19469_s9 + $0xac0] ss:$16 sps:$4 sm:$0xff]   ;;  %12311 = vmatprep.subr.bf16.mxu1 %v18812_v17 }
 0xb2c   : > { %12312 = vmatpush1.bf16.msra.mxu1 %v18810_v47 }
 0xb2d   : > { %12313 = vmatprep.subr.bf16.mxu1 %v18818_v11 }
 0xb30   : > { %12314 = vmatpush1.bf16.msra.mxu1 %v18816_v7 }
 0xb32   : > { %11304 = vmatmul.mubr.bf16.gmra.mxu1 %v21633_v63  ;;  %v18824_v63 = vld [vmem:[%s19469_s9 + $0xa84] ss:$16 sps:$4 sm:$0xff]  }
 0xb33   : > { %11313 = vmatprep.mubr.bf16.mxu1 %v21653_v30  ;;  %v18822_v30 = vld [vmem:[%s19469_s9 + $0xa80] ss:$16 sps:$4 sm:$0xff]   ;;  %12315 = vmatprep.subr.bf16.mxu1 %v18824_v63 }
 0xb34   : > { %12316 = vmatpush1.bf16.msra.mxu1 %v18822_v30 }
 0xb35   : > { %12317 = vmatprep.subr.bf16.mxu1 %v18830_v36 }
 0xb38   : > { %12318 = vmatpush1.bf16.msra.mxu1 %v18828_v5 }
 0xb3a   : > { %11314 = vmatmul.mubr.bf16.gmra.mxu1 %v21655_v15  ;;  %v18836_v15 = vld [vmem:[%s19469_s9 + $0xa44] ss:$16 sps:$4 sm:$0xff]  }
 0xb3b   : > { %11323 = vmatprep.mubr.bf16.mxu1 %v21669_v1  ;;  %12319 = vmatprep.subr.bf16.mxu1 %v18836_v15  ;;  %v18870_v1 = vld [vmem:[%s19469_s9 + $0xb80] ss:$16 sps:$4 sm:$0xff]  }
 0xb3c   : > { %12320 = vmatpush1.bf16.msra.mxu1 %v18834_v50 }
 0xb3d   : > { %12321 = vmatprep.subr.bf16.mxu1 %v18842_v44 }
 0xb40   : > { %12322 = vmatpush1.bf16.msra.mxu1 %v18840_v42 }
 0xb41   : > { %12323 = vmatprep.subr.bf16.mxu1 %v18848_v57 }
 0xb42   : > { %11324 = vmatmul.mubr.bf16.gmra.mxu1 %v21671_v59  ;;  %v18872_v59 = vld [vmem:[%s19469_s9 + $0xb84] ss:$16 sps:$4 sm:$0xff]  }
 0xb44   : > { %12324 = vmatpush1.bf16.msra.mxu1 %v18846_v60 }
 0xb45   : > { %12325 = vmatprep.subr.bf16.mxu1 %v18854_v54 }
 0xb48   : > { %12326 = vmatpush2.bf16.msra.mxu1 %v18852_v18 }
 0xb49   : > { %12327 = vmatprep.subr.bf16.mxu1 %v18860_v4 }
 0xb4c   : > { %12328 = vmatpush2.bf16.msra.mxu1 %v18858_v20 }
 0xb4d   : > { %12329 = vmatprep.subr.bf16.mxu1 %v18866_v61 }
 0xb50   : > { %12330 = vmatpush2.bf16.msra.mxu1 %v18864_v26 }
 0xb51   : > { %12331 = vmatprep.subr.bf16.mxu1 %v18872_v59 }
 0xb54   : > { %12332 = vmatpush2.bf16.msra.mxu1 %v18870_v1 }
 0xb55   : > { %12333 = vmatprep.subr.bf16.mxu1 %v18878_v2  ;;  %v18807_v2 = vld [vmem:[%s19469_s9 + $0x8e8] ss:$16 sps:$4 sm:$0xff]  }
 0xb58   : > { %12334 = vmatpush2.bf16.msra.mxu1 %v18876_v39 }
 0xb59   : > { %12335 = vmatprep.subr.bf16.mxu1 %v18884_v14 }
 0xb5c   : > { %12336 = vmatpush2.bf16.msra.mxu1 %v18882_v13 }
 0xb5d   : > { %12337 = vmatprep.subr.bf16.mxu1 %v18890_v34  ;;  %v18815_v34 = vld [vmem:[%s19469_s9 + $0x8cc] ss:$16 sps:$4 sm:$0xff]  }
 0xb60   : > { %12338 = vmatpush2.bf16.msra.mxu1 %v18888_v3 }
 0xb61   : > { %12339 = vmatprep.subr.bf16.mxu1 %v18896_v28 }
 0xb62   : > { %v11036_v21 = vpop.f32.mrf.mxu0 }
 0xb63   : > { %v11037_v22 = vadd.f32 %v11036_v21, %v21772_v27 }
 0xb64   : > { %12340 = vmatpush2.bf16.msra.mxu1 %v18894_v37  ;;  %v11038_v33 = vpop.f32.mrf.mxu0 }
 0xb65   : > { %12475 = vmatprep.subr.bf16.mxu1 %v18902_v8  ;;  %v11039_v0 = vadd.f32 %v11038_v33, %v21768_v51 }
 0xb66   : > { %v11040_v41 = vpop.f32.mrf.mxu0 }
 0xb67   : > { %v11041_v55 = vadd.f32 %v11040_v41, %v21772_v27 }
 0xb68   : > { %v11042_v43 = vpop.f32.mrf.mxu0 }
 0xb69   : > { %v11043_v38 = vadd.f32 %v11042_v43, %v21768_v51  ;;  %v18813_v43 = vld [vmem:[%s19469_s9 + $0x8c8] ss:$16 sps:$4 sm:$0xff]  }
 0xb6a   : > { %v11046_v49 = vpop.f32.mrf.mxu0 }
 0xb6b   : > { %v11047_v42 = vadd.f32 %v11046_v49, %v21772_v27 }
 0xb6c   : > { %v11048_v45 = vpop.f32.mrf.mxu0 }
 0xb6d   : > { %v11049_v15 = vadd.f32 %v11048_v45, %v21768_v51 }
 0xb6e   : > { %v11050_v16 = vpop.f32.mrf.mxu0 }
 0xb6f   : > { %v11051_v57 = vadd.f32 %v11050_v16, %v21772_v27  ;;  %v18821_v16 = vld [vmem:[%s19469_s9 + $0x8ac] ss:$16 sps:$4 sm:$0xff]  }
 0xb70   : > { %v11052_v53 = vpop.f32.mrf.mxu0 }
 0xb71   : > { %v11053_v61 = vadd.f32 %v11052_v53, %v21768_v51 }
 0xb72   : > { %v21755_v29 = vpop.f32.mrf.mxu0 }
 0xb73   : > { %v11057_v53 = vadd.f32 %v21755_v29, %v21772_v27 }
 0xb74   : > { %v11058_v23 = vpop.f32.mrf.mxu0 }
 0xb75   : > { %v11059_v49 = vadd.f32 %v11058_v23, %v21768_v51 }
 0xb76   : > { %v11060_v24 = vpop.f32.mrf.mxu0 }
 0xb78   : > { %v21757_v12 = vpop.f32.mrf.mxu0 }
 0xb79   : > { %v11063_v23 = vadd.f32 %v21757_v12, %v21768_v51 }
 0xb7a   : > { %v21759_v19 = vpop.f32.mrf.mxu0 }
 0xb7c   : > { %v21764_v9 = vpop.f32.mrf.mxu0 }
 0xb7e   : > { %v21774_v62 = vpop.f32.mrf.mxu0 }
 0xb80   : > { %v21779_v48 = vpop.f32.mrf.mxu0 }
 0xb82   : > { %v21782_v63 = vpop.f32.mrf.mxu0 }
 0xb84   : > { %v21787_v54 = vpop.f32.mrf.mxu0 }
 0xb86   : > { %v21797_v28 = vpop.f32.mrf.mxu0 }
 0xba2   : > { %v11119_v32 = vpop.f32.mrf.mxu1 }
 0xba3   : > { %v11120_v56 = vadd.f32 %v11119_v32, %v11037_v22  ;;  %v11061_v32 = vadd.f32 %v11060_v24, %v21772_v27  ;;  %v18819_v24 = vld [vmem:[%s19469_s9 + $0x8a8] ss:$16 sps:$4 sm:$0xff]  }
 0xba4   : > { %v11121_v46 = vpop.f32.mrf.mxu1 }
 0xba5   : > { %v11122_v31 = vadd.f32 %v11121_v46, %v11039_v0  ;;  %v11334_v30 = vmul.f32 0.2, %v11120_v56  ;;  %v21806_v46 = vpop.f32.mrf.mxu0 }
 0xba6   : > { %v11123_v40 = vpop.f32.mrf.mxu1 }
 0xba7   : > { %v11124_v52 = vadd.f32 %v11123_v40, %v11041_v55  ;;  %v11335_v47 = vmul.f32 0.2, %v11122_v31  ;;  %v11374_v20 = vmax.f32 %v11120_v56, %v11334_v30 }
 0xba8   : > { %v11125_v17 = vpop.f32.mrf.mxu1 }
 0xba9   : > { %v11338_v11 = vmul.f32 0.2, %v11124_v52  ;;  %v11126_v7 = vadd.f32 %v11125_v17, %v11043_v38  ;;  %v11375_v60 = vmax.f32 %v11122_v31, %v11335_v47  ;;  %v21810_v17 = vpop.f32.mrf.mxu0 }
 0xbaa   : > { %v11129_v36 = vpop.f32.mrf.mxu1 }
 0xbab   : > { %v11339_v5 = vmul.f32 0.2, %v11126_v7  ;;  %v11378_v50 = vmax.f32 %v11124_v52, %v11338_v11  ;;  %v11130_v1 = vadd.f32 %v11129_v36, %v11047_v42  ;;  %v18827_v36 = vld [vmem:[%s19469_s9 + $0x88c] ss:$16 sps:$4 sm:$0xff]   ;;  %v21822_v42 = vpop.f32.mrf.mxu0 }
 0xbac   : > { %v11131_v44 = vpop.f32.mrf.mxu1 }
 0xbad   : > { %v11379_v18 = vmax.f32 %v11126_v7, %v11339_v5  ;;  %v11132_v4 = vadd.f32 %v11131_v44, %v11049_v15  ;;  %v21793_v14 = vpack.c.bf16 %v11378_v50, %v11374_v20  ;;  %v11342_v8 = vmul.f32 0.2, %v11130_v1 }
 0xbae   : > { %v11133_v26 = vpop.f32.mrf.mxu1  ;;  %v11069_v44 = vadd.f32 %v21764_v9, %v21768_v51  ;;  %v11071_v20 = vadd.f32 %v21774_v62, %v21772_v27 }
 0xbaf   : > { %v11134_v59 = vadd.f32 %v11133_v26, %v11051_v57  ;;  %v21790_v39 = vpack.c.bf16 %v11379_v18, %v11375_v60  ;;  %v11343_v37 = vmul.f32 0.2, %v11132_v4  ;;  %v11382_v40 = vmax.f32 %v11130_v1, %v11342_v8  ;;  %v18825_v60 = vld [vmem:[%s19469_s9 + $0x888] ss:$16 sps:$4 sm:$0xff]  }
 0xbb0   : > { %v11135_v13 = vpop.f32.mrf.mxu1  ;;  %v11067_v18 = vadd.f32 %v21759_v19, %v21772_v27 }
 0xbb1   : > { %v11346_v3 = vmul.f32 0.2, %v11134_v59  ;;  %v11136_v21 = vadd.f32 %v11135_v13, %v11053_v61  ;;  %12258 = vmatprep.mubr.bf16.mxu0 %v21790_v39  ;;  %v11383_v55 = vmax.f32 %v11132_v4, %v11343_v37  ;;  %v18833_v61 = vld [vmem:[%s19469_s9 + $0x86c] ss:$16 sps:$4 sm:$0xff]   ;;  %v18831_v37 = vld [vmem:[%s19469_s9 + $0x868] ss:$16 sps:$4 sm:$0xff]  }
 0xbb2   : > { %v11139_v33 = vpop.f32.mrf.mxu1  ;;  %12259 = vmatmul.mubr.bf16.vlgmr.msra.gmra.mxu0 %v21793_v14 }
 0xbb3   : > { %v11347_v41 = vmul.f32 0.2, %v11136_v21  ;;  %12393 = vmatpush1.bf16.msra.mxu0 %v18807_v2  ;;  %v11386_v0 = vmax.f32 %v11134_v59, %v11346_v3  ;;  %v11140_v38 = vadd.f32 %v11139_v33, %v11057_v53  ;;  %v11073_v2 = vadd.f32 %v21779_v48, %v21768_v51 }
 0xbb4   : > { %v11141_v45 = vpop.f32.mrf.mxu1  ;;  %12394 = vmatprep.subr.bf16.mxu0 %v18815_v34 }
 0xbb5   : > { %v11387_v22 = vmax.f32 %v11136_v21, %v11347_v41  ;;  %v11142_v31 = vadd.f32 %v11141_v45, %v11059_v49  ;;  %v21815_v30 = vpack.c.bf16 %v11386_v0, %v11382_v40  ;;  %v11350_v15 = vmul.f32 0.2, %v11140_v38  ;;  %v21832_v21 = vpop.f32.mrf.mxu0 }
 0xbb6   : > { %v11143_v56 = vpop.f32.mrf.mxu1  ;;  %v11079_v45 = vadd.f32 %v21787_v54, %v21768_v51  ;;  %v18845_v54 = vld [vmem:[%s19469_s9 + $0x82c] ss:$16 sps:$4 sm:$0xff]  }
 0xbb7   : > { %v11144_v52 = vadd.f32 %v11143_v56, %v11061_v32  ;;  %12395 = vmatpush1.bf16.msra.mxu0 %v18813_v43  ;;  %v21812_v47 = vpack.c.bf16 %v11387_v22, %v11383_v55  ;;  %v11351_v5 = vmul.f32 0.2, %v11142_v31  ;;  %v11390_v13 = vmax.f32 %v11140_v38, %v11350_v15  ;;  %v18839_v43 = vld [vmem:[%s19469_s9 + $0x84c] ss:$16 sps:$4 sm:$0xff]   ;;  %v21846_v0 = vpop.f32.mrf.mxu0  ;;  %v18837_v55 = vld [vmem:[%s19469_s9 + $0x848] ss:$16 sps:$4 sm:$0xff]  }
 0xbb8   : > { %v11145_v29 = vpop.f32.mrf.mxu1  ;;  %12396 = vmatprep.subr.bf16.mxu0 %v18821_v16  ;;  %v11077_v32 = vadd.f32 %v21782_v63, %v21772_v27  ;;  %v11083_v63 = vadd.f32 %v21806_v46, %v21768_v51 }
 0xbb9   : > { %v11354_v11 = vmul.f32 0.2, %v11144_v52  ;;  %v11146_v7 = vadd.f32 %v11145_v29, %v11063_v23  ;;  %12268 = vmatprep.mubr.bf16.mxu0 %v21812_v47  ;;  %v11391_v1 = vmax.f32 %v11142_v31, %v11351_v5  ;;  %v11081_v31 = vadd.f32 %v21797_v28, %v21772_v27 }
 0xbba   : > { %v11149_v12 = vpop.f32.mrf.mxu1  ;;  %12269 = vmatmul.mubr.bf16.gmra.mxu0 %v21815_v30 }
 0xbbb   : > { %v11355_v50 = vmul.f32 0.2, %v11146_v7  ;;  %12397 = vmatpush1.bf16.msra.mxu0 %v18819_v24  ;;  %v11394_v4 = vmax.f32 %v11144_v52, %v11354_v11  ;;  %v11150_v34 = vadd.f32 %v11149_v12, %v11067_v18 }
 0xbbc   : > { %v11151_v57 = vpop.f32.mrf.mxu1  ;;  %12398 = vmatprep.subr.bf16.mxu0 %v18827_v36  ;;  %v18843_v36 = vld [vmem:[%s19469_s9 + $0x828] ss:$16 sps:$4 sm:$0xff]  }
 0xbbd   : > { %v11395_v26 = vmax.f32 %v11146_v7, %v11355_v50  ;;  %v11152_v59 = vadd.f32 %v11151_v57, %v11069_v44  ;;  %v21837_v41 = vpack.c.bf16 %v11394_v4, %v11390_v13  ;;  %v11358_v16 = vmul.f32 0.2, %v11150_v34  ;;  %v21854_v7 = vpop.f32.mrf.mxu0  ;;  %v18851_v44 = vld [vmem:[%s19469_s9 + $0x80c] ss:$16 sps:$4 sm:$0xff]  }
 0xbbe   : > { %v11153_v9 = vpop.f32.mrf.mxu1  ;;  %v18863_v13 = vld [vmem:[%s19469_s9 + $0x9cc] ss:$16 sps:$4 sm:$0xff]  }
 0xbbf   : > { %v11154_v3 = vadd.f32 %v11153_v9, %v11071_v20  ;;  %12399 = vmatpush1.bf16.msra.mxu0 %v18825_v60  ;;  %v21834_v62 = vpack.c.bf16 %v11395_v26, %v11391_v1  ;;  %v11359_v49 = vmul.f32 0.2, %v11152_v59  ;;  %v11398_v29 = vmax.f32 %v11150_v34, %v11358_v16  ;;  %v21864_v57 = vpop.f32.mrf.mxu0  ;;  %v18849_v60 = vld [vmem:[%s19469_s9 + $0x808] ss:$16 sps:$4 sm:$0xff]   ;;  %v18857_v26 = vld [vmem:[%s19469_s9 + $0x9ec] ss:$16 sps:$4 sm:$0xff]  }
 0xbc0   : > { %v11155_v19 = vpop.f32.mrf.mxu1  ;;  %12400 = vmatprep.subr.bf16.mxu0 %v18833_v61  ;;  %v18855_v9 = vld [vmem:[%s19469_s9 + $0x9e8] ss:$16 sps:$4 sm:$0xff]  }
 0xbc1   : > { %v11362_v33 = vmul.f32 0.2, %v11154_v3  ;;  %v11156_v8 = vadd.f32 %v11155_v19, %v11073_v2  ;;  %12278 = vmatprep.mubr.bf16.mxu0 %v21834_v62  ;;  %v11399_v38 = vmax.f32 %v11152_v59, %v11359_v49  ;;  %v21870_v59 = vpop.f32.mrf.mxu0  ;;  %v18869_v19 = vld [vmem:[%s19469_s9 + $0x9ac] ss:$16 sps:$4 sm:$0xff]   ;;  %v18873_v49 = vld [vmem:[%s19469_s9 + $0x988] ss:$16 sps:$4 sm:$0xff]  }
 0xbc2   : > { %v11159_v48 = vpop.f32.mrf.mxu1  ;;  %12279 = vmatmul.mubr.bf16.gmra.mxu0 %v21837_v41 }
 0xbc3   : > { %v11363_v53 = vmul.f32 0.2, %v11156_v8  ;;  %12401 = vmatpush1.bf16.msra.mxu0 %v18831_v37  ;;  %v11402_v56 = vmax.f32 %v11154_v3, %v11362_v33  ;;  %v11160_v24 = vadd.f32 %v11159_v48, %v11077_v32  ;;  %v21878_v34 = vpop.f32.mrf.mxu0  ;;  %v18861_v3 = vld [vmem:[%s19469_s9 + $0x9c8] ss:$16 sps:$4 sm:$0xff]   ;;  %v18881_v48 = vld [vmem:[%s19469_s9 + $0x96c] ss:$16 sps:$4 sm:$0xff]  }
 0xbc4   : > { %v11161_v22 = vpop.f32.mrf.mxu1  ;;  %12402 = vmatprep.subr.bf16.mxu0 %v18839_v43  ;;  %v18867_v33 = vld [vmem:[%s19469_s9 + $0x9a8] ss:$16 sps:$4 sm:$0xff]   ;;  %v18887_v32 = vld [vmem:[%s19469_s9 + $0x94c] ss:$16 sps:$4 sm:$0xff]  }
 0xbc5   : > { %v11403_v23 = vmax.f32 %v11156_v8, %v11363_v53  ;;  %v11162_v40 = vadd.f32 %v11161_v22, %v11079_v45  ;;  %v21859_v50 = vpack.c.bf16 %v11402_v56, %v11398_v29  ;;  %v11366_v51 = vmul.f32 0.2, %v11160_v24  ;;  %v21883_v37 = vpop.f32.mrf.mxu0  ;;  %v18875_v8 = vld [vmem:[%s19469_s9 + $0x98c] ss:$16 sps:$4 sm:$0xff]   ;;  %v18879_v53 = vld [vmem:[%s19469_s9 + $0x968] ss:$16 sps:$4 sm:$0xff]  }
 0xbc6   : > { %v11163_v52 = vpop.f32.mrf.mxu1  ;;  %v21897_v45 = vrot.slane %v21762_v25, %v21562_v6 }
 0xbc7   : > { %v11164_v11 = vadd.f32 %v11163_v52, %v11081_v31  ;;  %12403 = vmatpush1.bf16.msra.mxu0 %v18837_v55  ;;  %v21856_v28 = vpack.c.bf16 %v11403_v23, %v11399_v38  ;;  %v11367_v5 = vmul.f32 0.2, %v11162_v40  ;;  %v11406_v61 = vmax.f32 %v11160_v24, %v11366_v51  ;;  %v21887_v43 = vpop.f32.mrf.mxu0  ;;  %v18885_v23 = vld [vmem:[%s19469_s9 + $0x948] ss:$16 sps:$4 sm:$0xff]   ;;  %v18893_v38 = vld [vmem:[%s19469_s9 + $0x92c] ss:$16 sps:$4 sm:$0xff]  }
 0xbc8   : > { %v11165_v27 = vpop.f32.mrf.mxu1  ;;  %12404 = vmatprep.subr.bf16.mxu0 %v18845_v54  ;;  %v11203_v31 = vadd.f32 %v21810_v17, %v21897_v45 }
 0xbc9   : > { %v11370_v12 = vmul.f32 0.2, %v11164_v11  ;;  %v11166_v15 = vadd.f32 %v11165_v27, %v11083_v63  ;;  %12288 = vmatprep.mubr.bf16.mxu0 %v21856_v28  ;;  %v11407_v18 = vmax.f32 %v11162_v40, %v11367_v5  ;;  %v21899_v16 = vpop.f32.mrf.mxu0  ;;  %v11207_v40 = vadd.f32 %v21832_v21, %v21897_v45  ;;  %v18899_v21 = vld [vmem:[%s19469_s9 + $0x90c] ss:$16 sps:$4 sm:$0xff]  }
 0xbca   : > { %12289 = vmatmul.mubr.bf16.gmra.mxu0 %v21859_v50 }
 0xbcb   : > { %v11371_v46 = vmul.f32 0.2, %v11166_v15  ;;  %12405 = vmatpush1.bf16.msra.mxu0 %v18843_v36  ;;  %v11410_v20 = vmax.f32 %v11164_v11, %v11370_v12  ;;  %v21907_v56 = vpop.f32.mrf.mxu0  ;;  %v18891_v11 = vld [vmem:[%s19469_s9 + $0x928] ss:$16 sps:$4 sm:$0xff]  }
 0xbcc   : > { %12406 = vmatprep.subr.bf16.mxu0 %v18851_v44 }
 0xbcd   : > { %v11411_v4 = vmax.f32 %v11166_v15, %v11371_v46  ;;  %v21874_v2 = vpack.c.bf16 %v11410_v20, %v11406_v61  ;;  %v21915_v17 = vpop.f32.mrf.mxu0  ;;  %v18897_v20 = vld [vmem:[%s19469_s9 + $0x908] ss:$16 sps:$4 sm:$0xff]  }
 0xbcf   : > { %v21868_v1 = vpack.c.bf16 %v11411_v4, %v11407_v18  ;;  %12407 = vmatpush1.bf16.msra.mxu0 %v18849_v60  ;;  %v21923_v46 = vpop.f32.mrf.mxu0  ;;  %v11217_v4 = vadd.f32 %v21870_v59, %v21897_v45 }
 0xbd0   : > { %12408 = vmatprep.subr.bf16.mxu0 %v18857_v26 }
 0xbd1   : > { %12298 = vmatprep.mubr.bf16.mxu0 %v21868_v1 }
 0xbd2   : > { %12299 = vmatmul.mubr.bf16.gmra.mxu0 %v21874_v2 }
 0xbd3   : > { %12409 = vmatpush2.bf16.msra.mxu0 %v18855_v9  ;;  %12424 = vmatprep.mubr.bf16.mxu0 %v21790_v39  ;;  %v21893_v39 = vrot.slane %v21762_v25, %v21559_v10 }
 0xbd4   : > { %12410 = vmatprep.subr.bf16.mxu0 %v18863_v13 }
 0xbd5   : > { %v11205_v55 = vadd.f32 %v21822_v42, %v21893_v39  ;;  %v11209_v42 = vadd.f32 %v21846_v0, %v21893_v39  ;;  %v11215_v44 = vadd.f32 %v21864_v57, %v21893_v39  ;;  %v11213_v0 = vadd.f32 %v21854_v7, %v21897_v45 }
 0xbd6   : > { %v11219_v7 = vadd.f32 %v21878_v34, %v21893_v39  ;;  %v11225_v34 = vadd.f32 %v21887_v43, %v21893_v39 }
 0xbd7   : > { %12411 = vmatpush2.bf16.msra.mxu0 %v18861_v3 }
 0xbd8   : > { %12412 = vmatprep.subr.bf16.mxu0 %v18869_v19 }
 0xbdb   : > { %12413 = vmatpush2.bf16.msra.mxu0 %v18867_v33 }
 0xbdc   : > { %12414 = vmatprep.subr.bf16.mxu0 %v18875_v8  ;;  %v18900_v8 = vld [vmem:[%s19469_s9 + $0xae8] ss:$16 sps:$4 sm:$0xff]  }
 0xbdf   : > { %12415 = vmatpush2.bf16.msra.mxu0 %v18873_v49  ;;  %v11236_v49 = vpop.f32.mrf.mxu0 }
 0xbe0   : > { %12416 = vmatprep.subr.bf16.mxu0 %v18881_v48 }
 0xbe2   : > { %v11285_v22 = vpop.f32.mrf.mxu1 }
 0xbe3   : > { %12417 = vmatpush2.bf16.msra.mxu0 %v18879_v53  ;;  %v11286_v52 = vadd.f32 %v11285_v22, %v11203_v31  ;;  %v18905_v53 = vld [vmem:[%s19469_s9 + $0xacc] ss:$16 sps:$4 sm:$0xff]  }
 0xbe4   : > { %v11287_v25 = vpop.f32.mrf.mxu1  ;;  %12418 = vmatprep.subr.bf16.mxu0 %v18887_v32 }
 0xbe5   : > { %v11288_v54 = vadd.f32 %v11287_v25, %v11205_v55  ;;  %v11336_v12 = vmul.f32 0.2, %v11286_v52 }
 0xbe6   : > { %v11289_v63 = vpop.f32.mrf.mxu1 }
 0xbe7   : > { %v11290_v29 = vadd.f32 %v11289_v63, %v11207_v40  ;;  %12419 = vmatpush2.bf16.msra.mxu0 %v18885_v23  ;;  %v11337_v27 = vmul.f32 0.2, %v11288_v54  ;;  %v11376_v57 = vmax.f32 %v11286_v52, %v11336_v12  ;;  %v18903_v40 = vld [vmem:[%s19469_s9 + $0xac8] ss:$16 sps:$4 sm:$0xff]  }
 0xbe8   : > { %v11291_v24 = vpop.f32.mrf.mxu1  ;;  %12420 = vmatprep.subr.bf16.mxu0 %v18893_v38  ;;  %v11238_v38 = vpop.f32.mrf.mxu0 }
 0xbe9   : > { %v11340_v36 = vmul.f32 0.2, %v11290_v29  ;;  %v11292_v5 = vadd.f32 %v11291_v24, %v11209_v42  ;;  %v11377_v26 = vmax.f32 %v11288_v54, %v11337_v27  ;;  %v11223_v54 = vadd.f32 %v21883_v37, %v21897_v45  ;;  %v18908_v42 = vld [vmem:[%s19469_s9 + $0xaac] ss:$16 sps:$4 sm:$0xff]  }
 0xbea   : > { %v11295_v15 = vpop.f32.mrf.mxu1  ;;  %v11229_v37 = vadd.f32 %v21907_v56, %v21893_v39  ;;  %v11242_v12 = vpop.f32.mrf.mxu0 }
 0xbeb   : > { %v11341_v51 = vmul.f32 0.2, %v11292_v5  ;;  %v11380_v60 = vmax.f32 %v11290_v29, %v11340_v36  ;;  %12421 = vmatpush2.bf16.msra.mxu0 %v18891_v11  ;;  %v11296_v13 = vadd.f32 %v11295_v15, %v11213_v0  ;;  %v11227_v29 = vadd.f32 %v21899_v16, %v21897_v45 }
 0xbec   : > { %v11297_v18 = vpop.f32.mrf.mxu1  ;;  %12422 = vmatprep.subr.bf16.mxu0 %v18899_v21 }
 0xbed   : > { %v11381_v61 = vmax.f32 %v11292_v5, %v11341_v51  ;;  %v11298_v9 = vadd.f32 %v11297_v18, %v11215_v44  ;;  %v21933_v48 = vpack.c.bf16 %v11380_v60, %v11376_v57  ;;  %v11344_v31 = vmul.f32 0.2, %v11296_v13  ;;  %v18911_v44 = vld [vmem:[%s19469_s9 + $0xa8c] ss:$16 sps:$4 sm:$0xff]  }
 0xbee   : > { %v11299_v3 = vpop.f32.mrf.mxu1 }
 0xbef   : > { %v11300_v19 = vadd.f32 %v11299_v3, %v11217_v4  ;;  %v21930_v33 = vpack.c.bf16 %v11381_v61, %v11377_v26  ;;  %12423 = vmatpush2.bf16.msra.mxu0 %v18897_v20  ;;  %v11345_v32 = vmul.f32 0.2, %v11298_v9  ;;  %v11384_v11 = vmax.f32 %v11296_v13, %v11344_v31  ;;  %v18909_v26 = vld [vmem:[%s19469_s9 + $0xa88] ss:$16 sps:$4 sm:$0xff]   ;;  %v18914_v3 = vld [vmem:[%s19469_s9 + $0xa6c] ss:$16 sps:$4 sm:$0xff]  }
 0xbf0   : > { %v11301_v59 = vpop.f32.mrf.mxu1  ;;  %v11235_v20 = vadd.f32 %v21923_v46, %v21893_v39  ;;  %v11233_v61 = vadd.f32 %v21915_v17, %v21897_v45  ;;  %v11239_v17 = vadd.f32 %v11238_v38, %v21893_v39 }
 0xbf1   : > { %v11348_v22 = vmul.f32 0.2, %v11300_v19  ;;  %v11302_v55 = vadd.f32 %v11301_v59, %v11219_v7  ;;  %12341 = vmatprep.mubr.bf16.mxu1 %v21930_v33  ;;  %v11385_v43 = vmax.f32 %v11298_v9, %v11345_v32  ;;  %v11244_v9 = vpop.f32.mrf.mxu0  ;;  %v11237_v7 = vadd.f32 %v11236_v49, %v21897_v45 }
 0xbf2   : > { %v11305_v25 = vpop.f32.mrf.mxu1  ;;  %12342 = vmatmul.mubr.bf16.vlgmr.msra.gmra.mxu1 %v21933_v48  ;;  %12425 = vmatmul.mubr.bf16.vlgmr.msra.gmra.mxu0 %v21793_v14 }
 0xbf3   : > { %v11349_v23 = vmul.f32 0.2, %v11302_v55  ;;  %12476 = vmatpush1.bf16.msra.mxu1 %v18900_v8  ;;  %v11388_v52 = vmax.f32 %v11300_v19, %v11348_v22  ;;  %12434 = vmatprep.mubr.bf16.mxu0 %v21812_v47  ;;  %v11306_v27 = vadd.f32 %v11305_v25, %v11223_v54  ;;  %v18906_v47 = vld [vmem:[%s19469_s9 + $0xaa8] ss:$16 sps:$4 sm:$0xff]   ;;  %v18917_v25 = vld [vmem:[%s19469_s9 + $0xa4c] ss:$16 sps:$4 sm:$0xff]  }
 0xbf4   : > { %v11307_v63 = vpop.f32.mrf.mxu1  ;;  %12477 = vmatprep.subr.bf16.mxu1 %v18905_v53 }
 0xbf5   : > { %v11389_v24 = vmax.f32 %v11302_v55, %v11349_v23  ;;  %v11308_v14 = vadd.f32 %v11307_v63, %v11225_v34  ;;  %v21953_v16 = vpack.c.bf16 %v11388_v52, %v11384_v11  ;;  %v11352_v18 = vmul.f32 0.2, %v11306_v27  ;;  %v11246_v55 = vpop.f32.mrf.mxu0  ;;  %v18950_v34 = vld [vmem:[%s19469_s9 + $0xce4] ss:$16 sps:$4 sm:$0xff]   ;;  %v18948_v52 = vld [vmem:[%s19469_s9 + $0xce0] ss:$16 sps:$4 sm:$0xff]  }
 0xbf6   : > { %v11309_v36 = vpop.f32.mrf.mxu1  ;;  %13450 = vmatprep.subr.bf16.mxu0 %v18950_v34  ;;  %v18932_v34 = vld [vmem:[%s19469_s9 + $0xbac] ss:$16 sps:$4 sm:$0xff]  }
 0xbf7   : > { %v11310_v5 = vadd.f32 %v11309_v36, %v11227_v29  ;;  %12478 = vmatpush1.bf16.msra.mxu1 %v18903_v40  ;;  %v21950_v21 = vpack.c.bf16 %v11389_v24, %v11385_v43  ;;  %v11353_v51 = vmul.f32 0.2, %v11308_v14  ;;  %v11392_v8 = vmax.f32 %v11306_v27, %v11352_v18  ;;  %v18915_v43 = vld [vmem:[%s19469_s9 + $0xa48] ss:$16 sps:$4 sm:$0xff]   ;;  %v18920_v36 = vld [vmem:[%s19469_s9 + $0xa2c] ss:$16 sps:$4 sm:$0xff]   ;;  %13451 = vmatpush1.bf16.msra.mxu0 %v18948_v52 }
 0xbf8   : > { %v11311_v15 = vpop.f32.mrf.mxu1  ;;  %12479 = vmatprep.subr.bf16.mxu1 %v18908_v42  ;;  %v11245_v42 = vadd.f32 %v11244_v9, %v21893_v39  ;;  %v11243_v24 = vadd.f32 %v11242_v12, %v21897_v45  ;;  %v18968_v52 = vld [vmem:[%s19469_s9 + $0xc24] ss:$16 sps:$4 sm:$0xff]  }
 0xbf9   : > { %v11356_v0 = vmul.f32 0.2, %v11310_v5  ;;  %v11312_v60 = vadd.f32 %v11311_v15, %v11229_v37  ;;  %12351 = vmatprep.mubr.bf16.mxu1 %v21950_v21  ;;  %v11393_v46 = vmax.f32 %v11308_v14, %v11353_v51  ;;  %v11248_v14 = vpop.f32.mrf.mxu0  ;;  %v18953_v37 = vld [vmem:[%s19469_s9 + $0xcc4] ss:$16 sps:$4 sm:$0xff]  }
 0xbfa   : > { %v11315_v56 = vpop.f32.mrf.mxu1  ;;  %12352 = vmatmul.mubr.bf16.gmra.mxu1 %v21953_v16  ;;  %12435 = vmatmul.mubr.bf16.gmra.mxu0 %v21815_v30 }
 0xbfb   : > { %v11357_v4 = vmul.f32 0.2, %v11312_v60  ;;  %12480 = vmatpush1.bf16.msra.mxu1 %v18906_v47  ;;  %v11396_v57 = vmax.f32 %v11310_v5, %v11356_v0  ;;  %12444 = vmatprep.mubr.bf16.mxu0 %v21834_v62  ;;  %v11316_v59 = vadd.f32 %v11315_v56, %v11233_v61  ;;  %v18912_v62 = vld [vmem:[%s19469_s9 + $0xa68] ss:$16 sps:$4 sm:$0xff]   ;;  %v11247_v5 = vadd.f32 %v11246_v55, %v21897_v45  ;;  %v18962_v55 = vld [vmem:[%s19469_s9 + $0xc64] ss:$16 sps:$4 sm:$0xff]  }
 0xbfc   : > { %v11317_v13 = vpop.f32.mrf.mxu1  ;;  %12481 = vmatprep.subr.bf16.mxu1 %v18911_v44  ;;  %v18951_v44 = vld [vmem:[%s19469_s9 + $0xcc0] ss:$16 sps:$4 sm:$0xff]   ;;  %13452 = vmatprep.subr.bf16.mxu0 %v18953_v37  ;;  %v18918_v56 = vld [vmem:[%s19469_s9 + $0xa28] ss:$16 sps:$4 sm:$0xff]   ;;  %v18944_v37 = vld [vmem:[%s19469_s9 + $0xb2c] ss:$16 sps:$4 sm:$0xff]  }
 0xbfd   : > { %v11397_v19 = vmax.f32 %v11312_v60, %v11357_v4  ;;  %v11318_v30 = vadd.f32 %v11317_v13, %v11235_v20  ;;  %v21971_v49 = vpack.c.bf16 %v11396_v57, %v11392_v8  ;;  %v11360_v38 = vmul.f32 0.2, %v11316_v59  ;;  %v18923_v4 = vld [vmem:[%s19469_s9 + $0xa0c] ss:$16 sps:$4 sm:$0xff]   ;;  %13453 = vmatpush1.bf16.msra.mxu0 %v18951_v44  ;;  %v18978_v44 = vld [vmem:[%s19469_s9 + $0xda0] ss:$16 sps:$4 sm:$0xff]  }
 0xbfe   : > { %v11319_v53 = vpop.f32.mrf.mxu1 }
 0xbff   : > { %v11320_v32 = vadd.f32 %v11319_v53, %v11237_v7  ;;  %12482 = vmatpush1.bf16.msra.mxu1 %v18909_v26  ;;  %v21968_v22 = vpack.c.bf16 %v11397_v19, %v11393_v46  ;;  %v11361_v23 = vmul.f32 0.2, %v11318_v30  ;;  %v11400_v51 = vmax.f32 %v11316_v59, %v11360_v38  ;;  %v18956_v26 = vld [vmem:[%s19469_s9 + $0xca4] ss:$16 sps:$4 sm:$0xff]   ;;  %v18921_v7 = vld [vmem:[%s19469_s9 + $0xa08] ss:$16 sps:$4 sm:$0xff]  }
 0xc00   : > { %v11321_v31 = vpop.f32.mrf.mxu1  ;;  %12483 = vmatprep.subr.bf16.mxu1 %v18914_v3  ;;  %13454 = vmatprep.subr.bf16.mxu0 %v18956_v26  ;;  %v18926_v19 = vld [vmem:[%s19469_s9 + $0xbec] ss:$16 sps:$4 sm:$0xff]   ;;  %v18957_v53 = vld [vmem:[%s19469_s9 + $0xc80] ss:$16 sps:$4 sm:$0xff]  }
 0xc01   : > { %v11364_v40 = vmul.f32 0.2, %v11320_v32  ;;  %v11322_v54 = vadd.f32 %v11321_v31, %v11239_v17  ;;  %12361 = vmatprep.mubr.bf16.mxu1 %v21968_v22  ;;  %v11401_v47 = vmax.f32 %v11318_v30, %v11361_v23  ;;  %v18959_v30 = vld [vmem:[%s19469_s9 + $0xc84] ss:$16 sps:$4 sm:$0xff]   ;;  %v18960_v31 = vld [vmem:[%s19469_s9 + $0xc60] ss:$16 sps:$4 sm:$0xff]  }
 0xc02   : > { %v11325_v63 = vpop.f32.mrf.mxu1  ;;  %12362 = vmatmul.mubr.bf16.gmra.mxu1 %v21971_v49  ;;  %12445 = vmatmul.mubr.bf16.gmra.mxu0 %v21837_v41  ;;  %v18965_v23 = vld [vmem:[%s19469_s9 + $0xc44] ss:$16 sps:$4 sm:$0xff]   ;;  %v18966_v38 = vld [vmem:[%s19469_s9 + $0xc20] ss:$16 sps:$4 sm:$0xff]  }
 0xc03   : > { %v11365_v29 = vmul.f32 0.2, %v11322_v54  ;;  %12484 = vmatpush1.bf16.msra.mxu1 %v18912_v62  ;;  %v11404_v11 = vmax.f32 %v11320_v32, %v11364_v40  ;;  %12454 = vmatprep.mubr.bf16.mxu0 %v21856_v28  ;;  %v11326_v12 = vadd.f32 %v11325_v63, %v11243_v24  ;;  %v11249_v28 = vadd.f32 %v11248_v14, %v21893_v39  ;;  %v18954_v39 = vld [vmem:[%s19469_s9 + $0xca0] ss:$16 sps:$4 sm:$0xff]   ;;  %v18924_v32 = vld [vmem:[%s19469_s9 + $0xbe8] ss:$16 sps:$4 sm:$0xff]  }
 0xc04   : > { %v11327_v27 = vpop.f32.mrf.mxu1  ;;  %12485 = vmatprep.subr.bf16.mxu1 %v18917_v25  ;;  %13455 = vmatpush1.bf16.msra.mxu0 %v18954_v39  ;;  %v18929_v62 = vld [vmem:[%s19469_s9 + $0xbcc] ss:$16 sps:$4 sm:$0xff]   ;;  %v18927_v25 = vld [vmem:[%s19469_s9 + $0xbc8] ss:$16 sps:$4 sm:$0xff]   ;;  %v18963_v40 = vld [vmem:[%s19469_s9 + $0xc40] ss:$16 sps:$4 sm:$0xff]  }
 0xc05   : > { %v11405_v15 = vmax.f32 %v11322_v54, %v11365_v29  ;;  %v11328_v41 = vadd.f32 %v11327_v27, %v11245_v42  ;;  %v21991_v20 = vpack.c.bf16 %v11404_v11, %v11400_v51  ;;  %v11368_v13 = vmul.f32 0.2, %v11326_v12  ;;  %13456 = vmatprep.subr.bf16.mxu0 %v18959_v30  ;;  %v18930_v54 = vld [vmem:[%s19469_s9 + $0xba8] ss:$16 sps:$4 sm:$0xff]   ;;  %v18938_v42 = vld [vmem:[%s19469_s9 + $0xb6c] ss:$16 sps:$4 sm:$0xff]  }
 0xc06   : > { %v11329_v0 = vpop.f32.mrf.mxu1  ;;  %v18933_v63 = vld [vmem:[%s19469_s9 + $0xb88] ss:$16 sps:$4 sm:$0xff]   ;;  %v18969_v29 = vld [vmem:[%s19469_s9 + $0xc00] ss:$16 sps:$4 sm:$0xff]   ;;  %v18941_v14 = vld [vmem:[%s19469_s9 + $0xb4c] ss:$16 sps:$4 sm:$0xff]  }
 0xc07   : > { %v11330_v60 = vadd.f32 %v11329_v0, %v11247_v5  ;;  %12486 = vmatpush1.bf16.msra.mxu1 %v18915_v43  ;;  %v21988_v18 = vpack.c.bf16 %v11405_v15, %v11401_v47  ;;  %v11369_v61 = vmul.f32 0.2, %v11328_v41  ;;  %v11408_v17 = vmax.f32 %v11326_v12, %v11368_v13  ;;  %v18974_v43 = vld [vmem:[%s19469_s9 + $0xde4] ss:$16 sps:$4 sm:$0xff]   ;;  %v18936_v24 = vld [vmem:[%s19469_s9 + $0xb68] ss:$16 sps:$4 sm:$0xff]  }
 0xc08   : > { %v11331_v45 = vpop.f32.mrf.mxu1  ;;  %12487 = vmatprep.subr.bf16.mxu1 %v18920_v36  ;;  %13457 = vmatpush1.bf16.msra.mxu0 %v18957_v53  ;;  %v18972_v11 = vld [vmem:[%s19469_s9 + $0xde0] ss:$16 sps:$4 sm:$0xff]   ;;  %v18977_v27 = vld [vmem:[%s19469_s9 + $0xdc4] ss:$16 sps:$4 sm:$0xff]   ;;  %v18939_v36 = vld [vmem:[%s19469_s9 + $0xb48] ss:$16 sps:$4 sm:$0xff]  }
 0xc09   : > { %v11372_v9 = vmul.f32 0.2, %v11330_v60  ;;  %v11332_v57 = vadd.f32 %v11331_v45, %v11249_v28  ;;  %12371 = vmatprep.mubr.bf16.mxu1 %v21988_v18  ;;  %v11409_v8 = vmax.f32 %v11328_v41, %v11369_v61  ;;  %13458 = vmatprep.subr.bf16.mxu0 %v18962_v55  ;;  %v18975_v5 = vld [vmem:[%s19469_s9 + $0xdc0] ss:$16 sps:$4 sm:$0xff]   ;;  %v18980_v47 = vld [vmem:[%s19469_s9 + $0xda4] ss:$16 sps:$4 sm:$0xff]  }
 0xc0a   : > { %12372 = vmatmul.mubr.bf16.gmra.mxu1 %v21991_v20  ;;  %12455 = vmatmul.mubr.bf16.gmra.mxu0 %v21859_v50  ;;  %v18942_v15 = vld [vmem:[%s19469_s9 + $0xb28] ss:$16 sps:$4 sm:$0xff]   ;;  %v18947_v41 = vld [vmem:[%s19469_s9 + $0xb0c] ss:$16 sps:$4 sm:$0xff]   ;;  %v18983_v51 = vld [vmem:[%s19469_s9 + $0xd84] ss:$16 sps:$4 sm:$0xff]  }
 0xc0b   : > { %v11373_v3 = vmul.f32 0.2, %v11332_v57  ;;  %12488 = vmatpush1.bf16.msra.mxu1 %v18918_v56  ;;  %v11412_v46 = vmax.f32 %v11330_v60, %v11372_v9  ;;  %12464 = vmatprep.mubr.bf16.mxu0 %v21868_v1  ;;  %v18945_v12 = vld [vmem:[%s19469_s9 + $0xb08] ss:$16 sps:$4 sm:$0xff]   ;;  %v18981_v0 = vld [vmem:[%s19469_s9 + $0xd80] ss:$16 sps:$4 sm:$0xff]  }
 0xc0c   : > { %12489 = vmatprep.subr.bf16.mxu1 %v18923_v4  ;;  %13459 = vmatpush1.bf16.msra.mxu0 %v18960_v31  ;;  %v18986_v28 = vld [vmem:[%s19469_s9 + $0xd64] ss:$16 sps:$4 sm:$0xff]   ;;  %v18984_v60 = vld [vmem:[%s19469_s9 + $0xd60] ss:$16 sps:$4 sm:$0xff]  }
 0xc0d   : > { %v11413_v59 = vmax.f32 %v11332_v57, %v11373_v3  ;;  %v22007_v1 = vpack.c.bf16 %v11412_v46, %v11408_v17  ;;  %13460 = vmatprep.subr.bf16.mxu0 %v18965_v23  ;;  %v18989_v56 = vld [vmem:[%s19469_s9 + $0xd44] ss:$16 sps:$4 sm:$0xff]   ;;  %v18987_v45 = vld [vmem:[%s19469_s9 + $0xd40] ss:$16 sps:$4 sm:$0xff]   ;;  %v19001_v57 = vld [vmem:[%s19469_s9 + $0xcec] ss:$16 sps:$4 sm:$0xff]  }
 0xc0e   : > { %v18992_v4 = vld [vmem:[%s19469_s9 + $0xd24] ss:$16 sps:$4 sm:$0xff]   ;;  %v18990_v26 = vld [vmem:[%s19469_s9 + $0xd20] ss:$16 sps:$4 sm:$0xff]  }
 0xc0f   : > { %12490 = vmatpush1.bf16.msra.mxu1 %v18921_v7  ;;  %v22004_v50 = vpack.c.bf16 %v11413_v59, %v11409_v8  ;;  %v18998_v61 = vld [vmem:[%s19469_s9 + $0xee4] ss:$16 sps:$4 sm:$0xff]   ;;  %v18996_v9 = vld [vmem:[%s19469_s9 + $0xee0] ss:$16 sps:$4 sm:$0xff]  }
 0xc10   : > { %12491 = vmatprep.subr.bf16.mxu1 %v18926_v19  ;;  %13461 = vmatpush1.bf16.msra.mxu0 %v18963_v40  ;;  %v19010_v39 = vld [vmem:[%s19469_s9 + $0xea4] ss:$16 sps:$4 sm:$0xff]   ;;  %v19008_v13 = vld [vmem:[%s19469_s9 + $0xea0] ss:$16 sps:$4 sm:$0xff]  }
 0xc11   : > { %12381 = vmatprep.mubr.bf16.mxu1 %v22004_v50  ;;  %13462 = vmatprep.subr.bf16.mxu0 %v18968_v52  ;;  %v19022_v3 = vld [vmem:[%s19469_s9 + $0xe64] ss:$16 sps:$4 sm:$0xff]   ;;  %v19020_v7 = vld [vmem:[%s19469_s9 + $0xe60] ss:$16 sps:$4 sm:$0xff]  }
 0xc12   : > { %12382 = vmatmul.mubr.bf16.gmra.mxu1 %v22007_v1  ;;  %12465 = vmatmul.mubr.bf16.gmra.mxu0 %v21874_v2  ;;  %v18935_v2 = vld [vmem:[%s19469_s9 + $0xb8c] ss:$16 sps:$4 sm:$0xff]   ;;  %v19026_v46 = vld [vmem:[%s19469_s9 + $0xe40] ss:$16 sps:$4 sm:$0xff]   ;;  %v19034_v19 = vld [vmem:[%s19469_s9 + $0xe24] ss:$16 sps:$4 sm:$0xff]  }
 0xc13   : > { %12492 = vmatpush2.bf16.msra.mxu1 %v18924_v32  ;;  %12507 = vmatprep.mubr.bf16.mxu1 %v21930_v33  ;;  %v18971_v33 = vld [vmem:[%s19469_s9 + $0xc04] ss:$16 sps:$4 sm:$0xff]   ;;  %v19032_v30 = vld [vmem:[%s19469_s9 + $0xe20] ss:$16 sps:$4 sm:$0xff]  }
 0xc14   : > { %12493 = vmatprep.subr.bf16.mxu1 %v18929_v62  ;;  %13463 = vmatpush1.bf16.msra.mxu0 %v18966_v38  ;;  %v19040_v8 = vld [vmem:[%s19469_s9 + $0xe04] ss:$16 sps:$4 sm:$0xff]   ;;  %v19038_v59 = vld [vmem:[%s19469_s9 + $0xe00] ss:$16 sps:$4 sm:$0xff]  }
 0xc15   : > { %13464 = vmatprep.subr.bf16.mxu0 %v18971_v33  ;;  %v19044_v53 = vld [vmem:[%s19469_s9 + $0xfe0] ss:$16 sps:$4 sm:$0xff]   ;;  %v19046_v17 = vld [vmem:[%s19469_s9 + $0xfe4] ss:$16 sps:$4 sm:$0xff]  }
 0xc16   : > { %v19052_v32 = vld [vmem:[%s19469_s9 + $0xfc4] ss:$16 sps:$4 sm:$0xff]   ;;  %v19062_v55 = vld [vmem:[%s19469_s9 + $0xf80] ss:$16 sps:$4 sm:$0xff]  }
 0xc17   : > { %12494 = vmatpush2.bf16.msra.mxu1 %v18927_v25  ;;  %v19058_v62 = vld [vmem:[%s19469_s9 + $0xfa4] ss:$16 sps:$4 sm:$0xff]   ;;  %v19068_v25 = vld [vmem:[%s19469_s9 + $0xf60] ss:$16 sps:$4 sm:$0xff]  }
 0xc18   : > { %12495 = vmatprep.subr.bf16.mxu1 %v18932_v34  ;;  %13465 = vmatpush1.bf16.msra.mxu0 %v18969_v29  ;;  %v19064_v31 = vld [vmem:[%s19469_s9 + $0xf84] ss:$16 sps:$4 sm:$0xff]   ;;  %v19074_v40 = vld [vmem:[%s19469_s9 + $0xf40] ss:$16 sps:$4 sm:$0xff]  }
 0xc19   : > { %13466 = vmatprep.subr.bf16.mxu0 %v18974_v43  ;;  %v19070_v34 = vld [vmem:[%s19469_s9 + $0xf64] ss:$16 sps:$4 sm:$0xff]   ;;  %v19086_v33 = vld [vmem:[%s19469_s9 + $0xf00] ss:$16 sps:$4 sm:$0xff]  }
 0xc1a   : > { %v19076_v23 = vld [vmem:[%s19469_s9 + $0xf44] ss:$16 sps:$4 sm:$0xff]  }
 0xc1b   : > { %12496 = vmatpush2.bf16.msra.mxu1 %v18930_v54  ;;  %v19082_v54 = vld [vmem:[%s19469_s9 + $0xf24] ss:$16 sps:$4 sm:$0xff]  }
 0xc1c   : > { %12497 = vmatprep.subr.bf16.mxu1 %v18935_v2  ;;  %13467 = vmatpush2.bf16.msra.mxu0 %v18972_v11  ;;  %v19080_v2 = vld [vmem:[%s19469_s9 + $0xf20] ss:$16 sps:$4 sm:$0xff]   ;;  %v19088_v38 = vld [vmem:[%s19469_s9 + $0xf04] ss:$16 sps:$4 sm:$0xff]  }
 0xc1d   : > { %13468 = vmatprep.subr.bf16.mxu0 %v18977_v27 }
 0xc1f   : > { %12498 = vmatpush2.bf16.msra.mxu1 %v18933_v63 }
 0xc20   : > { %12499 = vmatprep.subr.bf16.mxu1 %v18938_v42  ;;  %13469 = vmatpush2.bf16.msra.mxu0 %v18975_v5  ;;  %v19094_v42 = vld [vmem:[%s19469_s9 + $0xeec] ss:$16 sps:$4 sm:$0xff]  }
 0xc21   : > { %13470 = vmatprep.subr.bf16.mxu0 %v18980_v47 }
 0xc23   : > { %12500 = vmatpush2.bf16.msra.mxu1 %v18936_v24 }
 0xc24   : > { %12501 = vmatprep.subr.bf16.mxu1 %v18941_v14  ;;  %13471 = vmatpush2.bf16.msra.mxu0 %v18978_v44 }
 0xc25   : > { %13472 = vmatprep.subr.bf16.mxu0 %v18983_v51 }
 0xc27   : > { %12502 = vmatpush2.bf16.msra.mxu1 %v18939_v36 }
 0xc28   : > { %12503 = vmatprep.subr.bf16.mxu1 %v18944_v37  ;;  %13473 = vmatpush2.bf16.msra.mxu0 %v18981_v0 }
 0xc29   : > { %13474 = vmatprep.subr.bf16.mxu0 %v18986_v28 }
 0xc2b   : > { %12504 = vmatpush2.bf16.msra.mxu1 %v18942_v15 }
 0xc2c   : > { %12505 = vmatprep.subr.bf16.mxu1 %v18947_v41  ;;  %13475 = vmatpush2.bf16.msra.mxu0 %v18984_v60  ;;  %v22101_v41 = vld [vmem:[%s19475_s6 + $0x8] sm:$0xf] }
 0xc2d   : > { %13476 = vmatprep.subr.bf16.mxu0 %v18989_v56  ;;  %v22107_v51 = vrot.slane %v22101_v41, %v21469_v58 }
 0xc2f   : > { %12506 = vmatpush2.bf16.msra.mxu1 %v18945_v12  ;;  %v22111_v12 = vrot.slane %v22101_v41, %v21472_v35 }
 0xc30   : > { %13477 = vmatpush2.bf16.msra.mxu0 %v18987_v45  ;;  %13533 = vmatprep.subr.bf16.mxu1 %v18998_v61 }
 0xc31   : > { %13478 = vmatprep.subr.bf16.mxu0 %v18992_v4 }
 0xc32   : > { %12508 = vmatmul.mubr.bf16.vlgmr.msra.gmra.mxu1 %v21933_v48  ;;  %v18995_v48 = vld [vmem:[%s19469_s9 + $0xd04] ss:$16 sps:$4 sm:$0xff]  }
 0xc33   : > { %12517 = vmatprep.mubr.bf16.mxu1 %v21950_v21  ;;  %v18993_v21 = vld [vmem:[%s19469_s9 + $0xd00] ss:$16 sps:$4 sm:$0xff]   ;;  %13534 = vmatpush1.bf16.msra.mxu1 %v18996_v9 }
 0xc34   : > { %13479 = vmatpush2.bf16.msra.mxu0 %v18990_v26 }
 0xc35   : > { %13480 = vmatprep.subr.bf16.mxu0 %v18995_v48 }
 0xc38   : > { %13481 = vmatpush2.bf16.msra.mxu0 %v18993_v21 }
 0xc39   : > { %13616 = vmatprep.subr.bf16.mxu0 %v19001_v57 }
 0xc3a   : > { %12518 = vmatmul.mubr.bf16.gmra.mxu1 %v21953_v16  ;;  %v19004_v16 = vld [vmem:[%s19469_s9 + $0xec4] ss:$16 sps:$4 sm:$0xff]  }
 0xc3b   : > { %12527 = vmatprep.mubr.bf16.mxu1 %v21968_v22  ;;  %v19002_v22 = vld [vmem:[%s19469_s9 + $0xec0] ss:$16 sps:$4 sm:$0xff]   ;;  %13535 = vmatprep.subr.bf16.mxu1 %v19004_v16 }
 0xc3c   : > { %13536 = vmatpush1.bf16.msra.mxu1 %v19002_v22 }
 0xc3d   : > { %13537 = vmatprep.subr.bf16.mxu1 %v19010_v39 }
 0xc40   : > { %13538 = vmatpush1.bf16.msra.mxu1 %v19008_v13 }
 0xc42   : > { %12528 = vmatmul.mubr.bf16.gmra.mxu1 %v21971_v49  ;;  %v19016_v49 = vld [vmem:[%s19469_s9 + $0xe84] ss:$16 sps:$4 sm:$0xff]  }
 0xc43   : > { %12537 = vmatprep.mubr.bf16.mxu1 %v21988_v18  ;;  %v19014_v18 = vld [vmem:[%s19469_s9 + $0xe80] ss:$16 sps:$4 sm:$0xff]   ;;  %13539 = vmatprep.subr.bf16.mxu1 %v19016_v49 }
 0xc44   : > { %13540 = vmatpush1.bf16.msra.mxu1 %v19014_v18 }
 0xc45   : > { %13541 = vmatprep.subr.bf16.mxu1 %v19022_v3 }
 0xc48   : > { %13542 = vmatpush1.bf16.msra.mxu1 %v19020_v7 }
 0xc4a   : > { %12538 = vmatmul.mubr.bf16.gmra.mxu1 %v21991_v20  ;;  %v19028_v20 = vld [vmem:[%s19469_s9 + $0xe44] ss:$16 sps:$4 sm:$0xff]  }
 0xc4b   : > { %12547 = vmatprep.mubr.bf16.mxu1 %v22004_v50  ;;  %13543 = vmatprep.subr.bf16.mxu1 %v19028_v20  ;;  %v19050_v50 = vld [vmem:[%s19469_s9 + $0xfc0] ss:$16 sps:$4 sm:$0xff]  }
 0xc4c   : > { %13544 = vmatpush1.bf16.msra.mxu1 %v19026_v46 }
 0xc4d   : > { %13545 = vmatprep.subr.bf16.mxu1 %v19034_v19 }
 0xc50   : > { %13546 = vmatpush1.bf16.msra.mxu1 %v19032_v30 }
 0xc51   : > { %13547 = vmatprep.subr.bf16.mxu1 %v19040_v8 }
 0xc52   : > { %12548 = vmatmul.mubr.bf16.gmra.mxu1 %v22007_v1  ;;  %v19056_v1 = vld [vmem:[%s19469_s9 + $0xfa0] ss:$16 sps:$4 sm:$0xff]  }
 0xc54   : > { %13548 = vmatpush1.bf16.msra.mxu1 %v19038_v59 }
 0xc55   : > { %13549 = vmatprep.subr.bf16.mxu1 %v19046_v17 }
 0xc58   : > { %13550 = vmatpush2.bf16.msra.mxu1 %v19044_v53 }
 0xc59   : > { %13551 = vmatprep.subr.bf16.mxu1 %v19052_v32 }
 0xc5c   : > { %13552 = vmatpush2.bf16.msra.mxu1 %v19050_v50 }
 0xc5d   : > { %13553 = vmatprep.subr.bf16.mxu1 %v19058_v62 }
 0xc60   : > { %13554 = vmatpush2.bf16.msra.mxu1 %v19056_v1 }
 0xc61   : > { %13555 = vmatprep.subr.bf16.mxu1 %v19064_v31 }
 0xc64   : > { %13556 = vmatpush2.bf16.msra.mxu1 %v19062_v55 }
 0xc65   : > { %13557 = vmatprep.subr.bf16.mxu1 %v19070_v34  ;;  %v18999_v34 = vld [vmem:[%s19469_s9 + $0xce8] ss:$16 sps:$4 sm:$0xff]  }
 0xc68   : > { %13558 = vmatpush2.bf16.msra.mxu1 %v19068_v25 }
 0xc69   : > { %13559 = vmatprep.subr.bf16.mxu1 %v19076_v23 }
 0xc6c   : > { %13560 = vmatpush2.bf16.msra.mxu1 %v19074_v40 }
 0xc6d   : > { %13561 = vmatprep.subr.bf16.mxu1 %v19082_v54  ;;  %v19007_v54 = vld [vmem:[%s19469_s9 + $0xccc] ss:$16 sps:$4 sm:$0xff]  }
 0xc70   : > { %13562 = vmatpush2.bf16.msra.mxu1 %v19080_v2 }
 0xc71   : > { %13563 = vmatprep.subr.bf16.mxu1 %v19088_v38 }
 0xc72   : > { %v12260_v52 = vpop.f32.mrf.mxu0 }
 0xc73   : > { %v12261_v56 = vadd.f32 %v12260_v52, %v22111_v12 }
 0xc74   : > { %v12262_v63 = vpop.f32.mrf.mxu0  ;;  %13564 = vmatpush2.bf16.msra.mxu1 %v19086_v33 }
 0xc75   : > { %13699 = vmatprep.subr.bf16.mxu1 %v19094_v42  ;;  %v12263_v60 = vadd.f32 %v12262_v63, %v22107_v51 }
 0xc76   : > { %v12264_v29 = vpop.f32.mrf.mxu0 }
 0xc77   : > { %v12265_v4 = vadd.f32 %v12264_v29, %v22111_v12 }
 0xc78   : > { %v12266_v43 = vpop.f32.mrf.mxu0 }
 0xc79   : > { %v12267_v9 = vadd.f32 %v12266_v43, %v22107_v51 }
 0xc7a   : > { %v12270_v24 = vpop.f32.mrf.mxu0 }
 0xc7b   : > { %v12271_v46 = vadd.f32 %v12270_v24, %v22111_v12  ;;  %v19005_v24 = vld [vmem:[%s19469_s9 + $0xcc8] ss:$16 sps:$4 sm:$0xff]  }
 0xc7c   : > { %v12272_v14 = vpop.f32.mrf.mxu0 }
 0xc7d   : > { %v12273_v7 = vadd.f32 %v12272_v14, %v22107_v51 }
 0xc7e   : > { %v12274_v11 = vpop.f32.mrf.mxu0 }
 0xc7f   : > { %v12275_v8 = vadd.f32 %v12274_v11, %v22111_v12 }
 0xc80   : > { %v12276_v27 = vpop.f32.mrf.mxu0 }
 0xc81   : > { %v12277_v55 = vadd.f32 %v12276_v27, %v22107_v51 }
 0xc82   : > { %v12280_v36 = vpop.f32.mrf.mxu0 }
 0xc83   : > { %v12281_v14 = vadd.f32 %v12280_v36, %v22111_v12 }
 0xc84   : > { %v12282_v37 = vpop.f32.mrf.mxu0 }
 0xc85   : > { %v12283_v29 = vadd.f32 %v12282_v37, %v22107_v51 }
 0xc86   : > { %v22094_v5 = vpop.f32.mrf.mxu0 }
 0xc88   : > { %v22096_v47 = vpop.f32.mrf.mxu0 }
 0xc89   : > { %v12287_v36 = vadd.f32 %v22096_v47, %v22107_v51 }
 0xc8a   : > { %v22098_v15 = vpop.f32.mrf.mxu0 }
 0xc8c   : > { %v22103_v44 = vpop.f32.mrf.mxu0 }
 0xc8e   : > { %v22113_v0 = vpop.f32.mrf.mxu0 }
 0xc90   : > { %v22118_v48 = vpop.f32.mrf.mxu0 }
 0xc92   : > { %v22121_v49 = vpop.f32.mrf.mxu0 }
 0xc94   : > { %v22126_v50 = vpop.f32.mrf.mxu0 }
 0xc96   : > { %v22136_v33 = vpop.f32.mrf.mxu0 }
 0xcb2   : > { %v12343_v28 = vpop.f32.mrf.mxu1 }
 0xcb3   : > { %v12344_v21 = vadd.f32 %v12343_v28, %v12261_v56  ;;  %v19013_v28 = vld [vmem:[%s19469_s9 + $0xcac] ss:$16 sps:$4 sm:$0xff]  }
 0xcb4   : > { %v12345_v45 = vpop.f32.mrf.mxu1 }
 0xcb5   : > { %v12346_v26 = vadd.f32 %v12345_v45, %v12263_v60  ;;  %v12558_v18 = vmul.f32 0.2, %v12344_v21  ;;  %v12285_v60 = vadd.f32 %v22094_v5, %v22111_v12 }
 0xcb6   : > { %v12347_v61 = vpop.f32.mrf.mxu1 }
 0xcb7   : > { %v12348_v57 = vadd.f32 %v12347_v61, %v12265_v4  ;;  %v12559_v22 = vmul.f32 0.2, %v12346_v26  ;;  %v12598_v32 = vmax.f32 %v12344_v21, %v12558_v18 }
 0xcb8   : > { %v12349_v16 = vpop.f32.mrf.mxu1 }
 0xcb9   : > { %v12562_v39 = vmul.f32 0.2, %v12348_v57  ;;  %v12350_v13 = vadd.f32 %v12349_v16, %v12267_v9  ;;  %v12599_v59 = vmax.f32 %v12346_v26, %v12559_v22  ;;  %v22145_v26 = vpop.f32.mrf.mxu0  ;;  %v19011_v16 = vld [vmem:[%s19469_s9 + $0xca8] ss:$16 sps:$4 sm:$0xff]  }
 0xcba   : > { %v12353_v3 = vpop.f32.mrf.mxu1 }
 0xcbb   : > { %v12563_v20 = vmul.f32 0.2, %v12350_v13  ;;  %v12602_v19 = vmax.f32 %v12348_v57, %v12562_v39  ;;  %v12354_v1 = vadd.f32 %v12353_v3, %v12271_v46  ;;  %v22152_v22 = vpop.f32.mrf.mxu0  ;;  %v12293_v46 = vadd.f32 %v22103_v44, %v22107_v51 }
 0xcbc   : > { %v12355_v30 = vpop.f32.mrf.mxu1 }
 0xcbd   : > { %v12603_v53 = vmax.f32 %v12350_v13, %v12563_v20  ;;  %v12356_v17 = vadd.f32 %v12355_v30, %v12273_v7  ;;  %v22132_v23 = vpack.c.bf16 %v12602_v19, %v12598_v32  ;;  %v12566_v63 = vmul.f32 0.2, %v12354_v1  ;;  %v19019_v13 = vld [vmem:[%s19469_s9 + $0xc8c] ss:$16 sps:$4 sm:$0xff]   ;;  %v19017_v30 = vld [vmem:[%s19469_s9 + $0xc88] ss:$16 sps:$4 sm:$0xff]  }
 0xcbe   : > { %v12357_v62 = vpop.f32.mrf.mxu1  ;;  %v19025_v32 = vld [vmem:[%s19469_s9 + $0xc6c] ss:$16 sps:$4 sm:$0xff]  }
 0xcbf   : > { %v12358_v31 = vadd.f32 %v12357_v62, %v12275_v8  ;;  %v22129_v25 = vpack.c.bf16 %v12603_v53, %v12599_v59  ;;  %v12567_v2 = vmul.f32 0.2, %v12356_v17  ;;  %v12606_v37 = vmax.f32 %v12354_v1, %v12566_v63  ;;  %v22164_v59 = vpop.f32.mrf.mxu0 }
 0xcc0   : > { %v12359_v40 = vpop.f32.mrf.mxu1  ;;  %v12291_v8 = vadd.f32 %v22098_v15, %v22111_v12  ;;  %v12295_v1 = vadd.f32 %v22113_v0, %v22111_v12  ;;  %v12297_v15 = vadd.f32 %v22118_v48, %v22107_v51 }
 0xcc1   : > { %v12570_v52 = vmul.f32 0.2, %v12358_v31  ;;  %v12360_v38 = vadd.f32 %v12359_v40, %v12277_v55  ;;  %13482 = vmatprep.mubr.bf16.mxu0 %v22129_v25  ;;  %v12607_v56 = vmax.f32 %v12356_v17, %v12567_v2 }
 0xcc2   : > { %v12363_v42 = vpop.f32.mrf.mxu1  ;;  %13483 = vmatmul.mubr.bf16.vlgmr.msra.gmra.mxu0 %v22132_v23 }
 0xcc3   : > { %v12571_v43 = vmul.f32 0.2, %v12360_v38  ;;  %13617 = vmatpush1.bf16.msra.mxu0 %v18999_v34  ;;  %v12610_v11 = vmax.f32 %v12358_v31, %v12570_v52  ;;  %v12364_v21 = vadd.f32 %v12363_v42, %v12281_v14  ;;  %v19023_v52 = vld [vmem:[%s19469_s9 + $0xc68] ss:$16 sps:$4 sm:$0xff]   ;;  %v19031_v42 = vld [vmem:[%s19469_s9 + $0xc4c] ss:$16 sps:$4 sm:$0xff]  }
 0xcc4   : > { %v12365_v27 = vpop.f32.mrf.mxu1  ;;  %13618 = vmatprep.subr.bf16.mxu0 %v19007_v54 }
 0xcc5   : > { %v12611_v45 = vmax.f32 %v12360_v38, %v12571_v43  ;;  %v12366_v4 = vadd.f32 %v12365_v27, %v12283_v29  ;;  %v22154_v5 = vpack.c.bf16 %v12610_v11, %v12606_v37  ;;  %v12574_v47 = vmul.f32 0.2, %v12364_v21  ;;  %v22174_v38 = vpop.f32.mrf.mxu0  ;;  %v19037_v37 = vld [vmem:[%s19469_s9 + $0xc2c] ss:$16 sps:$4 sm:$0xff]  }
 0xcc6   : > { %v12367_v61 = vpop.f32.mrf.mxu1  ;;  %v12303_v11 = vadd.f32 %v22126_v50, %v22107_v51 }
 0xcc7   : > { %v12368_v9 = vadd.f32 %v12367_v61, %v12285_v60  ;;  %13619 = vmatpush1.bf16.msra.mxu0 %v19005_v24  ;;  %v22149_v57 = vpack.c.bf16 %v12611_v45, %v12607_v56  ;;  %v12575_v18 = vmul.f32 0.2, %v12366_v4  ;;  %v12614_v31 = vmax.f32 %v12364_v21, %v12574_v47  ;;  %v22186_v56 = vpop.f32.mrf.mxu0 }
 0xcc8   : > { %v12369_v39 = vpop.f32.mrf.mxu1  ;;  %13620 = vmatprep.subr.bf16.mxu0 %v19013_v28  ;;  %v19029_v28 = vld [vmem:[%s19469_s9 + $0xc48] ss:$16 sps:$4 sm:$0xff]   ;;  %v12301_v60 = vadd.f32 %v22121_v49, %v22111_v12  ;;  %v12305_v21 = vadd.f32 %v22136_v33, %v22111_v12  ;;  %v12307_v49 = vadd.f32 %v22145_v26, %v22107_v51  ;;  %v19043_v33 = vld [vmem:[%s19469_s9 + $0xc0c] ss:$16 sps:$4 sm:$0xff]  }
 0xcc9   : > { %v12578_v3 = vmul.f32 0.2, %v12368_v9  ;;  %v12370_v7 = vadd.f32 %v12369_v39, %v12287_v36  ;;  %13492 = vmatprep.mubr.bf16.mxu0 %v22149_v57  ;;  %v12615_v62 = vmax.f32 %v12366_v4, %v12575_v18 }
 0xcca   : > { %v12373_v20 = vpop.f32.mrf.mxu1  ;;  %13493 = vmatmul.mubr.bf16.gmra.mxu0 %v22154_v5 }
 0xccb   : > { %v12579_v19 = vmul.f32 0.2, %v12370_v7  ;;  %13621 = vmatpush1.bf16.msra.mxu0 %v19011_v16  ;;  %v12618_v53 = vmax.f32 %v12368_v9, %v12578_v3  ;;  %v12374_v34 = vadd.f32 %v12373_v20, %v12291_v8  ;;  %v19035_v3 = vld [vmem:[%s19469_s9 + $0xc28] ss:$16 sps:$4 sm:$0xff]  }
 0xccc   : > { %v12375_v17 = vpop.f32.mrf.mxu1  ;;  %13622 = vmatprep.subr.bf16.mxu0 %v19019_v13 }
 0xccd   : > { %v12619_v55 = vmax.f32 %v12370_v7, %v12579_v19  ;;  %v12376_v44 = vadd.f32 %v12375_v17, %v12293_v46  ;;  %v22176_v63 = vpack.c.bf16 %v12618_v53, %v12614_v31  ;;  %v12582_v48 = vmul.f32 0.2, %v12374_v34  ;;  %v22196_v7 = vpop.f32.mrf.mxu0  ;;  %v19049_v17 = vld [vmem:[%s19469_s9 + $0xdec] ss:$16 sps:$4 sm:$0xff]  }
 0xcce   : > { %v12377_v40 = vpop.f32.mrf.mxu1 }
 0xccf   : > { %v12378_v54 = vadd.f32 %v12377_v40, %v12295_v1  ;;  %13623 = vmatpush1.bf16.msra.mxu0 %v19017_v30  ;;  %v22171_v2 = vpack.c.bf16 %v12619_v55, %v12615_v62  ;;  %v12583_v29 = vmul.f32 0.2, %v12376_v44  ;;  %v12622_v9 = vmax.f32 %v12374_v34, %v12582_v48  ;;  %v19041_v30 = vld [vmem:[%s19469_s9 + $0xc08] ss:$16 sps:$4 sm:$0xff]   ;;  %v22204_v8 = vpop.f32.mrf.mxu0  ;;  %v19055_v40 = vld [vmem:[%s19469_s9 + $0xdcc] ss:$16 sps:$4 sm:$0xff]  }
 0xcd0   : > { %v12379_v0 = vpop.f32.mrf.mxu1  ;;  %13624 = vmatprep.subr.bf16.mxu0 %v19025_v32  ;;  %v19073_v48 = vld [vmem:[%s19469_s9 + $0xd6c] ss:$16 sps:$4 sm:$0xff]  }
 0xcd1   : > { %v12586_v43 = vmul.f32 0.2, %v12378_v54  ;;  %v12380_v24 = vadd.f32 %v12379_v0, %v12297_v15  ;;  %13502 = vmatprep.mubr.bf16.mxu0 %v22171_v2  ;;  %v12623_v61 = vmax.f32 %v12376_v44, %v12583_v29  ;;  %v19047_v44 = vld [vmem:[%s19469_s9 + $0xde8] ss:$16 sps:$4 sm:$0xff]   ;;  %v22210_v31 = vpop.f32.mrf.mxu0  ;;  %v19067_v29 = vld [vmem:[%s19469_s9 + $0xd8c] ss:$16 sps:$4 sm:$0xff]  }
 0xcd2   : > { %v12383_v14 = vpop.f32.mrf.mxu1  ;;  %13503 = vmatmul.mubr.bf16.gmra.mxu0 %v22176_v63  ;;  %v19053_v15 = vld [vmem:[%s19469_s9 + $0xdc8] ss:$16 sps:$4 sm:$0xff]  }
 0xcd3   : > { %v12587_v27 = vmul.f32 0.2, %v12380_v24  ;;  %13625 = vmatpush1.bf16.msra.mxu0 %v19023_v52  ;;  %v12626_v45 = vmax.f32 %v12378_v54, %v12586_v43  ;;  %v12384_v16 = vadd.f32 %v12383_v14, %v12301_v60  ;;  %v12442_v54 = vpop.f32.mrf.mxu0  ;;  %v19061_v52 = vld [vmem:[%s19469_s9 + $0xdac] ss:$16 sps:$4 sm:$0xff]   ;;  %v19059_v0 = vld [vmem:[%s19469_s9 + $0xda8] ss:$16 sps:$4 sm:$0xff]  }
 0xcd4   : > { %v12385_v4 = vpop.f32.mrf.mxu1  ;;  %13626 = vmatprep.subr.bf16.mxu0 %v19031_v42  ;;  %v19065_v43 = vld [vmem:[%s19469_s9 + $0xd88] ss:$16 sps:$4 sm:$0xff]  }
 0xcd5   : > { %v12627_v36 = vmax.f32 %v12380_v24, %v12587_v27  ;;  %v12386_v50 = vadd.f32 %v12385_v4, %v12303_v11  ;;  %v22198_v47 = vpack.c.bf16 %v12626_v45, %v12622_v9  ;;  %v12590_v51 = vmul.f32 0.2, %v12384_v16  ;;  %v22221_v42 = vpop.f32.mrf.mxu0  ;;  %v19071_v14 = vld [vmem:[%s19469_s9 + $0xd68] ss:$16 sps:$4 sm:$0xff]  }
 0xcd6   : > { %v12387_v39 = vpop.f32.mrf.mxu1  ;;  %v22235_v11 = vrot.slane %v22101_v41, %v21562_v6  ;;  %v19077_v4 = vld [vmem:[%s19469_s9 + $0xd48] ss:$16 sps:$4 sm:$0xff]  }
 0xcd7   : > { %v12388_v13 = vadd.f32 %v12387_v39, %v12305_v21  ;;  %13627 = vmatpush1.bf16.msra.mxu0 %v19029_v28  ;;  %v22193_v18 = vpack.c.bf16 %v12627_v36, %v12623_v61  ;;  %v12591_v20 = vmul.f32 0.2, %v12386_v50  ;;  %v12630_v62 = vmax.f32 %v12384_v16, %v12590_v51  ;;  %v22225_v24 = vpop.f32.mrf.mxu0  ;;  %v19079_v28 = vld [vmem:[%s19469_s9 + $0xd4c] ss:$16 sps:$4 sm:$0xff]  }
 0xcd8   : > { %v12389_v12 = vpop.f32.mrf.mxu1  ;;  %13628 = vmatprep.subr.bf16.mxu0 %v19037_v37  ;;  %v12427_v37 = vadd.f32 %v22152_v22, %v22235_v11  ;;  %v12431_v36 = vadd.f32 %v22174_v38, %v22235_v11 }
 0xcd9   : > { %v12594_v46 = vmul.f32 0.2, %v12388_v13  ;;  %v12390_v19 = vadd.f32 %v12389_v12, %v12307_v49  ;;  %13512 = vmatprep.mubr.bf16.mxu0 %v22193_v18  ;;  %v12631_v32 = vmax.f32 %v12386_v50, %v12591_v20  ;;  %v22237_v27 = vpop.f32.mrf.mxu0  ;;  %v19083_v49 = vld [vmem:[%s19469_s9 + $0xd28] ss:$16 sps:$4 sm:$0xff]  }
 0xcda   : > { %13513 = vmatmul.mubr.bf16.gmra.mxu0 %v22198_v47 }
 0xcdb   : > { %v12595_v26 = vmul.f32 0.2, %v12390_v19  ;;  %13629 = vmatpush1.bf16.msra.mxu0 %v19035_v3  ;;  %v12634_v53 = vmax.f32 %v12388_v13, %v12594_v46  ;;  %v22245_v21 = vpop.f32.mrf.mxu0  ;;  %v19091_v3 = vld [vmem:[%s19469_s9 + $0xd0c] ss:$16 sps:$4 sm:$0xff]  }
 0xcdc   : > { %13630 = vmatprep.subr.bf16.mxu0 %v19043_v33 }
 0xcdd   : > { %v12635_v1 = vmax.f32 %v12390_v19, %v12595_v26  ;;  %v22212_v34 = vpack.c.bf16 %v12634_v53, %v12630_v62  ;;  %v22253_v22 = vpop.f32.mrf.mxu0  ;;  %v12437_v26 = vadd.f32 %v22196_v7, %v22235_v11 }
 0xcdf   : > { %13631 = vmatpush1.bf16.msra.mxu0 %v19041_v30  ;;  %v22207_v55 = vpack.c.bf16 %v12635_v1, %v12631_v32  ;;  %v22261_v30 = vpop.f32.mrf.mxu0  ;;  %v12441_v32 = vadd.f32 %v22210_v31, %v22235_v11 }
 0xce0   : > { %13632 = vmatprep.subr.bf16.mxu0 %v19049_v17 }
 0xce1   : > { %13522 = vmatprep.mubr.bf16.mxu0 %v22207_v55 }
 0xce2   : > { %13523 = vmatmul.mubr.bf16.gmra.mxu0 %v22212_v34 }
 0xce3   : > { %13633 = vmatpush2.bf16.msra.mxu0 %v19047_v44  ;;  %13648 = vmatprep.mubr.bf16.mxu0 %v22129_v25  ;;  %v22230_v25 = vrot.slane %v22101_v41, %v21559_v10  ;;  %v19085_v41 = vld [vmem:[%s19469_s9 + $0xd2c] ss:$16 sps:$4 sm:$0xff]  }
 0xce4   : > { %13634 = vmatprep.subr.bf16.mxu0 %v19055_v40 }
 0xce5   : > { %v12429_v45 = vadd.f32 %v22164_v59, %v22230_v25  ;;  %v12433_v59 = vadd.f32 %v22186_v56, %v22230_v25  ;;  %v12439_v19 = vadd.f32 %v22204_v8, %v22230_v25  ;;  %v19089_v56 = vld [vmem:[%s19469_s9 + $0xd08] ss:$16 sps:$4 sm:$0xff]  }
 0xce7   : > { %13635 = vmatpush2.bf16.msra.mxu0 %v19053_v15 }
 0xce8   : > { %13636 = vmatprep.subr.bf16.mxu0 %v19061_v52  ;;  %v12443_v52 = vadd.f32 %v12442_v54, %v22230_v25  ;;  %v12449_v54 = vadd.f32 %v22225_v24, %v22230_v25 }
 0xceb   : > { %13637 = vmatpush2.bf16.msra.mxu0 %v19059_v0 }
 0xcec   : > { %13638 = vmatprep.subr.bf16.mxu0 %v19067_v29  ;;  %v19092_v29 = vld [vmem:[%s19469_s9 + $0xee8] ss:$16 sps:$4 sm:$0xff]  }
 0xcef   : > { %13639 = vmatpush2.bf16.msra.mxu0 %v19065_v43  ;;  %v12460_v43 = vpop.f32.mrf.mxu0 }
 0xcf0   : > { %13640 = vmatprep.subr.bf16.mxu0 %v19073_v48 }
 0xcf2   : > { %v12509_v60 = vpop.f32.mrf.mxu1 }
 0xcf3   : > { %13641 = vmatpush2.bf16.msra.mxu0 %v19071_v14  ;;  %v12510_v9 = vadd.f32 %v12509_v60, %v12427_v37 }
 0xcf4   : > { %v12511_v61 = vpop.f32.mrf.mxu1  ;;  %13642 = vmatprep.subr.bf16.mxu0 %v19079_v28  ;;  %v19097_v28 = vld [vmem:[%s19469_s9 + $0xecc] ss:$16 sps:$4 sm:$0xff]  }
 0xcf5   : > { %v12512_v50 = vadd.f32 %v12511_v61, %v12429_v45  ;;  %v12560_v46 = vmul.f32 0.2, %v12510_v9 }
 0xcf6   : > { %v12513_v16 = vpop.f32.mrf.mxu1 }
 0xcf7   : > { %v12514_v39 = vadd.f32 %v12513_v16, %v12431_v36  ;;  %13643 = vmatpush2.bf16.msra.mxu0 %v19077_v4  ;;  %v12561_v12 = vmul.f32 0.2, %v12512_v50  ;;  %v12600_v8 = vmax.f32 %v12510_v9, %v12560_v46  ;;  %v12447_v36 = vadd.f32 %v22221_v42, %v22235_v11 }
 0xcf8   : > { %v12515_v13 = vpop.f32.mrf.mxu1  ;;  %13644 = vmatprep.subr.bf16.mxu0 %v19085_v41  ;;  %v19095_v41 = vld [vmem:[%s19469_s9 + $0xec8] ss:$16 sps:$4 sm:$0xff]  }
 0xcf9   : > { %v12564_v33 = vmul.f32 0.2, %v12514_v39  ;;  %v12516_v20 = vadd.f32 %v12515_v13, %v12433_v59  ;;  %v12601_v1 = vmax.f32 %v12512_v50, %v12561_v12  ;;  %v12462_v50 = vpop.f32.mrf.mxu0  ;;  %v19100_v59 = vld [vmem:[%s19469_s9 + $0xeac] ss:$16 sps:$4 sm:$0xff]   ;;  %v12453_v12 = vadd.f32 %v22245_v21, %v22230_v25 }
 0xcfa   : > { %v12519_v38 = vpop.f32.mrf.mxu1 }
 0xcfb   : > { %v12565_v51 = vmul.f32 0.2, %v12516_v20  ;;  %13645 = vmatpush2.bf16.msra.mxu0 %v19083_v49  ;;  %v12604_v53 = vmax.f32 %v12514_v39, %v12564_v33  ;;  %v12520_v40 = vadd.f32 %v12519_v38, %v12437_v26  ;;  %v12466_v46 = vpop.f32.mrf.mxu0 }
 0xcfc   : > { %v12521_v17 = vpop.f32.mrf.mxu1  ;;  %13646 = vmatprep.subr.bf16.mxu0 %v19091_v3 }
 0xcfd   : > { %v12605_v62 = vmax.f32 %v12516_v20, %v12565_v51  ;;  %v12522_v44 = vadd.f32 %v12521_v17, %v12439_v19  ;;  %v22269_v48 = vpack.c.bf16 %v12604_v53, %v12600_v8  ;;  %v12568_v4 = vmul.f32 0.2, %v12520_v40  ;;  %v19098_v20 = vld [vmem:[%s19469_s9 + $0xea8] ss:$16 sps:$4 sm:$0xff]   ;;  %v19103_v19 = vld [vmem:[%s19469_s9 + $0xe8c] ss:$16 sps:$4 sm:$0xff]  }
 0xcfe   : > { %v12523_v15 = vpop.f32.mrf.mxu1  ;;  %v12459_v17 = vadd.f32 %v22261_v30, %v22230_v25 }
 0xcff   : > { %v12524_v0 = vadd.f32 %v12523_v15, %v12441_v32  ;;  %13647 = vmatpush2.bf16.msra.mxu0 %v19089_v56  ;;  %v22266_v7 = vpack.c.bf16 %v12605_v62, %v12601_v1  ;;  %v12569_v31 = vmul.f32 0.2, %v12522_v44  ;;  %v12608_v13 = vmax.f32 %v12520_v40, %v12568_v4  ;;  %v19101_v1 = vld [vmem:[%s19469_s9 + $0xe88] ss:$16 sps:$4 sm:$0xff]   ;;  %v19106_v15 = vld [vmem:[%s19469_s9 + $0xe6c] ss:$16 sps:$4 sm:$0xff]  }
 0xd00   : > { %v12525_v14 = vpop.f32.mrf.mxu1  ;;  %v12457_v62 = vadd.f32 %v22253_v22, %v22235_v11 }
 0xd01   : > { %v12572_v60 = vmul.f32 0.2, %v12524_v0  ;;  %v12526_v45 = vadd.f32 %v12525_v14, %v12443_v52  ;;  %13565 = vmatprep.mubr.bf16.mxu1 %v22266_v7  ;;  %v12609_v39 = vmax.f32 %v12522_v44, %v12569_v31  ;;  %v12468_v44 = vpop.f32.mrf.mxu0  ;;  %v12461_v52 = vadd.f32 %v12460_v43, %v22235_v11  ;;  %v19109_v43 = vld [vmem:[%s19469_s9 + $0xe4c] ss:$16 sps:$4 sm:$0xff]  }
 0xd02   : > { %v12529_v37 = vpop.f32.mrf.mxu1  ;;  %13566 = vmatmul.mubr.bf16.vlgmr.msra.gmra.mxu1 %v22269_v48  ;;  %13649 = vmatmul.mubr.bf16.vlgmr.msra.gmra.mxu0 %v22132_v23  ;;  %v12451_v23 = vadd.f32 %v22237_v27, %v22235_v11 }
 0xd03   : > { %v12573_v61 = vmul.f32 0.2, %v12526_v45  ;;  %13700 = vmatpush1.bf16.msra.mxu1 %v19092_v29  ;;  %13658 = vmatprep.mubr.bf16.mxu0 %v22149_v57  ;;  %v12612_v9 = vmax.f32 %v12524_v0, %v12572_v60  ;;  %v12530_v3 = vadd.f32 %v12529_v37, %v12447_v36  ;;  %v19104_v60 = vld [vmem:[%s19469_s9 + $0xe68] ss:$16 sps:$4 sm:$0xff]  }
 0xd04   : > { %v12531_v16 = vpop.f32.mrf.mxu1  ;;  %13701 = vmatprep.subr.bf16.mxu1 %v19097_v28 }
 0xd05   : > { %v12613_v24 = vmax.f32 %v12526_v45, %v12573_v61  ;;  %v12532_v49 = vadd.f32 %v12531_v16, %v12449_v54  ;;  %v22289_v38 = vpack.c.bf16 %v12612_v9, %v12608_v13  ;;  %v12576_v53 = vmul.f32 0.2, %v12530_v3  ;;  %v12470_v45 = vpop.f32.mrf.mxu0  ;;  %v19112_v13 = vld [vmem:[%s19469_s9 + $0xe2c] ss:$16 sps:$4 sm:$0xff]  }
 0xd06   : > { %v12533_v57 = vpop.f32.mrf.mxu1  ;;  %v12469_v9 = vadd.f32 %v12468_v44, %v22230_v25  ;;  %v19118_v44 = vld [vmem:[%s19469_s9 + $0xfec] ss:$16 sps:$4 sm:$0xff]  }
 0xd07   : > { %v12534_v42 = vadd.f32 %v12533_v57, %v12451_v23  ;;  %13702 = vmatpush1.bf16.msra.mxu1 %v19095_v41  ;;  %v22286_v33 = vpack.c.bf16 %v12613_v24, %v12609_v39  ;;  %v12577_v51 = vmul.f32 0.2, %v12532_v49  ;;  %v12616_v29 = vmax.f32 %v12530_v3, %v12576_v53  ;;  %v12472_v39 = vpop.f32.mrf.mxu0 }
 0xd08   : > { %v12535_v27 = vpop.f32.mrf.mxu1  ;;  %13703 = vmatprep.subr.bf16.mxu1 %v19100_v59  ;;  %v19107_v59 = vld [vmem:[%s19469_s9 + $0xe48] ss:$16 sps:$4 sm:$0xff]   ;;  %v12467_v23 = vadd.f32 %v12466_v46, %v22235_v11  ;;  %v12471_v3 = vadd.f32 %v12470_v45, %v22235_v11  ;;  %v19115_v11 = vld [vmem:[%s19469_s9 + $0xe0c] ss:$16 sps:$4 sm:$0xff]  }
 0xd09   : > { %v12580_v56 = vmul.f32 0.2, %v12534_v42  ;;  %v12536_v26 = vadd.f32 %v12535_v27, %v12453_v12  ;;  %13575 = vmatprep.mubr.bf16.mxu1 %v22286_v33  ;;  %v19134_v45 = vld [vmem:[%s19469_s9 + $0xf28] ss:$16 sps:$4 sm:$0xff]  }
 0xd0a   : > { %v12539_v21 = vpop.f32.mrf.mxu1  ;;  %13576 = vmatmul.mubr.bf16.gmra.mxu1 %v22289_v38  ;;  %13659 = vmatmul.mubr.bf16.gmra.mxu0 %v22154_v5  ;;  %v12617_v5 = vmax.f32 %v12532_v49, %v12577_v51  ;;  %v19110_v51 = vld [vmem:[%s19469_s9 + $0xe28] ss:$16 sps:$4 sm:$0xff]  }
 0xd0b   : > { %v12581_v32 = vmul.f32 0.2, %v12536_v26  ;;  %13704 = vmatpush1.bf16.msra.mxu1 %v19098_v20  ;;  %13668 = vmatprep.mubr.bf16.mxu0 %v22171_v2  ;;  %v12620_v8 = vmax.f32 %v12534_v42, %v12580_v56  ;;  %v12540_v14 = vadd.f32 %v12539_v21, %v12457_v62  ;;  %v12463_v2 = vadd.f32 %v12462_v50, %v22230_v25 }
 0xd0c   : > { %v12541_v40 = vpop.f32.mrf.mxu1  ;;  %13705 = vmatprep.subr.bf16.mxu1 %v19103_v19 }
 0xd0d   : > { %v12621_v0 = vmax.f32 %v12536_v26, %v12581_v32  ;;  %v12542_v30 = vadd.f32 %v12541_v40, %v12459_v17  ;;  %v22307_v4 = vpack.c.bf16 %v12620_v8, %v12616_v29  ;;  %v12584_v36 = vmul.f32 0.2, %v12540_v14  ;;  %v19122_v29 = vld [vmem:[%s19469_s9 + $0xfa8] ss:$16 sps:$4 sm:$0xff]  }
 0xd0e   : > { %v12543_v28 = vpop.f32.mrf.mxu1 }
 0xd0f   : > { %v12544_v31 = vadd.f32 %v12543_v28, %v12461_v52  ;;  %13706 = vmatpush1.bf16.msra.mxu1 %v19101_v1  ;;  %v22304_v22 = vpack.c.bf16 %v12621_v0, %v12617_v5  ;;  %v12585_v54 = vmul.f32 0.2, %v12542_v30  ;;  %v12624_v42 = vmax.f32 %v12540_v14, %v12584_v36  ;;  %v19113_v1 = vld [vmem:[%s19469_s9 + $0xe08] ss:$16 sps:$4 sm:$0xff]   ;;  %v19121_v0 = vld [vmem:[%s19469_s9 + $0xfcc] ss:$16 sps:$4 sm:$0xff]  }
 0xd10   : > { %v12545_v37 = vpop.f32.mrf.mxu1  ;;  %13707 = vmatprep.subr.bf16.mxu1 %v19106_v15  ;;  %v19116_v5 = vld [vmem:[%s19469_s9 + $0xfe8] ss:$16 sps:$4 sm:$0xff]   ;;  %v19127_v14 = vld [vmem:[%s19469_s9 + $0xf8c] ss:$16 sps:$4 sm:$0xff]  }
 0xd11   : > { %v12588_v61 = vmul.f32 0.2, %v12544_v31  ;;  %v12546_v41 = vadd.f32 %v12545_v37, %v12463_v2  ;;  %13585 = vmatprep.mubr.bf16.mxu1 %v22304_v22  ;;  %v12625_v57 = vmax.f32 %v12542_v30, %v12585_v54  ;;  %v19124_v30 = vld [vmem:[%s19469_s9 + $0xfac] ss:$16 sps:$4 sm:$0xff]   ;;  %v19125_v28 = vld [vmem:[%s19469_s9 + $0xf88] ss:$16 sps:$4 sm:$0xff]  }
 0xd12   : > { %v12549_v50 = vpop.f32.mrf.mxu1  ;;  %13586 = vmatmul.mubr.bf16.gmra.mxu1 %v22307_v4  ;;  %13669 = vmatmul.mubr.bf16.gmra.mxu0 %v22176_v63  ;;  %v19128_v2 = vld [vmem:[%s19469_s9 + $0xf68] ss:$16 sps:$4 sm:$0xff]   ;;  %v19139_v37 = vld [vmem:[%s19469_s9 + $0xf0c] ss:$16 sps:$4 sm:$0xff]  }
 0xd13   : > { %v12589_v16 = vmul.f32 0.2, %v12546_v41  ;;  %13708 = vmatpush1.bf16.msra.mxu1 %v19104_v60  ;;  %13678 = vmatprep.mubr.bf16.mxu0 %v22193_v18  ;;  %v12628_v24 = vmax.f32 %v12544_v31, %v12588_v61  ;;  %v12550_v20 = vadd.f32 %v12549_v50, %v12467_v23  ;;  %v12473_v18 = vadd.f32 %v12472_v39, %v22230_v25  ;;  %v19131_v31 = vld [vmem:[%s19469_s9 + $0xf48] ss:$16 sps:$4 sm:$0xff]   ;;  %v19136_v60 = vld [vmem:[%s19469_s9 + $0xf2c] ss:$16 sps:$4 sm:$0xff]  }
 0xd14   : > { %v12551_v49 = vpop.f32.mrf.mxu1  ;;  %13709 = vmatprep.subr.bf16.mxu1 %v19109_v43  ;;  %v19137_v43 = vld [vmem:[%s19469_s9 + $0xf08] ss:$16 sps:$4 sm:$0xff]  }
 0xd15   : > { %v12629_v63 = vmax.f32 %v12546_v41, %v12589_v16  ;;  %v12552_v12 = vadd.f32 %v12551_v49, %v12469_v9  ;;  %v22323_v56 = vpack.c.bf16 %v12628_v24, %v12624_v42  ;;  %v12592_v32 = vmul.f32 0.2, %v12550_v20 }
 0xd16   : > { %v12553_v27 = vpop.f32.mrf.mxu1 }
 0xd17   : > { %v12554_v19 = vadd.f32 %v12553_v27, %v12471_v3  ;;  %13710 = vmatpush1.bf16.msra.mxu1 %v19107_v59  ;;  %v22320_v46 = vpack.c.bf16 %v12629_v63, %v12625_v57  ;;  %v12593_v53 = vmul.f32 0.2, %v12552_v12  ;;  %v12632_v15 = vmax.f32 %v12550_v20, %v12592_v32 }
 0xd18   : > { %v12555_v26 = vpop.f32.mrf.mxu1  ;;  %13711 = vmatprep.subr.bf16.mxu1 %v19112_v13 }
 0xd19   : > { %v12596_v21 = vmul.f32 0.2, %v12554_v19  ;;  %v12556_v17 = vadd.f32 %v12555_v26, %v12473_v18  ;;  %13595 = vmatprep.mubr.bf16.mxu1 %v22320_v46  ;;  %v12633_v8 = vmax.f32 %v12552_v12, %v12593_v53 }
 0xd1a   : > { %13596 = vmatmul.mubr.bf16.gmra.mxu1 %v22323_v56  ;;  %13679 = vmatmul.mubr.bf16.gmra.mxu0 %v22198_v47 }
 0xd1b   : > { %v12597_v25 = vmul.f32 0.2, %v12556_v17  ;;  %13712 = vmatpush1.bf16.msra.mxu1 %v19110_v51  ;;  %13688 = vmatprep.mubr.bf16.mxu0 %v22207_v55  ;;  %v12636_v62 = vmax.f32 %v12554_v19, %v12596_v21  ;;  %v19119_v55 = vld [vmem:[%s19469_s9 + $0xfc8] ss:$16 sps:$4 sm:$0xff]  }
 0xd1c   : > { %13713 = vmatprep.subr.bf16.mxu1 %v19115_v11 }
 0xd1d   : > { %v12637_v40 = vmax.f32 %v12556_v17, %v12597_v25  ;;  %v12656_v47 = vpack.c.bf16 %v12636_v62, %v12632_v15 }
 0xd1f   : > { %13714 = vmatpush1.bf16.msra.mxu1 %v19113_v1  ;;  %v12657_v52 = vpack.c.bf16 %v12637_v40, %v12633_v8 }
 0xd20   : > { %13715 = vmatprep.subr.bf16.mxu1 %v19118_v44 }
 0xd21   : > { %13605 = vmatprep.mubr.bf16.mxu1 %v12657_v52 }
 0xd22   : > { %13606 = vmatmul.mubr.bf16.gmra.mxu1 %v12656_v47  ;;  %13689 = vmatmul.mubr.bf16.gmra.mxu0 %v22212_v34  ;;  %v19130_v34 = vld [vmem:[%s19469_s9 + $0xf6c] ss:$16 sps:$4 sm:$0xff]  }
 0xd23   : > { %13716 = vmatpush2.bf16.msra.mxu1 %v19116_v5  ;;  %13731 = vmatprep.mubr.bf16.mxu1 %v22266_v7  ;;  %v19133_v7 = vld [vmem:[%s19469_s9 + $0xf4c] ss:$16 sps:$4 sm:$0xff]  }
 0xd24   : > { %13717 = vmatprep.subr.bf16.mxu1 %v19121_v0 }
 0xd27   : > { %13718 = vmatpush2.bf16.msra.mxu1 %v19119_v55 }
 0xd28   : > { %13719 = vmatprep.subr.bf16.mxu1 %v19124_v30 }
 0xd2b   : > { %13720 = vmatpush2.bf16.msra.mxu1 %v19122_v29 }
 0xd2c   : > { %13721 = vmatprep.subr.bf16.mxu1 %v19127_v14 }
 0xd2f   : > { %13722 = vmatpush2.bf16.msra.mxu1 %v19125_v28 }
 0xd30   : > { %13723 = vmatprep.subr.bf16.mxu1 %v19130_v34 }
 0xd33   : > { %13724 = vmatpush2.bf16.msra.mxu1 %v19128_v2 }
 0xd34   : > { %13725 = vmatprep.subr.bf16.mxu1 %v19133_v7 }
 0xd37   : > { %13726 = vmatpush2.bf16.msra.mxu1 %v19131_v31 }
 0xd38   : > { %13727 = vmatprep.subr.bf16.mxu1 %v19136_v60 }
 0xd3b   : > { %13728 = vmatpush2.bf16.msra.mxu1 %v19134_v45 }
 0xd3c   : > { %13729 = vmatprep.subr.bf16.mxu1 %v19139_v37 }
 0xd3f   : > { %13730 = vmatpush2.bf16.msra.mxu1 %v19137_v43 }
 0xd42   : > { %13732 = vmatmul.mubr.bf16.vlgmr.msra.gmra.mxu1 %v22269_v48 }
 0xd43   : > { %13741 = vmatprep.mubr.bf16.mxu1 %v22286_v33 }
 0xd4a   : > { %13742 = vmatmul.mubr.bf16.gmra.mxu1 %v22289_v38 }
 0xd4b   : > { %13751 = vmatprep.mubr.bf16.mxu1 %v22304_v22 }
 0xd52   : > { %13752 = vmatmul.mubr.bf16.gmra.mxu1 %v22307_v4  ;;  %v22359_v4 = vld [vmem:[%s19475_s6 + $0xc] sm:$0xf] }
 0xd53   : > { %13761 = vmatprep.mubr.bf16.mxu1 %v22320_v46  ;;  %v22365_v39 = vrot.slane %v22359_v4, %v21472_v35  ;;  %v22371_v49 = vrot.slane %v22359_v4, %v21469_v58 }
 0xd5a   : > { %13762 = vmatmul.mubr.bf16.gmra.mxu1 %v22323_v56 }
 0xd5b   : > { %13771 = vmatprep.mubr.bf16.mxu1 %v12657_v52 }
 0xd62   : > { %13772 = vmatmul.mubr.bf16.gmra.mxu1 %v12656_v47 }
 0xd82   : > { %v13484_v54 = vpop.f32.mrf.mxu0 }
 0xd83   : > { %v13485_v13 = vadd.f32 %v13484_v54, %v22365_v39 }
 0xd84   : > { %v13486_v61 = vpop.f32.mrf.mxu0 }
 0xd85   : > { %v13487_v63 = vadd.f32 %v13486_v61, %v22371_v49 }
 0xd86   : > { %v13488_v41 = vpop.f32.mrf.mxu0 }
 0xd87   : > { %v13489_v20 = vadd.f32 %v13488_v41, %v22365_v39 }
 0xd88   : > { %v13490_v36 = vpop.f32.mrf.mxu0 }
 0xd89   : > { %v13491_v46 = vadd.f32 %v13490_v36, %v22371_v49 }
 0xd8a   : > { %v13494_v48 = vpop.f32.mrf.mxu0 }
 0xd8b   : > { %v13495_v11 = vadd.f32 %v13494_v48, %v22365_v39 }
 0xd8c   : > { %v13496_v50 = vpop.f32.mrf.mxu0 }
 0xd8d   : > { %v13497_v1 = vadd.f32 %v13496_v50, %v22371_v49 }
 0xd8e   : > { %v13498_v33 = vpop.f32.mrf.mxu0 }
 0xd8f   : > { %v13499_v15 = vadd.f32 %v13498_v33, %v22365_v39 }
 0xd90   : > { %v13500_v9 = vpop.f32.mrf.mxu0 }
 0xd91   : > { %v13501_v30 = vadd.f32 %v13500_v9, %v22371_v49 }
 0xd92   : > { %v13504_v38 = vpop.f32.mrf.mxu0 }
 0xd93   : > { %v13505_v2 = vadd.f32 %v13504_v38, %v22365_v39 }
 0xd94   : > { %v13506_v16 = vpop.f32.mrf.mxu0 }
 0xd95   : > { %v13507_v43 = vadd.f32 %v13506_v16, %v22371_v49 }
 0xd96   : > { %v13508_v22 = vpop.f32.mrf.mxu0 }
 0xd97   : > { %v13509_v48 = vadd.f32 %v13508_v22, %v22365_v39 }
 0xd98   : > { %v22356_v59 = vpop.f32.mrf.mxu0 }
 0xd9a   : > { %v22361_v23 = vpop.f32.mrf.mxu0 }
 0xd9c   : > { %v22367_v24 = vpop.f32.mrf.mxu0 }
 0xd9e   : > { %v22374_v3 = vpop.f32.mrf.mxu0 }
 0xda0   : > { %v22378_v18 = vpop.f32.mrf.mxu0 }
 0xda2   : > { %v22382_v32 = vpop.f32.mrf.mxu0 }
 0xda4   : > { %v22386_v0 = vpop.f32.mrf.mxu0 }
 0xda6   : > { %v13528_v45 = vpop.f32.mrf.mxu0 }
 0xda8   : > { %v13530_v38 = vpop.f32.mrf.mxu0 }
 0xdc2   : > { %v13567_v57 = vpop.f32.mrf.mxu1 }
 0xdc3   : > { %v13568_v12 = vadd.f32 %v13567_v57, %v13485_v13  ;;  %v13511_v57 = vadd.f32 %v22356_v59, %v22371_v49 }
 0xdc4   : > { %v13569_v42 = vpop.f32.mrf.mxu1 }
 0xdc5   : > { %v13782_v27 = vmul.f32 0.2, %v13568_v12  ;;  %v13570_v35 = vadd.f32 %v13569_v42, %v13487_v63  ;;  %v22394_v42 = vpop.f32.mrf.mxu0 }
 0xdc6   : > { %v13571_v19 = vpop.f32.mrf.mxu1 }
 0xdc7   : > { %v13822_v58 = vmax.f32 %v13568_v12, %v13782_v27  ;;  %v13783_v51 = vmul.f32 0.2, %v13570_v35  ;;  %v13572_v56 = vadd.f32 %v13571_v19, %v13489_v20  ;;  %v13515_v27 = vadd.f32 %v22361_v23, %v22365_v39 }
 0xdc8   : > { %v13573_v26 = vpop.f32.mrf.mxu1 }
 0xdc9   : > { %13863 = vst [vmem:[#allocation8 + $0x100] sm:$0xff] %v13822_v58  ;;  %v13823_v53 = vmax.f32 %v13570_v35, %v13783_v51  ;;  %v13786_v21 = vmul.f32 0.2, %v13572_v56  ;;  %v13574_v17 = vadd.f32 %v13573_v26, %v13491_v46  ;;  %v13517_v58 = vadd.f32 %v22367_v24, %v22371_v49  ;;  %v13652_v26 = vpop.f32.mrf.mxu0 }
 0xdca   : > { %v13577_v25 = vpop.f32.mrf.mxu1 }
 0xdcb   : > { %13864 = vst [vmem:[#allocation8 + $0x108] sm:$0xff] %v13823_v53  ;;  %v13826_v62 = vmax.f32 %v13572_v56, %v13786_v21  ;;  %v13787_v44 = vmul.f32 0.2, %v13574_v17  ;;  %v13578_v8 = vadd.f32 %v13577_v25, %v13495_v11  ;;  %v13519_v53 = vadd.f32 %v22374_v3, %v22365_v39 }
 0xdcc   : > { %v13579_v40 = vpop.f32.mrf.mxu1 }
 0xdcd   : > { %13867 = vst [vmem:[#allocation8 + $0x120] sm:$0xff] %v13826_v62  ;;  %v13827_v52 = vmax.f32 %v13574_v17, %v13787_v44  ;;  %v13790_v5 = vmul.f32 0.2, %v13578_v8  ;;  %v13580_v47 = vadd.f32 %v13579_v40, %v13497_v1  ;;  %v13521_v1 = vadd.f32 %v22378_v18, %v22371_v49 }
 0xdce   : > { %v13581_v55 = vpop.f32.mrf.mxu1 }
 0xdcf   : > { %13868 = vst [vmem:[#allocation8 + $0x128] sm:$0xff] %v13827_v52  ;;  %v13830_v29 = vmax.f32 %v13578_v8, %v13790_v5  ;;  %v13791_v14 = vmul.f32 0.2, %v13580_v47  ;;  %v13582_v28 = vadd.f32 %v13581_v55, %v13499_v15  ;;  %v13654_v8 = vpop.f32.mrf.mxu0  ;;  %v13525_v15 = vadd.f32 %v22382_v32, %v22365_v39 }
 0xdd0   : > { %v13583_v34 = vpop.f32.mrf.mxu1  ;;  %v13527_v55 = vadd.f32 %v22386_v0, %v22371_v49 }
 0xdd1   : > { %13871 = vst [vmem:[#allocation8 + $0x140] sm:$0xff] %v13830_v29  ;;  %v13831_v7 = vmax.f32 %v13580_v47, %v13791_v14  ;;  %v13794_v31 = vmul.f32 0.2, %v13582_v28  ;;  %v13584_v60 = vadd.f32 %v13583_v34, %v13501_v30  ;;  %v13656_v14 = vpop.f32.mrf.mxu0  ;;  %v13529_v34 = vadd.f32 %v13528_v45, %v22365_v39 }
 0xdd2   : > { %v13587_v37 = vpop.f32.mrf.mxu1 }
 0xdd3   : > { %13872 = vst [vmem:[#allocation8 + $0x148] sm:$0xff] %v13831_v7  ;;  %v13834_v54 = vmax.f32 %v13582_v28, %v13794_v31  ;;  %v13795_v61 = vmul.f32 0.2, %v13584_v60  ;;  %v13588_v41 = vadd.f32 %v13587_v37, %v13505_v2  ;;  %v13660_v0 = vpop.f32.mrf.mxu0 }
 0xdd4   : > { %v13589_v36 = vpop.f32.mrf.mxu1 }
 0xdd5   : > { %13875 = vst [vmem:[#allocation8 + $0x160] sm:$0xff] %v13834_v54  ;;  %v13835_v50 = vmax.f32 %v13584_v60, %v13795_v61  ;;  %v13798_v33 = vmul.f32 0.2, %v13588_v41  ;;  %v13590_v9 = vadd.f32 %v13589_v36, %v13507_v43  ;;  %v13531_v60 = vadd.f32 %v13530_v38, %v22371_v49  ;;  %v13662_v45 = vpop.f32.mrf.mxu0 }
 0xdd6   : > { %v13591_v13 = vpop.f32.mrf.mxu1 }
 0xdd7   : > { %13876 = vst [vmem:[#allocation8 + $0x168] sm:$0xff] %v13835_v50  ;;  %v13838_v63 = vmax.f32 %v13588_v41, %v13798_v33  ;;  %v13799_v12 = vmul.f32 0.2, %v13590_v9  ;;  %v13592_v16 = vadd.f32 %v13591_v13, %v13509_v48 }
 0xdd8   : > { %v13593_v20 = vpop.f32.mrf.mxu1 }
 0xdd9   : > { %13879 = vst [vmem:[#allocation8 + $0x180] sm:$0xff] %v13838_v63  ;;  %v13839_v22 = vmax.f32 %v13590_v9, %v13799_v12  ;;  %v13802_v35 = vmul.f32 0.2, %v13592_v16  ;;  %v13594_v19 = vadd.f32 %v13593_v20, %v13511_v57  ;;  %v13664_v9 = vpop.f32.mrf.mxu0  ;;  %v22412_v57 = vrot.slane %v22359_v4, %v21562_v6 }
 0xdda   : > { %v13597_v46 = vpop.f32.mrf.mxu1  ;;  %v22416_v63 = vrot.slane %v22359_v4, %v21559_v10 }
 0xddb   : > { %13880 = vst [vmem:[#allocation8 + $0x188] sm:$0xff] %v13839_v22  ;;  %v13842_v59 = vmax.f32 %v13592_v16, %v13802_v35  ;;  %v13803_v51 = vmul.f32 0.2, %v13594_v19  ;;  %v13598_v56 = vadd.f32 %v13597_v46, %v13515_v27  ;;  %v13666_v13 = vpop.f32.mrf.mxu0  ;;  %v13651_v16 = vadd.f32 %v22394_v42, %v22412_v57 }
 0xddc   : > { %v13599_v11 = vpop.f32.mrf.mxu1  ;;  %v13653_v27 = vadd.f32 %v13652_v26, %v22416_v63  ;;  %v13655_v46 = vadd.f32 %v13654_v8, %v22412_v57  ;;  %v13661_v42 = vadd.f32 %v13660_v0, %v22412_v57 }
 0xddd   : > { %13883 = vst [vmem:[#allocation8 + $0x1a0] sm:$0xff] %v13842_v59  ;;  %v13843_v21 = vmax.f32 %v13594_v19, %v13803_v51  ;;  %v13806_v23 = vmul.f32 0.2, %v13598_v56  ;;  %v13600_v17 = vadd.f32 %v13599_v11, %v13517_v58  ;;  %v13670_v49 = vpop.f32.mrf.mxu0  ;;  %v13657_v51 = vadd.f32 %v13656_v14, %v22416_v63 }
 0xdde   : > { %v13601_v25 = vpop.f32.mrf.mxu1 }
 0xddf   : > { %13884 = vst [vmem:[#allocation8 + $0x1a8] sm:$0xff] %v13843_v21  ;;  %v13846_v62 = vmax.f32 %v13598_v56, %v13806_v23  ;;  %v13807_v24 = vmul.f32 0.2, %v13600_v17  ;;  %v13602_v44 = vadd.f32 %v13601_v25, %v13519_v53  ;;  %v13672_v38 = vpop.f32.mrf.mxu0  ;;  %v13663_v25 = vadd.f32 %v13662_v45, %v22416_v63 }
 0xde0   : > { %v13603_v40 = vpop.f32.mrf.mxu1 }
 0xde1   : > { %13887 = vst [vmem:[#allocation8 + $0x1c0] sm:$0xff] %v13846_v62  ;;  %v13847_v52 = vmax.f32 %v13600_v17, %v13807_v24  ;;  %v13810_v3 = vmul.f32 0.2, %v13602_v44  ;;  %v13604_v5 = vadd.f32 %v13603_v40, %v13521_v1  ;;  %v13674_v12 = vpop.f32.mrf.mxu0  ;;  %v13665_v40 = vadd.f32 %v13664_v9, %v22412_v57 }
 0xde2   : > { %v13607_v47 = vpop.f32.mrf.mxu1 }
 0xde3   : > { %13888 = vst [vmem:[#allocation8 + $0x1c8] sm:$0xff] %v13847_v52  ;;  %v13850_v30 = vmax.f32 %v13602_v44, %v13810_v3  ;;  %v13811_v18 = vmul.f32 0.2, %v13604_v5  ;;  %v13608_v29 = vadd.f32 %v13607_v47, %v13525_v15  ;;  %v13676_v35 = vpop.f32.mrf.mxu0  ;;  %v13667_v47 = vadd.f32 %v13666_v13, %v22416_v63 }
 0xde4   : > { %v13609_v28 = vpop.f32.mrf.mxu1 }
 0xde5   : > { %13891 = vst [vmem:[#allocation8 + $0x1e0] sm:$0xff] %v13850_v30  ;;  %v13851_v2 = vmax.f32 %v13604_v5, %v13811_v18  ;;  %v13814_v7 = vmul.f32 0.2, %v13608_v29  ;;  %v13610_v32 = vadd.f32 %v13609_v28, %v13527_v55  ;;  %v13680_v11 = vpop.f32.mrf.mxu0  ;;  %v13671_v28 = vadd.f32 %v13670_v49, %v22412_v57 }
 0xde6   : > { %v13611_v31 = vpop.f32.mrf.mxu1 }
 0xde7   : > { %13892 = vst [vmem:[#allocation8 + $0x1e8] sm:$0xff] %v13851_v2  ;;  %v13854_v37 = vmax.f32 %v13608_v29, %v13814_v7  ;;  %v13815_v43 = vmul.f32 0.2, %v13610_v32  ;;  %v13612_v54 = vadd.f32 %v13611_v31, %v13529_v34  ;;  %v13682_v44 = vpop.f32.mrf.mxu0  ;;  %v13673_v31 = vadd.f32 %v13672_v38, %v22416_v63 }
 0xde8   : > { %v13613_v61 = vpop.f32.mrf.mxu1  ;;  %v13681_v38 = vadd.f32 %v13680_v11, %v22412_v57 }
 0xde9   : > { %13895 = vst [vmem:[#allocation8 + $0x200] sm:$0xff] %v13854_v37  ;;  %v13855_v41 = vmax.f32 %v13610_v32, %v13815_v43  ;;  %v13818_v36 = vmul.f32 0.2, %v13612_v54  ;;  %v13614_v48 = vadd.f32 %v13613_v61, %v13531_v60  ;;  %v13684_v29 = vpop.f32.mrf.mxu0  ;;  %v13675_v61 = vadd.f32 %v13674_v12, %v22412_v57 }
 0xdeb   : > { %13896 = vst [vmem:[#allocation8 + $0x208] sm:$0xff] %v13855_v41  ;;  %v13858_v50 = vmax.f32 %v13612_v54, %v13818_v36  ;;  %v13819_v39 = vmul.f32 0.2, %v13614_v48  ;;  %v13686_v54 = vpop.f32.mrf.mxu0 }
 0xdec   : > { %v13687_v11 = vadd.f32 %v13686_v54, %v22416_v63 }
 0xded   : > { %13899 = vst [vmem:[#allocation8 + $0x220] sm:$0xff] %v13858_v50  ;;  %v13859_v33 = vmax.f32 %v13614_v48, %v13819_v39  ;;  %v13677_v39 = vadd.f32 %v13676_v35, %v22416_v63  ;;  %v13690_v13 = vpop.f32.mrf.mxu0 }
 0xdef   : > { %13900 = vst [vmem:[#allocation8 + $0x228] sm:$0xff] %v13859_v33  ;;  %v13692_v35 = vpop.f32.mrf.mxu0 }
 0xe02   : > { %v13733_v20 = vpop.f32.mrf.mxu1 }
 0xe03   : > { %v13734_v22 = vadd.f32 %v13733_v20, %v13651_v16 }
 0xe04   : > { %v13735_v19 = vpop.f32.mrf.mxu1 }
 0xe05   : > { %v13784_v58 = vmul.f32 0.2, %v13734_v22  ;;  %v13736_v59 = vadd.f32 %v13735_v19, %v13653_v27 }
 0xe06   : > { %v13737_v6 = vpop.f32.mrf.mxu1 }
 0xe07   : > { %v13824_v56 = vmax.f32 %v13734_v22, %v13784_v58  ;;  %v13785_v10 = vmul.f32 0.2, %v13736_v59  ;;  %v13738_v4 = vadd.f32 %v13737_v6, %v13655_v46  ;;  %v13683_v22 = vadd.f32 %v13682_v44, %v22416_v63 }
 0xe08   : > { %v13739_v53 = vpop.f32.mrf.mxu1  ;;  %v13685_v6 = vadd.f32 %v13684_v29, %v22412_v57  ;;  %v13693_v44 = vadd.f32 %v13692_v35, %v22416_v63 }
 0xe09   : > { %13865 = vst [vmem:[#allocation8 + $0x110] sm:$0xff] %v13824_v56  ;;  %v13825_v21 = vmax.f32 %v13736_v59, %v13785_v10  ;;  %v13788_v26 = vmul.f32 0.2, %v13738_v4  ;;  %v13740_v23 = vadd.f32 %v13739_v53, %v13657_v51 }
 0xe0a   : > { %v13743_v17 = vpop.f32.mrf.mxu1 }
 0xe0b   : > { %13866 = vst [vmem:[#allocation8 + $0x118] sm:$0xff] %v13825_v21  ;;  %v13828_v1 = vmax.f32 %v13738_v4, %v13788_v26  ;;  %v13789_v62 = vmul.f32 0.2, %v13740_v23  ;;  %v13744_v24 = vadd.f32 %v13743_v17, %v13661_v42  ;;  %v13694_v26 = vpop.f32.mrf.mxu0  ;;  %v13691_v17 = vadd.f32 %v13690_v13, %v22412_v57 }
 0xe0c   : > { %v13745_v8 = vpop.f32.mrf.mxu1 }
 0xe0d   : > { %13869 = vst [vmem:[#allocation8 + $0x130] sm:$0xff] %v13828_v1  ;;  %v13829_v15 = vmax.f32 %v13740_v23, %v13789_v62  ;;  %v13792_v52 = vmul.f32 0.2, %v13744_v24  ;;  %v13746_v3 = vadd.f32 %v13745_v8, %v13663_v25 }
 0xe0e   : > { %v13747_v5 = vpop.f32.mrf.mxu1 }
 0xe0f   : > { %13870 = vst [vmem:[#allocation8 + $0x138] sm:$0xff] %v13829_v15  ;;  %v13832_v55 = vmax.f32 %v13744_v24, %v13792_v52  ;;  %v13793_v30 = vmul.f32 0.2, %v13746_v3  ;;  %v13748_v18 = vadd.f32 %v13747_v5, %v13665_v40  ;;  %v13696_v52 = vpop.f32.mrf.mxu0  ;;  %v13695_v5 = vadd.f32 %v13694_v26, %v22412_v57 }
 0xe10   : > { %v13749_v14 = vpop.f32.mrf.mxu1  ;;  %v13697_v29 = vadd.f32 %v13696_v52, %v22416_v63 }
 0xe11   : > { %13873 = vst [vmem:[#allocation8 + $0x150] sm:$0xff] %v13832_v55  ;;  %v13833_v34 = vmax.f32 %v13746_v3, %v13793_v30  ;;  %v13796_v2 = vmul.f32 0.2, %v13748_v18  ;;  %v13750_v7 = vadd.f32 %v13749_v14, %v13667_v47 }
 0xe12   : > { %v13753_v32 = vpop.f32.mrf.mxu1 }
 0xe13   : > { %13874 = vst [vmem:[#allocation8 + $0x158] sm:$0xff] %v13833_v34  ;;  %v13836_v60 = vmax.f32 %v13748_v18, %v13796_v2  ;;  %v13797_v37 = vmul.f32 0.2, %v13750_v7  ;;  %v13754_v43 = vadd.f32 %v13753_v32, %v13671_v28 }
 0xe14   : > { %v13755_v0 = vpop.f32.mrf.mxu1 }
 0xe15   : > { %13877 = vst [vmem:[#allocation8 + $0x170] sm:$0xff] %v13836_v60  ;;  %v13837_v41 = vmax.f32 %v13750_v7, %v13797_v37  ;;  %v13800_v36 = vmul.f32 0.2, %v13754_v43  ;;  %v13756_v48 = vadd.f32 %v13755_v0, %v13673_v31 }
 0xe16   : > { %v13757_v50 = vpop.f32.mrf.mxu1 }
 0xe17   : > { %13878 = vst [vmem:[#allocation8 + $0x178] sm:$0xff] %v13837_v41  ;;  %v13840_v45 = vmax.f32 %v13754_v43, %v13800_v36  ;;  %v13801_v33 = vmul.f32 0.2, %v13756_v48  ;;  %v13758_v9 = vadd.f32 %v13757_v50, %v13675_v61 }
 0xe18   : > { %v13759_v49 = vpop.f32.mrf.mxu1 }
 0xe19   : > { %13881 = vst [vmem:[#allocation8 + $0x190] sm:$0xff] %v13840_v45  ;;  %v13841_v16 = vmax.f32 %v13756_v48, %v13801_v33  ;;  %v13804_v20 = vmul.f32 0.2, %v13758_v9  ;;  %v13760_v27 = vadd.f32 %v13759_v49, %v13677_v39 }
 0xe1a   : > { %v13763_v12 = vpop.f32.mrf.mxu1 }
 0xe1b   : > { %13882 = vst [vmem:[#allocation8 + $0x198] sm:$0xff] %v13841_v16  ;;  %v13844_v19 = vmax.f32 %v13758_v9, %v13804_v20  ;;  %v13805_v46 = vmul.f32 0.2, %v13760_v27  ;;  %v13764_v58 = vadd.f32 %v13763_v12, %v13681_v38 }
 0xe1c   : > { %v13765_v59 = vpop.f32.mrf.mxu1 }
 0xe1d   : > { %13885 = vst [vmem:[#allocation8 + $0x1b0] sm:$0xff] %v13844_v19  ;;  %v13845_v51 = vmax.f32 %v13760_v27, %v13805_v46  ;;  %v13808_v56 = vmul.f32 0.2, %v13764_v58  ;;  %v13766_v10 = vadd.f32 %v13765_v59, %v13683_v22 }
 0xe1e   : > { %v13767_v4 = vpop.f32.mrf.mxu1 }
 0xe1f   : > { %13886 = vst [vmem:[#allocation8 + $0x1b8] sm:$0xff] %v13845_v51  ;;  %v13848_v53 = vmax.f32 %v13764_v58, %v13808_v56  ;;  %v13809_v42 = vmul.f32 0.2, %v13766_v10  ;;  %v13768_v21 = vadd.f32 %v13767_v4, %v13685_v6 }
 0xe20   : > { %v13769_v23 = vpop.f32.mrf.mxu1 }
 0xe21   : > { %13889 = vst [vmem:[#allocation8 + $0x1d0] sm:$0xff] %v13848_v53  ;;  %v13849_v25 = vmax.f32 %v13766_v10, %v13809_v42  ;;  %v13812_v1 = vmul.f32 0.2, %v13768_v21  ;;  %v13770_v62 = vadd.f32 %v13769_v23, %v13687_v11 }
 0xe22   : > { %v13773_v24 = vpop.f32.mrf.mxu1 }
 0xe23   : > { %13890 = vst [vmem:[#allocation8 + $0x1d8] sm:$0xff] %v13849_v25  ;;  %v13852_v8 = vmax.f32 %v13768_v21, %v13812_v1  ;;  %v13813_v40 = vmul.f32 0.2, %v13770_v62  ;;  %v13774_v15 = vadd.f32 %v13773_v24, %v13691_v17 }
 0xe24   : > { %v13775_v3 = vpop.f32.mrf.mxu1 }
 0xe25   : > { %13893 = vst [vmem:[#allocation8 + $0x1f0] sm:$0xff] %v13852_v8  ;;  %v13853_v47 = vmax.f32 %v13770_v62, %v13813_v40  ;;  %v13816_v55 = vmul.f32 0.2, %v13774_v15  ;;  %v13776_v30 = vadd.f32 %v13775_v3, %v13693_v44 }
 0xe26   : > { %v13777_v18 = vpop.f32.mrf.mxu1 }
 0xe27   : > { %13894 = vst [vmem:[#allocation8 + $0x1f8] sm:$0xff] %v13853_v47  ;;  %v13856_v14 = vmax.f32 %v13774_v15, %v13816_v55  ;;  %v13817_v28 = vmul.f32 0.2, %v13776_v30  ;;  %v13778_v34 = vadd.f32 %v13777_v18, %v13695_v5 }
 0xe28   : > { %v13779_v2 = vpop.f32.mrf.mxu1 }
 0xe29   : > { %13897 = vst [vmem:[#allocation8 + $0x210] sm:$0xff] %v13856_v14  ;;  %v13857_v7 = vmax.f32 %v13776_v30, %v13817_v28  ;;  %v13820_v32 = vmul.f32 0.2, %v13778_v34  ;;  %v13780_v31 = vadd.f32 %v13779_v2, %v13697_v29 }
 0xe2b   : > { %13898 = vst [vmem:[#allocation8 + $0x218] sm:$0xff] %v13857_v7  ;;  %v13860_v60 = vmax.f32 %v13778_v34, %v13820_v32  ;;  %v13821_v37 = vmul.f32 0.2, %v13780_v31 }
 0xe2d   : > { %13901 = vst [vmem:[#allocation8 + $0x230] sm:$0xff] %v13860_v60  ;;  %v13861_v57 = vmax.f32 %v13780_v31, %v13821_v37 }
 0xe2f   : > { %13902 = vst [vmem:[#allocation8 + $0x238] sm:$0xff] %v13861_v57 }
 0xe30 PF: > { %p16760_p8 = scmp.eq.s32.totalorder %s19410_s22, 2  ;;  %s19323_s15 = smov [#allocation8]  }
 0xe31   : > { %s13912_s21 = sshll.u32 %s19323_s15, 4  ;;  %s13913_s21 = int_to_ptr.vmem [resolvable:$true] %s13912_s21 }
 0xe32   : > { %s19230_s23 = scalar_lea.vmem %s13913_s21, 9216  ;;  %p19237_p11 = scmp.lt.s32.totalorder %s13913_s21, %s13913_s21 }
 0xe33   : > { %p19231_p10 = scmp.ne.s32.totalorder %s13913_s21, %s19230_s23  ;;  %p19238_p12 = scmp.lt.s32.totalorder %s19230_s23, %s19230_s23 }
 0xe35   : > { %p19232_p4 = pnand %p19231_p10, %p16760_p8  ;;  %p19239_p13 = por %p19238_p12, %p19237_p11 }
 0xe37   : > { %p19233_p9 = pneg %p19232_p4 }
 0xe39   : > { %p19240_p7 = pnand %p19239_p13, %p19233_p9 }
 0xe3b   : > { %19243 = shalt.err (!%p19240_p7)
}
 0xe3c   : > { %s19324_s25 = smov 512   ;;  %s19325_s5 = smov 32  }
 0xe3d   : > { %16743 = dma.vmem_to_hbm [thread:$0]  (%p16760_p8), %s13913_s21, 9216, %s22472_s3, [#allocation4], %s19324_s25, %s19324_s25, %s19325_s5  }
 0xe3e   : > { %19287 = dma.done.wait (%p16760_p8), [#allocation4], 9216  }
 0xe3f   : > { %19289 = vsyncadd (%p16760_p8), [#allocation4], 4294958080 }
 0xe40 PF: > { %s18_s17 = sadd.s32 1, %s19312_s17   ;;  %s22482_s12 = smov %s19296_s13 }
 0xe41   : > { %p15_p0 = scmp.ge.s32.totalorder %s18_s17, 5   ;;  %s22483_s13 = smov %s19300_s14 }
 0xe42   : > { %s22484_s14 = smov %s19390_s24  ;;  %s22485_s15 = smov %s19308_s16 }
 0xe43   : > { %s22486_s16 = smov %s22488_s18  ;;  %17 = sbr.rel (!%p15_p0) target bundleno = 6 (0x6), region = 121 }
 0xe48   :  { %13928 = vsyncpa [#allocation3], 1 }
 0xe49   :  { %13930 = vsyncpa [#allocation3 + $0x1], 1 }
 0xe4a   :  { %13931 = vsyncpa [#allocation6], 1 }
 0xe4b   :  { %13933 = vsyncpa [#allocation6 + $0x1], 1 }
 0xe4c   :  { %13934 = vsyncpa [#allocation4], 1 }
 0xe4d   :  { %13936 = vsyncpa [#allocation4 + $0x1], 1 }

</bundles_post_ra>
